<compile_context>
chip_gen: v5e
topology: v5e:2x2
jax: 0.10.0
libtpu: 0.0.40
codegen_flags: <defaults>
</compile_context>

<pallas_src>
import functools

import jax
import jax.numpy as jnp
from jax import lax
from jax.experimental import pallas as pl
from jax.experimental.pallas import tpu as pltpu


# -----------------------------------------------------------------------------
# One-time capability / hardware probes
# -----------------------------------------------------------------------------
@functools.lru_cache(maxsize=None)
def _single_buffer_supported():
    """One-time probe: does this Pallas accept pl.Buffered(1) single-buffering
    of constant-index input blocks?  The try/except only wraps this tiny probe
    compile — errors from the real kernel are never masked."""
    if not hasattr(pl, "Buffered"):
        return False
    try:
        def probe_kernel(w_ref, o_ref):
            o_ref[...] = w_ref[...] + 1.0

        probe = pl.pallas_call(
            probe_kernel,
            out_shape=jax.ShapeDtypeStruct((16, 128), jnp.float32),
            grid=(2,),
            in_specs=[pl.BlockSpec((8, 128), lambda i: (0, 0),
                                   pipeline_mode=pl.Buffered(1))],
            out_specs=pl.BlockSpec((8, 128), lambda i: (i, 0)),
        )
        jax.jit(probe).lower(jnp.zeros((8, 128), jnp.float32)).compile()
        return True
    except Exception:
        return False


def _vmem_limit_bytes():
    # ~96 MiB on 128-MiB-VMEM parts (v5e / v6e), ~48 MiB on v7x (64 MiB VMEM).
    try:
        cap = getattr(pltpu.get_tpu_info(), "vmem_capacity_bytes", None)
    except Exception:
        cap = None
    if not cap:
        cap = 64 * 1024 * 1024
    return int(min(96 * 1024 * 1024, max(32 * 1024 * 1024, (cap * 3) // 4)))


# -----------------------------------------------------------------------------
# Kernel
# -----------------------------------------------------------------------------
def encoder_layer_kernel(
    xt_ref, xf_ref, zf_ref,
    wq_ref, wk_ref, wv_ref, bq_ref, bk_ref, bv_ref,
    wo_ref, bo_ref,
    w1_ref, b1_ref, w2_ref, b2_ref,
    g1_ref, be1_ref, g2_ref, be2_ref,
    out_ref, attn_ref,
    k_sc, v_sc,
    *, n_heads,
):
    H = n_heads
    TL, D = out_ref.shape[1], out_ref.shape[2]
    dh = D // H
    f32, bf16 = jnp.float32, jnp.bfloat16
    scale = f32(1.0 / float(dh) ** 0.5)

    # ---- K/V projections: dense (L,D)@(D,D), computed once per batch --------
    # (the query-tile grid axis is "arbitrary"/sequential so the scratch
    #  persists and is reused by every later query tile of this batch element)
    @pl.when(pl.program_id(1) == 0)
    def _():
        k_sc[...] = (jnp.dot(zf_ref[0], wk_ref[...], preferred_element_type=f32)
                     + bk_ref[...]).astype(bf16)
        v_sc[...] = (jnp.dot(xf_ref[0], wv_ref[...], preferred_element_type=f32)
                     + bv_ref[...]).astype(bf16)

    # ---- Q projection for this query tile: dense (TL,D)@(D,D) ---------------
    x_tile = xt_ref[0]                                                # (TL, D) f32
    q2 = (jnp.dot(x_tile.astype(bf16), wq_ref[...],
                  preferred_element_type=f32) + bq_ref[...]) * scale   # (TL, D)

    k_all = k_sc[...]                                                 # (L, D) bf16
    v_all = v_sc[...]                                                 # (L, D) bf16

    # ---- per-head attention (score last dim = L -> lane-dense stores) -------
    ctx_parts = []
    for h in range(H):
        lo = h * dh
        qh = q2[:, lo:lo + dh].astype(bf16)                           # (TL, dh)
        kh = k_all[:, lo:lo + dh]                                     # (L, dh)
        vh = v_all[:, lo:lo + dh]                                     # (L, dh)
        s = lax.dot_general(qh, kh, (((1,), (1,)), ((), ())),
                            preferred_element_type=f32)               # (TL, L)
        s = s - jnp.max(s, axis=-1, keepdims=True)
        e = jnp.exp(s)
        p = e * pl.reciprocal(jnp.sum(e, axis=-1, keepdims=True), approx=True)
        attn_ref[0, h] = p.astype(attn_ref.dtype)                     # bf16 writeback
        ctx_parts.append(
            jnp.dot(p.astype(bf16), vh, preferred_element_type=f32).astype(bf16))

    # ---- dense output projection: (TL,D)@(D,D) ------------------------------
    ctx = jnp.concatenate(ctx_parts, axis=-1)                         # (TL, D) bf16
    new_x = jnp.dot(ctx, wo_ref[...], preferred_element_type=f32) + bo_ref[...]

    # ---- LayerNorm (centered two-pass, f32) ----------------------------------
    def layernorm(v, g, b):
        inv_d = f32(1.0 / D)
        mu = jnp.sum(v, axis=-1, keepdims=True) * inv_d
        c = v - mu
        var = jnp.sum(c * c, axis=-1, keepdims=True) * inv_d
        return c * lax.rsqrt(var + f32(1e-5)) * g + b

    # ---- residual + norm1 -----------------------------------------------------
    xn = layernorm(x_tile + new_x, g1_ref[...], be1_ref[...])         # (TL, D)

    # ---- position-wise FFN: conv1(k=1) -> relu -> conv2(k=1) -----------------
    y = jnp.dot(xn.astype(bf16), w1_ref[...], preferred_element_type=f32) + b1_ref[...]
    y = jnp.maximum(y, 0.0)
    y = jnp.dot(y.astype(bf16), w2_ref[...], preferred_element_type=f32) + b2_ref[...]

    # ---- residual + norm2 ------------------------------------------------------
    out_ref[0] = layernorm(xn + y, g2_ref[...], be2_ref[...]).astype(out_ref.dtype)


# -----------------------------------------------------------------------------
# Wrapper
# -----------------------------------------------------------------------------
def encoder_layer(x, z, params, n_heads, block_l=128):
    """x, z: (B, L, D) float32.  Returns (out (B,L,D) f32, attn (B,H,L,L) bf16)."""
    B, L, D = x.shape
    H = n_heads
    assert D % H == 0, "d_model must be divisible by n_heads"
    TL = min(block_l, L)
    assert L % TL == 0 and TL % 8 == 0

    f32, bf16 = jnp.float32, jnp.bfloat16

    # Weights: bf16 MXU operands (cast once here); biases / LN params stay f32.
    weights = [
        params["wq"].astype(bf16), params["wk"].astype(bf16), params["wv"].astype(bf16),
        params["bq"].astype(f32), params["bk"].astype(f32), params["bv"].astype(f32),
        params["wo"].astype(bf16), params["bo"].astype(f32),
        params["w1"].astype(bf16), params["b1"].astype(f32),
        params["w2"].astype(bf16), params["b2"].astype(f32),
        params["g1"].astype(f32), params["be1"].astype(f32),
        params["g2"].astype(f32), params["be2"].astype(f32),
    ]

    single_buffer = _single_buffer_supported()

    def const_spec(arr):
        nd = arr.ndim
        # Block index never changes across the grid -> fetched once; one VMEM
        # buffer instead of two when Buffered(1) is available.
        kw = {"pipeline_mode": pl.Buffered(1)} if single_buffer else {}
        return pl.BlockSpec(arr.shape, lambda b, q, _nd=nd: (0,) * _nd, **kw)

    grid_spec = pltpu.PrefetchScalarGridSpec(
        num_scalar_prefetch=0,
        grid=(B, L // TL),
        in_specs=[
            # f32 query/residual tile: small, DMA'd per step.
            pl.BlockSpec((1, TL, D), lambda b, q: (b, q, 0)),
            # bf16 full-sequence x (values) and z (keys): block index changes
            # only with b, so each is DMA'd once per batch element.
            pl.BlockSpec((1, L, D), lambda b, q: (b, 0, 0)),
            pl.BlockSpec((1, L, D), lambda b, q: (b, 0, 0)),
        ] + [const_spec(w) for w in weights],
        out_specs=[
            pl.BlockSpec((1, TL, D), lambda b, q: (b, q, 0)),
            pl.BlockSpec((1, H, TL, L), lambda b, q: (b, 0, q, 0)),   # lane-dense last dim
        ],
        scratch_shapes=[
            pltpu.VMEM((L, D), bf16),   # K = z @ Wk   (persists across query tiles)
            pltpu.VMEM((L, D), bf16),   # V = x @ Wv
        ],
    )
    # TODO(synk): for very large L on v7x (64 MiB VMEM), add a kv grid axis with
    #             flash-style online softmax; not needed at these shapes and the
    #             full (H,L,L) attn matrix is a required module output anyway.

    fn = pl.pallas_call(
        functools.partial(encoder_layer_kernel, n_heads=n_heads),
        out_shape=(
            jax.ShapeDtypeStruct((B, L, D), f32),
            jax.ShapeDtypeStruct((B, H, L, L), bf16),   # bf16 halves attn writeback
        ),
        grid_spec=grid_spec,
        compiler_params=pltpu.CompilerParams(
            # Query-tile axis must run sequentially ("arbitrary") so the K/V
            # scratch computed at q==0 is valid for later tiles of the batch.
            dimension_semantics=("parallel", "arbitrary"),
            vmem_limit_bytes=_vmem_limit_bytes(),
        ),
    )
    return fn(x, x.astype(bf16), z.astype(bf16), *weights)


# -------------------------- pure-JAX f32 reference ----------------------------
def _layernorm(v, g, b, eps=1e-5):
    mu = jnp.mean(v, axis=-1, keepdims=True)
    var = jnp.mean((v - mu) ** 2, axis=-1, keepdims=True)
    return (v - mu) * lax.rsqrt(var + eps) * g + b


def ref_forward(x, z, p, n_heads):
    B, L, D = x.shape
    dh = D // n_heads
    q = x @ p["wq"] + p["bq"][0]
    k = z @ p["wk"] + p["bk"][0]
    v = x @ p["wv"] + p["bv"][0]
    qh = q.reshape(B, L, n_heads, dh).transpose(0, 2, 1, 3)
    kh = k.reshape(B, L, n_heads, dh).transpose(0, 2, 1, 3)
    vh = v.reshape(B, L, n_heads, dh).transpose(0, 2, 1, 3)
    s = jnp.einsum("bhld,bhmd->bhlm", qh, kh) / jnp.sqrt(jnp.float32(dh))
    a = jax.nn.softmax(s, axis=-1)
    ctx = jnp.einsum("bhlm,bhmd->bhld", a, vh).transpose(0, 2, 1, 3).reshape(B, L, D)
    new_x = ctx @ p["wo"] + p["bo"][0]
    xn = _layernorm(x + new_x, p["g1"][0], p["be1"][0])
    y = jnp.maximum(xn @ p["w1"] + p["b1"][0], 0.0)
    y = y @ p["w2"] + p["b2"][0]
    return _layernorm(xn + y, p["g2"][0], p["be2"][0]), a


# ------------------------------- driver ---------------------------------------
def init_params(key, d_model, d_ff):
    ks = jax.random.split(key, 8)
    s_in = 1.0 / jnp.sqrt(jnp.float32(d_model))
    s_ff = 1.0 / jnp.sqrt(jnp.float32(d_ff))
    return {
        "wq": jax.random.normal(ks[0], (d_model, d_model), jnp.float32) * s_in,
        "wk": jax.random.normal(ks[1], (d_model, d_model), jnp.float32) * s_in,
        "wv": jax.random.normal(ks[2], (d_model, d_model), jnp.float32) * s_in,
        "wo": jax.random.normal(ks[3], (d_model, d_model), jnp.float32) * s_in,
        # conv1: Conv1d(d_model -> d_ff, k=1) weight[:, :, 0].T == (d_model, d_ff)
        "w1": jax.random.normal(ks[4], (d_model, d_ff), jnp.float32) * s_in,
        # conv2: Conv1d(d_ff -> d_model, k=1) weight[:, :, 0].T == (d_ff, d_model)
        "w2": jax.random.normal(ks[5], (d_ff, d_model), jnp.float32) * s_ff,
        "bq": jax.random.normal(ks[6], (1, d_model), jnp.float32) * 0.02,
        "bk": jnp.zeros((1, d_model), jnp.float32),
        "bv": jnp.zeros((1, d_model), jnp.float32),
        "bo": jnp.zeros((1, d_model), jnp.float32),
        "b1": jax.random.normal(ks[7], (1, d_ff), jnp.float32) * 0.02,
        "b2": jnp.zeros((1, d_model), jnp.float32),
        "g1": jnp.ones((1, d_model), jnp.float32),
        "be1": jnp.zeros((1, d_model), jnp.float32),
        "g2": jnp.ones((1, d_model), jnp.float32),
        "be2": jnp.zeros((1, d_model), jnp.float32),
    }


if __name__ == "__main__":
    # L = 256 with TL = 128 -> two query tiles per batch element, so the
    # K/V-scratch reuse path (q > 0) is actually exercised.
    B, L, d_model, d_ff, n_heads = 2, 256, 128, 256, 4
    key = jax.random.PRNGKey(0)
    kx, kz, kp = jax.random.split(key, 3)
    x = jax.random.normal(kx, (B, L, d_model), jnp.float32)
    z = jax.random.normal(kz, (B, L, d_model), jnp.float32)
    params = init_params(kp, d_model, d_ff)

    out, attn = encoder_layer(x, z, params, n_heads, block_l=128)
    out = jax.block_until_ready(out)
    attn = jax.block_until_ready(attn)

    out_ref, attn_ref = ref_forward(x, z, params, n_heads)
    assert out.shape == (B, L, d_model) and attn.shape == (B, n_heads, L, L)
    # bf16 MXU operands / bf16 K,V scratch / bf16 attn output vs f32 reference
    # -> relaxed tolerances.
    attn_f32 = attn.astype(jnp.float32)
    assert jnp.allclose(out, out_ref, atol=4e-2, rtol=4e-2), \
        float(jnp.max(jnp.abs(out - out_ref)))
    assert jnp.allclose(attn_f32, attn_ref, atol=2e-2, rtol=2e-2), \
        float(jnp.max(jnp.abs(attn_f32 - attn_ref)))
    print("KERNEL_OK")
</pallas_src>

<mosaic_0001>
module attributes {stable_mosaic.version = 11 : i64} {
  func.func @encoder_layer_kernel(%arg0: i32, %arg1: i32, %arg2: memref<1x128x128xf32, #tpu.memory_space<vmem>>, %arg3: memref<1x256x128xbf16, #tpu.memory_space<vmem>>, %arg4: memref<1x256x128xbf16, #tpu.memory_space<vmem>>, %arg5: memref<128x128xbf16, #tpu.memory_space<vmem>>, %arg6: memref<128x128xbf16, #tpu.memory_space<vmem>>, %arg7: memref<128x128xbf16, #tpu.memory_space<vmem>>, %arg8: memref<1x128xf32, #tpu.memory_space<vmem>>, %arg9: memref<1x128xf32, #tpu.memory_space<vmem>>, %arg10: memref<1x128xf32, #tpu.memory_space<vmem>>, %arg11: memref<128x128xbf16, #tpu.memory_space<vmem>>, %arg12: memref<1x128xf32, #tpu.memory_space<vmem>>, %arg13: memref<128x256xbf16, #tpu.memory_space<vmem>>, %arg14: memref<1x256xf32, #tpu.memory_space<vmem>>, %arg15: memref<256x128xbf16, #tpu.memory_space<vmem>>, %arg16: memref<1x128xf32, #tpu.memory_space<vmem>>, %arg17: memref<1x128xf32, #tpu.memory_space<vmem>>, %arg18: memref<1x128xf32, #tpu.memory_space<vmem>>, %arg19: memref<1x128xf32, #tpu.memory_space<vmem>>, %arg20: memref<1x128xf32, #tpu.memory_space<vmem>>, %arg21: memref<1x128x128xf32, #tpu.memory_space<vmem>>, %arg22: memref<1x4x128x256xbf16, #tpu.memory_space<vmem>>, %arg23: memref<256x128xbf16, #tpu.memory_space<vmem>>, %arg24: memref<256x128xbf16, #tpu.memory_space<vmem>>) attributes {dimension_semantics = [#tpu.dimension_semantics<parallel>, #tpu.dimension_semantics<arbitrary>], iteration_bounds = array<i64: 2, 2>, scalar_prefetch = 0 : i64, scratch_operands = 2 : i64, tpu.core_type = #tpu.core_type<tc>, window_params = [{transform_indices = @transform_0, window_bounds = array<i64: 1, 128, 128>}, {transform_indices = @transform_1, window_bounds = array<i64: 1, 256, 128>}, {transform_indices = @transform_2, window_bounds = array<i64: 1, 256, 128>}, {pipeline_mode = #tpu.pipeline_mode<synchronous>, transform_indices = @transform_3, window_bounds = array<i64: 128, 128>}, {pipeline_mode = #tpu.pipeline_mode<synchronous>, transform_indices = @transform_4, window_bounds = array<i64: 128, 128>}, {pipeline_mode = #tpu.pipeline_mode<synchronous>, transform_indices = @transform_5, window_bounds = array<i64: 128, 128>}, {pipeline_mode = #tpu.pipeline_mode<synchronous>, transform_indices = @transform_6, window_bounds = array<i64: 1, 128>}, {pipeline_mode = #tpu.pipeline_mode<synchronous>, transform_indices = @transform_7, window_bounds = array<i64: 1, 128>}, {pipeline_mode = #tpu.pipeline_mode<synchronous>, transform_indices = @transform_8, window_bounds = array<i64: 1, 128>}, {pipeline_mode = #tpu.pipeline_mode<synchronous>, transform_indices = @transform_9, window_bounds = array<i64: 128, 128>}, {pipeline_mode = #tpu.pipeline_mode<synchronous>, transform_indices = @transform_10, window_bounds = array<i64: 1, 128>}, {pipeline_mode = #tpu.pipeline_mode<synchronous>, transform_indices = @transform_11, window_bounds = array<i64: 128, 256>}, {pipeline_mode = #tpu.pipeline_mode<synchronous>, transform_indices = @transform_12, window_bounds = array<i64: 1, 256>}, {pipeline_mode = #tpu.pipeline_mode<synchronous>, transform_indices = @transform_13, window_bounds = array<i64: 256, 128>}, {pipeline_mode = #tpu.pipeline_mode<synchronous>, transform_indices = @transform_14, window_bounds = array<i64: 1, 128>}, {pipeline_mode = #tpu.pipeline_mode<synchronous>, transform_indices = @transform_15, window_bounds = array<i64: 1, 128>}, {pipeline_mode = #tpu.pipeline_mode<synchronous>, transform_indices = @transform_16, window_bounds = array<i64: 1, 128>}, {pipeline_mode = #tpu.pipeline_mode<synchronous>, transform_indices = @transform_17, window_bounds = array<i64: 1, 128>}, {pipeline_mode = #tpu.pipeline_mode<synchronous>, transform_indices = @transform_18, window_bounds = array<i64: 1, 128>}, {transform_indices = @transform_19, window_bounds = array<i64: 1, 128, 128>}, {transform_indices = @transform_20, window_bounds = array<i64: 1, 4, 128, 256>}]} {
    %c0_i32 = arith.constant 0 : i32
    %0 = arith.cmpi eq, %arg1, %c0_i32 : i32
    %1 = arith.extui %0 : i1 to i32
    %c0_i32_0 = arith.constant 0 : i32
    %2 = arith.cmpi ne, %1, %c0_i32_0 : i32
    scf.if %2 {
      %c0_78 = arith.constant 0 : index
      %c0_79 = arith.constant 0 : index
      %c0_80 = arith.constant 0 : index
      %172 = vector.load %arg4[%c0_78, %c0_79, %c0_80] : memref<1x256x128xbf16, #tpu.memory_space<vmem>>, vector<1x256x128xbf16>
      %173 = vector.shape_cast %172 : vector<1x256x128xbf16> to vector<256x128xbf16>
      %c0_81 = arith.constant 0 : index
      %c0_82 = arith.constant 0 : index
      %174 = vector.load %arg6[%c0_81, %c0_82] : memref<128x128xbf16, #tpu.memory_space<vmem>>, vector<128x128xbf16>
      %cst_83 = arith.constant dense<0.000000e+00> : vector<256x128xf32>
      %175 = tpu.matmul %173, %174, %cst_83 {dimension_numbers = #tpu.dot_dimension_numbers<[1], [0], [0], [1], [0, 0, 1, 1], [], []>} : vector<256x128xbf16>, vector<128x128xbf16>, vector<256x128xf32> -> vector<256x128xf32>
      %c0_84 = arith.constant 0 : index
      %c0_85 = arith.constant 0 : index
      %176 = vector.load %arg9[%c0_84, %c0_85] : memref<1x128xf32, #tpu.memory_space<vmem>>, vector<1x128xf32>
      %177 = vector.broadcast %176 : vector<1x128xf32> to vector<256x128xf32>
      %178 = arith.addf %175, %177 : vector<256x128xf32>
      %179 = arith.truncf %178 : vector<256x128xf32> to vector<256x128xbf16>
      %c0_86 = arith.constant 0 : index
      %c0_87 = arith.constant 0 : index
      %180 = vector.load %arg23[%c0_86, %c0_87] : memref<256x128xbf16, #tpu.memory_space<vmem>>, vector<256x128xbf16>
      tpu.vector_store %arg23[%c0_86, %c0_87], %179 {strides = array<i32>} : memref<256x128xbf16, #tpu.memory_space<vmem>>, vector<256x128xbf16>,
      %c0_88 = arith.constant 0 : index
      %c0_89 = arith.constant 0 : index
      %c0_90 = arith.constant 0 : index
      %181 = vector.load %arg3[%c0_88, %c0_89, %c0_90] : memref<1x256x128xbf16, #tpu.memory_space<vmem>>, vector<1x256x128xbf16>
      %182 = vector.shape_cast %181 : vector<1x256x128xbf16> to vector<256x128xbf16>
      %c0_91 = arith.constant 0 : index
      %c0_92 = arith.constant 0 : index
      %183 = vector.load %arg7[%c0_91, %c0_92] : memref<128x128xbf16, #tpu.memory_space<vmem>>, vector<128x128xbf16>
      %cst_93 = arith.constant dense<0.000000e+00> : vector<256x128xf32>
      %184 = tpu.matmul %182, %183, %cst_93 {dimension_numbers = #tpu.dot_dimension_numbers<[1], [0], [0], [1], [0, 0, 1, 1], [], []>} : vector<256x128xbf16>, vector<128x128xbf16>, vector<256x128xf32> -> vector<256x128xf32>
      %c0_94 = arith.constant 0 : index
      %c0_95 = arith.constant 0 : index
      %185 = vector.load %arg10[%c0_94, %c0_95] : memref<1x128xf32, #tpu.memory_space<vmem>>, vector<1x128xf32>
      %186 = vector.broadcast %185 : vector<1x128xf32> to vector<256x128xf32>
      %187 = arith.addf %184, %186 : vector<256x128xf32>
      %188 = arith.truncf %187 : vector<256x128xf32> to vector<256x128xbf16>
      %c0_96 = arith.constant 0 : index
      %c0_97 = arith.constant 0 : index
      %189 = vector.load %arg24[%c0_96, %c0_97] : memref<256x128xbf16, #tpu.memory_space<vmem>>, vector<256x128xbf16>
      tpu.vector_store %arg24[%c0_96, %c0_97], %188 {strides = array<i32>} : memref<256x128xbf16, #tpu.memory_space<vmem>>, vector<256x128xbf16>,
    } else {
    }
    %c0 = arith.constant 0 : index
    %c0_1 = arith.constant 0 : index
    %c0_2 = arith.constant 0 : index
    %3 = vector.load %arg2[%c0, %c0_1, %c0_2] : memref<1x128x128xf32, #tpu.memory_space<vmem>>, vector<1x128x128xf32>
    %4 = vector.shape_cast %3 : vector<1x128x128xf32> to vector<128x128xf32>
    %5 = arith.truncf %4 : vector<128x128xf32> to vector<128x128xbf16>
    %c0_3 = arith.constant 0 : index
    %c0_4 = arith.constant 0 : index
    %6 = vector.load %arg5[%c0_3, %c0_4] : memref<128x128xbf16, #tpu.memory_space<vmem>>, vector<128x128xbf16>
    %cst = arith.constant dense<0.000000e+00> : vector<128x128xf32>
    %7 = tpu.matmul %5, %6, %cst {dimension_numbers = #tpu.dot_dimension_numbers<[1], [0], [0], [1], [0, 0, 1, 1], [], []>} : vector<128x128xbf16>, vector<128x128xbf16>, vector<128x128xf32> -> vector<128x128xf32>
    %c0_5 = arith.constant 0 : index
    %c0_6 = arith.constant 0 : index
    %8 = vector.load %arg8[%c0_5, %c0_6] : memref<1x128xf32, #tpu.memory_space<vmem>>, vector<1x128xf32>
    %9 = vector.broadcast %8 : vector<1x128xf32> to vector<128x128xf32>
    %10 = arith.addf %7, %9 : vector<128x128xf32>
    %cst_7 = arith.constant 0.176776692 : f32
    %11 = vector.broadcast %cst_7 : f32 to vector<128x128xf32>
    %12 = arith.mulf %10, %11 : vector<128x128xf32>
    %c0_8 = arith.constant 0 : index
    %c0_9 = arith.constant 0 : index
    %13 = vector.load %arg23[%c0_8, %c0_9] : memref<256x128xbf16, #tpu.memory_space<vmem>>, vector<256x128xbf16>
    %c0_10 = arith.constant 0 : index
    %c0_11 = arith.constant 0 : index
    %14 = vector.load %arg24[%c0_10, %c0_11] : memref<256x128xbf16, #tpu.memory_space<vmem>>, vector<256x128xbf16>
    %15 = vector.extract_strided_slice %12 {offsets = [0, 0], sizes = [128, 32], strides = [1, 1]} : vector<128x128xf32> to vector<128x32xf32>
    %16 = arith.truncf %15 : vector<128x32xf32> to vector<128x32xbf16>
    %17 = vector.extract_strided_slice %13 {offsets = [0, 0], sizes = [256, 32], strides = [1, 1]} : vector<256x128xbf16> to vector<256x32xbf16>
    %18 = vector.extract_strided_slice %14 {offsets = [0, 0], sizes = [256, 32], strides = [1, 1]} : vector<256x128xbf16> to vector<256x32xbf16>
    %cst_12 = arith.constant dense<0.000000e+00> : vector<128x256xf32>
    %19 = tpu.matmul %16, %17, %cst_12 {dimension_numbers = #tpu.dot_dimension_numbers<[1], [1], [0], [0], [0, 0, 1, 0], [], []>} : vector<128x32xbf16>, vector<256x32xbf16>, vector<128x256xf32> -> vector<128x256xf32>
    %cst_13 = arith.constant dense<0xFF800000> : vector<128xf32>
    %20 = vector.multi_reduction <maximumf>, %19, %cst_13 [1] : vector<128x256xf32> to vector<128xf32>
    %21 = vector.shape_cast %20 : vector<128xf32> to vector<128x1xf32>
    %22 = vector.broadcast %21 : vector<128x1xf32> to vector<128x256xf32>
    %23 = arith.subf %19, %22 : vector<128x256xf32>
    %24 = math.exp %23 : vector<128x256xf32>
    %cst_14 = arith.constant dense<0.000000e+00> : vector<128xf32>
    %25 = vector.multi_reduction <add>, %24, %cst_14 [1] : vector<128x256xf32> to vector<128xf32>
    %26 = vector.shape_cast %25 : vector<128xf32> to vector<128x1xf32>
    %27 = tpu.reciprocal %26 {approx = true} : vector<128x1xf32> -> vector<128x1xf32>
    %28 = vector.broadcast %27 : vector<128x1xf32> to vector<128x256xf32>
    %29 = arith.mulf %24, %28 : vector<128x256xf32>
    %30 = arith.truncf %29 : vector<128x256xf32> to vector<128x256xbf16>
    %c0_15 = arith.constant 0 : index
    %c0_16 = arith.constant 0 : index
    %c0_17 = arith.constant 0 : index
    %c0_18 = arith.constant 0 : index
    %31 = vector.load %arg22[%c0_15, %c0_16, %c0_17, %c0_18] : memref<1x4x128x256xbf16, #tpu.memory_space<vmem>>, vector<1x1x128x256xbf16>
    %32 = vector.shape_cast %31 : vector<1x1x128x256xbf16> to vector<128x256xbf16>
    %33 = vector.shape_cast %30 : vector<128x256xbf16> to vector<1x1x128x256xbf16>
    tpu.vector_store %arg22[%c0_15, %c0_16, %c0_17, %c0_18], %33 {strides = array<i32>} : memref<1x4x128x256xbf16, #tpu.memory_space<vmem>>, vector<1x1x128x256xbf16>,
    %34 = arith.truncf %29 : vector<128x256xf32> to vector<128x256xbf16>
    %cst_19 = arith.constant dense<0.000000e+00> : vector<128x32xf32>
    %35 = tpu.matmul %34, %18, %cst_19 {dimension_numbers = #tpu.dot_dimension_numbers<[1], [0], [0], [1], [0, 0, 1, 1], [], []>} : vector<128x256xbf16>, vector<256x32xbf16>, vector<128x32xf32> -> vector<128x32xf32>
    %36 = arith.truncf %35 : vector<128x32xf32> to vector<128x32xbf16>
    %37 = vector.extract_strided_slice %12 {offsets = [0, 32], sizes = [128, 32], strides = [1, 1]} : vector<128x128xf32> to vector<128x32xf32>
    %38 = arith.truncf %37 : vector<128x32xf32> to vector<128x32xbf16>
    %39 = vector.extract_strided_slice %13 {offsets = [0, 32], sizes = [256, 32], strides = [1, 1]} : vector<256x128xbf16> to vector<256x32xbf16>
    %40 = vector.extract_strided_slice %14 {offsets = [0, 32], sizes = [256, 32], strides = [1, 1]} : vector<256x128xbf16> to vector<256x32xbf16>
    %cst_20 = arith.constant dense<0.000000e+00> : vector<128x256xf32>
    %41 = tpu.matmul %38, %39, %cst_20 {dimension_numbers = #tpu.dot_dimension_numbers<[1], [1], [0], [0], [0, 0, 1, 0], [], []>} : vector<128x32xbf16>, vector<256x32xbf16>, vector<128x256xf32> -> vector<128x256xf32>
    %cst_21 = arith.constant dense<0xFF800000> : vector<128xf32>
    %42 = vector.multi_reduction <maximumf>, %41, %cst_21 [1] : vector<128x256xf32> to vector<128xf32>
    %43 = vector.shape_cast %42 : vector<128xf32> to vector<128x1xf32>
    %44 = vector.broadcast %43 : vector<128x1xf32> to vector<128x256xf32>
    %45 = arith.subf %41, %44 : vector<128x256xf32>
    %46 = math.exp %45 : vector<128x256xf32>
    %cst_22 = arith.constant dense<0.000000e+00> : vector<128xf32>
    %47 = vector.multi_reduction <add>, %46, %cst_22 [1] : vector<128x256xf32> to vector<128xf32>
    %48 = vector.shape_cast %47 : vector<128xf32> to vector<128x1xf32>
    %49 = tpu.reciprocal %48 {approx = true} : vector<128x1xf32> -> vector<128x1xf32>
    %50 = vector.broadcast %49 : vector<128x1xf32> to vector<128x256xf32>
    %51 = arith.mulf %46, %50 : vector<128x256xf32>
    %52 = arith.truncf %51 : vector<128x256xf32> to vector<128x256xbf16>
    %c0_23 = arith.constant 0 : index
    %c1 = arith.constant 1 : index
    %c0_24 = arith.constant 0 : index
    %c0_25 = arith.constant 0 : index
    %53 = vector.load %arg22[%c0_23, %c1, %c0_24, %c0_25] : memref<1x4x128x256xbf16, #tpu.memory_space<vmem>>, vector<1x1x128x256xbf16>
    %54 = vector.shape_cast %53 : vector<1x1x128x256xbf16> to vector<128x256xbf16>
    %55 = vector.shape_cast %52 : vector<128x256xbf16> to vector<1x1x128x256xbf16>
    tpu.vector_store %arg22[%c0_23, %c1, %c0_24, %c0_25], %55 {strides = array<i32>} : memref<1x4x128x256xbf16, #tpu.memory_space<vmem>>, vector<1x1x128x256xbf16>,
    %56 = arith.truncf %51 : vector<128x256xf32> to vector<128x256xbf16>
    %cst_26 = arith.constant dense<0.000000e+00> : vector<128x32xf32>
    %57 = tpu.matmul %56, %40, %cst_26 {dimension_numbers = #tpu.dot_dimension_numbers<[1], [0], [0], [1], [0, 0, 1, 1], [], []>} : vector<128x256xbf16>, vector<256x32xbf16>, vector<128x32xf32> -> vector<128x32xf32>
    %58 = arith.truncf %57 : vector<128x32xf32> to vector<128x32xbf16>
    %59 = vector.extract_strided_slice %12 {offsets = [0, 64], sizes = [128, 32], strides = [1, 1]} : vector<128x128xf32> to vector<128x32xf32>
    %60 = arith.truncf %59 : vector<128x32xf32> to vector<128x32xbf16>
    %61 = vector.extract_strided_slice %13 {offsets = [0, 64], sizes = [256, 32], strides = [1, 1]} : vector<256x128xbf16> to vector<256x32xbf16>
    %62 = vector.extract_strided_slice %14 {offsets = [0, 64], sizes = [256, 32], strides = [1, 1]} : vector<256x128xbf16> to vector<256x32xbf16>
    %cst_27 = arith.constant dense<0.000000e+00> : vector<128x256xf32>
    %63 = tpu.matmul %60, %61, %cst_27 {dimension_numbers = #tpu.dot_dimension_numbers<[1], [1], [0], [0], [0, 0, 1, 0], [], []>} : vector<128x32xbf16>, vector<256x32xbf16>, vector<128x256xf32> -> vector<128x256xf32>
    %cst_28 = arith.constant dense<0xFF800000> : vector<128xf32>
    %64 = vector.multi_reduction <maximumf>, %63, %cst_28 [1] : vector<128x256xf32> to vector<128xf32>
    %65 = vector.shape_cast %64 : vector<128xf32> to vector<128x1xf32>
    %66 = vector.broadcast %65 : vector<128x1xf32> to vector<128x256xf32>
    %67 = arith.subf %63, %66 : vector<128x256xf32>
    %68 = math.exp %67 : vector<128x256xf32>
    %cst_29 = arith.constant dense<0.000000e+00> : vector<128xf32>
    %69 = vector.multi_reduction <add>, %68, %cst_29 [1] : vector<128x256xf32> to vector<128xf32>
    %70 = vector.shape_cast %69 : vector<128xf32> to vector<128x1xf32>
    %71 = tpu.reciprocal %70 {approx = true} : vector<128x1xf32> -> vector<128x1xf32>
    %72 = vector.broadcast %71 : vector<128x1xf32> to vector<128x256xf32>
    %73 = arith.mulf %68, %72 : vector<128x256xf32>
    %74 = arith.truncf %73 : vector<128x256xf32> to vector<128x256xbf16>
    %c0_30 = arith.constant 0 : index
    %c2 = arith.constant 2 : index
    %c0_31 = arith.constant 0 : index
    %c0_32 = arith.constant 0 : index
    %75 = vector.load %arg22[%c0_30, %c2, %c0_31, %c0_32] : memref<1x4x128x256xbf16, #tpu.memory_space<vmem>>, vector<1x1x128x256xbf16>
    %76 = vector.shape_cast %75 : vector<1x1x128x256xbf16> to vector<128x256xbf16>
    %77 = vector.shape_cast %74 : vector<128x256xbf16> to vector<1x1x128x256xbf16>
    tpu.vector_store %arg22[%c0_30, %c2, %c0_31, %c0_32], %77 {strides = array<i32>} : memref<1x4x128x256xbf16, #tpu.memory_space<vmem>>, vector<1x1x128x256xbf16>,
    %78 = arith.truncf %73 : vector<128x256xf32> to vector<128x256xbf16>
    %cst_33 = arith.constant dense<0.000000e+00> : vector<128x32xf32>
    %79 = tpu.matmul %78, %62, %cst_33 {dimension_numbers = #tpu.dot_dimension_numbers<[1], [0], [0], [1], [0, 0, 1, 1], [], []>} : vector<128x256xbf16>, vector<256x32xbf16>, vector<128x32xf32> -> vector<128x32xf32>
    %80 = arith.truncf %79 : vector<128x32xf32> to vector<128x32xbf16>
    %81 = vector.extract_strided_slice %12 {offsets = [0, 96], sizes = [128, 32], strides = [1, 1]} : vector<128x128xf32> to vector<128x32xf32>
    %82 = arith.truncf %81 : vector<128x32xf32> to vector<128x32xbf16>
    %83 = vector.extract_strided_slice %13 {offsets = [0, 96], sizes = [256, 32], strides = [1, 1]} : vector<256x128xbf16> to vector<256x32xbf16>
    %84 = vector.extract_strided_slice %14 {offsets = [0, 96], sizes = [256, 32], strides = [1, 1]} : vector<256x128xbf16> to vector<256x32xbf16>
    %cst_34 = arith.constant dense<0.000000e+00> : vector<128x256xf32>
    %85 = tpu.matmul %82, %83, %cst_34 {dimension_numbers = #tpu.dot_dimension_numbers<[1], [1], [0], [0], [0, 0, 1, 0], [], []>} : vector<128x32xbf16>, vector<256x32xbf16>, vector<128x256xf32> -> vector<128x256xf32>
    %cst_35 = arith.constant dense<0xFF800000> : vector<128xf32>
    %86 = vector.multi_reduction <maximumf>, %85, %cst_35 [1] : vector<128x256xf32> to vector<128xf32>
    %87 = vector.shape_cast %86 : vector<128xf32> to vector<128x1xf32>
    %88 = vector.broadcast %87 : vector<128x1xf32> to vector<128x256xf32>
    %89 = arith.subf %85, %88 : vector<128x256xf32>
    %90 = math.exp %89 : vector<128x256xf32>
    %cst_36 = arith.constant dense<0.000000e+00> : vector<128xf32>
    %91 = vector.multi_reduction <add>, %90, %cst_36 [1] : vector<128x256xf32> to vector<128xf32>
    %92 = vector.shape_cast %91 : vector<128xf32> to vector<128x1xf32>
    %93 = tpu.reciprocal %92 {approx = true} : vector<128x1xf32> -> vector<128x1xf32>
    %94 = vector.broadcast %93 : vector<128x1xf32> to vector<128x256xf32>
    %95 = arith.mulf %90, %94 : vector<128x256xf32>
    %96 = arith.truncf %95 : vector<128x256xf32> to vector<128x256xbf16>
    %c0_37 = arith.constant 0 : index
    %c3 = arith.constant 3 : index
    %c0_38 = arith.constant 0 : index
    %c0_39 = arith.constant 0 : index
    %97 = vector.load %arg22[%c0_37, %c3, %c0_38, %c0_39] : memref<1x4x128x256xbf16, #tpu.memory_space<vmem>>, vector<1x1x128x256xbf16>
    %98 = vector.shape_cast %97 : vector<1x1x128x256xbf16> to vector<128x256xbf16>
    %99 = vector.shape_cast %96 : vector<128x256xbf16> to vector<1x1x128x256xbf16>
    tpu.vector_store %arg22[%c0_37, %c3, %c0_38, %c0_39], %99 {strides = array<i32>} : memref<1x4x128x256xbf16, #tpu.memory_space<vmem>>, vector<1x1x128x256xbf16>,
    %100 = arith.truncf %95 : vector<128x256xf32> to vector<128x256xbf16>
    %cst_40 = arith.constant dense<0.000000e+00> : vector<128x32xf32>
    %101 = tpu.matmul %100, %84, %cst_40 {dimension_numbers = #tpu.dot_dimension_numbers<[1], [0], [0], [1], [0, 0, 1, 1], [], []>} : vector<128x256xbf16>, vector<256x32xbf16>, vector<128x32xf32> -> vector<128x32xf32>
    %102 = arith.truncf %101 : vector<128x32xf32> to vector<128x32xbf16>
    %103 = tpu.concatenate %36, %58, %80, %102 in 1 : vector<128x32xbf16>, vector<128x32xbf16>, vector<128x32xbf16>, vector<128x32xbf16> -> vector<128x128xbf16>
    %c0_41 = arith.constant 0 : index
    %c0_42 = arith.constant 0 : index
    %104 = vector.load %arg11[%c0_41, %c0_42] : memref<128x128xbf16, #tpu.memory_space<vmem>>, vector<128x128xbf16>
    %cst_43 = arith.constant dense<0.000000e+00> : vector<128x128xf32>
    %105 = tpu.matmul %103, %104, %cst_43 {dimension_numbers = #tpu.dot_dimension_numbers<[1], [0], [0], [1], [0, 0, 1, 1], [], []>} : vector<128x128xbf16>, vector<128x128xbf16>, vector<128x128xf32> -> vector<128x128xf32>
    %c0_44 = arith.constant 0 : index
    %c0_45 = arith.constant 0 : index
    %106 = vector.load %arg12[%c0_44, %c0_45] : memref<1x128xf32, #tpu.memory_space<vmem>>, vector<1x128xf32>
    %107 = vector.broadcast %106 : vector<1x128xf32> to vector<128x128xf32>
    %108 = arith.addf %105, %107 : vector<128x128xf32>
    %109 = arith.addf %4, %108 : vector<128x128xf32>
    %c0_46 = arith.constant 0 : index
    %c0_47 = arith.constant 0 : index
    %110 = vector.load %arg17[%c0_46, %c0_47] : memref<1x128xf32, #tpu.memory_space<vmem>>, vector<1x128xf32>
    %c0_48 = arith.constant 0 : index
    %c0_49 = arith.constant 0 : index
    %111 = vector.load %arg18[%c0_48, %c0_49] : memref<1x128xf32, #tpu.memory_space<vmem>>, vector<1x128xf32>
    %cst_50 = arith.constant dense<0.000000e+00> : vector<128xf32>
    %112 = vector.multi_reduction <add>, %109, %cst_50 [1] : vector<128x128xf32> to vector<128xf32>
    %113 = vector.shape_cast %112 : vector<128xf32> to vector<128x1xf32>
    %cst_51 = arith.constant 7.812500e-03 : f32
    %114 = vector.broadcast %cst_51 : f32 to vector<128x1xf32>
    %115 = arith.mulf %113, %114 : vector<128x1xf32>
    %116 = vector.broadcast %115 : vector<128x1xf32> to vector<128x128xf32>
    %117 = arith.subf %109, %116 : vector<128x128xf32>
    %118 = arith.mulf %117, %117 : vector<128x128xf32>
    %cst_52 = arith.constant dense<0.000000e+00> : vector<128xf32>
    %119 = vector.multi_reduction <add>, %118, %cst_52 [1] : vector<128x128xf32> to vector<128xf32>
    %120 = vector.shape_cast %119 : vector<128xf32> to vector<128x1xf32>
    %cst_53 = arith.constant 7.812500e-03 : f32
    %121 = vector.broadcast %cst_53 : f32 to vector<128x1xf32>
    %122 = arith.mulf %120, %121 : vector<128x1xf32>
    %cst_54 = arith.constant 9.99999974E-6 : f32
    %123 = vector.broadcast %cst_54 : f32 to vector<128x1xf32>
    %124 = arith.addf %122, %123 : vector<128x1xf32>
    %125 = math.rsqrt %124 : vector<128x1xf32>
    %126 = vector.broadcast %125 : vector<128x1xf32> to vector<128x128xf32>
    %127 = arith.mulf %117, %126 : vector<128x128xf32>
    %128 = vector.broadcast %110 : vector<1x128xf32> to vector<128x128xf32>
    %129 = arith.mulf %127, %128 : vector<128x128xf32>
    %130 = vector.broadcast %111 : vector<1x128xf32> to vector<128x128xf32>
    %131 = arith.addf %129, %130 : vector<128x128xf32>
    %132 = arith.truncf %131 : vector<128x128xf32> to vector<128x128xbf16>
    %c0_55 = arith.constant 0 : index
    %c0_56 = arith.constant 0 : index
    %133 = vector.load %arg13[%c0_55, %c0_56] : memref<128x256xbf16, #tpu.memory_space<vmem>>, vector<128x256xbf16>
    %cst_57 = arith.constant dense<0.000000e+00> : vector<128x256xf32>
    %134 = tpu.matmul %132, %133, %cst_57 {dimension_numbers = #tpu.dot_dimension_numbers<[1], [0], [0], [1], [0, 0, 1, 1], [], []>} : vector<128x128xbf16>, vector<128x256xbf16>, vector<128x256xf32> -> vector<128x256xf32>
    %c0_58 = arith.constant 0 : index
    %c0_59 = arith.constant 0 : index
    %135 = vector.load %arg14[%c0_58, %c0_59] : memref<1x256xf32, #tpu.memory_space<vmem>>, vector<1x256xf32>
    %136 = vector.broadcast %135 : vector<1x256xf32> to vector<128x256xf32>
    %137 = arith.addf %134, %136 : vector<128x256xf32>
    %cst_60 = arith.constant 0.000000e+00 : f32
    %138 = vector.broadcast %cst_60 : f32 to vector<128x256xf32>
    %139 = arith.maximumf %137, %138 : vector<128x256xf32>
    %140 = arith.truncf %139 : vector<128x256xf32> to vector<128x256xbf16>
    %c0_61 = arith.constant 0 : index
    %c0_62 = arith.constant 0 : index
    %141 = vector.load %arg15[%c0_61, %c0_62] : memref<256x128xbf16, #tpu.memory_space<vmem>>, vector<256x128xbf16>
    %cst_63 = arith.constant dense<0.000000e+00> : vector<128x128xf32>
    %142 = tpu.matmul %140, %141, %cst_63 {dimension_numbers = #tpu.dot_dimension_numbers<[1], [0], [0], [1], [0, 0, 1, 1], [], []>} : vector<128x256xbf16>, vector<256x128xbf16>, vector<128x128xf32> -> vector<128x128xf32>
    %c0_64 = arith.constant 0 : index
    %c0_65 = arith.constant 0 : index
    %143 = vector.load %arg16[%c0_64, %c0_65] : memref<1x128xf32, #tpu.memory_space<vmem>>, vector<1x128xf32>
    %144 = vector.broadcast %143 : vector<1x128xf32> to vector<128x128xf32>
    %145 = arith.addf %142, %144 : vector<128x128xf32>
    %146 = arith.addf %131, %145 : vector<128x128xf32>
    %c0_66 = arith.constant 0 : index
    %c0_67 = arith.constant 0 : index
    %147 = vector.load %arg19[%c0_66, %c0_67] : memref<1x128xf32, #tpu.memory_space<vmem>>, vector<1x128xf32>
    %c0_68 = arith.constant 0 : index
    %c0_69 = arith.constant 0 : index
    %148 = vector.load %arg20[%c0_68, %c0_69] : memref<1x128xf32, #tpu.memory_space<vmem>>, vector<1x128xf32>
    %cst_70 = arith.constant dense<0.000000e+00> : vector<128xf32>
    %149 = vector.multi_reduction <add>, %146, %cst_70 [1] : vector<128x128xf32> to vector<128xf32>
    %150 = vector.shape_cast %149 : vector<128xf32> to vector<128x1xf32>
    %cst_71 = arith.constant 7.812500e-03 : f32
    %151 = vector.broadcast %cst_71 : f32 to vector<128x1xf32>
    %152 = arith.mulf %150, %151 : vector<128x1xf32>
    %153 = vector.broadcast %152 : vector<128x1xf32> to vector<128x128xf32>
    %154 = arith.subf %146, %153 : vector<128x128xf32>
    %155 = arith.mulf %154, %154 : vector<128x128xf32>
    %cst_72 = arith.constant dense<0.000000e+00> : vector<128xf32>
    %156 = vector.multi_reduction <add>, %155, %cst_72 [1] : vector<128x128xf32> to vector<128xf32>
    %157 = vector.shape_cast %156 : vector<128xf32> to vector<128x1xf32>
    %cst_73 = arith.constant 7.812500e-03 : f32
    %158 = vector.broadcast %cst_73 : f32 to vector<128x1xf32>
    %159 = arith.mulf %157, %158 : vector<128x1xf32>
    %cst_74 = arith.constant 9.99999974E-6 : f32
    %160 = vector.broadcast %cst_74 : f32 to vector<128x1xf32>
    %161 = arith.addf %159, %160 : vector<128x1xf32>
    %162 = math.rsqrt %161 : vector<128x1xf32>
    %163 = vector.broadcast %162 : vector<128x1xf32> to vector<128x128xf32>
    %164 = arith.mulf %154, %163 : vector<128x128xf32>
    %165 = vector.broadcast %147 : vector<1x128xf32> to vector<128x128xf32>
    %166 = arith.mulf %164, %165 : vector<128x128xf32>
    %167 = vector.broadcast %148 : vector<1x128xf32> to vector<128x128xf32>
    %168 = arith.addf %166, %167 : vector<128x128xf32>
    %c0_75 = arith.constant 0 : index
    %c0_76 = arith.constant 0 : index
    %c0_77 = arith.constant 0 : index
    %169 = vector.load %arg21[%c0_75, %c0_76, %c0_77] : memref<1x128x128xf32, #tpu.memory_space<vmem>>, vector<1x128x128xf32>
    %170 = vector.shape_cast %169 : vector<1x128x128xf32> to vector<128x128xf32>
    %171 = vector.shape_cast %168 : vector<128x128xf32> to vector<1x128x128xf32>
    tpu.vector_store %arg21[%c0_75, %c0_76, %c0_77], %171 {strides = array<i32>} : memref<1x128x128xf32, #tpu.memory_space<vmem>>, vector<1x128x128xf32>,
    return
  }
  func.func @transform_0(%arg0: i32, %arg1: i32) -> (i32, i32, i32) {
    %c0_i32 = arith.constant 0 : i32
    %c0_i32_0 = arith.constant 0 : i32
    return %arg0, %arg1, %c0_i32 : i32, i32, i32
  }
  func.func @transform_1(%arg0: i32, %arg1: i32) -> (i32, i32, i32) {
    %c0_i32 = arith.constant 0 : i32
    %c0_i32_0 = arith.constant 0 : i32
    %c0_i32_1 = arith.constant 0 : i32
    return %arg0, %c0_i32, %c0_i32_0 : i32, i32, i32
  }
  func.func @transform_2(%arg0: i32, %arg1: i32) -> (i32, i32, i32) {
    %c0_i32 = arith.constant 0 : i32
    %c0_i32_0 = arith.constant 0 : i32
    %c0_i32_1 = arith.constant 0 : i32
    return %arg0, %c0_i32, %c0_i32_0 : i32, i32, i32
  }
  func.func @transform_3(%arg0: i32, %arg1: i32) -> (i32, i32) {
    %c0_i32 = arith.constant 0 : i32
    %c0_i32_0 = arith.constant 0 : i32
    %c0_i32_1 = arith.constant 0 : i32
    return %c0_i32, %c0_i32_0 : i32, i32
  }
  func.func @transform_4(%arg0: i32, %arg1: i32) -> (i32, i32) {
    %c0_i32 = arith.constant 0 : i32
    %c0_i32_0 = arith.constant 0 : i32
    %c0_i32_1 = arith.constant 0 : i32
    return %c0_i32, %c0_i32_0 : i32, i32
  }
  func.func @transform_5(%arg0: i32, %arg1: i32) -> (i32, i32) {
    %c0_i32 = arith.constant 0 : i32
    %c0_i32_0 = arith.constant 0 : i32
    %c0_i32_1 = arith.constant 0 : i32
    return %c0_i32, %c0_i32_0 : i32, i32
  }
  func.func @transform_6(%arg0: i32, %arg1: i32) -> (i32, i32) {
    %c0_i32 = arith.constant 0 : i32
    %c0_i32_0 = arith.constant 0 : i32
    %c0_i32_1 = arith.constant 0 : i32
    return %c0_i32, %c0_i32_0 : i32, i32
  }
  func.func @transform_7(%arg0: i32, %arg1: i32) -> (i32, i32) {
    %c0_i32 = arith.constant 0 : i32
    %c0_i32_0 = arith.constant 0 : i32
    %c0_i32_1 = arith.constant 0 : i32
    return %c0_i32, %c0_i32_0 : i32, i32
  }
  func.func @transform_8(%arg0: i32, %arg1: i32) -> (i32, i32) {
    %c0_i32 = arith.constant 0 : i32
    %c0_i32_0 = arith.constant 0 : i32
    %c0_i32_1 = arith.constant 0 : i32
    return %c0_i32, %c0_i32_0 : i32, i32
  }
  func.func @transform_9(%arg0: i32, %arg1: i32) -> (i32, i32) {
    %c0_i32 = arith.constant 0 : i32
    %c0_i32_0 = arith.constant 0 : i32
    %c0_i32_1 = arith.constant 0 : i32
    return %c0_i32, %c0_i32_0 : i32, i32
  }
  func.func @transform_10(%arg0: i32, %arg1: i32) -> (i32, i32) {
    %c0_i32 = arith.constant 0 : i32
    %c0_i32_0 = arith.constant 0 : i32
    %c0_i32_1 = arith.constant 0 : i32
    return %c0_i32, %c0_i32_0 : i32, i32
  }
  func.func @transform_11(%arg0: i32, %arg1: i32) -> (i32, i32) {
    %c0_i32 = arith.constant 0 : i32
    %c0_i32_0 = arith.constant 0 : i32
    %c0_i32_1 = arith.constant 0 : i32
    return %c0_i32, %c0_i32_0 : i32, i32
  }
  func.func @transform_12(%arg0: i32, %arg1: i32) -> (i32, i32) {
    %c0_i32 = arith.constant 0 : i32
    %c0_i32_0 = arith.constant 0 : i32
    %c0_i32_1 = arith.constant 0 : i32
    return %c0_i32, %c0_i32_0 : i32, i32
  }
  func.func @transform_13(%arg0: i32, %arg1: i32) -> (i32, i32) {
    %c0_i32 = arith.constant 0 : i32
    %c0_i32_0 = arith.constant 0 : i32
    %c0_i32_1 = arith.constant 0 : i32
    return %c0_i32, %c0_i32_0 : i32, i32
  }
  func.func @transform_14(%arg0: i32, %arg1: i32) -> (i32, i32) {
    %c0_i32 = arith.constant 0 : i32
    %c0_i32_0 = arith.constant 0 : i32
    %c0_i32_1 = arith.constant 0 : i32
    return %c0_i32, %c0_i32_0 : i32, i32
  }
  func.func @transform_15(%arg0: i32, %arg1: i32) -> (i32, i32) {
    %c0_i32 = arith.constant 0 : i32
    %c0_i32_0 = arith.constant 0 : i32
    %c0_i32_1 = arith.constant 0 : i32
    return %c0_i32, %c0_i32_0 : i32, i32
  }
  func.func @transform_16(%arg0: i32, %arg1: i32) -> (i32, i32) {
    %c0_i32 = arith.constant 0 : i32
    %c0_i32_0 = arith.constant 0 : i32
    %c0_i32_1 = arith.constant 0 : i32
    return %c0_i32, %c0_i32_0 : i32, i32
  }
  func.func @transform_17(%arg0: i32, %arg1: i32) -> (i32, i32) {
    %c0_i32 = arith.constant 0 : i32
    %c0_i32_0 = arith.constant 0 : i32
    %c0_i32_1 = arith.constant 0 : i32
    return %c0_i32, %c0_i32_0 : i32, i32
  }
  func.func @transform_18(%arg0: i32, %arg1: i32) -> (i32, i32) {
    %c0_i32 = arith.constant 0 : i32
    %c0_i32_0 = arith.constant 0 : i32
    %c0_i32_1 = arith.constant 0 : i32
    return %c0_i32, %c0_i32_0 : i32, i32
  }
  func.func @transform_19(%arg0: i32, %arg1: i32) -> (i32, i32, i32) {
    %c0_i32 = arith.constant 0 : i32
    %c0_i32_0 = arith.constant 0 : i32
    return %arg0, %arg1, %c0_i32 : i32, i32, i32
  }
  func.func @transform_20(%arg0: i32, %arg1: i32) -> (i32, i32, i32, i32) {
    %c0_i32 = arith.constant 0 : i32
    %c0_i32_0 = arith.constant 0 : i32
    %c0_i32_1 = arith.constant 0 : i32
    return %arg0, %c0_i32, %arg1, %c0_i32_0 : i32, i32, i32, i32
  }
}

</mosaic_0001>

<bundles_post_ra>
// kernel: tpu_custom_call.1
= control target key start
LH: loop header
LB: loop body
LE: loop exit
PB: predicated region body
PF: predicated region fallthrough
CT: control target
= control target key end

     0   :  { %s12236_s0 = inlined_call_operand.hbm [shape: f32[2,256,128], index: 0, kind: input, shape index: {}]   ;;  %s12237_s1 = inlined_call_operand.hbm [shape: bf16[2,256,128], index: 1, kind: input, shape index: {}]   ;;  %s12238_s2 = inlined_call_operand.hbm [shape: bf16[2,256,128], index: 2, kind: input, shape index: {}]   ;;  %s12239_s3 = inlined_call_operand.hbm [shape: bf16[128,128], index: 3, kind: input, shape index: {}]   ;;  %s12240_s4 = inlined_call_operand.hbm [shape: bf16[128,128], index: 4, kind: input, shape index: {}]   ;;  %s12241_s5 = inlined_call_operand.hbm [shape: bf16[128,128], index: 5, kind: input, shape index: {}]   ;;  %s12242_s6 = inlined_call_operand.vmem [shape: f32[1,128], index: 6, kind: input, shape index: {}]   ;;  %s12243_s7 = inlined_call_operand.vmem [shape: f32[1,128], index: 7, kind: input, shape index: {}]   ;;  %s12244_s8 = inlined_call_operand.vmem [shape: f32[1,128], index: 8, kind: input, shape index: {}]   ;;  %s12245_s9 = inlined_call_operand.hbm [shape: bf16[128,128], index: 9, kind: input, shape index: {}]   ;;  %s12246_s10 = inlined_call_operand.vmem [shape: f32[1,128], index: 10, kind: input, shape index: {}]   ;;  %s12247_s11 = inlined_call_operand.hbm [shape: bf16[128,256], index: 11, kind: input, shape index: {}]   ;;  %s12248_s12 = inlined_call_operand.vmem [shape: f32[1,256], index: 12, kind: input, shape index: {}]   ;;  %s12249_s13 = inlined_call_operand.hbm [shape: bf16[256,128], index: 13, kind: input, shape index: {}]   ;;  %s12250_s14 = inlined_call_operand.vmem [shape: f32[1,128], index: 14, kind: input, shape index: {}]   ;;  %s12251_s15 = inlined_call_operand.vmem [shape: f32[1,128], index: 15, kind: input, shape index: {}]   ;;  %s12252_s16 = inlined_call_operand.vmem [shape: f32[1,128], index: 16, kind: input, shape index: {}]   ;;  %s12253_s17 = inlined_call_operand.vmem [shape: f32[1,128], index: 17, kind: input, shape index: {}]   ;;  %s12254_s18 = inlined_call_operand.vmem [shape: f32[1,128], index: 18, kind: input, shape index: {}]   ;;  %s12255_s19 = inlined_call_operand.hbm [shape: f32[2,256,128], index: 19, kind: output, shape index: {0}]   ;;  %s12256_s20 = inlined_call_operand.hbm [shape: bf16[2,4,256,256], index: 20, kind: output, shape index: {1}]  }
   0x1   :  { %12330 = sst [smem:[#allocation90_spill]] %s12236_s0 }
   0x2   :  { %12331 = sst [smem:[#allocation91_spill]] %s12237_s1 }
   0x3   :  { %12332 = sst [smem:[#allocation92_spill]] %s12238_s2 }
   0x4   :  { %12333 = sst [smem:[#allocation93_spill]] %s12239_s3 }
   0x5   :  { %12334 = sst [smem:[#allocation94_spill]] %s12240_s4 }
   0x6   :  { %12335 = sst [smem:[#allocation95_spill]] %s12241_s5 }
   0x7   :  { %12336 = sst [smem:[#allocation96_spill]] %s12242_s6 }
   0x8   :  { %12337 = sst [smem:[#allocation97_spill]] %s12243_s7 }
   0x9   :  { %12338 = sst [smem:[#allocation98_spill]] %s12244_s8 }
   0xa   :  { %12339 = sst [smem:[#allocation99_spill]] %s12245_s9 }
   0xb   :  { %12340 = sst [smem:[#allocation100_spill]] %s12246_s10 }
   0xc   :  { %12341 = sst [smem:[#allocation101_spill]] %s12247_s11 }
   0xd   :  { %12342 = sst [smem:[#allocation102_spill]] %s12248_s12 }
   0xe   :  { %12343 = sst [smem:[#allocation103_spill]] %s12249_s13 }
   0xf   :  { %12344 = sst [smem:[#allocation104_spill]] %s12250_s14 }
  0x10   :  { %12345 = sst [smem:[#allocation105_spill]] %s12251_s15 }
  0x11   :  { %12346 = sst [smem:[#allocation106_spill]] %s12252_s16 }
  0x12   :  { %12347 = sst [smem:[#allocation107_spill]] %s12253_s17 }
  0x13   :  { %12348 = sst [smem:[#allocation108_spill]] %s12254_s18 }
  0x14   :  { %12349 = sst [smem:[#allocation109_spill]] %s12255_s19 }
  0x15   :  { %12350 = sst [smem:[#allocation110_spill]] %s12256_s20 }
  0x16   :  { %26 = vsyncpa [#allocation5], 0 }
  0x17   :  { %28 = vsyncpa [#allocation5 + $0x1], 0 }
  0x18   :  { %29 = vsyncpa [#allocation8], 0 }
  0x19   :  { %31 = vsyncpa [#allocation8 + $0x1], 0 }
  0x1a   :  { %32 = vsyncpa [#allocation11], 0 }
  0x1b   :  { %33 = vsyncpa [#allocation14], 0 }
  0x1c   :  { %34 = vsyncpa [#allocation17], 0 }
  0x1d   :  { %35 = vsyncpa [#allocation6], 0 }
  0x1e   :  { %37 = vsyncpa [#allocation6 + $0x1], 0 }
  0x1f   :  { %38 = vsyncpa [#allocation21], 0 }
  0x20   :  { %40 = vsyncpa [#allocation21 + $0x1], 0  ;;  %s9027_s1 = smov 0   ;;  %s9029_s22 = smov 0  }
  0x21   :  { %s9031_s23 = smov 0   ;;  %s9033_s24 = smov 0  }
  0x22   :  { %s9035_s2 = smov 0   ;;  %s9037_s25 = smov 0  }
  0x23   :  { %s9039_s3 = smov 0   ;;  %s9041_s26 = smov 0  }
  0x24   :  { %s9043_s27 = smov 0   ;;  %s9045_s28 = smov 0  }
  0x25   :  { %s9047_s4 = smov 0  }
  0x26 LB: > { %12351 = sst [smem:[#allocation31_spill]] %s8862_s22  ;;  %s9083_s29 = sadd.s32 4294967295, %s8898_s4   ;;  %s8898_s4 = sphi %s9047_s4, %s46_s4   ;;  %s8894_s28 = sphi %s9045_s28, %s12604_s28   ;;  %s8890_s27 = sphi %s9043_s27, %s12603_s27   ;;  %s8886_s26 = sphi %s9041_s26, %s12602_s26   ;;  %s8882_s3 = sphi %s9039_s3, %s12601_s3   ;;  %s8878_s25 = sphi %s9037_s25, %s12600_s25   ;;  %s8874_s2 = sphi %s9035_s2, %s12599_s2   ;;  %s8870_s24 = sphi %s9033_s24, %s12598_s24   ;;  %s8866_s23 = sphi %s9031_s23, %s12597_s23   ;;  %s8862_s22 = sphi %s9029_s22, %s12596_s22   ;;  %s8858_s1 = sphi %s9027_s1, %s12592_s1  }
  0x27   : > { %12352 = sst [smem:[#allocation32_spill]] %s8870_s24  ;;  %p6754_p0 = scmp.ge.s32.totalorder %s8898_s4, 1 }
  0x28   : > { %12353 = sst [smem:[#allocation33_spill]] %s8882_s3  ;;  %p12268_p1 = scmp.eq.s32.totalorder %s9083_s29, 0 }
  0x29   : > { %12354 = sst [smem:[#allocation34_spill]] %s8886_s26  ;;  %p535_p2 = scmp.lt.s32.totalorder %s8898_s4, 5 }
  0x2a   : > { %12355 = sst [smem:[#allocation35_spill]] %s9083_s29  ;;  %s8900_s26 = smov [#allocation10]  }
  0x2b   : > { %s12356_s21 = sld [smem:[#allocation93_spill]]  ;;  %p9091_p3 = pnand %p6754_p0, %p535_p2 }
  0x2c   : > { %s548_s18 = sshll.u32 %s8900_s26, 4  ;;  %s12359_s5 = sld [smem:[#allocation95_spill]]  ;;  %s549_s18 = int_to_ptr.vmem [resolvable:$true] %s548_s18 }
  0x2d   : > { %p7813_p4 = pneg %p9091_p3  ;;  %s12259_s0 = smov 64  }
  0x2e   : > { %s8903_s26 = smov [#allocation13]   ;;  %s12360_s11 = sld [smem:[#allocation101_spill]] }
  0x2f   : > { %p9099_p5 = pnand %p7813_p4, %p12268_p1  ;;  %s576_s12 = sshll.u32 %s8903_s26, 4  ;;  %s577_s12 = int_to_ptr.vmem [resolvable:$true] %s576_s12 }
  0x30   : > { %s12263_s26 = smov 128   ;;  %s12264_s15 = smov 8  }
  0x31   : > { %s546_s20 = sshll.u32 %s12356_s21, 4  ;;  %s12261_s21 = smov 4   ;;  %s547_s20 = int_to_ptr.hbm [resolvable:$true] %s546_s20 }
  0x32   : > { %s574_s30 = sshll.u32 %s12359_s5, 4  ;;  %p75_p6 = scmp.eq.s32.totalorder %s8898_s4, 0  ;;  %s575_s30 = int_to_ptr.hbm [resolvable:$true] %s574_s30 }
  0x33   : > { %7816 = dma.hbm_to_vmem [thread:$0]  (!%p9099_p5), %s547_s20, 1024, %s549_s18, [#allocation11], %s12259_s0, %s12259_s0, %s12261_s21  }
  0x34   : > { %s614_s16 = sshll.u32 %s12360_s11, 4  ;;  %s8904_s18 = smov [#allocation16]   ;;  %s615_s16 = int_to_ptr.hbm [resolvable:$true] %s614_s16 }
  0x35   : > { %7822 = dma.hbm_to_vmem [thread:$0]  (!%p9099_p5), %s575_s30, 1024, %s577_s12, [#allocation14], %s12259_s0, %s12259_s0, %s12261_s21  }
  0x36   : > { %s616_s20 = sshll.u32 %s8904_s18, 4  ;;  %p100_p7 = scmp.ne.s32.totalorder %s8866_s23, %s8862_s22  ;;  %s617_s20 = int_to_ptr.vmem [resolvable:$true] %s616_s20 }
  0x37   : > { %7828 = dma.hbm_to_vmem [thread:$0]  (!%p9099_p5), %s615_s16, 2048, %s617_s20, [#allocation17], %s12263_s26, %s12263_s26, %s12264_s15  }
  0x38   : > { %p106_p8 = scmp.ne.s32.totalorder %s8862_s22, %s8858_s1  ;;  %p12269_p9 = scmp.lt.s32.totalorder %s8898_s4, 4 }
  0x39   : > { %s686_s12 = sand.u32 1, %s8898_s4   ;;  %p102_p11 = por %p100_p7, %p75_p6 }
  0x3a   : > { %p9134_p10 = por %p106_p8, %p12268_p1  ;;  %s688_s18 = sand.u32 1, %s8866_s23  }
  0x3b   : > { %s6766_s0 = sshll.u32 %s688_s18, 7  ;;  %s7420_s21 = sshll.u32 %s8894_s28, 7 }
  0x3c   : > { %s12361_s30 = scalar_select %p9134_p10, 1, 0 }
  0x3d   : > { %s12363_s20 = sld [smem:[#allocation91_spill]]  ;;  %s690_s5 = scalar_lea.vmem [#allocation7], %s6766_s0 }
  0x3e   : > { %12362 = sst [smem:[#allocation36_spill]] %s12361_s30  ;;  %s698_s1 = sshll.u32 %s690_s5, 4  ;;  %s699_s1 = int_to_ptr.vmem [resolvable:$true] %s698_s1 }
  0x3f   : > { %p9148_p12 = pnand %p12269_p9, %p102_p11  ;;  %s12365_s8 = sld [smem:[#allocation92_spill]] }
  0x40   : > { %s9155_s3 = scalar_lea.sflag [#allocation8], %s686_s12  ;;  %s12366_s11 = smov 4  }
  0x41   : > { %s712_s5 = scalar_lea.vmem [#allocation9], %s6766_s0  ;;  %s12368_s6 = sld [smem:[#allocation94_spill]] }
  0x42   : > { %s9165_s16 = sshll.u32 %s712_s5, 4  ;;  %s12369_s9 = sld [smem:[#allocation99_spill]]  ;;  %s721_s16 = int_to_ptr.vmem [resolvable:$true] %s9165_s16 }
  0x43   : > { %s695_s26 = scalar_lea.hbm %s12363_s20, %s7420_s21  ;;  %s8908_s0 = smov [#allocation15]  }
  0x44   : > { %s696_s15 = sshll.u32 %s695_s26, 4  ;;  %s12367_s26 = smov 64   ;;  %s697_s15 = int_to_ptr.hbm [resolvable:$true] %s696_s15 }
  0x45   : > { %s717_s18 = scalar_lea.hbm %s12365_s8, %s7420_s21  ;;  %s8907_s8 = smov [#allocation12]  }
  0x46   : > { %s718_s7 = sshll.u32 %s717_s18, 4  ;;  %s562_s21 = sshll.u32 %s8907_s8, 4  ;;  %s9163_s7 = int_to_ptr.hbm [resolvable:$true] %s718_s7  ;;  %s563_s21 = int_to_ptr.vmem [resolvable:$true] %s562_s21 }
  0x47   : > { %7838 = dma.hbm_to_vmem [thread:$0]  (!%p9148_p12), %s697_s15, 2048, %s699_s1, %s9155_s3, %s12367_s26, %s12367_s26, %s12366_s11  }
  0x48   : > { %s560_s10 = sshll.u32 %s12368_s6, 4  ;;  %s597_s15 = sshll.u32 %s12369_s9, 4  ;;  %s561_s10 = int_to_ptr.hbm [resolvable:$true] %s560_s10  ;;  %s598_s15 = int_to_ptr.hbm [resolvable:$true] %s597_s15 }
  0x49   : > { %7819 = dma.hbm_to_vmem [thread:$0]  (!%p9099_p5), %s561_s10, 1024, %s563_s21, [#allocation11], %s12367_s26, %s12367_s26, %s12366_s11  }
  0x4a   : > { %s599_s30 = sshll.u32 %s8908_s0, 4  ;;  %s12370_s13 = sld [smem:[#allocation103_spill]]  ;;  %s600_s30 = int_to_ptr.vmem [resolvable:$true] %s599_s30 }
  0x4b   : > { %7825 = dma.hbm_to_vmem [thread:$0]  (!%p9099_p5), %s598_s15, 1024, %s600_s30, [#allocation14], %s12367_s26, %s12367_s26, %s12366_s11  }
  0x4c   : > { %s8909_s6 = smov [#allocation18]   ;;  %s6753_s8 = sadd.s32 4294967294, %s8898_s4  }
  0x4d   : > { %s633_s10 = sshll.u32 %s8909_s6, 4  ;;  %s55_s21 = sadd.s32 1, %s8890_s27  ;;  %s634_s10 = int_to_ptr.vmem [resolvable:$true] %s633_s10 }
  0x4e   : > { %p56_p13 = scmp.ge.s32.totalorder %s55_s21, 2  ;;  %s67_s12 = sadd.s32 1, %s8878_s25 }
  0x4f   : > { %p80_p0 = scmp.ne.s32.totalorder %s8874_s2, %s8870_s24  ;;  %p494_p2 = scmp.eq.s32.totalorder %s9083_s29, 3 }
  0x50   : > { %s631_s20 = sshll.u32 %s12370_s13, 4  ;;  %s12606_s21 = smov (%p56_p13, %s55_s21), 0  ;;  %s632_s20 = int_to_ptr.hbm [resolvable:$true] %s631_s20 }
  0x51   : > { %7831 = dma.hbm_to_vmem [thread:$0]  (!%p9099_p5), %s632_s20, 2048, %s634_s10, [#allocation17], %s12367_s26, %s12367_s26, %s12366_s11  }
  0x52   : > { %12371 = sst [smem:[#allocation37_spill]] %s12606_s21  ;;  %s12372_s18 = sadd.s32 1, %s8894_s28 }
  0x53   : > { %s12608_s18 = smov (!%p56_p13, %s12372_s18), %s8894_s28  ;;  %s63_s17 = ssub.s32 %s8890_s27, %s12606_s21 }
  0x54   : > { %p74_p4 = scmp.ne.s32.totalorder %s8878_s25, %s8874_s2  ;;  %p60_p5 = scmp.ge.s32.totalorder %s12608_s18, 2 }
  0x55   : > { %p9209_p7 = por %p12268_p1, %p80_p0  ;;  %p500_p11 = scmp.eq.s32.totalorder %s6753_s8, 3 }
  0x56   : > { %p9213_p8 = por %p494_p2, %p74_p4  ;;  %s12610_s18 = smov (%p60_p5, %s12608_s18), 0 }
  0x57   : > { %s12373_s15 = scalar_select %p9209_p7, 1, 0 }
  0x58   : > { %s12375_s0 = scalar_select %p9213_p8, 1, 0 }
  0x59   : > { %12374 = sst [smem:[#allocation38_spill]] %s12373_s15  ;;  %p9219_p13 = por %p500_p11, %p80_p0 }
  0x5a   : > { %12376 = sst [smem:[#allocation39_spill]] %s12375_s0  ;;  %s662_s1 = sand.u32 1, %s8878_s25  }
  0x5b   : > { %12377 = sst [smem:[#allocation40_spill]] %s12610_s18  ;;  %s62_s5 = ssub.s32 %s8894_s28, %s12610_s18 }
  0x5c   : > { %s12378_s30 = scalar_select %p9219_p13, 1, 0 }
  0x5d   : > { %p9228_p1 = por %p75_p6, %p74_p4  ;;  %s64_s6 = sor.u32 %s63_s17, %s62_s5 }
  0x5e   : > { %12379 = sst [smem:[#allocation41_spill]] %s12378_s30  ;;  %p91_p2 = scmp.eq.s32.totalorder %s62_s5, 0 }
  0x5f   : > { %p65_p9 = scmp.eq.s32.totalorder %s64_s6, 0  ;;  %s6762_s10 = sshll.u32 %s662_s1, 7 }
  0x60   : > { %s12381_s8 = sadd.s32 1, %s8866_s23  ;;  %s6763_s18 = sshll.u32 %s8890_s27, 4 }
  0x61   : > { %s9235_s9 = scalar_select %p91_p2, %s8866_s23, %s12381_s8  }
  0x62   : > { %s9238_s13 = scalar_select %p65_p9, %s8878_s25, %s67_s12  }
  0x63   : > { %12382 = sst [smem:[#allocation42_spill]] %s9235_s9  ;;  %s6764_s21 = sshll.u32 %s8894_s28, 5 }
  0x64   : > { %s666_s30 = scalar_lea.vmem [#allocation4], %s6762_s10  ;;  %s671_s0 = sadd.s32 %s6764_s21, %s6763_s18 }
  0x65   : > { %s676_s24 = sshll.u32 %s666_s30, 4  ;;  %s6765_s22 = sshll.u32 %s671_s0, 3  ;;  %s677_s24 = int_to_ptr.vmem [resolvable:$true] %s676_s24 }
  0x66   : > { %p12383_p6 = scmp.lt.s32.totalorder %s8898_s4, 4  ;;  %s12384_s6 = sld [smem:[#allocation90_spill]] }
  0x67   : > { %s663_s8 = scalar_lea.sflag [#allocation5], %s662_s1  ;;  %s12385_s9 = smov 8  }
  0x68   : > { %p7833_p0 = pnand %p12383_p6, %p9228_p1  ;;  %s12386_s12 = smov 128  }
  0x69   : > { %7841 = dma.hbm_to_vmem [thread:$0]  (!%p9148_p12), %s9163_s7, 2048, %s721_s16, %s9155_s3, %s12367_s26, %s12367_s26, %s12366_s11  }
  0x6a   : > { %732 = sbr.rel (%p9091_p3) target bundleno = 3699 (0xe73), region = 96 }
  0x6c   : > { %s673_s29 = scalar_lea.hbm %s12384_s6, %s6765_s22 }
  0x6d   : > { %s674_s15 = sshll.u32 %s673_s29, 4  ;;  %s675_s15 = int_to_ptr.hbm [resolvable:$true] %s674_s15 }
  0x6e   : > { %7835 = dma.hbm_to_vmem [thread:$0]  (!%p7833_p0), %s675_s15, 2048, %s677_s24, %s663_s8, %s12386_s12, %s12386_s12, %s12385_s9  }
  0x6f   : > { %s9264_s22 = sand.u32 1, %s8874_s2  }
  0x70   : > { %s6773_s29 = sshll.u32 %s9264_s22, 7  ;;  %s735_s18 = scalar_lea.sflag [#allocation5], %s9264_s22 }
  0x71   : > { %s9268_s0 = scalar_lea.vmem [#allocation4], %s6773_s29 }
  0x72   : > { %8829 = dma.done.wait (%p9209_p7), %s735_s18, 2048  }
  0x73   : > { %8831 = vsyncadd (%p9209_p7), %s735_s18, 4294965248  ;;  %s12388_s9 = sld [smem:[#allocation35_spill]] }
  0x74   : > { %s12389_s7 = sld [smem:[#allocation31_spill]] }
  0x79   : > { %s744_s19 = sand.u32 1, %s12388_s9  }
  0x7a   : > { %s746_s3 = sand.u32 1, %s12389_s7   ;;  %s745_s11 = scalar_lea.sflag [#allocation8], %s744_s19 }
  0x7b   : > { %s6774_s14 = sshll.u32 %s746_s3, 7 }
  0x7c   : > { %s9276_s26 = scalar_lea.vmem [#allocation7], %s6774_s14 }
  0x7d   : > { %8833 = dma.done.wait (%p9134_p10), %s745_s11, 4096  }
  0x7e   : > { %8835 = vsyncadd (%p9134_p10), %s745_s11, 4294963200  ;;  %s9282_s16 = scalar_lea.vmem [#allocation9], %s6774_s14  ;;  %p12391_p1 = scmp.eq.s32.totalorder %s12388_s9, 0 }
  0x80   : > { %8837 = dma.done.wait (%p12391_p1), [#allocation11], 2048   ;;  %p12392_p3 = pmov %p12391_p1 }
  0x81   : > { %p12393_p9 = pmov %p12391_p1 }
  0x82   : > { %8839 = vsyncadd (%p12392_p3), [#allocation11], 4294965248 }
  0x83   : > { %8841 = dma.done.wait (%p12393_p9), [#allocation14], 2048   ;;  %p12394_p12 = pmov %p12391_p1 }
  0x84   : > { %p12395_p4 = pmov %p12391_p1 }
  0x85   : > { %8843 = vsyncadd (%p12394_p12), [#allocation14], 4294965248 }
  0x86   : > { %8845 = dma.done.wait (%p12395_p4), [#allocation17], 4096   ;;  %p12396_p5 = pmov %p12391_p1 }
  0x87   : > { %s6783_s15 = sshll.u32 %s9264_s22, 9  ;;  %s9297_s30 = scalar_lea.vmem [#allocation19], %s6773_s29 }
  0x88   : > { %8847 = vsyncadd (%p12396_p5), [#allocation17], 4294963200  ;;  %s9299_s1 = scalar_lea.vmem [#allocation20], %s6783_s15  ;;  %s12397_s20 = sld [smem:[#allocation33_spill]] }
  0x8e   : > { %p6784_p10 = scmp.ne.s32.totalorder %s12397_s20, 0 }
  0x8f   : > { %s12398_s5 = sld [smem:[#allocation97_spill]] (!%p6784_p10) }
  0x90   : > { %867 = sbr.rel (%p6784_p10) target bundleno = 439 (0x1b7), region = 136  ;;  %s12399_s12 = sld [smem:[#allocation98_spill]] (!%p6784_p10) }
  0x95   : > { %v7445_v0 = vld [vmem:[#allocation12 + $0x38] sm:$0xff]  ;;  %v7444_v2 = vld [vmem:[#allocation12 + $0x30] sm:$0xff]  ;;  %v7443_v4 = vld [vmem:[#allocation12 + $0x28] sm:$0xff] }
  0x96   : > { %v7469_v1 = vld [vmem:[#allocation13 + $0x38] sm:$0xff]  ;;  %1064 = vmatpush.bf16.msra.mxu0 %v7445_v0  ;;  %7741 = vmatpush.bf16.msra.mxu2 %v7445_v0  ;;  %v7468_v3 = vld [vmem:[#allocation13 + $0x30] sm:$0xff]  ;;  %v7467_v5 = vld [vmem:[#allocation13 + $0x28] sm:$0xff] }
  0x97   : > { %1413 = vmatpush.bf16.msra.mxu1 %v7469_v1  ;;  %7749 = vmatpush.bf16.msra.mxu3 %v7469_v1  ;;  %v7442_v6 = vld [vmem:[#allocation12 + $0x20] sm:$0xff]  ;;  %v7441_v8 = vld [vmem:[#allocation12 + $0x18] sm:$0xff]  ;;  %v7440_v10 = vld [vmem:[#allocation12 + $0x10] sm:$0xff] }
  0x98   : > { %v7466_v7 = vld [vmem:[#allocation13 + $0x20] sm:$0xff]  ;;  %v7465_v9 = vld [vmem:[#allocation13 + $0x18] sm:$0xff]  ;;  %v7464_v11 = vld [vmem:[#allocation13 + $0x10] sm:$0xff] }
  0x99   : > { %v7439_v12 = vld [vmem:[#allocation12 + $0x8] sm:$0xff]  ;;  %v7438_v14 = vld [vmem:[#allocation12] sm:$0xff]  ;;  %v7424_v24 = vld [vmem:[%s9282_s16 + $0x10] sm:$0xff] }
  0x9a   : > { %1065 = vmatpush.bf16.msra.mxu0 %v7444_v2  ;;  %7742 = vmatpush.bf16.msra.mxu2 %v7444_v2  ;;  %v7463_v13 = vld [vmem:[#allocation13 + $0x8] sm:$0xff]  ;;  %v7462_v15 = vld [vmem:[#allocation13] sm:$0xff]  ;;  %v7432_v25 = vld [vmem:[%s9282_s16 + $0x50] sm:$0xff] }
  0x9b   : > { %1414 = vmatpush.bf16.msra.mxu1 %v7468_v3  ;;  %7750 = vmatpush.bf16.msra.mxu3 %v7468_v3  ;;  %v7422_v16 = vld [vmem:[%s9282_s16] sm:$0xff]  ;;  %v7423_v20 = vld [vmem:[%s9282_s16 + $0x8] sm:$0xff]  ;;  %v7448_v26 = vld [vmem:[%s9276_s26 + $0x10] sm:$0xff] }
  0x9c   : > { %v7430_v17 = vld [vmem:[%s9282_s16 + $0x40] sm:$0xff]  ;;  %v7431_v21 = vld [vmem:[%s9282_s16 + $0x48] sm:$0xff]  ;;  %v7456_v27 = vld [vmem:[%s9276_s26 + $0x50] sm:$0xff] }
  0x9d   : > { %v7446_v18 = vld [vmem:[%s9276_s26] sm:$0xff]  ;;  %v7447_v22 = vld [vmem:[%s9276_s26 + $0x8] sm:$0xff]  ;;  %v7425_v28 = vld [vmem:[%s9282_s16 + $0x18] sm:$0xff] }
  0x9e   : > { %1066 = vmatpush.bf16.msra.mxu0 %v7443_v4  ;;  %7743 = vmatpush.bf16.msra.mxu2 %v7443_v4  ;;  %v7454_v19 = vld [vmem:[%s9276_s26 + $0x40] sm:$0xff]  ;;  %v7455_v23 = vld [vmem:[%s9276_s26 + $0x48] sm:$0xff]  ;;  %v7433_v29 = vld [vmem:[%s9282_s16 + $0x58] sm:$0xff] }
  0x9f   : > { %1415 = vmatpush.bf16.msra.mxu1 %v7467_v5  ;;  %7751 = vmatpush.bf16.msra.mxu3 %v7467_v5  ;;  %v7449_v30 = vld [vmem:[%s9276_s26 + $0x18] sm:$0xff]  ;;  %v7426_v32 = vld [vmem:[%s9282_s16 + $0x20] sm:$0xff]  ;;  %v7427_v36 = vld [vmem:[%s9282_s16 + $0x28] sm:$0xff] }
  0xa0   : > { %v7457_v31 = vld [vmem:[%s9276_s26 + $0x58] sm:$0xff]  ;;  %v7434_v33 = vld [vmem:[%s9282_s16 + $0x60] sm:$0xff]  ;;  %v7435_v37 = vld [vmem:[%s9282_s16 + $0x68] sm:$0xff] }
  0xa1   : > { %v7450_v34 = vld [vmem:[%s9276_s26 + $0x20] sm:$0xff]  ;;  %v7451_v38 = vld [vmem:[%s9276_s26 + $0x28] sm:$0xff]  ;;  %v7428_v40 = vld [vmem:[%s9282_s16 + $0x30] sm:$0xff] }
  0xa2   : > { %1067 = vmatpush.bf16.msra.mxu0 %v7442_v6  ;;  %7744 = vmatpush.bf16.msra.mxu2 %v7442_v6  ;;  %v7458_v35 = vld [vmem:[%s9276_s26 + $0x60] sm:$0xff]  ;;  %v7459_v39 = vld [vmem:[%s9276_s26 + $0x68] sm:$0xff]  ;;  %v7436_v41 = vld [vmem:[%s9282_s16 + $0x70] sm:$0xff] }
  0xa3   : > { %1416 = vmatpush.bf16.msra.mxu1 %v7466_v7  ;;  %7752 = vmatpush.bf16.msra.mxu3 %v7466_v7  ;;  %v7452_v42 = vld [vmem:[%s9276_s26 + $0x30] sm:$0xff]  ;;  %v7429_v44 = vld [vmem:[%s9282_s16 + $0x38] sm:$0xff]  ;;  %v9337_v50 = vld [vmem:[%s12398_s5] ss:$0 sm:$0xff] }
  0xa4   : > { %v7460_v43 = vld [vmem:[%s9276_s26 + $0x70] sm:$0xff]  ;;  %v7437_v45 = vld [vmem:[%s9282_s16 + $0x78] sm:$0xff]  ;;  %v9342_v51 = vld [vmem:[%s12399_s12] ss:$0 sm:$0xff] }
  0xa5   : > { %v7453_v46 = vld [vmem:[%s9276_s26 + $0x38] sm:$0xff] }
  0xa6   : > { %1068 = vmatpush.bf16.msra.mxu0 %v7441_v8  ;;  %7745 = vmatpush.bf16.msra.mxu2 %v7441_v8  ;;  %v7461_v47 = vld [vmem:[%s9276_s26 + $0x78] sm:$0xff] }
  0xa7   : > { %1417 = vmatpush.bf16.msra.mxu1 %v7465_v9  ;;  %7753 = vmatpush.bf16.msra.mxu3 %v7465_v9 }
  0xaa   : > { %1069 = vmatpush.bf16.msra.mxu0 %v7440_v10  ;;  %7746 = vmatpush.bf16.msra.mxu2 %v7440_v10 }
  0xab   : > { %1418 = vmatpush.bf16.msra.mxu1 %v7464_v11  ;;  %7754 = vmatpush.bf16.msra.mxu3 %v7464_v11 }
  0xae   : > { %1070 = vmatpush.bf16.msra.mxu0 %v7439_v12  ;;  %7747 = vmatpush.bf16.msra.mxu2 %v7439_v12 }
  0xaf   : > { %1419 = vmatpush.bf16.msra.mxu1 %v7463_v13  ;;  %7755 = vmatpush.bf16.msra.mxu3 %v7463_v13 }
  0xb2   : > { %1071 = vmatpush.bf16.msra.mxu0 %v7438_v14  ;;  %7748 = vmatpush.bf16.msra.mxu2 %v7438_v14 }
  0xb3   : > { %1420 = vmatpush.bf16.msra.mxu1 %v7462_v15  ;;  %7756 = vmatpush.bf16.msra.mxu3 %v7462_v15 }
  0xb5   : > { %1072 = vmatmul.bf16.vlgmr.msra.gmra.mxu0 %v7422_v16  ;;  %1112 = vmatmul.bf16.vlgmr.msra.gmra.mxu2 %v7430_v17 }
  0xb6   : > { %1421 = vmatmul.bf16.vlgmr.msra.gmra.mxu1 %v7446_v18  ;;  %1461 = vmatmul.bf16.vlgmr.msra.gmra.mxu3 %v7454_v19 }
  0xc5   : > { %1077 = vmatmul.bf16.gmra.mxu0 %v7423_v20  ;;  %1117 = vmatmul.bf16.gmra.mxu2 %v7431_v21 }
  0xc6   : > { %1426 = vmatmul.bf16.gmra.mxu1 %v7447_v22  ;;  %1466 = vmatmul.bf16.gmra.mxu3 %v7455_v23 }
  0xd5   : > { %1082 = vmatmul.bf16.gmra.mxu0 %v7424_v24  ;;  %1122 = vmatmul.bf16.gmra.mxu2 %v7432_v25 }
  0xd6   : > { %1431 = vmatmul.bf16.gmra.mxu1 %v7448_v26  ;;  %1471 = vmatmul.bf16.gmra.mxu3 %v7456_v27 }
  0xe5   : > { %1087 = vmatmul.bf16.gmra.mxu0 %v7425_v28  ;;  %1127 = vmatmul.bf16.gmra.mxu2 %v7433_v29 }
  0xe6   : > { %1436 = vmatmul.bf16.gmra.mxu1 %v7449_v30  ;;  %1476 = vmatmul.bf16.gmra.mxu3 %v7457_v31 }
  0xf5   : > { %1092 = vmatmul.bf16.gmra.mxu0 %v7426_v32  ;;  %1132 = vmatmul.bf16.gmra.mxu2 %v7434_v33 }
  0xf6   : > { %1441 = vmatmul.bf16.gmra.mxu1 %v7450_v34  ;;  %1481 = vmatmul.bf16.gmra.mxu3 %v7458_v35 }
 0x105   : > { %1097 = vmatmul.bf16.gmra.mxu0 %v7427_v36  ;;  %1137 = vmatmul.bf16.gmra.mxu2 %v7435_v37 }
 0x106   : > { %1446 = vmatmul.bf16.gmra.mxu1 %v7451_v38  ;;  %1486 = vmatmul.bf16.gmra.mxu3 %v7459_v39 }
 0x115   : > { %1102 = vmatmul.bf16.gmra.mxu0 %v7428_v40  ;;  %1142 = vmatmul.bf16.gmra.mxu2 %v7436_v41 }
 0x116   : > { %1451 = vmatmul.bf16.gmra.mxu1 %v7452_v42  ;;  %1491 = vmatmul.bf16.gmra.mxu3 %v7460_v43 }
 0x125   : > { %1107 = vmatmul.bf16.gmra.mxu0 %v7429_v44  ;;  %1147 = vmatmul.bf16.gmra.mxu2 %v7437_v45 }
 0x126   : > { %1456 = vmatmul.bf16.gmra.mxu1 %v7453_v46  ;;  %1496 = vmatmul.bf16.gmra.mxu3 %v7461_v47 }
 0x132   : > { %v1073_v48 = vpop.f32.mrf.mxu0 }
 0x133   : > { %v1422_v49 = vpop.f32.mrf.mxu1  ;;  %v1074_v55 = vadd.f32 %v9337_v50, %v1073_v48 }
 0x134   : > { %v1423_v58 = vadd.f32 %v9342_v51, %v1422_v49 }
 0x138   : > { %v1113_v52 = vpop.f32.mrf.mxu2 }
 0x139   : > { %v1462_v53 = vpop.f32.mrf.mxu3  ;;  %v1114_v63 = vadd.f32 %v9337_v50, %v1113_v52 }
 0x13a   : > { %v1075_v54 = vpop.f32.mrf.mxu0  ;;  %v1463_v2 = vadd.f32 %v9342_v51, %v1462_v53 }
 0x13b   : > { %v1076_v56 = vadd.f32 %v9337_v50, %v1075_v54  ;;  %v1424_v57 = vpop.f32.mrf.mxu1 }
 0x13c   : > { %v1425_v59 = vadd.f32 %v9342_v51, %v1424_v57 }
 0x13d   : > { %v7554_v60 = vpack.c.bf16 %v1076_v56, %v1074_v55 }
 0x13e   : > { %v7634_v61 = vpack.c.bf16 %v1425_v59, %v1423_v58 }
 0x13f   : > { %7555 = vst [vmem:[#allocation2 + $0x30] sm:$0xff] %v7554_v60  }
 0x140   : > { %7635 = vst [vmem:[#allocation3 + $0x28] sm:$0xff] %v7634_v61   ;;  %v1115_v62 = vpop.f32.mrf.mxu2 }
 0x141   : > { %v1116_v0 = vadd.f32 %v9337_v50, %v1115_v62  ;;  %v1464_v1 = vpop.f32.mrf.mxu3 }
 0x142   : > { %v1465_v3 = vadd.f32 %v9342_v51, %v1464_v1  ;;  %v1078_v4 = vpop.f32.mrf.mxu0 }
 0x143   : > { %v7594_v5 = vpack.c.bf16 %v1116_v0, %v1114_v63  ;;  %v1427_v6 = vpop.f32.mrf.mxu1  ;;  %v1079_v11 = vadd.f32 %v9337_v50, %v1078_v4 }
 0x144   : > { %v7674_v7 = vpack.c.bf16 %v1465_v3, %v1463_v2  ;;  %v1428_v14 = vadd.f32 %v9342_v51, %v1427_v6 }
 0x145   : > { %7718 = vst [vmem:[#allocation2 + $0x40] sm:$0xff] %v7594_v5  }
 0x146   : > { %7733 = vst [vmem:[#allocation3 + $0x20] sm:$0xff] %v7674_v7  }
 0x148   : > { %v1118_v8 = vpop.f32.mrf.mxu2 }
 0x149   : > { %v1467_v9 = vpop.f32.mrf.mxu3  ;;  %v1119_v19 = vadd.f32 %v9337_v50, %v1118_v8 }
 0x14a   : > { %v1080_v10 = vpop.f32.mrf.mxu0  ;;  %v1468_v22 = vadd.f32 %v9342_v51, %v1467_v9 }
 0x14b   : > { %v1081_v12 = vadd.f32 %v9337_v50, %v1080_v10  ;;  %v1429_v13 = vpop.f32.mrf.mxu1 }
 0x14c   : > { %v1430_v15 = vadd.f32 %v9342_v51, %v1429_v13 }
 0x14d   : > { %v7559_v16 = vpack.c.bf16 %v1081_v12, %v1079_v11 }
 0x14e   : > { %v7639_v17 = vpack.c.bf16 %v1430_v15, %v1428_v14 }
 0x14f   : > { %7711 = vst [vmem:[#allocation2] sm:$0xff] %v7559_v16  }
 0x150   : > { %7726 = vst [vmem:[#allocation3 + $0x68] sm:$0xff] %v7639_v17   ;;  %v1120_v18 = vpop.f32.mrf.mxu2 }
 0x151   : > { %v1121_v20 = vadd.f32 %v9337_v50, %v1120_v18  ;;  %v1469_v21 = vpop.f32.mrf.mxu3 }
 0x152   : > { %v1470_v23 = vadd.f32 %v9342_v51, %v1469_v21  ;;  %v1083_v24 = vpop.f32.mrf.mxu0 }
 0x153   : > { %v7599_v25 = vpack.c.bf16 %v1121_v20, %v1119_v19  ;;  %v1432_v26 = vpop.f32.mrf.mxu1  ;;  %v1084_v31 = vadd.f32 %v9337_v50, %v1083_v24 }
 0x154   : > { %v7679_v27 = vpack.c.bf16 %v1470_v23, %v1468_v22  ;;  %v1433_v34 = vadd.f32 %v9342_v51, %v1432_v26 }
 0x155   : > { %7719 = vst [vmem:[#allocation2 + $0x20] sm:$0xff] %v7599_v25  }
 0x156   : > { %7734 = vst [vmem:[#allocation3 + $0x78] sm:$0xff] %v7679_v27  }
 0x158   : > { %v1123_v28 = vpop.f32.mrf.mxu2 }
 0x159   : > { %v1472_v29 = vpop.f32.mrf.mxu3  ;;  %v1124_v39 = vadd.f32 %v9337_v50, %v1123_v28 }
 0x15a   : > { %v1085_v30 = vpop.f32.mrf.mxu0  ;;  %v1473_v42 = vadd.f32 %v9342_v51, %v1472_v29 }
 0x15b   : > { %v1086_v32 = vadd.f32 %v9337_v50, %v1085_v30  ;;  %v1434_v33 = vpop.f32.mrf.mxu1 }
 0x15c   : > { %v1435_v35 = vadd.f32 %v9342_v51, %v1434_v33 }
 0x15d   : > { %v7564_v36 = vpack.c.bf16 %v1086_v32, %v1084_v31 }
 0x15e   : > { %v7644_v37 = vpack.c.bf16 %v1435_v35, %v1433_v34 }
 0x15f   : > { %7712 = vst [vmem:[#allocation2 + $0x58] sm:$0xff] %v7564_v36  }
 0x160   : > { %7727 = vst [vmem:[#allocation3 + $0x10] sm:$0xff] %v7644_v37   ;;  %v1125_v38 = vpop.f32.mrf.mxu2 }
 0x161   : > { %v1126_v40 = vadd.f32 %v9337_v50, %v1125_v38  ;;  %v1474_v41 = vpop.f32.mrf.mxu3 }
 0x162   : > { %v1475_v43 = vadd.f32 %v9342_v51, %v1474_v41  ;;  %v1088_v44 = vpop.f32.mrf.mxu0 }
 0x163   : > { %v7604_v45 = vpack.c.bf16 %v1126_v40, %v1124_v39  ;;  %v1437_v46 = vpop.f32.mrf.mxu1  ;;  %v1089_v53 = vadd.f32 %v9337_v50, %v1088_v44 }
 0x164   : > { %v7684_v47 = vpack.c.bf16 %v1475_v43, %v1473_v42  ;;  %v1438_v56 = vadd.f32 %v9342_v51, %v1437_v46 }
 0x165   : > { %7720 = vst [vmem:[#allocation2 + $0x10] sm:$0xff] %v7604_v45  }
 0x166   : > { %7735 = vst [vmem:[#allocation3 + $0x18] sm:$0xff] %v7684_v47  }
 0x168   : > { %v1128_v48 = vpop.f32.mrf.mxu2 }
 0x169   : > { %v1477_v49 = vpop.f32.mrf.mxu3  ;;  %v1129_v61 = vadd.f32 %v9337_v50, %v1128_v48 }
 0x16a   : > { %v1090_v52 = vpop.f32.mrf.mxu0  ;;  %v1478_v0 = vadd.f32 %v9342_v51, %v1477_v49 }
 0x16b   : > { %v1091_v54 = vadd.f32 %v9337_v50, %v1090_v52  ;;  %v1439_v55 = vpop.f32.mrf.mxu1 }
 0x16c   : > { %v1440_v57 = vadd.f32 %v9342_v51, %v1439_v55 }
 0x16d   : > { %v7569_v58 = vpack.c.bf16 %v1091_v54, %v1089_v53 }
 0x16e   : > { %v7649_v59 = vpack.c.bf16 %v1440_v57, %v1438_v56 }
 0x16f   : > { %7713 = vst [vmem:[#allocation2 + $0x18] sm:$0xff] %v7569_v58  }
 0x170   : > { %7728 = vst [vmem:[#allocation3 + $0x40] sm:$0xff] %v7649_v59   ;;  %v1130_v60 = vpop.f32.mrf.mxu2 }
 0x171   : > { %v1131_v62 = vadd.f32 %v9337_v50, %v1130_v60  ;;  %v1479_v63 = vpop.f32.mrf.mxu3 }
 0x172   : > { %v1480_v1 = vadd.f32 %v9342_v51, %v1479_v63  ;;  %v1093_v2 = vpop.f32.mrf.mxu0 }
 0x173   : > { %v7609_v3 = vpack.c.bf16 %v1131_v62, %v1129_v61  ;;  %v1442_v4 = vpop.f32.mrf.mxu1  ;;  %v1094_v9 = vadd.f32 %v9337_v50, %v1093_v2 }
 0x174   : > { %v7689_v5 = vpack.c.bf16 %v1480_v1, %v1478_v0  ;;  %v1443_v12 = vadd.f32 %v9342_v51, %v1442_v4 }
 0x175   : > { %7721 = vst [vmem:[#allocation2 + $0x38] sm:$0xff] %v7609_v3  }
 0x176   : > { %7736 = vst [vmem:[#allocation3 + $0x58] sm:$0xff] %v7689_v5  }
 0x178   : > { %v1133_v6 = vpop.f32.mrf.mxu2 }
 0x179   : > { %v1482_v7 = vpop.f32.mrf.mxu3  ;;  %v1134_v17 = vadd.f32 %v9337_v50, %v1133_v6 }
 0x17a   : > { %v1095_v8 = vpop.f32.mrf.mxu0  ;;  %v1483_v20 = vadd.f32 %v9342_v51, %v1482_v7 }
 0x17b   : > { %v1096_v10 = vadd.f32 %v9337_v50, %v1095_v8  ;;  %v1444_v11 = vpop.f32.mrf.mxu1 }
 0x17c   : > { %v1445_v13 = vadd.f32 %v9342_v51, %v1444_v11 }
 0x17d   : > { %v7574_v14 = vpack.c.bf16 %v1096_v10, %v1094_v9 }
 0x17e   : > { %v7654_v15 = vpack.c.bf16 %v1445_v13, %v1443_v12 }
 0x17f   : > { %7714 = vst [vmem:[#allocation2 + $0x50] sm:$0xff] %v7574_v14  }
 0x180   : > { %7729 = vst [vmem:[#allocation3 + $0x48] sm:$0xff] %v7654_v15   ;;  %v1135_v16 = vpop.f32.mrf.mxu2 }
 0x181   : > { %v1136_v18 = vadd.f32 %v9337_v50, %v1135_v16  ;;  %v1484_v19 = vpop.f32.mrf.mxu3 }
 0x182   : > { %v1485_v21 = vadd.f32 %v9342_v51, %v1484_v19  ;;  %v1098_v22 = vpop.f32.mrf.mxu0 }
 0x183   : > { %v7614_v23 = vpack.c.bf16 %v1136_v18, %v1134_v17  ;;  %v1447_v24 = vpop.f32.mrf.mxu1  ;;  %v1099_v29 = vadd.f32 %v9337_v50, %v1098_v22 }
 0x184   : > { %v7694_v25 = vpack.c.bf16 %v1485_v21, %v1483_v20  ;;  %v1448_v32 = vadd.f32 %v9342_v51, %v1447_v24 }
 0x185   : > { %7722 = vst [vmem:[#allocation2 + $0x60] sm:$0xff] %v7614_v23  }
 0x186   : > { %7737 = vst [vmem:[#allocation3] sm:$0xff] %v7694_v25  }
 0x188   : > { %v1138_v26 = vpop.f32.mrf.mxu2 }
 0x189   : > { %v1487_v27 = vpop.f32.mrf.mxu3  ;;  %v1139_v37 = vadd.f32 %v9337_v50, %v1138_v26 }
 0x18a   : > { %v1100_v28 = vpop.f32.mrf.mxu0  ;;  %v1488_v40 = vadd.f32 %v9342_v51, %v1487_v27 }
 0x18b   : > { %v1101_v30 = vadd.f32 %v9337_v50, %v1100_v28  ;;  %v1449_v31 = vpop.f32.mrf.mxu1 }
 0x18c   : > { %v1450_v33 = vadd.f32 %v9342_v51, %v1449_v31 }
 0x18d   : > { %v7579_v34 = vpack.c.bf16 %v1101_v30, %v1099_v29 }
 0x18e   : > { %v7659_v35 = vpack.c.bf16 %v1450_v33, %v1448_v32 }
 0x18f   : > { %7715 = vst [vmem:[#allocation2 + $0x68] sm:$0xff] %v7579_v34  }
 0x190   : > { %7730 = vst [vmem:[#allocation3 + $0x30] sm:$0xff] %v7659_v35   ;;  %v1140_v36 = vpop.f32.mrf.mxu2 }
 0x191   : > { %v1141_v38 = vadd.f32 %v9337_v50, %v1140_v36  ;;  %v1489_v39 = vpop.f32.mrf.mxu3 }
 0x192   : > { %v1490_v41 = vadd.f32 %v9342_v51, %v1489_v39  ;;  %v1103_v42 = vpop.f32.mrf.mxu0 }
 0x193   : > { %v7619_v43 = vpack.c.bf16 %v1141_v38, %v1139_v37  ;;  %v1452_v44 = vpop.f32.mrf.mxu1  ;;  %v1104_v49 = vadd.f32 %v9337_v50, %v1103_v42 }
 0x194   : > { %v7699_v45 = vpack.c.bf16 %v1490_v41, %v1488_v40  ;;  %v1453_v54 = vadd.f32 %v9342_v51, %v1452_v44 }
 0x195   : > { %7723 = vst [vmem:[#allocation2 + $0x70] sm:$0xff] %v7619_v43  }
 0x196   : > { %7738 = vst [vmem:[#allocation3 + $0x8] sm:$0xff] %v7699_v45  }
 0x198   : > { %v1143_v46 = vpop.f32.mrf.mxu2 }
 0x199   : > { %v1492_v47 = vpop.f32.mrf.mxu3  ;;  %v1144_v59 = vadd.f32 %v9337_v50, %v1143_v46 }
 0x19a   : > { %v1105_v48 = vpop.f32.mrf.mxu0  ;;  %v1493_v62 = vadd.f32 %v9342_v51, %v1492_v47 }
 0x19b   : > { %v1106_v52 = vadd.f32 %v9337_v50, %v1105_v48  ;;  %v1454_v53 = vpop.f32.mrf.mxu1 }
 0x19c   : > { %v1455_v55 = vadd.f32 %v9342_v51, %v1454_v53 }
 0x19d   : > { %v7584_v56 = vpack.c.bf16 %v1106_v52, %v1104_v49 }
 0x19e   : > { %v7664_v57 = vpack.c.bf16 %v1455_v55, %v1453_v54 }
 0x19f   : > { %7716 = vst [vmem:[#allocation2 + $0x8] sm:$0xff] %v7584_v56  }
 0x1a0   : > { %7731 = vst [vmem:[#allocation3 + $0x70] sm:$0xff] %v7664_v57   ;;  %v1145_v58 = vpop.f32.mrf.mxu2 }
 0x1a1   : > { %v1146_v60 = vadd.f32 %v9337_v50, %v1145_v58  ;;  %v1494_v61 = vpop.f32.mrf.mxu3 }
 0x1a2   : > { %v1495_v63 = vadd.f32 %v9342_v51, %v1494_v61  ;;  %v1108_v0 = vpop.f32.mrf.mxu0 }
 0x1a3   : > { %v7624_v1 = vpack.c.bf16 %v1146_v60, %v1144_v59  ;;  %v1457_v2 = vpop.f32.mrf.mxu1  ;;  %v1109_v7 = vadd.f32 %v9337_v50, %v1108_v0 }
 0x1a4   : > { %v7704_v3 = vpack.c.bf16 %v1495_v63, %v1493_v62  ;;  %v1458_v10 = vadd.f32 %v9342_v51, %v1457_v2 }
 0x1a5   : > { %7724 = vst [vmem:[#allocation2 + $0x78] sm:$0xff] %v7624_v1  }
 0x1a6   : > { %7739 = vst [vmem:[#allocation3 + $0x60] sm:$0xff] %v7704_v3  }
 0x1a8   : > { %v1148_v4 = vpop.f32.mrf.mxu2 }
 0x1a9   : > { %v1497_v5 = vpop.f32.mrf.mxu3  ;;  %v1149_v15 = vadd.f32 %v9337_v50, %v1148_v4 }
 0x1aa   : > { %v1110_v6 = vpop.f32.mrf.mxu0  ;;  %v1498_v18 = vadd.f32 %v9342_v51, %v1497_v5 }
 0x1ab   : > { %v1111_v8 = vadd.f32 %v9337_v50, %v1110_v6  ;;  %v1459_v9 = vpop.f32.mrf.mxu1 }
 0x1ac   : > { %v1460_v11 = vadd.f32 %v9342_v51, %v1459_v9 }
 0x1ad   : > { %v7589_v12 = vpack.c.bf16 %v1111_v8, %v1109_v7 }
 0x1ae   : > { %v7669_v13 = vpack.c.bf16 %v1460_v11, %v1458_v10 }
 0x1af   : > { %7717 = vst [vmem:[#allocation2 + $0x48] sm:$0xff] %v7589_v12  }
 0x1b0   : > { %7732 = vst [vmem:[#allocation3 + $0x38] sm:$0xff] %v7669_v13   ;;  %v1150_v14 = vpop.f32.mrf.mxu2 }
 0x1b1   : > { %v1151_v16 = vadd.f32 %v9337_v50, %v1150_v14  ;;  %v1499_v17 = vpop.f32.mrf.mxu3 }
 0x1b2   : > { %v1500_v19 = vadd.f32 %v9342_v51, %v1499_v17 }
 0x1b3   : > { %v7629_v20 = vpack.c.bf16 %v1151_v16, %v1149_v15 }
 0x1b4   : > { %v7709_v21 = vpack.c.bf16 %v1500_v19, %v1498_v18 }
 0x1b5   : > { %7725 = vst [vmem:[#allocation2 + $0x28] sm:$0xff] %v7629_v20  }
 0x1b6   : > { %7740 = vst [vmem:[#allocation3 + $0x50] sm:$0xff] %v7709_v21  }
 0x1b7 PF: > { %v7477_v22 = vld [vmem:[#allocation10 + $0x38] sm:$0xff]  ;;  %v7476_v23 = vld [vmem:[#allocation10 + $0x30] sm:$0xff]  ;;  %v7475_v24 = vld [vmem:[#allocation10 + $0x28] sm:$0xff]  ;;  %vm1875_vm0 = vcmask 261120   ;;  %s8910_s21 = smov 96   ;;  %s8911_s29 = smov 64  }
 0x1b8   : > { %1658 = vmatpush.bf16.msra.mxu0 %v7477_v22  ;;  %v7474_v50 = vld [vmem:[#allocation10 + $0x20] sm:$0xff]  ;;  %v7473_v25 = vld [vmem:[#allocation10 + $0x18] sm:$0xff]  ;;  %v7472_v51 = vld [vmem:[#allocation10 + $0x10] sm:$0xff]  ;;  %s12400_s7 = sld [smem:[#allocation96_spill]]  ;;  %s8912_s24 = smov 32   ;;  %vm5064_vm1 = vcmask 785408  }
 0x1b9   : > { %v7471_v26 = vld [vmem:[#allocation10 + $0x8] sm:$0xff]  ;;  %v7470_v27 = vld [vmem:[#allocation10] sm:$0xff]  ;;  %v1568_v31 = vld [vmem:[%s9268_s0 + $0x10] sm:$0xff]  ;;  %vm5047_vm2 = vcmask 523264   ;;  %s12571_s14 = sld [smem:[#allocation100_spill]]  ;;  %s6461_s8 = scalar_lea.sflag [#allocation6], %s9264_s22 }
 0x1ba   : > { %v1566_v28 = vld [vmem:[%s9268_s0] sm:$0xff]  ;;  %v1567_v29 = vld [vmem:[%s9268_s0 + $0x8] sm:$0xff]  ;;  %v1569_v32 = vld [vmem:[%s9268_s0 + $0x18] sm:$0xff]  ;;  %s12579_s16 = sld [smem:[#allocation105_spill]] }
 0x1bb   : > { %v1582_v30 = vpack.c.bf16 %v1567_v29, %v1566_v28  ;;  %v1583_v33 = vpack.c.bf16 %v1569_v32, %v1568_v31  ;;  %v1570_v34 = vld [vmem:[%s9268_s0 + $0x20] sm:$0xff]  ;;  %v1571_v35 = vld [vmem:[%s9268_s0 + $0x28] sm:$0xff]  ;;  %v1572_v42 = vld [vmem:[%s9268_s0 + $0x30] sm:$0xff]  ;;  %s12580_s10 = sld [smem:[#allocation106_spill]] }
 0x1bc   : > { %1659 = vmatpush.bf16.msra.mxu0 %v7476_v23  ;;  %v1584_v36 = vpack.c.bf16 %v1571_v35, %v1570_v34  ;;  %v9414_v37 = vld [vmem:[#allocation2 + $0x8] sm:$0xff]  ;;  %v1573_v43 = vld [vmem:[%s9268_s0 + $0x38] sm:$0xff]  ;;  %v7491_v52 = vld [vmem:[#allocation2 + $0x70] sm:$0xff]  ;;  %s12581_s5 = sld [smem:[#allocation102_spill]] }
 0x1bd   : > { %v9416_v38 = vld [vmem:[#allocation2 + $0x48] sm:$0xff]  ;;  %2644 = vrot.lane.b32.xlu0 %v9414_v37, %s8910_s21  ;;  %v1585_v44 = vpack.c.bf16 %v1573_v43, %v1572_v42  ;;  %v9432_v45 = vld [vmem:[#allocation2 + $0x18] sm:$0xff]  ;;  %v1919_v46 = vsel %vm1875_vm0, %v9414_v37, 0  ;;  %v1940_v55 = vsel %vm1875_vm0, %v7491_v52, 0  ;;  %v1574_v56 = vld [vmem:[%s9268_s0 + $0x40] sm:$0xff]  ;;  %s12582_s12 = sld [smem:[#allocation104_spill]] }
 0x1be   : > { %v9418_v39 = vld [vmem:[#allocation2 + $0x28] sm:$0xff]  ;;  %v1922_v40 = vsel %vm1875_vm0, %v9416_v38, 0  ;;  %2646 = vrot.lane.b32.xlu1 %v9416_v38, %s8910_s21  ;;  %v7492_v47 = vld [vmem:[#allocation2 + $0x78] sm:$0xff]  ;;  %v9449_v59 = vld [vmem:[#allocation2 + $0x10] sm:$0xff]  ;;  %v1910_v2 = vsel %vm1875_vm0, %v9432_v45, 0  ;;  %s12583_s18 = sld [smem:[#allocation107_spill]] }
 0x1bf   : > { %v1946_v41 = vsel %vm1875_vm0, %v9418_v39, 0  ;;  %2662 = vrot.lane.b32.xlu2 %v9418_v39, %s8910_s21  ;;  %1948 = vmatpush.bf16.xpose.msra.mxu1 %v1922_v40  ;;  %v1943_v48 = vsel %vm1875_vm0, %v7492_v47, 0  ;;  %v7483_v49 = vld [vmem:[#allocation2 + $0x68] sm:$0xff]  ;;  %v9440_v53 = vld [vmem:[#allocation2 + $0x58] sm:$0xff]  ;;  %v7482_v60 = vld [vmem:[#allocation2 + $0x50] sm:$0xff]  ;;  %v1931_v9 = vsel %vm1875_vm0, %v9449_v59, 0 }
 0x1c0   : > { %1660 = vmatpush.bf16.msra.mxu0 %v7475_v24  ;;  %1997 = vmatpush.bf16.xpose.msra.mxu2 %v1946_v41  ;;  %v1916_v54 = vsel %vm1875_vm0, %v7483_v49, 0  ;;  %v1575_v57 = vld [vmem:[%s9268_s0 + $0x48] sm:$0xff]  ;;  %v7490_v61 = vld [vmem:[#allocation2 + $0x60] sm:$0xff]  ;;  %v7489_v62 = vld [vmem:[#allocation2 + $0x38] sm:$0xff]  ;;  %v1913_v63 = vsel %vm1875_vm0, %v7482_v60, 0  ;;  %v1907_v8 = vsel %vm1875_vm0, %v9440_v53, 0 }
 0x1c1   : > { %v1586_v58 = vpack.c.bf16 %v1575_v57, %v1574_v56  ;;  %v1937_v0 = vsel %vm1875_vm0, %v7490_v61, 0  ;;  %v9457_v1 = vld [vmem:[#allocation2 + $0x30] sm:$0xff]  ;;  %v1934_v3 = vsel %vm1875_vm0, %v7489_v62, 0  ;;  %v1577_v5 = vld [vmem:[%s9268_s0 + $0x58] sm:$0xff]  ;;  %v9467_v7 = vld [vmem:[#allocation2] sm:$0xff]  ;;  %s12585_s19 = sld [smem:[#allocation33_spill]] }
 0x1c2   : > { %v1576_v4 = vld [vmem:[%s9268_s0 + $0x50] sm:$0xff]  ;;  %v9477_v10 = vld [vmem:[#allocation2 + $0x40] sm:$0xff]  ;;  %v1579_v12 = vld [vmem:[%s9268_s0 + $0x68] sm:$0xff]  ;;  %v1904_v15 = vsel %vm1875_vm0, %v9467_v7, 0  ;;  %v1901_v17 = vsel %vm1875_vm0, %v9457_v1, 0  ;;  %s12586_s3 = sld [smem:[#allocation34_spill]] }
 0x1c3   : > { %v1587_v6 = vpack.c.bf16 %v1577_v5, %v1576_v4  ;;  %v1578_v11 = vld [vmem:[%s9268_s0 + $0x60] sm:$0xff]  ;;  %v1925_v18 = vsel %vm1875_vm0, %v9477_v10, 0  ;;  %v1580_v19 = vld [vmem:[%s9268_s0 + $0x70] sm:$0xff]  ;;  %v1581_v20 = vld [vmem:[%s9268_s0 + $0x78] sm:$0xff] }
 0x1c4   : > { %1661 = vmatpush.bf16.msra.mxu0 %v7474_v50  ;;  %v9484_v13 = vld [vmem:[#allocation2 + $0x20] sm:$0xff]  ;;  %v1588_v14 = vpack.c.bf16 %v1579_v12, %v1578_v11  ;;  %v1589_v21 = vpack.c.bf16 %v1581_v20, %v1580_v19 }
 0x1c5   : > { %2638 = vrot.lane.b32.xlu0 %v9432_v45, %s8910_s21  ;;  %v1928_v16 = vsel %vm1875_vm0, %v9484_v13, 0  ;;  %v9513_v23 = vld [vmem:[%s12400_s7] ss:$0 sm:$0xff] }
 0x1c6   : > { %2654 = vrot.lane.b32.xlu1 %v7489_v62, %s8910_s21 }
 0x1c7   : > { %1949 = vmatpush.bf16.xpose.msra.mxu1 %v1919_v46  ;;  %2660 = vrot.lane.b32.xlu2 %v7492_v47, %s8910_s21 }
 0x1c8   : > { %1662 = vmatpush.bf16.msra.mxu0 %v7473_v25  ;;  %1998 = vmatpush.bf16.xpose.msra.mxu2 %v1943_v48  ;;  %s7412_s11 = sshll.u32 %s12586_s3, 5 }
 0x1cc   : > { %1663 = vmatpush.bf16.msra.mxu0 %v7472_v51 }
 0x1cd   : > { %2636 = vrot.lane.b32.xlu0 %v9440_v53, %s8910_s21 }
 0x1ce   : > { %2634 = vrot.lane.b32.xlu1 %v9467_v7, %s8910_s21 }
 0x1cf   : > { %1950 = vmatpush.bf16.xpose.msra.mxu1 %v1916_v54  ;;  %2642 = vrot.lane.b32.xlu2 %v7483_v49, %s8910_s21 }
 0x1d0   : > { %1664 = vmatpush.bf16.msra.mxu0 %v7471_v26  ;;  %1999 = vmatpush.bf16.xpose.msra.mxu2 %v1940_v55 }
 0x1d4   : > { %1665 = vmatpush.bf16.msra.mxu0 %v7470_v27 }
 0x1d5   : > { %2652 = vrot.lane.b32.xlu0 %v9449_v59, %s8910_s21 }
 0x1d6   : > { %2648 = vrot.lane.b32.xlu1 %v9477_v10, %s8910_s21 }
 0x1d7   : > { %1666 = vmatmul.bf16.vlgmr.msra.gmra.mxu0 %v1582_v30  ;;  %2658 = vrot.lane.b32.xlu2 %v7491_v52, %s8910_s21 }
 0x1d8   : > { %1951 = vmatpush.bf16.xpose.msra.mxu1 %v1913_v63  ;;  %2000 = vmatpush.bf16.xpose.msra.mxu2 %v1937_v0 }
 0x1dd   : > { %2632 = vrot.lane.b32.xlu0 %v9457_v1, %s8910_s21 }
 0x1de   : > { %3379 = vrot.lane.b32.xlu1 %v9416_v38, %s8911_s29 }
 0x1df   : > { %2640 = vrot.lane.b32.xlu2 %v7482_v60, %s8910_s21 }
 0x1e0   : > { %1952 = vmatpush.bf16.xpose.msra.mxu1 %v1910_v2  ;;  %2001 = vmatpush.bf16.xpose.msra.mxu2 %v1934_v3 }
 0x1e5   : > { %3393 = vrot.lane.b32.xlu0 %v7492_v47, %s8911_s29 }
 0x1e6   : > { %3395 = vrot.lane.b32.xlu1 %v9418_v39, %s8911_s29 }
 0x1e7   : > { %1671 = vmatmul.bf16.gmra.mxu0 %v1583_v33  ;;  %2656 = vrot.lane.b32.xlu2 %v7490_v61, %s8910_s21 }
 0x1e8   : > { %1953 = vmatpush.bf16.xpose.msra.mxu1 %v1907_v8  ;;  %2002 = vmatpush.bf16.xpose.msra.mxu2 %v1931_v9 }
 0x1ed   : > { %3375 = vrot.lane.b32.xlu0 %v7483_v49, %s8911_s29 }
 0x1ee   : > { %3377 = vrot.lane.b32.xlu1 %v9414_v37, %s8911_s29 }
 0x1ef   : > { %2650 = vrot.lane.b32.xlu2 %v9484_v13, %s8910_s21 }
 0x1f0   : > { %1954 = vmatpush.bf16.xpose.msra.mxu1 %v1904_v15  ;;  %2003 = vmatpush.bf16.xpose.msra.mxu2 %v1928_v16 }
 0x1f5   : > { %3391 = vrot.lane.b32.xlu0 %v7491_v52, %s8911_s29 }
 0x1f7   : > { %1676 = vmatmul.bf16.gmra.mxu0 %v1584_v36  ;;  %3373 = vrot.lane.b32.xlu2 %v7482_v60, %s8911_s29 }
 0x1f8   : > { %1955 = vmatpush.bf16.xpose.msra.mxu1 %v1901_v17  ;;  %2004 = vmatpush.bf16.xpose.msra.mxu2 %v1925_v18 }
 0x1ff   : > { %3389 = vrot.lane.b32.xlu2 %v7490_v61, %s8911_s29 }
 0x207   : > { %1681 = vmatmul.bf16.gmra.mxu0 %v1585_v44  ;;  %3371 = vrot.lane.b32.xlu2 %v9432_v45, %s8911_s29 }
 0x20f   : > { %3387 = vrot.lane.b32.xlu2 %v7489_v62, %s8911_s29 }
 0x217   : > { %1686 = vmatmul.bf16.gmra.mxu0 %v1586_v58 }
 0x219   : > { %v2663_v35 = vpop.permute.xlu2 %2662 }
 0x21a   : > { %v2734_v46 = vsel %vm1875_vm0, %v2663_v35, 0 }
 0x21b   : > { %2785 = vmatpush.bf16.xpose.msrb.mxu1 %v2734_v46  ;;  %v9614_v46 = vld [vmem:[#allocation3 + $0x38] sm:$0xff] }
 0x21c   : > { %7757 = vmatpush.bf16.msra.mxu3 %v9614_v46  ;;  %2494 = vmatpush.bf16.msrb.mxu2 %v9614_v46 }
 0x221   : > { %v2661_v37 = vpop.permute.xlu2 %2660 }
 0x222   : > { %v2731_v52 = vsel %vm1875_vm0, %v2661_v37, 0 }
 0x223   : > { %2786 = vmatpush.bf16.xpose.msrb.mxu1 %v2731_v52 }
 0x227   : > { %1691 = vmatmul.bf16.gmra.mxu0 %v1587_v6 }
 0x229   : > { %v9539_v44 = vpop.permute.xlu2 %2642 }
 0x22f   : > { %v9551_v55 = vpop.permute.xlu0 %2644 }
 0x230   : > { %v9553_v56 = vpop.permute.xlu1 %2646 }
 0x231   : > { %v2659_v47 = vpop.permute.xlu2 %2658 }
 0x232   : > { %v2728_v63 = vsel %vm1875_vm0, %v2659_v47, 0 }
 0x233   : > { %2787 = vmatpush.bf16.xpose.msrb.mxu1 %v2728_v63 }
 0x237   : > { %1696 = vmatmul.bf16.gmra.mxu0 %v1588_v14  ;;  %v9566_v2 = vpop.permute.xlu0 %2638 }
 0x238   : > { %v2655_v0 = vpop.permute.xlu1 %2654 }
 0x239   : > { %v9557_v61 = vpop.permute.xlu2 %2640  ;;  %v2722_v17 = vsel %vm1875_vm0, %v2655_v0, 0  ;;  %v9632_v0 = vld [vmem:[#allocation3 + $0x48] sm:$0xff] }
 0x23a   : > { %12404 = vst [vmem:[#allocation46_spill] sm:$0xff] %v9632_v0 }
 0x23f   : > { %v9575_v15 = vpop.permute.xlu0 %2636 }
 0x240   : > { %v9571_v9 = vpop.permute.xlu1 %2634 }
 0x241   : > { %v2657_v3 = vpop.permute.xlu2 %2656 }
 0x242   : > { %v2725_v6 = vsel %vm1875_vm0, %v2657_v3, 0 }
 0x243   : > { %2788 = vmatpush.bf16.xpose.msrb.mxu1 %v2725_v6 }
 0x247   : > { %1701 = vmatmul.bf16.gmra.mxu0 %v1589_v21  ;;  %v2653_v20 = vpop.permute.xlu0 %2652 }
 0x248   : > { %v2649_v18 = vpop.permute.xlu1 %2648 }
 0x24b   : > { %2789 = vmatpush.bf16.xpose.msrb.mxu1 %v2722_v17 }
 0x254   : > { %v1667_v22 = vpop.f32.mrf.mxu0 }
 0x255   : > { %v1668_v24 = vadd.f32 %v9513_v23, %v1667_v22  ;;  %v2719_v22 = vsel %vm1875_vm0, %v2653_v20, 0  ;;  %v2707_v20 = vsel %vm1875_vm0, %v9551_v55, 0 }
 0x256   : > { %2790 = vmatpush.bf16.xpose.msrb.mxu1 %v2719_v22 }
 0x257   : > { %v1707_v51 = vmul.f32 0.17677669, %v1668_v24 }
 0x25c   : > { %v1669_v50 = vpop.f32.mrf.mxu0 }
 0x25d   : > { %v1670_v25 = vadd.f32 %v9513_v23, %v1669_v50 }
 0x25f   : > { %v1708_v26 = vmul.f32 0.17677669, %v1670_v25 }
 0x261   : > { %v9517_v27 = vpack.c.bf16 %v1708_v26, %v1707_v51  ;;  %v9587_v51 = vpop.permute.xlu1 %3379 }
 0x263   : > { %12401 = vst [vmem:[#allocation43_spill] sm:$0xff] %v9517_v27  ;;  %2616 = vrot.lane.b32.xlu0 %v9517_v27, %s8910_s21  ;;  %7073 = vmatmul.msk.bf16.vlgmr.msra.gmra.mxu1 %vm1875_vm0, %v9517_v27 }
 0x264   : > { %7081 = vmatmul.msk.bf16.vlgmr.msra.gmra.mxu2 %vm1875_vm0, %v9517_v27  ;;  %v1672_v28 = vpop.f32.mrf.mxu0 }
 0x265   : > { %v1673_v29 = vadd.f32 %v9513_v23, %v1672_v28  ;;  %v2651_v28 = vpop.permute.xlu2 %2650 }
 0x267   : > { %v1709_v32 = vmul.f32 0.17677669, %v1673_v29  ;;  %v2716_v29 = vsel %vm1875_vm0, %v2651_v28, 0 }
 0x268   : > { %2791 = vmatpush.bf16.xpose.msrb.mxu1 %v2716_v29  ;;  %v2701_v29 = vsel %vm1875_vm0, %v9557_v61, 0 }
 0x26c   : > { %v1674_v30 = vpop.f32.mrf.mxu0 }
 0x26d   : > { %v1675_v31 = vadd.f32 %v9513_v23, %v1674_v30 }
 0x26f   : > { %v1710_v33 = vmul.f32 0.17677669, %v1675_v31  ;;  %v9598_v31 = vpop.permute.xlu0 %2632 }
 0x271   : > { %v9527_v34 = vpack.c.bf16 %v1710_v33, %v1709_v32  ;;  %v3396_v32 = vpop.permute.xlu1 %3395  ;;  %v2713_v33 = vsel %vm1875_vm0, %v2649_v18, 0 }
 0x272   : > { %2792 = vmatpush.bf16.xpose.msrb.mxu1 %v2713_v33 }
 0x273   : > { %2618 = vrot.lane.b32.xlu1 %v9527_v34, %s8910_s21  ;;  %7074 = vmatmul.msk.bf16.gmra.mxu1 %vm1875_vm0, %v9527_v34 }
 0x274   : > { %7082 = vmatmul.msk.bf16.gmra.mxu2 %vm1875_vm0, %v9527_v34  ;;  %v1677_v36 = vpop.f32.mrf.mxu0 }
 0x275   : > { %v1678_v38 = vadd.f32 %v9513_v23, %v1677_v36  ;;  %v3467_v36 = vsel %vm1875_vm0, %v3396_v32, 0 }
 0x277   : > { %v1711_v41 = vmul.f32 0.17677669, %v1678_v38 }
 0x279   : > { %v9660_v17 = vpop.permute.xlu1 %3377 }
 0x27a   : > { %3518 = vmatpush.bf16.xpose.msra.mxu1 %v3467_v36 }
 0x27c   : > { %v1679_v39 = vpop.f32.mrf.mxu0 }
 0x27d   : > { %v1680_v40 = vadd.f32 %v9513_v23, %v1679_v39 }
 0x27f   : > { %v1712_v42 = vmul.f32 0.17677669, %v1680_v40 }
 0x281   : > { %v9537_v43 = vpack.c.bf16 %v1712_v42, %v1711_v41  ;;  %v9610_v42 = vpop.permute.xlu0 %3393 }
 0x283   : > { %2620 = vrot.lane.b32.xlu0 %v9537_v43, %s8910_s21  ;;  %7075 = vmatmul.msk.bf16.gmra.mxu1 %vm1875_vm0, %v9537_v43 }
 0x284   : > { %7083 = vmatmul.msk.bf16.gmra.mxu2 %vm1875_vm0, %v9537_v43  ;;  %v1682_v45 = vpop.f32.mrf.mxu0 }
 0x285   : > { %v1683_v48 = vadd.f32 %v9513_v23, %v1682_v45 }
 0x287   : > { %v1713_v57 = vmul.f32 0.17677669, %v1683_v48  ;;  %v9619_v48 = vld [vmem:[#allocation3 + $0x70] sm:$0xff] }
 0x288   : > { %12402 = vst [vmem:[#allocation44_spill] sm:$0xff] %v9619_v48  ;;  %7758 = vmatpush.bf16.msra.mxu3 %v9619_v48  ;;  %2495 = vmatpush.bf16.msrb.mxu2 %v9619_v48 }
 0x28c   : > { %v1684_v49 = vpop.f32.mrf.mxu0 }
 0x28d   : > { %v1685_v54 = vadd.f32 %v9513_v23, %v1684_v49 }
 0x28f   : > { %v1714_v58 = vmul.f32 0.17677669, %v1685_v54 }
 0x291   : > { %v9555_v60 = vpack.c.bf16 %v1714_v58, %v1713_v57  ;;  %v9624_v57 = vld [vmem:[#allocation3 + $0x30] sm:$0xff]  ;;  %v9626_v58 = vpop.permute.xlu0 %3375 }
 0x292   : > { %7759 = vmatpush.bf16.msra.mxu3 %v9624_v57  ;;  %2496 = vmatpush.bf16.msrb.mxu2 %v9624_v57 }
 0x293   : > { %2622 = vrot.lane.b32.xlu1 %v9555_v60, %s8910_s21  ;;  %7076 = vmatmul.msk.bf16.gmra.mxu1 %vm1875_vm0, %v9555_v60 }
 0x294   : > { %7084 = vmatmul.msk.bf16.gmra.mxu2 %vm1875_vm0, %v9555_v60  ;;  %v1687_v62 = vpop.f32.mrf.mxu0 }
 0x295   : > { %v1688_v4 = vadd.f32 %v9513_v23, %v1687_v62 }
 0x296   : > { %7760 = vmatpush.bf16.msra.mxu3 %v9632_v0  ;;  %2497 = vmatpush.bf16.msrb.mxu2 %v9632_v0 }
 0x297   : > { %v1715_v11 = vmul.f32 0.17677669, %v1688_v4  ;;  %v9645_v4 = vld [vmem:[#allocation3 + $0x10] sm:$0xff] }
 0x298   : > { %12406 = vst [vmem:[#allocation48_spill] sm:$0xff] %v9645_v4 }
 0x299   : > { %v9643_v3 = vpop.permute.xlu0 %3391 }
 0x29c   : > { %v1689_v5 = vpop.f32.mrf.mxu0 }
 0x29d   : > { %v1690_v8 = vadd.f32 %v9513_v23, %v1689_v5  ;;  %v7495_v5 = vld [vmem:[#allocation3 + $0x68] sm:$0xff] }
 0x29f   : > { %v1716_v12 = vmul.f32 0.17677669, %v1690_v8  ;;  %v7494_v8 = vld [vmem:[#allocation3 + $0x28] sm:$0xff] }
 0x2a1   : > { %v9573_v14 = vpack.c.bf16 %v1716_v12, %v1715_v11  ;;  %v2710_v12 = vsel %vm1875_vm0, %v9553_v56, 0 }
 0x2a3   : > { %2624 = vrot.lane.b32.xlu1 %v9573_v14, %s8910_s21  ;;  %7077 = vmatmul.msk.bf16.gmra.mxu1 %vm1875_vm0, %v9573_v14 }
 0x2a4   : > { %7085 = vmatmul.msk.bf16.gmra.mxu2 %vm1875_vm0, %v9573_v14  ;;  %v1692_v16 = vpop.f32.mrf.mxu0 }
 0x2a5   : > { %v1693_v19 = vadd.f32 %v9513_v23, %v1692_v16 }
 0x2a7   : > { %v1717_v50 = vmul.f32 0.17677669, %v1693_v19 }
 0x2ac   : > { %v1694_v21 = vpop.f32.mrf.mxu0 }
 0x2ad   : > { %v1695_v24 = vadd.f32 %v9513_v23, %v1694_v21 }
 0x2af   : > { %v1718_v25 = vmul.f32 0.17677669, %v1695_v24 }
 0x2b1   : > { %v9589_v26 = vpack.c.bf16 %v1718_v25, %v1717_v50  ;;  %v2704_v50 = vsel %vm1875_vm0, %v9539_v44, 0 }
 0x2b3   : > { %2626 = vrot.lane.b32.xlu2 %v9589_v26, %s8910_s21  ;;  %7078 = vmatmul.msk.bf16.gmra.mxu1 %vm1875_vm0, %v9589_v26 }
 0x2b4   : > { %7086 = vmatmul.msk.bf16.gmra.mxu2 %vm1875_vm0, %v9589_v26  ;;  %v1697_v30 = vpop.f32.mrf.mxu0 }
 0x2b5   : > { %v1698_v35 = vadd.f32 %v9513_v23, %v1697_v30 }
 0x2b7   : > { %v1719_v39 = vmul.f32 0.17677669, %v1698_v35  ;;  %v2698_v35 = vsel %vm1875_vm0, %v9566_v2, 0 }
 0x2bc   : > { %v1699_v37 = vpop.f32.mrf.mxu0 }
 0x2bd   : > { %v1700_v38 = vadd.f32 %v9513_v23, %v1699_v37 }
 0x2bf   : > { %v1720_v40 = vmul.f32 0.17677669, %v1700_v38  ;;  %v9706_v38 = vpop.permute.xlu2 %3373 }
 0x2c1   : > { %v9604_v41 = vpack.c.bf16 %v1720_v40, %v1719_v39  ;;  %v2695_v39 = vsel %vm1875_vm0, %v9575_v15, 0 }
 0x2c3   : > { %2628 = vrot.lane.b32.xlu1 %v9604_v41, %s8910_s21  ;;  %7079 = vmatmul.msk.bf16.gmra.mxu1 %vm1875_vm0, %v9604_v41 }
 0x2c4   : > { %7087 = vmatmul.msk.bf16.gmra.mxu2 %vm1875_vm0, %v9604_v41  ;;  %v1702_v45 = vpop.f32.mrf.mxu0 }
 0x2c5   : > { %v1703_v47 = vadd.f32 %v9513_v23, %v1702_v45 }
 0x2c7   : > { %v1721_v52 = vmul.f32 0.17677669, %v1703_v47 }
 0x2cc   : > { %v1704_v49 = vpop.f32.mrf.mxu0 }
 0x2cd   : > { %v1705_v54 = vadd.f32 %v9513_v23, %v1704_v49  ;;  %v9639_v23 = vld [vmem:[#allocation3 + $0x40] sm:$0xff]  ;;  %v2692_v49 = vsel %vm1875_vm0, %v9571_v9, 0 }
 0x2ce   : > { %12405 = vst [vmem:[#allocation47_spill] sm:$0xff] %v9639_v23  ;;  %7761 = vmatpush.bf16.msra.mxu3 %v9639_v23  ;;  %2498 = vmatpush.bf16.msrb.mxu2 %v9639_v23 }
 0x2cf   : > { %v1722_v62 = vmul.f32 0.17677669, %v1705_v54 }
 0x2d1   : > { %v9630_v63 = vpack.c.bf16 %v1722_v62, %v1721_v52  ;;  %v9722_v52 = vpop.permute.xlu2 %3389 }
 0x2d2   : > { %7762 = vmatpush.bf16.msra.mxu3 %v9645_v4  ;;  %2499 = vmatpush.bf16.msrb.mxu2 %v9645_v4 }
 0x2d3   : > { %12403 = vst [vmem:[#allocation45_spill] sm:$0xff] %v9630_v63  ;;  %7080 = vmatmul.msk.bf16.gmra.mxu1 %vm1875_vm0, %v9630_v63 }
 0x2d4   : > { %7088 = vmatmul.msk.bf16.gmra.mxu2 %vm1875_vm0, %v9630_v63 }
 0x2d5   : > { %v9652_v11 = vpop.permute.xlu0 %2616 }
 0x2d6   : > { %7763 = vmatpush.bf16.msra.mxu3 %v7495_v5  ;;  %2500 = vmatpush.bf16.msrb.mxu2 %v7495_v5  ;;  %12407 = vst [vmem:[#allocation49_spill] sm:$0xff] %v9652_v11 }
 0x2d9   : > { %v9730_v5 = vpop.permute.xlu2 %3371 }
 0x2da   : > { %7764 = vmatpush.bf16.msra.mxu3 %v7494_v8  ;;  %2501 = vmatpush.bf16.msrb.mxu2 %v7494_v8 }
 0x2de   : > { %2736 = vmatpush.bf16.xpose.msrb.mxu3 %v2710_v12 }
 0x2e0   : > { %v9650_v6 = vpop.f32.mrf.mxu1 }
 0x2e3   : > { %7161 = vmatmul.msk.bf16.vlgmr.msrb.gmra.mxu1 %vm1875_vm0, %v9652_v11 }
 0x2e5   : > { %v9674_v24 = vpop.permute.xlu1 %2618 }
 0x2e6   : > { %2737 = vmatpush.bf16.xpose.msrb.mxu3 %v2707_v20  ;;  %12408 = vst [vmem:[#allocation50_spill] sm:$0xff] %v9674_v24 }
 0x2e7   : > { %v9658_v16 = vpop.f32.mrf.mxu2 }
 0x2e8   : > { %v9662_v18 = vpop.f32.mrf.mxu1  ;;  %v2046_v19 = vmax.f32 %v9650_v6, %v9658_v16 }
 0x2ea   : > { %2047 = vmax.xlane.f32.xlu2 %v2046_v19 }
 0x2ee   : > { %2738 = vmatpush.bf16.xpose.msrb.mxu3 %v2704_v50 }
 0x2ef   : > { %v9668_v56 = vpop.f32.mrf.mxu2 }
 0x2f0   : > { %v9670_v21 = vpop.f32.mrf.mxu1  ;;  %v2049_v22 = vmax.f32 %v9662_v18, %v9668_v56 }
 0x2f2   : > { %2050 = vmax.xlane.f32.xlu0 %v2049_v22  ;;  %v9744_v22 = vpop.permute.xlu2 %3387 }
 0x2f3   : > { %7162 = vmatmul.msk.bf16.gmra.mxu1 %vm1875_vm0, %v9674_v24 }
 0x2f5   : > { %v9694_v33 = vpop.permute.xlu0 %2620 }
 0x2f6   : > { %2739 = vmatpush.bf16.xpose.msrb.mxu3 %v2701_v29  ;;  %12409 = vst [vmem:[#allocation51_spill] sm:$0xff] %v9694_v33  ;;  %v2689_v29 = vsel %vm1875_vm0, %v9598_v31, 0 }
 0x2f7   : > { %v9680_v25 = vpop.f32.mrf.mxu2 }
 0x2f8   : > { %v9682_v55 = vpop.f32.mrf.mxu1  ;;  %v2052_v28 = vmax.f32 %v9670_v21, %v9680_v25 }
 0x2fa   : > { %2053 = vmax.xlane.f32.xlu1 %v2052_v28 }
 0x2fe   : > { %2740 = vmatpush.bf16.xpose.msrb.mxu3 %v2698_v35 }
 0x2ff   : > { %v9688_v30 = vpop.f32.mrf.mxu2 }
 0x300   : > { %v9690_v32 = vpop.f32.mrf.mxu1  ;;  %v2055_v44 = vmax.f32 %v9682_v55, %v9688_v30 }
 0x302   : > { %2056 = vmax.xlane.f32.xlu2 %v2055_v44 }
 0x303   : > { %7163 = vmatmul.msk.bf16.gmra.mxu1 %vm1875_vm0, %v9694_v33 }
 0x305   : > { %v9716_v47 = vpop.permute.xlu1 %2622 }
 0x306   : > { %2741 = vmatpush.bf16.xpose.msrb.mxu3 %v2695_v39  ;;  %12410 = vst [vmem:[#allocation52_spill] sm:$0xff] %v9716_v47 }
 0x307   : > { %v9700_v36 = vpop.f32.mrf.mxu2 }
 0x308   : > { %v9702_v61 = vpop.f32.mrf.mxu1  ;;  %v2058_v37 = vmax.f32 %v9690_v32, %v9700_v36 }
 0x30a   : > { %2059 = vmax.xlane.f32.xlu1 %v2058_v37  ;;  %v3464_v37 = vsel %vm1875_vm0, %v9610_v42, 0 }
 0x30b   : > { %3519 = vmatpush.bf16.xpose.msra.mxu1 %v3464_v37 }
 0x30d   : > { %v9758_v39 = vpop.permute.xlu2 %2626 }
 0x30e   : > { %2742 = vmatpush.bf16.xpose.msrb.mxu3 %v2692_v49  ;;  %12412 = vst [vmem:[#allocation54_spill] sm:$0xff] %v9758_v39 }
 0x30f   : > { %v9710_v40 = vpop.f32.mrf.mxu2 }
 0x310   : > { %v9712_v2 = vpop.f32.mrf.mxu1  ;;  %v2061_v45 = vmax.f32 %v9702_v61, %v9710_v40 }
 0x312   : > { %2062 = vmax.xlane.f32.xlu0 %v2061_v45 }
 0x313   : > { %7164 = vmatmul.msk.bf16.gmra.mxu1 %vm1875_vm0, %v9716_v47 }
 0x315   : > { %v9738_v19 = vpop.permute.xlu1 %2624 }
 0x316   : > { %12411 = vst [vmem:[#allocation53_spill] sm:$0xff] %v9738_v19  ;;  %2743 = vmatpush.bf16.xpose.msrb.mxu3 %v2689_v29  ;;  %v3461_v29 = vsel %vm1875_vm0, %v9643_v3, 0 }
 0x317   : > { %v9724_v15 = vpop.f32.mrf.mxu2  ;;  %3520 = vmatpush.bf16.xpose.msra.mxu1 %v3461_v29 }
 0x318   : > { %v9726_v54 = vpop.f32.mrf.mxu1  ;;  %v2064_v62 = vmax.f32 %v9712_v2, %v9724_v15 }
 0x31a   : > { %2065 = vmax.xlane.f32.xlu0 %v2064_v62 }
 0x31f   : > { %v9732_v8 = vpop.f32.mrf.mxu2 }
 0x320   : > { %v9734_v12 = vpop.f32.mrf.mxu1  ;;  %v2067_v9 = vmax.f32 %v9726_v54, %v9732_v8 }
 0x322   : > { %2068 = vmax.xlane.f32.xlu0 %v2067_v9 }
 0x323   : > { %7165 = vmatmul.msk.bf16.gmra.mxu1 %vm1875_vm0, %v9738_v19 }
 0x327   : > { %v9742_v20 = vpop.f32.mrf.mxu2 }
 0x328   : > { %v2070_v50 = vmax.f32 %v9734_v12, %v9742_v20  ;;  %v9748_v28 = vpop.f32.mrf.mxu1 }
 0x32a   : > { %2071 = vmax.xlane.f32.xlu1 %v2070_v50 }
 0x32f   : > { %v9752_v44 = vpop.f32.mrf.mxu2 }
 0x330   : > { %v2073_v35 = vmax.f32 %v9748_v28, %v9752_v44  ;;  %v9760_v45 = vpop.f32.mrf.mxu1 }
 0x332   : > { %2074 = vmax.xlane.f32.xlu1 %v2073_v35 }
 0x333   : > { %7166 = vmatmul.msk.bf16.gmra.mxu1 %vm1875_vm0, %v9758_v39 }
 0x335   : > { %v9774_v50 = vpop.permute.xlu1 %2628 }
 0x336   : > { %12413 = vst [vmem:[#allocation55_spill] sm:$0xff] %v9774_v50 }
 0x337   : > { %v9764_v49 = vpop.f32.mrf.mxu2 }
 0x338   : > { %v2076_v31 = vmax.f32 %v9760_v45, %v9764_v49  ;;  %v9768_v62 = vpop.f32.mrf.mxu1 }
 0x33a   : > { %2077 = vmax.xlane.f32.xlu2 %v2076_v31 }
 0x33f   : > { %v9770_v9 = vpop.f32.mrf.mxu2 }
 0x340   : > { %v2079_v42 = vmax.f32 %v9768_v62, %v9770_v9  ;;  %v9780_v35 = vpop.f32.mrf.mxu1 }
 0x342   : > { %2080 = vmax.xlane.f32.xlu2 %v2079_v42 }
 0x343   : > { %7167 = vmatmul.msk.bf16.gmra.mxu1 %vm1875_vm0, %v9774_v50 }
 0x347   : > { %v9782_v37 = vpop.f32.mrf.mxu2 }
 0x348   : > { %v2082_v31 = vmax.f32 %v9780_v35, %v9782_v37  ;;  %v9794_v3 = vpop.f32.mrf.mxu1 }
 0x34a   : > { %2083 = vmax.xlane.f32.xlu0 %v2082_v31 }
 0x34b   : > { %3385 = vrot.lane.b32.xlu1 %v9449_v59, %s8911_s29 }
 0x34f   : > { %v9796_v42 = vpop.f32.mrf.mxu2 }
 0x350   : > { %v9806_v39 = vpop.f32.mrf.mxu1 }
 0x357   : > { %v9802_v50 = vpop.f32.mrf.mxu2 }
 0x358   : > { %v2088_v47 = vmax.f32 %v9806_v39, %v9802_v50 }
 0x35a   : > { %3369 = vrot.lane.b32.xlu2 %v9440_v53, %s8911_s29  ;;  %v2085_v53 = vmax.f32 %v9794_v3, %v9796_v42 }
 0x35e   : > { %2630 = vrot.lane.b32.xlu0 %v9630_v63, %s8910_s21 }
 0x365   : > { %v2051_v29 = vpop.xlane.xlu0 %2050 }
 0x366   : > { %3367 = vrot.lane.b32.xlu0 %v9467_v7, %s8911_s29  ;;  %v2096_v31 = vsub.f32 %v9662_v18, %v2051_v29  ;;  %v2097_v59 = vsub.f32 %v9668_v56, %v2051_v29  ;;  %v9812_v18 = vpop.f32.mrf.mxu1 }
 0x367   : > { %12415 = vst [vmem:[#allocation57_spill] sm:$0xff] %v9812_v18 }
 0x368   : > { %v2130_v7 = vmul.f32 1.442695, %v2096_v31  ;;  %v2132_v19 = vmul.f32 1.442695, %v2097_v59 }
 0x36a   : > { %7982 = vpow2.f32 %v2130_v7 }
 0x36b   : > { %7984 = vpow2.f32 %v2132_v19  ;;  %v2048_v19 = vpop.xlane.xlu2 %2047 }
 0x36c   : > { %v2094_v11 = vsub.f32 %v9650_v6, %v2048_v19 }
 0x36e   : > { %3383 = vrot.lane.b32.xlu0 %v9484_v13, %s8911_s29  ;;  %v9810_v13 = vpop.f32.mrf.mxu2  ;;  %v2126_v4 = vmul.f32 1.442695, %v2094_v11 }
 0x36f   : > { %12414 = vst [vmem:[#allocation56_spill] sm:$0xff] %v9810_v13  ;;  %v2091_v29 = vmax.f32 %v9812_v18, %v9810_v13 }
 0x370   : > { %v9814_v56 = vpop.eup %7982 }
 0x371   : > { %v9818_v33 = vpop.eup %7984 }
 0x372   : > { %v2193_v31 = vadd.f32 %v9818_v33, %v9814_v56 }
 0x375   : > { %2086 = vmax.xlane.f32.xlu1 %v2085_v53  ;;  %v9824_v53 = vpop.xlane.xlu1 %2053 }
 0x37d   : > { %2089 = vmax.xlane.f32.xlu1 %v2088_v47  ;;  %v9830_v63 = vpop.xlane.xlu1 %2059 }
 0x383   : > { %2092 = vmax.xlane.f32.xlu2 %v2091_v29  ;;  %v2095_v29 = vsub.f32 %v9658_v16, %v2048_v19 }
 0x385   : > { %v9822_v59 = vpop.xlane.xlu0 %2062  ;;  %2194 = vadd.xlane.f32.xlu1 %v2193_v31  ;;  %v2128_v23 = vmul.f32 1.442695, %v2095_v29 }
 0x38d   : > { %v2066_v47 = vpop.xlane.xlu0 %2065 }
 0x38e   : > { %v2106_v7 = vsub.f32 %v9712_v2, %v2066_v47  ;;  %v2107_v24 = vsub.f32 %v9724_v15, %v2066_v47 }
 0x390   : > { %v2150_v13 = vmul.f32 1.442695, %v2106_v7  ;;  %v2152_v18 = vmul.f32 1.442695, %v2107_v24 }
 0x392   : > { %7986 = vpow2.f32 %v2150_v13 }
 0x393   : > { %7988 = vpow2.f32 %v2152_v18 }
 0x394   : > { %7990 = vpow2.f32 %v2126_v4 }
 0x395   : > { %v2069_v31 = vpop.xlane.xlu0 %2068  ;;  %7992 = vpow2.f32 %v2128_v23 }
 0x396   : > { %v2108_v0 = vsub.f32 %v9726_v54, %v2069_v31  ;;  %v2109_v48 = vsub.f32 %v9732_v8, %v2069_v31 }
 0x398   : > { %v9834_v2 = vpop.eup %7986  ;;  %v2154_v15 = vmul.f32 1.442695, %v2108_v0  ;;  %v2156_v6 = vmul.f32 1.442695, %v2109_v48 }
 0x399   : > { %v9836_v47 = vpop.eup %7988 }
 0x39a   : > { %7994 = vpow2.f32 %v2154_v15  ;;  %v2208_v11 = vadd.f32 %v9836_v47, %v9834_v2  ;;  %v9840_v24 = vpop.eup %7990 }
 0x39b   : > { %7996 = vpow2.f32 %v2156_v6  ;;  %v9844_v13 = vpop.eup %7992 }
 0x39c   : > { %2209 = vadd.xlane.f32.xlu2 %v2208_v11  ;;  %v2190_v19 = vadd.f32 %v9844_v13, %v9840_v24 }
 0x39d   : > { %v2072_v16 = vpop.xlane.xlu1 %2071 }
 0x39e   : > { %v2110_v54 = vsub.f32 %v9734_v12, %v2072_v16  ;;  %v2111_v8 = vsub.f32 %v9742_v20, %v2072_v16  ;;  %v9854_v12 = vpop.xlane.xlu2 %2056 }
 0x3a0   : > { %v9846_v0 = vpop.eup %7994  ;;  %v2158_v48 = vmul.f32 1.442695, %v2110_v54  ;;  %v2160_v4 = vmul.f32 1.442695, %v2111_v8 }
 0x3a1   : > { %v9848_v23 = vpop.eup %7996 }
 0x3a2   : > { %7998 = vpow2.f32 %v2158_v48  ;;  %v2211_v18 = vadd.f32 %v9848_v23, %v9846_v0 }
 0x3a3   : > { %8000 = vpow2.f32 %v2160_v4 }
 0x3a4   : > { %2212 = vadd.xlane.f32.xlu0 %v2211_v18  ;;  %2191 = vadd.xlane.f32.xlu2 %v2190_v19 }
 0x3a5   : > { %v2075_v20 = vpop.xlane.xlu1 %2074 }
 0x3a6   : > { %v2112_v7 = vsub.f32 %v9748_v28, %v2075_v20  ;;  %v2113_v29 = vsub.f32 %v9752_v44, %v2075_v20  ;;  %v3458_v20 = vsel %vm1875_vm0, %v9722_v52, 0 }
 0x3a7   : > { %3521 = vmatpush.bf16.xpose.msra.mxu1 %v3458_v20  ;;  %v2099_v20 = vsub.f32 %v9680_v25, %v9824_v53  ;;  %v3455_v25 = vsel %vm1875_vm0, %v9744_v22, 0 }
 0x3a8   : > { %v9858_v31 = vpop.eup %7998  ;;  %v2162_v15 = vmul.f32 1.442695, %v2112_v7  ;;  %v2164_v6 = vmul.f32 1.442695, %v2113_v29 }
 0x3a9   : > { %v9860_v11 = vpop.eup %8000 }
 0x3aa   : > { %8002 = vpow2.f32 %v2162_v15  ;;  %v2214_v16 = vadd.f32 %v9860_v11, %v9858_v31 }
 0x3ab   : > { %8004 = vpow2.f32 %v2164_v6 }
 0x3ac   : > { %2215 = vadd.xlane.f32.xlu0 %v2214_v16 }
 0x3ad   : > { %v2078_v54 = vpop.xlane.xlu2 %2077 }
 0x3ae   : > { %v2114_v8 = vsub.f32 %v9760_v45, %v2078_v54  ;;  %v2115_v48 = vsub.f32 %v9764_v49, %v2078_v54 }
 0x3af   : > { %3522 = vmatpush.bf16.xpose.msra.mxu1 %v3455_v25 }
 0x3b0   : > { %v9866_v28 = vpop.eup %8002  ;;  %v2166_v44 = vmul.f32 1.442695, %v2114_v8  ;;  %v2168_v4 = vmul.f32 1.442695, %v2115_v48 }
 0x3b1   : > { %v9868_v18 = vpop.eup %8004 }
 0x3b2   : > { %8006 = vpow2.f32 %v2166_v44  ;;  %v2217_v19 = vadd.f32 %v9868_v18, %v9866_v28 }
 0x3b3   : > { %8008 = vpow2.f32 %v2168_v4 }
 0x3b4   : > { %2218 = vadd.xlane.f32.xlu1 %v2217_v19 }
 0x3b5   : > { %v2081_v7 = vpop.xlane.xlu2 %2080 }
 0x3b6   : > { %v2116_v45 = vsub.f32 %v9768_v62, %v2081_v7  ;;  %v2117_v49 = vsub.f32 %v9770_v9, %v2081_v7  ;;  %v2098_v9 = vsub.f32 %v9670_v21, %v9824_v53 }
 0x3b8   : > { %v9876_v29 = vpop.eup %8006  ;;  %v2170_v15 = vmul.f32 1.442695, %v2116_v45  ;;  %v2172_v6 = vmul.f32 1.442695, %v2117_v49 }
 0x3b9   : > { %v9878_v16 = vpop.eup %8008 }
 0x3ba   : > { %8010 = vpow2.f32 %v2170_v15  ;;  %v2220_v54 = vadd.f32 %v9878_v16, %v9876_v29 }
 0x3bb   : > { %8012 = vpow2.f32 %v2172_v6 }
 0x3bc   : > { %2221 = vadd.xlane.f32.xlu2 %v2220_v54 }
 0x3bd   : > { %v2084_v8 = vpop.xlane.xlu0 %2083 }
 0x3be   : > { %v2118_v52 = vsub.f32 %v9780_v35, %v2084_v8  ;;  %v2119_v48 = vsub.f32 %v9782_v37, %v2084_v8  ;;  %v2134_v35 = vmul.f32 1.442695, %v2098_v9  ;;  %v2136_v37 = vmul.f32 1.442695, %v2099_v20  ;;  %v3386_v8 = vpop.permute.xlu1 %3385 }
 0x3c0   : > { %v9884_v62 = vpop.eup %8010  ;;  %v2174_v44 = vmul.f32 1.442695, %v2118_v52  ;;  %v2176_v4 = vmul.f32 1.442695, %v2119_v48  ;;  %v3452_v52 = vsel %vm1875_vm0, %v3386_v8, 0  ;;  %v9913_v48 = vld [vmem:[#allocation3 + $0x50] sm:$0xff] }
 0x3c1   : > { %v9888_v19 = vpop.eup %8012  ;;  %3523 = vmatpush.bf16.xpose.msra.mxu1 %v3452_v52  ;;  %2543 = vmatpush.bf16.msrb.mxu0 %v9913_v48 }
 0x3c2   : > { %8014 = vpow2.f32 %v2174_v44  ;;  %v2223_v7 = vadd.f32 %v9888_v19, %v9884_v62 }
 0x3c3   : > { %8016 = vpow2.f32 %v2176_v4  ;;  %v9918_v4 = vld [vmem:[#allocation3 + $0x60] sm:$0xff] }
 0x3c4   : > { %2224 = vadd.xlane.f32.xlu0 %v2223_v7  ;;  %8018 = vpow2.f32 %v2134_v35  ;;  %v9923_v35 = vld [vmem:[#allocation3 + $0x8] sm:$0xff] }
 0x3c5   : > { %8020 = vpow2.f32 %v2136_v37  ;;  %2544 = vmatpush.bf16.msrb.mxu0 %v9918_v4  ;;  %12417 = vst [vmem:[#allocation59_spill] sm:$0xff] %v9923_v35 }
 0x3c8   : > { %v9894_v45 = vpop.eup %8014 }
 0x3c9   : > { %v9896_v49 = vpop.eup %8016  ;;  %2545 = vmatpush.bf16.msrb.mxu0 %v9923_v35 }
 0x3ca   : > { %v2226_v21 = vadd.f32 %v9896_v49, %v9894_v45  ;;  %v9902_v53 = vpop.eup %8018 }
 0x3cb   : > { %v9904_v15 = vpop.eup %8020 }
 0x3cc   : > { %2227 = vadd.xlane.f32.xlu1 %v2226_v21  ;;  %v2196_v54 = vadd.f32 %v9904_v15, %v9902_v53  ;;  %v9928_v21 = vld [vmem:[#allocation3] sm:$0xff] }
 0x3cd   : > { %2546 = vmatpush.bf16.msrb.mxu0 %v9928_v21 }
 0x3d0   : > { %v9906_v6 = vpop.permute.xlu0 %2630 }
 0x3d1   : > { %12416 = vst [vmem:[#allocation58_spill] sm:$0xff] %v9906_v6  ;;  %7168 = vmatmul.msk.bf16.gmra.mxu1 %vm1875_vm0, %v9906_v6 }
 0x3d4   : > { %2197 = vadd.xlane.f32.xlu1 %v2196_v54 }
 0x3d8   : > { %v9958_v6 = vpop.permute.xlu0 %3367 }
 0x3d9   : > { %12420 = vst [vmem:[#allocation62_spill] sm:$0xff] %v9958_v6 }
 0x3e8   : > { %v2087_v22 = vpop.xlane.xlu1 %2086 }
 0x3e9   : > { %v2120_v9 = vsub.f32 %v9794_v3, %v2087_v22  ;;  %v2121_v44 = vsub.f32 %v9796_v42, %v2087_v22 }
 0x3eb   : > { %v2178_v20 = vmul.f32 1.442695, %v2120_v9  ;;  %v2180_v7 = vmul.f32 1.442695, %v2121_v44  ;;  %v9937_v9 = vld [vmem:[#allocation3 + $0x58] sm:$0xff] }
 0x3ec   : > { %2547 = vmatpush.bf16.msrb.mxu0 %v9937_v9  ;;  %v9942_v44 = vld [vmem:[#allocation3 + $0x18] sm:$0xff] }
 0x3ed   : > { %8022 = vpow2.f32 %v2178_v20  ;;  %3349 = vrot.lane.b32.xlu1 %v9517_v27, %s8911_s29  ;;  %12418 = vst [vmem:[#allocation60_spill] sm:$0xff] %v9942_v44  ;;  %v9960_v27 = vld [vmem:[#allocation3 + $0x20] sm:$0xff] }
 0x3ee   : > { %8024 = vpow2.f32 %v2180_v7  ;;  %v9946_v7 = vpop.permute.xlu2 %3369  ;;  %12421 = vst [vmem:[#allocation63_spill] sm:$0xff] %v9960_v27 }
 0x3f0   : > { %v2090_v37 = vpop.xlane.xlu1 %2089  ;;  %2548 = vmatpush.bf16.msrb.mxu0 %v9942_v44  ;;  %v2105_v44 = vsub.f32 %v9710_v40, %v9822_v59 }
 0x3f1   : > { %v2122_v3 = vsub.f32 %v9806_v39, %v2090_v37  ;;  %v2123_v42 = vsub.f32 %v9802_v50, %v2090_v37 }
 0x3f3   : > { %v9930_v25 = vpop.eup %8022  ;;  %v2182_v54 = vmul.f32 1.442695, %v2122_v3  ;;  %v2184_v8 = vmul.f32 1.442695, %v2123_v42  ;;  %v9951_v42 = vld [vmem:[#allocation3 + $0x78] sm:$0xff] }
 0x3f4   : > { %v9932_v52 = vpop.eup %8024  ;;  %12419 = vst [vmem:[#allocation61_spill] sm:$0xff] %v9951_v42  ;;  %2549 = vmatpush.bf16.msrb.mxu0 %v9951_v42 }
 0x3f5   : > { %8026 = vpow2.f32 %v2182_v54  ;;  %v2229_v22 = vadd.f32 %v9932_v52, %v9930_v25 }
 0x3f6   : > { %8028 = vpow2.f32 %v2184_v8 }
 0x3f7   : > { %2230 = vadd.xlane.f32.xlu0 %v2229_v22 }
 0x3f8   : > { %v2195_v39 = vpop.xlane.xlu1 %2194  ;;  %2550 = vmatpush.bf16.msrb.mxu0 %v9960_v27 }
 0x3f9   : > { %8030 = vrcp.f32 %v2195_v39  ;;  %v2104_v39 = vsub.f32 %v9702_v61, %v9822_v59  ;;  %v9970_v61 = vpop.permute.xlu0 %3383 }
 0x3fb   : > { %v9940_v50 = vpop.eup %8026 }
 0x3fc   : > { %v9944_v20 = vpop.eup %8028 }
 0x3fd   : > { %v2232_v37 = vadd.f32 %v9944_v20, %v9940_v50 }
 0x3ff   : > { %v8031_v3 = vpop.eup %8030  ;;  %2233 = vadd.xlane.f32.xlu2 %v2232_v37  ;;  %v2146_v37 = vmul.f32 1.442695, %v2104_v39 }
 0x400   : > { %v2256_v54 = vmul.f32 %v8031_v3, %v9814_v56  ;;  %v2257_v8 = vmul.f32 %v8031_v3, %v9818_v33  ;;  %v9966_v56 = vpop.xlane.xlu2 %2092  ;;  %v2148_v33 = vmul.f32 1.442695, %v2105_v44 }
 0x401   : > { %12422 = vst [vmem:[#allocation64_spill] sm:$0xff] %v9966_v56  ;;  %8032 = vpow2.f32 %v2146_v37  ;;  %v2100_v56 = vsub.f32 %v9682_v55, %v9854_v12 }
 0x402   : > { %v2287_v22 = vpack.c.bf16 %v2257_v8, %v2256_v54  ;;  %8034 = vpow2.f32 %v2148_v33 }
 0x404   : > { %2303 = vst [vmem:[%s9299_s1 + $0x8] sm:$0xff] %v2287_v22  ;;  %v2337_v42 = vunpack.c.h.b16 %v2287_v22 }
 0x407   : > { %v9972_v54 = vpop.eup %8032 }
 0x408   : > { %12423 = vst [vmem:[#allocation65_spill] sm:$0xff] %v9972_v54  ;;  %v9974_v40 = vpop.eup %8034 }
 0x409   : > { %12424 = vst [vmem:[#allocation66_spill] sm:$0xff] %v9974_v40  ;;  %v2205_v59 = vadd.f32 %v9974_v40, %v9972_v54 }
 0x40b   : > { %3381 = vrot.lane.b32.xlu0 %v9477_v10, %s8911_s29 }
 0x40f   : > { %v2210_v3 = vpop.xlane.xlu2 %2209 }
 0x410   : > { %8036 = vrcp.f32 %v2210_v3 }
 0x416   : > { %v8037_v8 = vpop.eup %8036 }
 0x417   : > { %v2266_v44 = vmul.f32 %v8037_v8, %v9834_v2  ;;  %v2267_v39 = vmul.f32 %v8037_v8, %v9836_v47  ;;  %v2213_v37 = vpop.xlane.xlu0 %2212  ;;  %2206 = vadd.xlane.f32.xlu1 %v2205_v59  ;;  %3365 = vrot.lane.b32.xlu2 %v9457_v1, %s8911_s29  ;;  %v2192_v10 = vpop.xlane.xlu2 %2191 }
 0x418   : > { %8038 = vrcp.f32 %v2213_v37  ;;  %v2138_v37 = vmul.f32 1.442695, %v2100_v56 }
 0x419   : > { %8040 = vrcp.f32 %v2192_v10  ;;  %v2292_v33 = vpack.c.bf16 %v2267_v39, %v2266_v44  ;;  %v2101_v44 = vsub.f32 %v9688_v30, %v9854_v12 }
 0x41b   : > { %2308 = vst [vmem:[%s9299_s1 + $0x30] sm:$0xff] %v2292_v33  ;;  %v2346_v55 = vunpack.c.l.b16 %v2292_v33  ;;  %v2347_v40 = vunpack.c.h.b16 %v2292_v33 }
 0x41e   : > { %v8039_v3 = vpop.eup %8038 }
 0x41f   : > { %v8041_v6 = vpop.eup %8040  ;;  %v2268_v2 = vmul.f32 %v8039_v3, %v9846_v0  ;;  %v2269_v47 = vmul.f32 %v8039_v3, %v9848_v23  ;;  %v2216_v59 = vpop.xlane.xlu0 %2215  ;;  %v2336_v23 = vunpack.c.l.b16 %v2287_v22 }
 0x420   : > { %v2254_v8 = vmul.f32 %v8041_v6, %v9840_v24  ;;  %v2255_v1 = vmul.f32 %v8041_v6, %v9844_v13  ;;  %8042 = vrcp.f32 %v2216_v59  ;;  %v2140_v24 = vmul.f32 1.442695, %v2101_v44 }
 0x421   : > { %v2293_v39 = vpack.c.bf16 %v2269_v47, %v2268_v2  ;;  %8044 = vpow2.f32 %v2138_v37  ;;  %v3443_v47 = vsel %vm1875_vm0, %v9587_v51, 0 }
 0x422   : > { %v2286_v10 = vpack.c.bf16 %v2255_v1, %v2254_v8  ;;  %v3440_v8 = vsel %vm1875_vm0, %v9660_v17, 0 }
 0x423   : > { %2309 = vst [vmem:[%s9299_s1 + $0x38] sm:$0xff] %v2293_v39  ;;  %v2348_v27 = vunpack.c.l.b16 %v2293_v39  ;;  %v2349_v54 = vunpack.c.h.b16 %v2293_v39 }
 0x424   : > { %2302 = vst [vmem:[%s9299_s1] sm:$0xff] %v2286_v10  ;;  %v2334_v0 = vunpack.c.l.b16 %v2286_v10  ;;  %v2335_v3 = vunpack.c.h.b16 %v2286_v10 }
 0x425   : > { %v2372_v35 = vpack.c.b16 %v2348_v27, %v2346_v55  ;;  %v9993_v13 = vpack.c.b16 %v2349_v54, %v2347_v40 }
 0x426   : > { %v8043_v6 = vpop.eup %8042  ;;  %v2366_v30 = vpack.c.b16 %v2336_v23, %v2334_v0  ;;  %v2367_v12 = vpack.c.b16 %v2337_v42, %v2335_v3  ;;  %v2102_v42 = vsub.f32 %v9690_v32, %v9830_v63  ;;  %v3437_v23 = vsel %vm1875_vm0, %v9626_v58, 0  ;;  %v8430_v3 = vld [vmem:[#allocation2 + $0x68] sm:$0xff] }
 0x427   : > { %v2270_v56 = vmul.f32 %v8043_v6, %v9858_v31  ;;  %v2271_v2 = vmul.f32 %v8043_v6, %v9860_v11  ;;  %v2219_v33 = vpop.xlane.xlu1 %2218  ;;  %2517 = vmatmul.bf16.vlgmr.msra.gmra.mxu3 %v2372_v35  ;;  %v10002_v22 = vpop.eup %8044  ;;  %v2103_v31 = vsub.f32 %v9700_v36, %v9830_v63 }
 0x428   : > { %8046 = vrcp.f32 %v2219_v33  ;;  %2502 = vmatmul.bf16.vlgmr.msrb.gmra.mxu2 %v2366_v30  ;;  %2551 = vmatmul.bf16.vlgmr.msrb.gmra.mxu0 %v2367_v12  ;;  %v2142_v59 = vmul.f32 1.442695, %v2102_v42  ;;  %v8431_v33 = vld [vmem:[#allocation2 + $0x70] sm:$0xff] }
 0x429   : > { %8048 = vpow2.f32 %v2140_v24  ;;  %3469 = vmatpush.bf16.xpose.msra.mxu3 %v3443_v47  ;;  %v2294_v27 = vpack.c.bf16 %v2271_v2, %v2270_v56  ;;  %v2144_v32 = vmul.f32 1.442695, %v2103_v31  ;;  %v3434_v2 = vsel %vm1875_vm0, %v9706_v38, 0 }
 0x42b   : > { %2310 = vst [vmem:[%s9299_s1 + $0x40] sm:$0xff] %v2294_v27  ;;  %v2350_v36 = vunpack.c.l.b16 %v2294_v27  ;;  %v2351_v44 = vunpack.c.h.b16 %v2294_v27 }
 0x42e   : > { %v8047_v11 = vpop.eup %8046 }
 0x42f   : > { %v10006_v35 = vpop.eup %8048  ;;  %v2272_v51 = vmul.f32 %v8047_v11, %v9866_v28  ;;  %v2273_v54 = vmul.f32 %v8047_v11, %v9868_v18  ;;  %v2222_v40 = vpop.xlane.xlu2 %2221 }
 0x430   : > { %8050 = vrcp.f32 %v2222_v40  ;;  %3357 = vrot.lane.b32.xlu1 %v9573_v14, %s8911_s29  ;;  %v2199_v63 = vadd.f32 %v10006_v35, %v10002_v22 }
 0x431   : > { %3470 = vmatpush.bf16.xpose.msra.mxu3 %v3440_v8  ;;  %v2295_v1 = vpack.c.bf16 %v2273_v54, %v2272_v51  ;;  %8052 = vpow2.f32 %v2142_v59  ;;  %v3431_v59 = vsel %vm1875_vm0, %v9730_v5, 0  ;;  %v8432_v8 = vld [vmem:[#allocation2 + $0x50] sm:$0xff] }
 0x432   : > { %8054 = vpow2.f32 %v2144_v32 }
 0x433   : > { %2311 = vst [vmem:[%s9299_s1 + $0x48] sm:$0xff] %v2295_v1  ;;  %v2352_v28 = vunpack.c.l.b16 %v2295_v1  ;;  %v2353_v18 = vunpack.c.h.b16 %v2295_v1 }
 0x435   : > { %2200 = vadd.xlane.f32.xlu0 %v2199_v63  ;;  %v2374_v39 = vpack.c.b16 %v2352_v28, %v2350_v36  ;;  %v10017_v17 = vpack.c.b16 %v2353_v18, %v2351_v44  ;;  %v8436_v36 = vld [vmem:[#allocation2 + $0x78] sm:$0xff]  ;;  %v8437_v28 = vld [vmem:[#allocation2 + $0x8] sm:$0xff] }
 0x436   : > { %v8051_v37 = vpop.eup %8050  ;;  %v12425_v44 = vld [vmem:[#allocation44_spill] sm:$0xff] }
 0x437   : > { %v2274_v10 = vmul.f32 %v8051_v37, %v9876_v29  ;;  %v2275_v55 = vmul.f32 %v8051_v37, %v9878_v16  ;;  %v2225_v0 = vpop.xlane.xlu0 %2224  ;;  %2522 = vmatmul.bf16.gmra.mxu3 %v2374_v39  ;;  %v10024_v6 = vpop.eup %8052  ;;  %v8438_v39 = vld [vmem:[#allocation2 + $0x60] sm:$0xff] }
 0x438   : > { %8056 = vrcp.f32 %v2225_v0  ;;  %4108 = vrot.lane.b32.xlu1 %v8430_v3, %s8912_s24  ;;  %v10026_v30 = vpop.eup %8054 }
 0x439   : > { %3471 = vmatpush.bf16.xpose.msra.mxu3 %v3437_v23  ;;  %v2296_v24 = vpack.c.bf16 %v2275_v55, %v2274_v10  ;;  %v2202_v16 = vadd.f32 %v10026_v30, %v10024_v6 }
 0x43b   : > { %2312 = vst [vmem:[%s9299_s1 + $0x50] sm:$0xff] %v2296_v24  ;;  %v2354_v27 = vunpack.c.l.b16 %v2296_v24  ;;  %v2355_v31 = vunpack.c.h.b16 %v2296_v24 }
 0x43e   : > { %v8057_v29 = vpop.eup %8056 }
 0x43f   : > { %v2276_v12 = vmul.f32 %v8057_v29, %v9884_v62  ;;  %v2277_v58 = vmul.f32 %v8057_v29, %v9888_v19  ;;  %v2228_v56 = vpop.xlane.xlu1 %2227  ;;  %v8439_v29 = vld [vmem:[#allocation2 + $0x38] sm:$0xff] }
 0x440   : > { %8058 = vrcp.f32 %v2228_v56  ;;  %4124 = vrot.lane.b32.xlu1 %v8431_v33, %s8912_s24  ;;  %2203 = vadd.xlane.f32.xlu2 %v2202_v16 }
 0x441   : > { %3472 = vmatpush.bf16.xpose.msra.mxu3 %v3434_v2  ;;  %v2297_v47 = vpack.c.bf16 %v2277_v58, %v2276_v12 }
 0x443   : > { %2313 = vst [vmem:[%s9299_s1 + $0x58] sm:$0xff] %v2297_v47  ;;  %v2356_v42 = vunpack.c.l.b16 %v2297_v47  ;;  %v2357_v11 = vunpack.c.h.b16 %v2297_v47  ;;  %v12426_v47 = vld [vmem:[#allocation46_spill] sm:$0xff] }
 0x445   : > { %v2376_v62 = vpack.c.b16 %v2356_v42, %v2354_v27  ;;  %v10037_v51 = vpack.c.b16 %v2357_v11, %v2355_v31  ;;  %v12427_v27 = vld [vmem:[#allocation45_spill] sm:$0xff]  ;;  %v12428_v42 = vld [vmem:[#allocation47_spill] sm:$0xff] }
 0x446   : > { %v8059_v19 = vpop.eup %8058  ;;  %v8441_v31 = vld [vmem:[#allocation2 + $0x10] sm:$0xff] }
 0x447   : > { %v2278_v54 = vmul.f32 %v8059_v19, %v9894_v45  ;;  %v2279_v38 = vmul.f32 %v8059_v19, %v9896_v49  ;;  %v2198_v40 = vpop.xlane.xlu1 %2197  ;;  %2527 = vmatmul.bf16.gmra.mxu3 %v2376_v62  ;;  %v3428_v45 = vsel %vm1875_vm0, %v9946_v7, 0  ;;  %v8435_v7 = vld [vmem:[#allocation2 + $0x48] sm:$0xff]  ;;  %v12429_v62 = vld [vmem:[#allocation59_spill] sm:$0xff]  ;;  %v12430_v19 = vld [vmem:[#allocation61_spill] sm:$0xff] }
 0x448   : > { %8060 = vrcp.f32 %v2198_v40  ;;  %4106 = vrot.lane.b32.xlu1 %v8432_v8, %s8912_s24  ;;  %v12432_v40 = vld [vmem:[#allocation65_spill] sm:$0xff]  ;;  %v12433_v8 = vld [vmem:[#allocation66_spill] sm:$0xff] }
 0x449   : > { %3473 = vmatpush.bf16.xpose.msra.mxu3 %v3431_v59  ;;  %3351 = vrot.lane.b32.xlu0 %v9527_v34, %s8911_s29  ;;  %v2298_v32 = vpack.c.bf16 %v2279_v38, %v2278_v54  ;;  %v12431_v38 = vld [vmem:[#allocation48_spill] sm:$0xff] }
 0x44b   : > { %2314 = vst [vmem:[%s9299_s1 + $0x60] sm:$0xff] %v2298_v32  ;;  %v2358_v0 = vunpack.c.l.b16 %v2298_v32  ;;  %v2359_v3 = vunpack.c.h.b16 %v2298_v32 }
 0x44e   : > { %v8061_v1 = vpop.eup %8060 }
 0x44f   : > { %v2258_v49 = vmul.f32 %v8061_v1, %v9902_v53  ;;  %v2259_v63 = vmul.f32 %v8061_v1, %v9904_v15  ;;  %v3449_v53 = vsel %vm1875_vm0, %v9970_v61, 0  ;;  %v8433_v15 = vld [vmem:[#allocation2 + $0x28] sm:$0xff] }
 0x450   : > { %3201 = vrot.lane.b32.xlu1 %v9614_v46, %s8910_s21  ;;  %3524 = vmatpush.bf16.xpose.msra.mxu1 %v3449_v53  ;;  %v8434_v46 = vld [vmem:[#allocation2 + $0x18] sm:$0xff] }
 0x451   : > { %3355 = vrot.lane.b32.xlu0 %v9555_v60, %s8911_s29  ;;  %3474 = vmatpush.bf16.xpose.msra.mxu3 %v3428_v45  ;;  %v10055_v5 = vpack.c.bf16 %v2259_v63, %v2258_v49  ;;  %v12434_v45 = vld [vmem:[#allocation63_spill] sm:$0xff]  ;;  %v12435_v63 = vld [vmem:[#allocation62_spill] sm:$0xff] }
 0x452   : > { %v8442_v49 = vld [vmem:[#allocation2] sm:$0xff]  ;;  %v3425_v53 = vsel %vm1875_vm0, %v12435_v63, 0 }
 0x453   : > { %2304 = vst [vmem:[%s9299_s1 + $0x10] sm:$0xff] %v10055_v5 }
 0x458   : > { %3361 = vrot.lane.b32.xlu1 %v9604_v41, %s8911_s29  ;;  %3353 = vrot.lane.b32.xlu2 %v9537_v43, %s8911_s29 }
 0x459   : > { %4128 = vrot.lane.b32.xlu0 %v8433_v15, %s8912_s24  ;;  %3475 = vmatpush.bf16.xpose.msra.mxu3 %v3425_v53  ;;  %v8443_v15 = vld [vmem:[#allocation2 + $0x40] sm:$0xff] }
 0x460   : > { %4104 = vrot.lane.b32.xlu1 %v8434_v46, %s8912_s24  ;;  %4112 = vrot.lane.b32.xlu2 %v8435_v7, %s8912_s24  ;;  %v8444_v46 = vld [vmem:[#allocation2 + $0x30] sm:$0xff] }
 0x461   : > { %4126 = vrot.lane.b32.xlu0 %v8436_v36, %s8912_s24  ;;  %v12436_v36 = vld [vmem:[#allocation64_spill] sm:$0xff] }
 0x468   : > { %3197 = vrot.lane.b32.xlu1 %v9624_v57, %s8910_s21  ;;  %4110 = vrot.lane.b32.xlu2 %v8437_v28, %s8912_s24  ;;  %v12437_v28 = vld [vmem:[#allocation57_spill] sm:$0xff] }
 0x469   : > { %3359 = vrot.lane.b32.xlu0 %v9589_v26, %s8911_s29 }
 0x46a   : > { %v2231_v61 = vpop.xlane.xlu0 %2230 }
 0x46b   : > { %8062 = vrcp.f32 %v2231_v61  ;;  %v2124_v61 = vsub.f32 %v12437_v28, %v12436_v36 }
 0x470   : > { %3215 = vrot.lane.b32.xlu1 %v9918_v4, %s8910_s21  ;;  %3199 = vrot.lane.b32.xlu2 %v12425_v44, %s8910_s21  ;;  %v12438_v44 = vld [vmem:[#allocation56_spill] sm:$0xff] }
 0x471   : > { %v8063_v18 = vpop.eup %8062  ;;  %4122 = vrot.lane.b32.xlu0 %v8438_v39, %s8912_s24 }
 0x472   : > { %v2280_v57 = vmul.f32 %v8063_v18, %v9930_v25  ;;  %v2281_v37 = vmul.f32 %v8063_v18, %v9932_v52  ;;  %v2234_v10 = vpop.xlane.xlu2 %2233  ;;  %v2125_v18 = vsub.f32 %v12438_v44, %v12436_v36 }
 0x473   : > { %8064 = vrcp.f32 %v2234_v10  ;;  %v2186_v10 = vmul.f32 1.442695, %v2124_v61 }
 0x474   : > { %v2299_v55 = vpack.c.bf16 %v2281_v37, %v2280_v57  ;;  %v12439_v57 = vld [vmem:[#allocation43_spill] sm:$0xff] }
 0x476   : > { %2315 = vst [vmem:[%s9299_s1 + $0x68] sm:$0xff] %v2299_v55  ;;  %v2360_v23 = vunpack.c.l.b16 %v2299_v55  ;;  %v2361_v24 = vunpack.c.h.b16 %v2299_v55 }
 0x478   : > { %4120 = vrot.lane.b32.xlu1 %v8439_v29, %s8912_s24  ;;  %3211 = vrot.lane.b32.xlu2 %v9928_v21, %s8910_s21  ;;  %v2378_v16 = vpack.c.b16 %v2360_v23, %v2358_v0  ;;  %v10085_v12 = vpack.c.b16 %v2361_v24, %v2359_v3  ;;  %v2188_v0 = vmul.f32 1.442695, %v2125_v18 }
 0x479   : > { %v8065_v25 = vpop.eup %8064  ;;  %3217 = vrot.lane.b32.xlu0 %v9913_v48, %s8910_s21 }
 0x47a   : > { %v2282_v52 = vmul.f32 %v8065_v25, %v9940_v50  ;;  %v2283_v58 = vmul.f32 %v8065_v25, %v9944_v20  ;;  %2532 = vmatmul.bf16.gmra.mxu3 %v2378_v16  ;;  %v10102_v50 = vpop.permute.xlu1 %3349  ;;  %v8440_v20 = vld [vmem:[#allocation2 + $0x58] sm:$0xff]  ;;  %v10139_v37 = vpop.permute.xlu2 %3365 }
 0x47c   : > { %v10091_v56 = vpack.c.bf16 %v2283_v58, %v2282_v52 }
 0x47d   : > { %v3382_v2 = vpop.permute.xlu0 %3381 }
 0x47e   : > { %v3446_v33 = vsel %vm1875_vm0, %v3382_v2, 0  ;;  %2316 = vst [vmem:[%s9299_s1 + $0x70] sm:$0xff] %v10091_v56  ;;  %v2338_v2 = vunpack.c.l.b16 %v10055_v5 }
 0x47f   : > { %3525 = vmatpush.bf16.xpose.msra.mxu1 %v3446_v33 }
 0x480   : > { %3195 = vrot.lane.b32.xlu1 %v12426_v47, %s8910_s21  ;;  %3363 = vrot.lane.b32.xlu2 %v12427_v27, %s8911_s29 }
 0x481   : > { %3193 = vrot.lane.b32.xlu0 %v12428_v42, %s8910_s21 }
 0x486   : > { %7193 = vmatmul.msk.bf16.vlgmr.msra.gmra.mxu1 %vm1875_vm0, %v10102_v50 }
 0x488   : > { %4102 = vrot.lane.b32.xlu1 %v8440_v20, %s8912_s24  ;;  %3209 = vrot.lane.b32.xlu2 %v9937_v9, %s8910_s21 }
 0x489   : > { %4118 = vrot.lane.b32.xlu0 %v8441_v31, %s8912_s24  ;;  %v8445_v31 = vld [vmem:[#allocation3 + $0x70] sm:$0xff] }
 0x48a   : > { %v2207_v11 = vpop.xlane.xlu1 %2206 }
 0x48b   : > { %8066 = vrcp.f32 %v2207_v11 }
 0x490   : > { %3213 = vrot.lane.b32.xlu1 %v12429_v62, %s8910_s21  ;;  %3205 = vrot.lane.b32.xlu2 %v12430_v19, %s8910_s21 }
 0x491   : > { %v8067_v54 = vpop.eup %8066  ;;  %3191 = vrot.lane.b32.xlu0 %v12431_v38, %s8910_s21 }
 0x492   : > { %v2264_v59 = vmul.f32 %v8067_v54, %v12432_v40  ;;  %v2265_v32 = vmul.f32 %v8067_v54, %v12433_v8  ;;  %v8446_v8 = vld [vmem:[#allocation3 + $0x48] sm:$0xff] }
 0x494   : > { %v10118_v1 = vpack.c.bf16 %v2265_v32, %v2264_v59 }
 0x496   : > { %2307 = vst [vmem:[%s9299_s1 + $0x28] sm:$0xff] %v10118_v1  ;;  %v2344_v53 = vunpack.c.l.b16 %v10118_v1 }
 0x498   : > { %3203 = vrot.lane.b32.xlu2 %v12434_v45, %s8910_s21 }
 0x499   : > { %4100 = vrot.lane.b32.xlu0 %v8442_v49, %s8912_s24 }
 0x4a0   : > { %4114 = vrot.lane.b32.xlu2 %v8443_v15, %s8912_s24  ;;  %v2345_v15 = vunpack.c.h.b16 %v10118_v1  ;;  %v12441_v1 = vld [vmem:[#allocation60_spill] sm:$0xff] }
 0x4a1   : > { %4098 = vrot.lane.b32.xlu0 %v8444_v46, %s8912_s24 }
 0x4a2   : > { %v10129_v7 = vpop.permute.xlu1 %3357 }
 0x4a5   : > { %v2552_v23 = vpop.f32.mrf.mxu0 }
 0x4a8   : > { %v2201_v39 = vpop.xlane.xlu0 %2200  ;;  %4082 = vrot.lane.b32.xlu2 %v12439_v57, %s8912_s24  ;;  %v8448_v57 = vld [vmem:[#allocation3 + $0x68] sm:$0xff] }
 0x4a9   : > { %8068 = vrcp.f32 %v2201_v39  ;;  %4084 = vrot.lane.b32.xlu0 %v9527_v34, %s8912_s24 }
 0x4aa   : > { %v10141_v55 = vpop.permute.xlu1 %4108  ;;  %8070 = vpow2.f32 %v2186_v10 }
 0x4ab   : > { %v2503_v3 = vpop.f32.mrf.mxu2  ;;  %8072 = vpow2.f32 %v2188_v0 }
 0x4ac   : > { %v10143_v24 = vadd.f32 %v2552_v23, %v2503_v3  ;;  %v10203_v23 = vpop.f32.mrf.mxu1  ;;  %v8449_v3 = vld [vmem:[#allocation3 + $0x28] sm:$0xff] }
 0x4ae   : > { %12440 = vst [vmem:[#allocation44_spill] sm:$0xff] %v10143_v24 }
 0x4af   : > { %v8069_v29 = vpop.eup %8068 }
 0x4b0   : > { %v2260_v16 = vmul.f32 %v8069_v29, %v10002_v22  ;;  %v2261_v25 = vmul.f32 %v8069_v29, %v10006_v35  ;;  %4086 = vrot.lane.b32.xlu2 %v9537_v43, %s8912_s24  ;;  %v10154_v33 = vpop.eup %8070  ;;  %v2339_v22 = vunpack.c.h.b16 %v10055_v5 }
 0x4b1   : > { %4090 = vrot.lane.b32.xlu0 %v9573_v14, %s8912_s24  ;;  %v10158_v42 = vpop.eup %8072 }
 0x4b2   : > { %v10151_v34 = vpop.permute.xlu1 %4124  ;;  %v2289_v52 = vpack.c.bf16 %v2261_v25, %v2260_v16  ;;  %v2235_v14 = vadd.f32 %v10158_v42, %v10154_v33 }
 0x4b3   : > { %v2204_v58 = vpop.xlane.xlu2 %2203  ;;  %v4194_v16 = vsel %vm1875_vm0, %v10151_v34, 0 }
 0x4b4   : > { %8074 = vrcp.f32 %v2204_v58  ;;  %2305 = vst [vmem:[%s9299_s1 + $0x18] sm:$0xff] %v2289_v52  ;;  %v2340_v47 = vunpack.c.l.b16 %v2289_v52  ;;  %v2341_v35 = vunpack.c.h.b16 %v2289_v52  ;;  %v10217_v25 = vpop.f32.mrf.mxu1  ;;  %v8450_v52 = vld [vmem:[#allocation2 + $0x20] sm:$0xff] }
 0x4b6   : > { %v2368_v43 = vpack.c.b16 %v2340_v47, %v2338_v2  ;;  %v2369_v20 = vpack.c.b16 %v2341_v35, %v2339_v22 }
 0x4b8   : > { %4092 = vrot.lane.b32.xlu2 %v9589_v26, %s8912_s24  ;;  %2507 = vmatmul.bf16.gmra.mxu2 %v2368_v43 }
 0x4b9   : > { %2556 = vmatmul.bf16.gmra.mxu0 %v2369_v20  ;;  %3932 = vrot.lane.b32.xlu0 %v8445_v31, %s8911_s29 }
 0x4ba   : > { %v8075_v11 = vpop.eup %8074  ;;  %v10165_v54 = vpop.permute.xlu1 %4106  ;;  %2236 = vadd.xlane.f32.xlu1 %v2235_v14  ;;  %v8451_v14 = vld [vmem:[#allocation3 + $0x38] sm:$0xff] }
 0x4bb   : > { %v2262_v5 = vmul.f32 %v8075_v11, %v10024_v6  ;;  %v2263_v38 = vmul.f32 %v8075_v11, %v10026_v30  ;;  %v10169_v40 = vpop.permute.xlu0 %3351  ;;  %v10171_v59 = vpop.permute.xlu2 %3353 }
 0x4bc   : > { %7194 = vmatmul.msk.bf16.gmra.mxu1 %vm1875_vm0, %v10169_v40  ;;  %v10227_v34 = vpop.f32.mrf.mxu1 }
 0x4bd   : > { %v2290_v26 = vpack.c.bf16 %v2263_v38, %v2262_v5 }
 0x4bf   : > { %2306 = vst [vmem:[%s9299_s1 + $0x20] sm:$0xff] %v2290_v26  ;;  %v2342_v49 = vunpack.c.l.b16 %v2290_v26  ;;  %v2343_v63 = vunpack.c.h.b16 %v2290_v26  ;;  %v8452_v26 = vld [vmem:[#allocation3 + $0x40] sm:$0xff] }
 0x4c0   : > { %3928 = vrot.lane.b32.xlu2 %v8446_v8, %s8911_s29 }
 0x4c1   : > { %4094 = vrot.lane.b32.xlu0 %v9604_v41, %s8912_s24  ;;  %v2370_v46 = vpack.c.b16 %v2344_v53, %v2342_v49  ;;  %v2371_v36 = vpack.c.b16 %v2345_v15, %v2343_v63  ;;  %v8447_v41 = vld [vmem:[#allocation3 + $0x30] sm:$0xff]  ;;  %v3422_v49 = vsel %vm1875_vm0, %v10139_v37, 0  ;;  %v10266_v63 = vpop.f32.mrf.mxu0  ;;  %v10269_v15 = vpop.f32.mrf.mxu2 }
 0x4c2   : > { %v3202_v32 = vpop.permute.xlu1 %3201  ;;  %3476 = vmatpush.bf16.xpose.msra.mxu3 %v3422_v49  ;;  %12442 = vst [vmem:[#allocation46_spill] sm:$0xff] %v10266_v63 }
 0x4c3   : > { %v10179_v6 = vpop.permute.xlu0 %3355  ;;  %3235 = vmatpush.bf16.msra.mxu2 %v3202_v32  ;;  %v10181_v30 = vpop.permute.xlu2 %4112  ;;  %v8453_v32 = vld [vmem:[#allocation3 + $0x10] sm:$0xff]  ;;  %12443 = vst [vmem:[#allocation45_spill] sm:$0xff] %v10269_v15 }
 0x4c8   : > { %2512 = vmatmul.bf16.gmra.mxu2 %v2370_v46  ;;  %3942 = vrot.lane.b32.xlu2 %v9937_v9, %s8911_s29 }
 0x4c9   : > { %2561 = vmatmul.bf16.gmra.mxu0 %v2371_v36  ;;  %3930 = vrot.lane.b32.xlu0 %v8447_v41, %s8911_s29 }
 0x4ca   : > { %v10188_v28 = vpop.permute.xlu1 %3361 }
 0x4cb   : > { %v4129_v61 = vpop.permute.xlu0 %4128  ;;  %v10190_v44 = vpop.permute.xlu2 %4110 }
 0x4cc   : > { %v4200_v18 = vsel %vm1875_vm0, %v4129_v61, 0  ;;  %7195 = vmatmul.msk.bf16.gmra.mxu1 %vm1875_vm0, %v10171_v59 }
 0x4cd   : > { %4251 = vmatpush.bf16.xpose.msrb.mxu1 %v4200_v18  ;;  %v2362_v18 = vunpack.c.l.b16 %v10091_v56 }
 0x4d0   : > { %3940 = vrot.lane.b32.xlu2 %v12441_v1, %s8911_s29 }
 0x4d1   : > { %3948 = vrot.lane.b32.xlu0 %v9918_v4, %s8911_s29 }
 0x4d2   : > { %v10199_v9 = vpop.permute.xlu1 %4104 }
 0x4d3   : > { %v4127_v39 = vpop.permute.xlu0 %4126  ;;  %3189 = vrot.lane.b32.xlu1 %v8448_v57, %s8910_s21  ;;  %v3200_v10 = vpop.permute.xlu2 %3199 }
 0x4d4   : > { %v4197_v0 = vsel %vm1875_vm0, %v4127_v39, 0  ;;  %3236 = vmatpush.bf16.msra.mxu2 %v3200_v10 }
 0x4d5   : > { %4252 = vmatpush.bf16.xpose.msrb.mxu1 %v4197_v0 }
 0x4d8   : > { %3920 = vrot.lane.b32.xlu2 %v8449_v3, %s8911_s29 }
 0x4d9   : > { %2566 = vmatmul.bf16.gmra.mxu0 %v9993_v13  ;;  %3946 = vrot.lane.b32.xlu0 %v12429_v62, %s8911_s29 }
 0x4da   : > { %v3198_v4 = vpop.permute.xlu1 %3197 }
 0x4db   : > { %v10209_v29 = vpop.permute.xlu0 %3359  ;;  %3207 = vrot.lane.b32.xlu1 %v12441_v1, %s8910_s21  ;;  %3237 = vmatpush.bf16.msra.mxu2 %v3198_v4  ;;  %v3212_v35 = vpop.permute.xlu2 %3211  ;;  %v2363_v1 = vunpack.c.h.b16 %v10091_v56  ;;  %v4176_v56 = vsel %vm1875_vm0, %v10181_v30, 0 }
 0x4dc   : > { %7196 = vmatmul.msk.bf16.gmra.mxu1 %vm1875_vm0, %v10179_v6 }
 0x4dd   : > { %4253 = vmatpush.bf16.xpose.msrb.mxu1 %v4194_v16 }
 0x4e0   : > { %3938 = vrot.lane.b32.xlu2 %v12430_v19, %s8911_s29 }
 0x4e1   : > { %3944 = vrot.lane.b32.xlu0 %v9928_v21, %s8911_s29 }
 0x4e2   : > { %v3216_v13 = vpop.permute.xlu1 %3215 }
 0x4e3   : > { %v4123_v62 = vpop.permute.xlu0 %4122  ;;  %4116 = vrot.lane.b32.xlu1 %v8450_v52, %s8912_s24  ;;  %v10245_v11 = vpop.permute.xlu2 %3363 }
 0x4e4   : > { %v4191_v58 = vsel %vm1875_vm0, %v4123_v62, 0 }
 0x4e5   : > { %4254 = vmatpush.bf16.xpose.msrb.mxu1 %v4191_v58 }
 0x4e9   : > { %2571 = vmatmul.bf16.gmra.mxu0 %v10017_v17  ;;  %3922 = vrot.lane.b32.xlu0 %v8448_v57, %s8911_s29  ;;  %v10235_v17 = vpop.f32.mrf.mxu1 }
 0x4ea   : > { %v4121_v2 = vpop.permute.xlu1 %4120 }
 0x4eb   : > { %v3218_v47 = vpop.permute.xlu0 %3217  ;;  %3187 = vrot.lane.b32.xlu1 %v8449_v3, %s8910_s21  ;;  %v4188_v21 = vsel %vm1875_vm0, %v4121_v2, 0  ;;  %v3210_v38 = vpop.permute.xlu2 %3209 }
 0x4ec   : > { %3284 = vmatpush.bf16.msra.mxu0 %v3218_v47  ;;  %7197 = vmatmul.msk.bf16.gmra.mxu1 %vm1875_vm0, %v10129_v7 }
 0x4ed   : > { %4255 = vmatpush.bf16.xpose.msrb.mxu1 %v4188_v21  ;;  %v12448_v21 = vld [vmem:[#allocation49_spill] sm:$0xff] }
 0x4f0   : > { %3285 = vmatpush.bf16.msra.mxu0 %v3216_v13 }
 0x4f1   : > { %v10243_v31 = vpop.f32.mrf.mxu1 }
 0x4f2   : > { %v3196_v19 = vpop.permute.xlu1 %3195 }
 0x4f3   : > { %v3194_v22 = vpop.permute.xlu0 %3193  ;;  %4088 = vrot.lane.b32.xlu1 %v9555_v60, %s8912_s24  ;;  %3238 = vmatpush.bf16.msra.mxu2 %v3196_v19  ;;  %v3206_v13 = vpop.permute.xlu2 %3205 }
 0x4f7   : > { %3239 = vmatpush.bf16.msra.mxu2 %v3194_v22 }
 0x4f9   : > { %2576 = vmatmul.bf16.gmra.mxu0 %v10037_v51  ;;  %v10249_v51 = vpop.f32.mrf.mxu1 }
 0x4fa   : > { %v10238_v43 = vpop.permute.xlu1 %4102 }
 0x4fb   : > { %v4119_v20 = vpop.permute.xlu0 %4118  ;;  %3934 = vrot.lane.b32.xlu1 %v8451_v14, %s8911_s29  ;;  %v3204_v22 = vpop.permute.xlu2 %3203 }
 0x4fc   : > { %7198 = vmatmul.msk.bf16.gmra.mxu1 %vm1875_vm0, %v10209_v29  ;;  %v4185_v53 = vsel %vm1875_vm0, %v4119_v20, 0  ;;  %v4173_v20 = vsel %vm1875_vm0, %v10190_v44, 0  ;;  %v4170_v44 = vsel %vm1875_vm0, %v10141_v55, 0 }
 0x4fd   : > { %4256 = vmatpush.bf16.xpose.msrb.mxu1 %v4185_v53 }
 0x501   : > { %v10255_v8 = vpop.f32.mrf.mxu1 }
 0x502   : > { %v3214_v60 = vpop.permute.xlu1 %3213 }
 0x503   : > { %v3192_v5 = vpop.permute.xlu0 %3191  ;;  %3286 = vmatpush.bf16.msra.mxu0 %v3214_v60  ;;  %3950 = vrot.lane.b32.xlu1 %v9913_v48, %s8911_s29 }
 0x504   : > { %3240 = vmatpush.bf16.msra.mxu2 %v3192_v5  ;;  %v4115_v5 = vpop.permute.xlu2 %4114 }
 0x507   : > { %3287 = vmatpush.bf16.msra.mxu0 %v3212_v35 }
 0x509   : > { %2581 = vmatmul.bf16.gmra.mxu0 %v10085_v12  ;;  %v10260_v48 = vpop.f32.mrf.mxu1 }
 0x50b   : > { %3926 = vrot.lane.b32.xlu1 %v8452_v26, %s8911_s29  ;;  %3288 = vmatpush.bf16.msra.mxu0 %v3210_v38  ;;  %v10284_v62 = vpop.permute.xlu0 %4100  ;;  %v4179_v38 = vsel %vm1875_vm0, %v4115_v5, 0 }
 0x50c   : > { %7199 = vmatmul.msk.bf16.gmra.mxu1 %vm1875_vm0, %v10188_v28  ;;  %v10310_v53 = vpop.permute.xlu2 %4082 }
 0x511   : > { %v10282_v16 = vpop.f32.mrf.mxu1 }
 0x513   : > { %3924 = vrot.lane.b32.xlu1 %v8453_v32, %s8911_s29  ;;  %v10294_v35 = vpop.permute.xlu0 %4098 }
 0x519   : > { %v10292_v19 = vpop.f32.mrf.mxu1 }
 0x51b   : > { %4096 = vrot.lane.b32.xlu1 %v12427_v27, %s8912_s24  ;;  %v10302_v26 = vpop.permute.xlu0 %4084 }
 0x51c   : > { %7200 = vmatmul.msk.bf16.gmra.mxu1 %vm1875_vm0, %v10245_v11 }
 0x521   : > { %v10299_v60 = vpop.f32.mrf.mxu1 }
 0x529   : > { %v10308_v49 = vpop.f32.mrf.mxu1 }
 0x52d   : > { %v2237_v12 = vpop.xlane.xlu1 %2236 }
 0x52e   : > { %8076 = vrcp.f32 %v2237_v12  ;;  %v12449_v12 = vld [vmem:[#allocation50_spill] sm:$0xff] }
 0x534   : > { %v8077_v27 = vpop.eup %8076 }
 0x535   : > { %v2284_v46 = vmul.f32 %v8077_v27, %v10154_v33  ;;  %v2285_v36 = vmul.f32 %v8077_v27, %v10158_v42 }
 0x536   : > { %v2557_v41 = vpop.f32.mrf.mxu0 }
 0x537   : > { %v2301_v61 = vpack.c.bf16 %v2285_v36, %v2284_v46  ;;  %v4167_v46 = vsel %vm1875_vm0, %v10165_v54, 0 }
 0x539   : > { %2317 = vst [vmem:[%s9299_s1 + $0x78] sm:$0xff] %v2301_v61  ;;  %v2364_v37 = vunpack.c.l.b16 %v2301_v61  ;;  %v2365_v39 = vunpack.c.h.b16 %v2301_v61  ;;  %v12451_v61 = vld [vmem:[#allocation51_spill] sm:$0xff] }
 0x53b   : > { %v2508_v57 = vpop.f32.mrf.mxu2  ;;  %v2380_v10 = vpack.c.b16 %v2364_v37, %v2362_v18  ;;  %v2381_v0 = vpack.c.b16 %v2365_v39, %v2363_v1  ;;  %v4164_v18 = vsel %vm1875_vm0, %v10199_v9, 0  ;;  %v10326_v37 = vpop.f32.mrf.mxu1 }
 0x53c   : > { %v10276_v3 = vadd.f32 %v2557_v41, %v2508_v57  ;;  %v10320_v41 = vpop.permute.xlu0 %4090  ;;  %v10330_v39 = vpop.f32.mrf.mxu3  ;;  %v4161_v57 = vsel %vm1875_vm0, %v10238_v43, 0 }
 0x53d   : > { %2537 = vmatmul.bf16.gmra.mxu3 %v2380_v10  ;;  %2586 = vmatmul.bf16.gmra.mxu0 %v2381_v0  ;;  %12453 = vst [vmem:[#allocation63_spill] sm:$0xff] %v10330_v39  ;;  %v10348_v43 = vpop.permute.xlu2 %4086 }
 0x53e   : > { %12444 = vst [vmem:[#allocation47_spill] sm:$0xff] %v10276_v3  ;;  %v10278_v4 = vpop.f32.mrf.mxu0 }
 0x53f   : > { %12445 = vst [vmem:[#allocation59_spill] sm:$0xff] %v10278_v4 }
 0x543   : > { %v10280_v33 = vpop.f32.mrf.mxu2  ;;  %v10336_v9 = vpop.f32.mrf.mxu1 }
 0x544   : > { %12446 = vst [vmem:[#allocation61_spill] sm:$0xff] %v10280_v33  ;;  %v3933_v1 = vpop.permute.xlu0 %3932 }
 0x545   : > { %v3190_v42 = vpop.permute.xlu1 %3189 }
 0x546   : > { %3241 = vmatpush.bf16.msra.mxu2 %v3190_v42  ;;  %v2562_v52 = vpop.f32.mrf.mxu0  ;;  %v12455_v42 = vld [vmem:[#allocation52_spill] sm:$0xff] }
 0x54b   : > { %v2513_v58 = vpop.f32.mrf.mxu2 }
 0x54c   : > { %v10288_v2 = vadd.f32 %v2562_v52, %v2513_v58 }
 0x54d   : > { %v3208_v47 = vpop.permute.xlu1 %3207  ;;  %7153 = vmatmul.msk.bf16.vlgmr.msrb.gmra.mxu3 %vm1875_vm0, %v12448_v21  ;;  %v12459_v21 = vld [vmem:[#allocation53_spill] sm:$0xff] }
 0x54e   : > { %12447 = vst [vmem:[#allocation48_spill] sm:$0xff] %v10288_v2  ;;  %4202 = vmatpush.bf16.xpose.msrb.mxu3 %v4176_v56  ;;  %3289 = vmatpush.bf16.msra.mxu0 %v3208_v47  ;;  %v10316_v36 = vpop.f32.mrf.mxu0  ;;  %v10344_v56 = vpop.f32.mrf.mxu1 }
 0x54f   : > { %12450 = vst [vmem:[#allocation65_spill] sm:$0xff] %v10316_v36 }
 0x552   : > { %3290 = vmatpush.bf16.msra.mxu0 %v3206_v13  ;;  %v10342_v13 = vpop.f32.mrf.mxu3 }
 0x553   : > { %12456 = vst [vmem:[#allocation64_spill] sm:$0xff] %v10342_v13 }
 0x555   : > { %v4117_v30 = vpop.permute.xlu1 %4116 }
 0x556   : > { %4203 = vmatpush.bf16.xpose.msrb.mxu3 %v4173_v20  ;;  %v4182_v14 = vsel %vm1875_vm0, %v4117_v30, 0  ;;  %3291 = vmatpush.bf16.msra.mxu0 %v3204_v22  ;;  %v10328_v54 = vpop.f32.mrf.mxu0  ;;  %v10354_v47 = vpop.f32.mrf.mxu1 }
 0x557   : > { %4257 = vmatpush.bf16.xpose.msrb.mxu1 %v4182_v14  ;;  %12452 = vst [vmem:[#allocation66_spill] sm:$0xff] %v10328_v54 }
 0x55a   : > { %v10352_v58 = vpop.f32.mrf.mxu3 }
 0x55b   : > { %12458 = vst [vmem:[#allocation56_spill] sm:$0xff] %v10352_v58 }
 0x55d   : > { %v3188_v32 = vpop.permute.xlu1 %3187  ;;  %7154 = vmatmul.msk.bf16.gmra.mxu3 %vm1875_vm0, %v12449_v12 }
 0x55e   : > { %4204 = vmatpush.bf16.xpose.msrb.mxu3 %v4170_v44  ;;  %3242 = vmatpush.bf16.msra.mxu2 %v3188_v32  ;;  %v10338_v0 = vpop.f32.mrf.mxu0  ;;  %v10362_v30 = vpop.f32.mrf.mxu1  ;;  %v12464_v32 = vld [vmem:[#allocation54_spill] sm:$0xff] }
 0x55f   : > { %4258 = vmatpush.bf16.xpose.msrb.mxu1 %v4179_v38  ;;  %12454 = vst [vmem:[#allocation62_spill] sm:$0xff] %v10338_v0 }
 0x562   : > { %v10360_v20 = vpop.f32.mrf.mxu3 }
 0x563   : > { %12461 = vst [vmem:[#allocation60_spill] sm:$0xff] %v10360_v20 }
 0x565   : > { %v10312_v27 = vpop.permute.xlu1 %4088 }
 0x566   : > { %4205 = vmatpush.bf16.xpose.msrb.mxu3 %v4167_v46  ;;  %7225 = vmatmul.msk.bf16.vlgmr.msrb.gmra.mxu1 %vm1875_vm0, %v10310_v53  ;;  %v10346_v52 = vpop.f32.mrf.mxu0  ;;  %v10370_v38 = vpop.f32.mrf.mxu1 }
 0x567   : > { %12457 = vst [vmem:[#allocation57_spill] sm:$0xff] %v10346_v52 }
 0x56a   : > { %v10368_v5 = vpop.f32.mrf.mxu3 }
 0x56b   : > { %12463 = vst [vmem:[#allocation50_spill] sm:$0xff] %v10368_v5  ;;  %v10408_v5 = vpop.permute.xlu0 %4094 }
 0x56d   : > { %v3935_v55 = vpop.permute.xlu1 %3934  ;;  %7155 = vmatmul.msk.bf16.gmra.mxu3 %vm1875_vm0, %v12451_v61  ;;  %v12468_v61 = vld [vmem:[#allocation55_spill] sm:$0xff] }
 0x56e   : > { %4206 = vmatpush.bf16.xpose.msrb.mxu3 %v4164_v18  ;;  %3968 = vmatpush.bf16.msrb.mxu2 %v3935_v55  ;;  %v10358_v22 = vpop.f32.mrf.mxu0  ;;  %v10376_v44 = vpop.f32.mrf.mxu1 }
 0x56f   : > { %12460 = vst [vmem:[#allocation43_spill] sm:$0xff] %v10358_v22 }
 0x572   : > { %3969 = vmatpush.bf16.msrb.mxu2 %v3933_v1  ;;  %v10378_v46 = vpop.f32.mrf.mxu3 }
 0x573   : > { %12466 = vst [vmem:[#allocation52_spill] sm:$0xff] %v10378_v46 }
 0x575   : > { %v3951_v10 = vpop.permute.xlu1 %3950 }
 0x576   : > { %4207 = vmatpush.bf16.xpose.msrb.mxu3 %v4161_v57  ;;  %7226 = vmatmul.msk.bf16.gmra.mxu1 %vm1875_vm0, %v10302_v26  ;;  %v10366_v14 = vpop.f32.mrf.mxu0  ;;  %v10388_v1 = vpop.f32.mrf.mxu1  ;;  %v4158_v57 = vsel %vm1875_vm0, %v10284_v62, 0 }
 0x577   : > { %4017 = vmatpush.bf16.msrb.mxu0 %v3951_v10  ;;  %12462 = vst [vmem:[#allocation49_spill] sm:$0xff] %v10366_v14  ;;  %v4155_v10 = vsel %vm1875_vm0, %v10294_v35, 0 }
 0x578   : > { %12470 = vst [vmem:[#allocation55_spill] sm:$0xff] %v10388_v1 }
 0x57a   : > { %v10386_v18 = vpop.f32.mrf.mxu3 }
 0x57b   : > { %12469 = vst [vmem:[#allocation54_spill] sm:$0xff] %v10386_v18 }
 0x57d   : > { %7156 = vmatmul.msk.bf16.gmra.mxu3 %vm1875_vm0, %v12455_v42  ;;  %v10394_v42 = vpop.permute.xlu2 %4092  ;;  %v3927_v18 = vpop.permute.xlu1 %3926 }
 0x57e   : > { %v10374_v12 = vpop.f32.mrf.mxu0  ;;  %4208 = vmatpush.bf16.xpose.msrb.mxu3 %v4158_v57 }
 0x57f   : > { %12465 = vst [vmem:[#allocation51_spill] sm:$0xff] %v10374_v12 }
 0x585   : > { %v3925_v46 = vpop.permute.xlu1 %3924 }
 0x586   : > { %7227 = vmatmul.msk.bf16.gmra.mxu1 %vm1875_vm0, %v10348_v43  ;;  %v10382_v55 = vpop.f32.mrf.mxu0  ;;  %4209 = vmatpush.bf16.xpose.msrb.mxu3 %v4155_v10 }
 0x587   : > { %12467 = vst [vmem:[#allocation53_spill] sm:$0xff] %v10382_v55  ;;  %v12474_v55 = vld [vmem:[#allocation58_spill] sm:$0xff] }
 0x58d   : > { %7157 = vmatmul.msk.bf16.gmra.mxu3 %vm1875_vm0, %v12459_v21 }
 0x58e   : > { %v10396_v21 = vpop.f32.mrf.mxu0 }
 0x58f   : > { %12471 = vst [vmem:[#allocation67_spill] sm:$0xff] %v10396_v21 }
 0x596   : > { %7228 = vmatmul.msk.bf16.gmra.mxu1 %vm1875_vm0, %v10312_v27 }
 0x59d   : > { %7158 = vmatmul.msk.bf16.gmra.mxu3 %vm1875_vm0, %v12464_v32  ;;  %v10400_v32 = vpop.f32.mrf.mxu3 }
 0x59e   : > { %12472 = vst [vmem:[#allocation68_spill] sm:$0xff] %v10400_v32 }
 0x5a6   : > { %7229 = vmatmul.msk.bf16.gmra.mxu1 %vm1875_vm0, %v10320_v41 }
 0x5ad   : > { %7159 = vmatmul.msk.bf16.gmra.mxu3 %vm1875_vm0, %v12468_v61  ;;  %v10402_v61 = vpop.f32.mrf.mxu1 }
 0x5ae   : > { %12473 = vst [vmem:[#allocation69_spill] sm:$0xff] %v10402_v61 }
 0x5b5   : > { %v10406_v35 = vpop.f32.mrf.mxu1 }
 0x5b6   : > { %7230 = vmatmul.msk.bf16.gmra.mxu1 %vm1875_vm0, %v10394_v42 }
 0x5ba   : > { %v2587_v62 = vpop.f32.mrf.mxu0 }
 0x5bd   : > { %7160 = vmatmul.msk.bf16.gmra.mxu3 %vm1875_vm0, %v12474_v55  ;;  %v10412_v58 = vpop.f32.mrf.mxu1 }
 0x5be   : > { %12475 = vst [vmem:[#allocation58_spill] sm:$0xff] %v10412_v58 }
 0x5c0   : > { %v2538_v57 = vpop.f32.mrf.mxu3 }
 0x5c1   : > { %v2588_v14 = vadd.f32 %v2587_v62, %v2538_v57 }
 0x5c2   : > { %v2589_v21 = vpop.f32.mrf.mxu0 }
 0x5c3   : > { %v2606_v12 = vpack.c.bf16 %v2588_v14, %v2588_v14 }
 0x5c5   : > { %v10414_v55 = vunpack.c.l.b16 %v2606_v12  ;;  %v3931_v12 = vpop.permute.xlu0 %3930 }
 0x5c6   : > { %7231 = vmatmul.msk.bf16.gmra.mxu1 %vm1875_vm0, %v10408_v5  ;;  %3970 = vmatpush.bf16.msrb.mxu2 %v3931_v12 }
 0x5c7   : > { %12476 = vst [vmem:[#allocation70_spill] sm:$0xff] %v10414_v55 }
 0x5c8   : > { %v2540_v10 = vpop.f32.mrf.mxu3 }
 0x5c9   : > { %v2590_v32 = vadd.f32 %v2589_v21, %v2540_v10  ;;  %v10426_v21 = vpop.permute.xlu1 %4096 }
 0x5cb   : > { %v2607_v52 = vpack.c.bf16 %v2590_v32, %v2590_v32  ;;  %v10428_v32 = vpop.f32.mrf.mxu1 }
 0x5cd   : > { %v10416_v22 = vunpack.c.l.b16 %v2607_v52  ;;  %7185 = vmatmul.msk.bf16.vlgmr.msra.gmra.mxu3 %vm1875_vm0, %v10102_v50 }
 0x5cf   : > { %12477 = vst [vmem:[#allocation71_spill] sm:$0xff] %v10416_v22 }
 0x5d0   : > { %v10422_v57 = vpop.f32.mrf.mxu3 }
 0x5d1   : > { %v2834_v14 = vmax.f32 %v10422_v57, %v10203_v23 }
 0x5d3   : > { %2835 = vmax.xlane.f32.xlu0 %v2834_v14  ;;  %v3949_v14 = vpop.permute.xlu0 %3948  ;;  %v10570_v3 = vpop.f32.mrf.mxu1 }
 0x5d4   : > { %4018 = vmatpush.bf16.msrb.mxu0 %v3949_v14  ;;  %12480 = vst [vmem:[#allocation74_spill] sm:$0xff] %v10570_v3 }
 0x5d6   : > { %7232 = vmatmul.msk.bf16.gmra.mxu1 %vm1875_vm0, %v10426_v21 }
 0x5d8   : > { %v10432_v52 = vpop.f32.mrf.mxu3 }
 0x5d9   : > { %v2837_v50 = vmax.f32 %v10432_v52, %v10217_v25 }
 0x5db   : > { %2838 = vmax.xlane.f32.xlu1 %v2837_v50  ;;  %v3947_v22 = vpop.permute.xlu0 %3946 }
 0x5dc   : > { %4019 = vmatpush.bf16.msrb.mxu0 %v3947_v22 }
 0x5dd   : > { %7186 = vmatmul.msk.bf16.gmra.mxu3 %vm1875_vm0, %v10169_v40  ;;  %v3929_v40 = vpop.permute.xlu2 %3928 }
 0x5de   : > { %3971 = vmatpush.bf16.msrb.mxu2 %v3929_v40 }
 0x5e0   : > { %v10438_v10 = vpop.f32.mrf.mxu3 }
 0x5e1   : > { %v2840_v62 = vmax.f32 %v10438_v10, %v10227_v34 }
 0x5e2   : > { %3972 = vmatpush.bf16.msrb.mxu2 %v3927_v18 }
 0x5e3   : > { %2841 = vmax.xlane.f32.xlu2 %v2840_v62  ;;  %v3945_v14 = vpop.permute.xlu0 %3944 }
 0x5e4   : > { %4020 = vmatpush.bf16.msrb.mxu0 %v3945_v14 }
 0x5e5   : > { %v3943_v20 = vpop.permute.xlu2 %3942 }
 0x5e6   : > { %3973 = vmatpush.bf16.msrb.mxu2 %v3925_v46 }
 0x5e7   : > { %3936 = vrot.lane.b32.xlu0 %v12434_v45, %s8911_s29 }
 0x5e8   : > { %v10444_v55 = vpop.f32.mrf.mxu3  ;;  %4021 = vmatpush.bf16.msrb.mxu0 %v3943_v20 }
 0x5e9   : > { %v2843_v12 = vmax.f32 %v10444_v55, %v10235_v17 }
 0x5eb   : > { %2844 = vmax.xlane.f32.xlu1 %v2843_v12  ;;  %v3923_v54 = vpop.permute.xlu0 %3922 }
 0x5ec   : > { %3974 = vmatpush.bf16.msrb.mxu2 %v3923_v54 }
 0x5ed   : > { %7187 = vmatmul.msk.bf16.gmra.mxu3 %vm1875_vm0, %v10171_v59  ;;  %v3941_v18 = vpop.permute.xlu2 %3940 }
 0x5ee   : > { %4022 = vmatpush.bf16.msrb.mxu0 %v3941_v18 }
 0x5f0   : > { %v10450_v50 = vpop.f32.mrf.mxu3 }
 0x5f1   : > { %v2846_v54 = vmax.f32 %v10450_v50, %v10243_v31 }
 0x5f5   : > { %v3921_v12 = vpop.permute.xlu2 %3920 }
 0x5f6   : > { %3975 = vmatpush.bf16.msrb.mxu2 %v3921_v12 }
 0x5f8   : > { %v10452_v45 = vpop.f32.mrf.mxu3 }
 0x5f9   : > { %v2849_v62 = vmax.f32 %v10452_v45, %v10249_v51 }
 0x5fb   : > { %2850 = vmax.xlane.f32.xlu2 %v2849_v62 }
 0x5fd   : > { %7188 = vmatmul.msk.bf16.gmra.mxu3 %vm1875_vm0, %v10179_v6  ;;  %v3939_v6 = vpop.permute.xlu2 %3938 }
 0x5fe   : > { %4023 = vmatpush.bf16.msrb.mxu0 %v3939_v6 }
 0x600   : > { %v10458_v59 = vpop.f32.mrf.mxu3 }
 0x601   : > { %v2852_v22 = vmax.f32 %v10458_v59, %v10255_v8 }
 0x603   : > { %2853 = vmax.xlane.f32.xlu2 %v2852_v22 }
 0x608   : > { %v10462_v46 = vpop.f32.mrf.mxu3 }
 0x609   : > { %v2855_v40 = vmax.f32 %v10462_v46, %v10260_v48 }
 0x60d   : > { %7189 = vmatmul.msk.bf16.gmra.mxu3 %vm1875_vm0, %v10129_v7 }
 0x610   : > { %v10468_v20 = vpop.f32.mrf.mxu3 }
 0x611   : > { %2847 = vmax.xlane.f32.xlu0 %v2846_v54  ;;  %v2858_v7 = vmax.f32 %v10468_v20, %v10282_v16 }
 0x618   : > { %v10472_v14 = vpop.f32.mrf.mxu3 }
 0x619   : > { %2856 = vmax.xlane.f32.xlu0 %v2855_v40  ;;  %v2861_v62 = vmax.f32 %v10472_v14, %v10292_v19 }
 0x61b   : > { %2862 = vmax.xlane.f32.xlu2 %v2861_v62 }
 0x61d   : > { %7190 = vmatmul.msk.bf16.gmra.mxu3 %vm1875_vm0, %v10209_v29 }
 0x620   : > { %v10480_v22 = vpop.f32.mrf.mxu3 }
 0x621   : > { %v2864_v18 = vmax.f32 %v10480_v22, %v10299_v60  ;;  %2859 = vmax.xlane.f32.xlu0 %v2858_v7 }
 0x623   : > { %2865 = vmax.xlane.f32.xlu1 %v2864_v18 }
 0x628   : > { %v10484_v12 = vpop.f32.mrf.mxu3 }
 0x629   : > { %v2867_v54 = vmax.f32 %v10484_v12, %v10308_v49 }
 0x62b   : > { %2868 = vmax.xlane.f32.xlu2 %v2867_v54 }
 0x62d   : > { %7191 = vmatmul.msk.bf16.gmra.mxu3 %vm1875_vm0, %v10188_v28 }
 0x630   : > { %v10490_v29 = vpop.f32.mrf.mxu3 }
 0x631   : > { %v2870_v6 = vmax.f32 %v10490_v29, %v10326_v37 }
 0x633   : > { %2871 = vmax.xlane.f32.xlu1 %v2870_v6 }
 0x638   : > { %v10494_v40 = vpop.f32.mrf.mxu3 }
 0x639   : > { %v2873_v62 = vmax.f32 %v10494_v40, %v10336_v9 }
 0x63b   : > { %2874 = vmax.xlane.f32.xlu1 %v2873_v62 }
 0x63d   : > { %7192 = vmatmul.msk.bf16.gmra.mxu3 %vm1875_vm0, %v10245_v11 }
 0x640   : > { %v10500_v7 = vpop.f32.mrf.mxu3 }
 0x641   : > { %v2876_v28 = vmax.f32 %v10500_v7, %v10344_v56 }
 0x643   : > { %2877 = vmax.xlane.f32.xlu1 %v2876_v28 }
 0x646   : > { %v2836_v18 = vpop.xlane.xlu0 %2835 }
 0x647   : > { %v2882_v54 = vsub.f32 %v10422_v57, %v2836_v18  ;;  %v2883_v6 = vsub.f32 %v10203_v23, %v2836_v18 }
 0x648   : > { %v10506_v39 = vpop.f32.mrf.mxu3 }
 0x649   : > { %v2914_v0 = vmul.f32 1.442695, %v2882_v54  ;;  %v2916_v13 = vmul.f32 1.442695, %v2883_v6  ;;  %v2879_v62 = vmax.f32 %v10506_v39, %v10354_v47 }
 0x64b   : > { %8078 = vpow2.f32 %v2914_v0  ;;  %2880 = vmax.xlane.f32.xlu1 %v2879_v62 }
 0x64c   : > { %8080 = vpow2.f32 %v2916_v13 }
 0x64d   : > { %7217 = vmatmul.msk.bf16.vlgmr.msrb.gmra.mxu3 %vm1875_vm0, %v10310_v53 }
 0x64e   : > { %v2839_v11 = vpop.xlane.xlu1 %2838 }
 0x64f   : > { %v2884_v28 = vsub.f32 %v10432_v52, %v2839_v11  ;;  %v2885_v57 = vsub.f32 %v10217_v25, %v2839_v11 }
 0x650   : > { %v10514_v2 = vpop.f32.mrf.mxu3 }
 0x651   : > { %v10516_v23 = vpop.eup %8078  ;;  %v2918_v18 = vmul.f32 1.442695, %v2884_v28  ;;  %v2920_v54 = vmul.f32 1.442695, %v2885_v57  ;;  %v3567_v6 = vmax.f32 %v10514_v2, %v10362_v30 }
 0x652   : > { %v10520_v0 = vpop.eup %8080 }
 0x653   : > { %8082 = vpow2.f32 %v2918_v18  ;;  %3568 = vmax.xlane.f32.xlu0 %v3567_v6  ;;  %v2978_v53 = vadd.f32 %v10520_v0, %v10516_v23 }
 0x654   : > { %8084 = vpow2.f32 %v2920_v54 }
 0x655   : > { %2979 = vadd.xlane.f32.xlu2 %v2978_v53 }
 0x656   : > { %v2842_v13 = vpop.xlane.xlu2 %2841 }
 0x657   : > { %v2886_v25 = vsub.f32 %v10438_v10, %v2842_v13  ;;  %v2887_v52 = vsub.f32 %v10227_v34, %v2842_v13 }
 0x658   : > { %v10526_v62 = vpop.f32.mrf.mxu3 }
 0x659   : > { %v10528_v11 = vpop.eup %8082  ;;  %v2922_v28 = vmul.f32 1.442695, %v2886_v25  ;;  %v2924_v57 = vmul.f32 1.442695, %v2887_v52  ;;  %v3570_v18 = vmax.f32 %v10526_v62, %v10370_v38  ;;  %v3937_v6 = vpop.permute.xlu0 %3936 }
 0x65a   : > { %v10532_v36 = vpop.eup %8084  ;;  %4024 = vmatpush.bf16.msrb.mxu0 %v3937_v6 }
 0x65b   : > { %8086 = vpow2.f32 %v2922_v28  ;;  %3571 = vmax.xlane.f32.xlu0 %v3570_v18  ;;  %v2981_v10 = vadd.f32 %v10532_v36, %v10528_v11 }
 0x65c   : > { %8088 = vpow2.f32 %v2924_v57 }
 0x65d   : > { %2982 = vadd.xlane.f32.xlu1 %v2981_v10  ;;  %7218 = vmatmul.msk.bf16.gmra.mxu3 %vm1875_vm0, %v10302_v26 }
 0x65e   : > { %v2845_v34 = vpop.xlane.xlu1 %2844 }
 0x65f   : > { %v2888_v54 = vsub.f32 %v10444_v55, %v2845_v34  ;;  %v2889_v53 = vsub.f32 %v10235_v17, %v2845_v34 }
 0x660   : > { %v10540_v13 = vpop.f32.mrf.mxu3 }
 0x661   : > { %v10542_v25 = vpop.eup %8086  ;;  %v2926_v52 = vmul.f32 1.442695, %v2888_v54  ;;  %v2928_v28 = vmul.f32 1.442695, %v2889_v53  ;;  %v3573_v18 = vmax.f32 %v10540_v13, %v10376_v44 }
 0x662   : > { %v10546_v6 = vpop.eup %8088 }
 0x663   : > { %8090 = vpow2.f32 %v2926_v52  ;;  %3574 = vmax.xlane.f32.xlu2 %v3573_v18  ;;  %v2984_v26 = vadd.f32 %v10546_v6, %v10542_v25 }
 0x664   : > { %8092 = vpow2.f32 %v2928_v28 }
 0x665   : > { %2985 = vadd.xlane.f32.xlu1 %v2984_v26 }
 0x668   : > { %v10550_v55 = vpop.f32.mrf.mxu3 }
 0x669   : > { %12478 = vst [vmem:[#allocation72_spill] sm:$0xff] %v10550_v55  ;;  %v10552_v17 = vpop.eup %8090  ;;  %v3576_v57 = vmax.f32 %v10550_v55, %v10388_v1 }
 0x66a   : > { %v10556_v10 = vpop.eup %8092 }
 0x66b   : > { %3577 = vmax.xlane.f32.xlu2 %v3576_v57  ;;  %v2987_v34 = vadd.f32 %v10556_v10, %v10552_v17 }
 0x66d   : > { %2988 = vadd.xlane.f32.xlu0 %v2987_v34  ;;  %7219 = vmatmul.msk.bf16.gmra.mxu3 %vm1875_vm0, %v10348_v43 }
 0x66e   : > { %v2851_v54 = vpop.xlane.xlu2 %2850 }
 0x670   : > { %v10562_v53 = vpop.f32.mrf.mxu3 }
 0x671   : > { %12479 = vst [vmem:[#allocation73_spill] sm:$0xff] %v10562_v53  ;;  %v3579_v52 = vmax.f32 %v10562_v53, %v10402_v61 }
 0x673   : > { %3580 = vmax.xlane.f32.xlu1 %v3579_v52 }
 0x676   : > { %v2854_v28 = vpop.xlane.xlu2 %2853 }
 0x677   : > { %v2894_v18 = vsub.f32 %v10458_v59, %v2854_v28  ;;  %v2895_v26 = vsub.f32 %v10255_v8, %v2854_v28  ;;  %v10580_v59 = vpop.f32.mrf.mxu1 }
 0x678   : > { %v10568_v57 = vpop.f32.mrf.mxu3  ;;  %12482 = vst [vmem:[#allocation76_spill] sm:$0xff] %v10580_v59 }
 0x679   : > { %v2938_v34 = vmul.f32 1.442695, %v2894_v18  ;;  %v2940_v4 = vmul.f32 1.442695, %v2895_v26 }
 0x67b   : > { %8094 = vpow2.f32 %v2938_v34 }
 0x67c   : > { %8096 = vpow2.f32 %v2940_v4 }
 0x67d   : > { %7220 = vmatmul.msk.bf16.gmra.mxu3 %vm1875_vm0, %v10312_v27 }
 0x67f   : > { %v10590_v63 = vpop.f32.mrf.mxu1 }
 0x680   : > { %v10574_v43 = vpop.f32.mrf.mxu3 }
 0x681   : > { %12481 = vst [vmem:[#allocation75_spill] sm:$0xff] %v10574_v43  ;;  %v10576_v33 = vpop.eup %8094 }
 0x682   : > { %v10578_v52 = vpop.eup %8096 }
 0x683   : > { %v2996_v8 = vadd.f32 %v10578_v52, %v10576_v33 }
 0x684   : > { %v2848_v28 = vpop.xlane.xlu0 %2847 }
 0x685   : > { %v2890_v18 = vsub.f32 %v10450_v50, %v2848_v28  ;;  %v2891_v26 = vsub.f32 %v10243_v31, %v2848_v28  ;;  %2997 = vadd.xlane.f32.xlu0 %v2996_v8 }
 0x687   : > { %v2930_v4 = vmul.f32 1.442695, %v2890_v18  ;;  %v2932_v34 = vmul.f32 1.442695, %v2891_v26  ;;  %v2892_v18 = vsub.f32 %v10452_v45, %v2851_v54 }
 0x688   : > { %v10586_v27 = vpop.f32.mrf.mxu3 }
 0x689   : > { %8098 = vpow2.f32 %v2930_v4  ;;  %v3588_v24 = vmax.f32 %v10586_v27, %v10428_v32  ;;  %v2934_v61 = vmul.f32 1.442695, %v2892_v18 }
 0x68a   : > { %8100 = vpow2.f32 %v2932_v34 }
 0x68b   : > { %3589 = vmax.xlane.f32.xlu2 %v3588_v24  ;;  %v2893_v24 = vsub.f32 %v10249_v51, %v2851_v54 }
 0x68d   : > { %7221 = vmatmul.msk.bf16.gmra.mxu3 %vm1875_vm0, %v10320_v41 }
 0x68e   : > { %v2863_v15 = vpop.xlane.xlu2 %2862 }
 0x68f   : > { %v10594_v50 = vpop.eup %8098  ;;  %v2900_v31 = vsub.f32 %v10472_v14, %v2863_v15  ;;  %v2901_v8 = vsub.f32 %v10292_v19, %v2863_v15  ;;  %v2936_v14 = vmul.f32 1.442695, %v2893_v24  ;;  %v10606_v15 = vpop.f32.mrf.mxu1  ;;  %v3582_v24 = vmax.f32 %v10568_v57, %v10406_v35 }
 0x690   : > { %v10598_v28 = vpop.eup %8100  ;;  %v10601_v26 = vpop.f32.mrf.mxu3  ;;  %12484 = vst [vmem:[#allocation78_spill] sm:$0xff] %v10606_v15 }
 0x691   : > { %12483 = vst [vmem:[#allocation77_spill] sm:$0xff] %v10601_v26  ;;  %v2950_v4 = vmul.f32 1.442695, %v2900_v31  ;;  %v2952_v34 = vmul.f32 1.442695, %v2901_v8  ;;  %v2990_v41 = vadd.f32 %v10598_v28, %v10594_v50 }
 0x693   : > { %8102 = vpow2.f32 %v2950_v4  ;;  %2991 = vadd.xlane.f32.xlu1 %v2990_v41 }
 0x694   : > { %8104 = vpow2.f32 %v2952_v34 }
 0x695   : > { %8106 = vpow2.f32 %v2934_v61  ;;  %v2857_v61 = vpop.xlane.xlu0 %2856 }
 0x696   : > { %v2866_v53 = vpop.xlane.xlu1 %2865  ;;  %8108 = vpow2.f32 %v2936_v14  ;;  %v2896_v4 = vsub.f32 %v10462_v46, %v2857_v61 }
 0x697   : > { %v2902_v19 = vsub.f32 %v10480_v22, %v2866_v53  ;;  %v2903_v45 = vsub.f32 %v10299_v60, %v2866_v53  ;;  %v10633_v14 = vpop.f32.mrf.mxu1 }
 0x698   : > { %v10610_v1 = vpop.f32.mrf.mxu3 }
 0x699   : > { %12485 = vst [vmem:[#allocation79_spill] sm:$0xff] %v10610_v1  ;;  %v10612_v51 = vpop.eup %8102  ;;  %v2954_v54 = vmul.f32 1.442695, %v2902_v19  ;;  %v2956_v31 = vmul.f32 1.442695, %v2903_v45  ;;  %v3594_v8 = vmax.f32 %v10610_v1, %v10580_v59  ;;  %v2897_v19 = vsub.f32 %v10260_v48, %v2857_v61 }
 0x69a   : > { %v10616_v18 = vpop.eup %8104  ;;  %v3585_v1 = vmax.f32 %v10574_v43, %v10412_v58 }
 0x69b   : > { %8110 = vpow2.f32 %v2954_v54  ;;  %3595 = vmax.xlane.f32.xlu0 %v3594_v8  ;;  %v3005_v60 = vadd.f32 %v10616_v18, %v10612_v51  ;;  %3583 = vmax.xlane.f32.xlu1 %v3582_v24  ;;  %v10624_v22 = vpop.eup %8106  ;;  %v2944_v8 = vmul.f32 1.442695, %v2897_v19 }
 0x69c   : > { %8112 = vpow2.f32 %v2956_v31  ;;  %v10626_v53 = vpop.eup %8108  ;;  %v2942_v31 = vmul.f32 1.442695, %v2896_v4 }
 0x69d   : > { %3006 = vadd.xlane.f32.xlu2 %v3005_v60  ;;  %7222 = vmatmul.msk.bf16.gmra.mxu3 %vm1875_vm0, %v10394_v42  ;;  %v2993_v54 = vadd.f32 %v10626_v53, %v10624_v22  ;;  %v2860_v4 = vpop.xlane.xlu0 %2859 }
 0x69e   : > { %8114 = vpow2.f32 %v2942_v31 }
 0x69f   : > { %8116 = vpow2.f32 %v2944_v8  ;;  %v10648_v55 = vpop.f32.mrf.mxu1 }
 0x6a0   : > { %v10629_v34 = vpop.f32.mrf.mxu3  ;;  %12487 = vst [vmem:[#allocation81_spill] sm:$0xff] %v10648_v55 }
 0x6a1   : > { %v10631_v41 = vpop.eup %8110 }
 0x6a2   : > { %v10636_v45 = vpop.eup %8112 }
 0x6a3   : > { %v3008_v42 = vadd.f32 %v10636_v45, %v10631_v41  ;;  %2994 = vadd.xlane.f32.xlu1 %v2993_v54 }
 0x6a5   : > { %3009 = vadd.xlane.f32.xlu0 %v3008_v42 }
 0x6a6   : > { %v2872_v46 = vpop.xlane.xlu1 %2871 }
 0x6a7   : > { %v2906_v24 = vsub.f32 %v10490_v29, %v2872_v46  ;;  %v2907_v60 = vsub.f32 %v10326_v37, %v2872_v46  ;;  %v10652_v29 = vpop.eup %8114  ;;  %v2898_v37 = vsub.f32 %v10468_v20, %v2860_v4 }
 0x6a8   : > { %v10644_v59 = vpop.f32.mrf.mxu3  ;;  %v10655_v54 = vpop.eup %8116 }
 0x6a9   : > { %12486 = vst [vmem:[#allocation80_spill] sm:$0xff] %v10644_v59  ;;  %v2962_v48 = vmul.f32 1.442695, %v2906_v24  ;;  %v2964_v61 = vmul.f32 1.442695, %v2907_v60  ;;  %v2999_v60 = vadd.f32 %v10655_v54, %v10652_v29 }
 0x6ab   : > { %8118 = vpow2.f32 %v2962_v48  ;;  %3586 = vmax.xlane.f32.xlu1 %v3585_v1  ;;  %v2899_v1 = vsub.f32 %v10282_v16, %v2860_v4 }
 0x6ac   : > { %8120 = vpow2.f32 %v2964_v61 }
 0x6ad   : > { %7223 = vmatmul.msk.bf16.gmra.mxu3 %vm1875_vm0, %v10408_v5  ;;  %v2946_v5 = vmul.f32 1.442695, %v2898_v37  ;;  %v3591_v37 = vmax.f32 %v10601_v26, %v10570_v3 }
 0x6ae   : > { %v2875_v19 = vpop.xlane.xlu1 %2874 }
 0x6af   : > { %v2908_v42 = vsub.f32 %v10494_v40, %v2875_v19  ;;  %v2909_v31 = vsub.f32 %v10336_v9, %v2875_v19  ;;  %v10670_v40 = vpop.f32.mrf.mxu1  ;;  %v2948_v9 = vmul.f32 1.442695, %v2899_v1  ;;  %8122 = vpow2.f32 %v2946_v5 }
 0x6b0   : > { %v10659_v8 = vpop.f32.mrf.mxu3 }
 0x6b1   : > { %v10661_v46 = vpop.eup %8118  ;;  %v2966_v20 = vmul.f32 1.442695, %v2908_v42  ;;  %v2968_v61 = vmul.f32 1.442695, %v2909_v31 }
 0x6b2   : > { %v10664_v24 = vpop.eup %8120 }
 0x6b3   : > { %v3014_v48 = vadd.f32 %v10664_v24, %v10661_v46  ;;  %3000 = vadd.xlane.f32.xlu1 %v2999_v60  ;;  %8124 = vpow2.f32 %v2966_v20 }
 0x6b4   : > { %8126 = vpow2.f32 %v2968_v61  ;;  %v2869_v61 = vpop.xlane.xlu2 %2868 }
 0x6b5   : > { %3015 = vadd.xlane.f32.xlu0 %v3014_v48  ;;  %8128 = vpow2.f32 %v2948_v9  ;;  %v10680_v42 = vpop.eup %8122 }
 0x6b6   : > { %v10672_v19 = vpop.xlane.xlu1 %2877 }
 0x6b7   : > { %v10690_v20 = vpop.f32.mrf.mxu1 }
 0x6b8   : > { %v10674_v16 = vpop.f32.mrf.mxu3 }
 0x6b9   : > { %12488 = vst [vmem:[#allocation82_spill] sm:$0xff] %v10674_v16  ;;  %v3606_v4 = vmax.f32 %v10674_v16, %v10648_v55  ;;  %v10682_v31 = vpop.eup %8124  ;;  %v2905_v55 = vsub.f32 %v10308_v49, %v2869_v61 }
 0x6ba   : > { %v10686_v1 = vpop.eup %8126 }
 0x6bb   : > { %3607 = vmax.xlane.f32.xlu2 %v3606_v4  ;;  %3592 = vmax.xlane.f32.xlu1 %v3591_v37  ;;  %12489 = vst [vmem:[#allocation83_spill] sm:$0xff] %v10686_v1  ;;  %v10688_v60 = vpop.eup %8128  ;;  %v3017_v37 = vadd.f32 %v10686_v1, %v10682_v31 }
 0x6bd   : > { %7224 = vmatmul.msk.bf16.gmra.mxu3 %vm1875_vm0, %v10426_v21  ;;  %v3002_v21 = vadd.f32 %v10688_v60, %v10680_v42 }
 0x6be   : > { %v2881_v5 = vpop.xlane.xlu1 %2880 }
 0x6bf   : > { %v2912_v48 = vsub.f32 %v10506_v39, %v2881_v5  ;;  %v2913_v9 = vsub.f32 %v10354_v47, %v2881_v5  ;;  %v10700_v43 = vpop.f32.mrf.mxu1  ;;  %v2904_v39 = vsub.f32 %v10484_v12, %v2869_v61  ;;  %v3597_v12 = vmax.f32 %v10629_v34, %v10590_v63 }
 0x6c0   : > { %v10694_v4 = vpop.f32.mrf.mxu3 }
 0x6c1   : > { %v2974_v3 = vmul.f32 1.442695, %v2912_v48  ;;  %v2976_v26 = vmul.f32 1.442695, %v2913_v9 }
 0x6c3   : > { %3018 = vadd.xlane.f32.xlu2 %v3017_v37  ;;  %3003 = vadd.xlane.f32.xlu1 %v3002_v21  ;;  %8130 = vpow2.f32 %v2974_v3  ;;  %v2958_v3 = vmul.f32 1.442695, %v2904_v39 }
 0x6c4   : > { %8132 = vpow2.f32 %v2976_v26 }
 0x6c6   : > { %v3569_v58 = vpop.xlane.xlu0 %3568 }
 0x6c7   : > { %v3615_v47 = vsub.f32 %v10514_v2, %v3569_v58  ;;  %v3616_v5 = vsub.f32 %v10362_v30, %v3569_v58  ;;  %v2960_v2 = vmul.f32 1.442695, %v2905_v55 }
 0x6c8   : > { %v2980_v16 = vpop.xlane.xlu2 %2979  ;;  %v10706_v1 = vpop.f32.mrf.mxu3 }
 0x6c9   : > { %v3647_v48 = vmul.f32 1.442695, %v3615_v47  ;;  %v3649_v37 = vmul.f32 1.442695, %v3616_v5  ;;  %8134 = vrcp.f32 %v2980_v16  ;;  %v3612_v9 = vmax.f32 %v10706_v1, %v10690_v20  ;;  %v10712_v49 = vpop.eup %8130 }
 0x6ca   : > { %v10714_v58 = vpop.eup %8132 }
 0x6cb   : > { %8136 = vpow2.f32 %v3647_v48  ;;  %3613 = vmax.xlane.f32.xlu2 %v3612_v9  ;;  %3598 = vmax.xlane.f32.xlu1 %v3597_v12  ;;  %v3023_v9 = vadd.f32 %v10714_v58, %v10712_v49 }
 0x6cc   : > { %8138 = vpow2.f32 %v3649_v37 }
 0x6cd   : > { %8140 = vpow2.f32 %v2958_v3 }
 0x6ce   : > { %v3572_v30 = vpop.xlane.xlu0 %3571  ;;  %8142 = vpow2.f32 %v2960_v2 }
 0x6cf   : > { %v8135_v26 = vpop.eup %8134  ;;  %v3617_v16 = vsub.f32 %v10526_v62, %v3572_v30  ;;  %v3618_v61 = vsub.f32 %v10370_v38, %v3572_v30  ;;  %v10728_v38 = vpop.f32.mrf.mxu1 }
 0x6d0   : > { %v3042_v21 = vmul.f32 %v8135_v26, %v10516_v23  ;;  %v3043_v39 = vmul.f32 %v8135_v26, %v10520_v0  ;;  %v2983_v55 = vpop.xlane.xlu1 %2982  ;;  %v10720_v47 = vpop.f32.mrf.mxu3  ;;  %12490 = vst [vmem:[#allocation84_spill] sm:$0xff] %v10728_v38  ;;  %v3600_v23 = vmax.f32 %v10644_v59, %v10606_v15 }
 0x6d1   : > { %v10722_v5 = vpop.eup %8136  ;;  %v3651_v48 = vmul.f32 1.442695, %v3617_v16  ;;  %v3653_v37 = vmul.f32 1.442695, %v3618_v61  ;;  %8144 = vrcp.f32 %v2983_v55 }
 0x6d2   : > { %v10726_v62 = vpop.eup %8138  ;;  %v3074_v12 = vpack.c.bf16 %v3043_v39, %v3042_v21 }
 0x6d3   : > { %8146 = vpow2.f32 %v3651_v48  ;;  %3024 = vadd.xlane.f32.xlu2 %v3023_v9  ;;  %v3711_v0 = vadd.f32 %v10726_v62, %v10722_v5  ;;  %3601 = vmax.xlane.f32.xlu1 %v3600_v23  ;;  %v10735_v3 = vpop.eup %8140 }
 0x6d4   : > { %7169 = vst [vmem:[%s9299_s1 + $0x80] sm:$0xff] %v3074_v12  ;;  %8148 = vpow2.f32 %v3653_v37  ;;  %v10737_v2 = vpop.eup %8142 }
 0x6d5   : > { %3712 = vadd.xlane.f32.xlu0 %v3711_v0 }
 0x6d6   : > { %v3575_v30 = vpop.xlane.xlu2 %3574 }
 0x6d7   : > { %v8145_v26 = vpop.eup %8144  ;;  %v3619_v16 = vsub.f32 %v10540_v13, %v3575_v30  ;;  %v3620_v61 = vsub.f32 %v10376_v44, %v3575_v30  ;;  %v3011_v44 = vadd.f32 %v10737_v2, %v10735_v3  ;;  %v10755_v30 = vpop.f32.mrf.mxu1 }
 0x6d8   : > { %v3044_v21 = vmul.f32 %v8145_v26, %v10528_v11  ;;  %v3045_v39 = vmul.f32 %v8145_v26, %v10532_v36  ;;  %v2986_v55 = vpop.xlane.xlu1 %2985  ;;  %v10743_v48 = vpop.f32.mrf.mxu3  ;;  %v3123_v11 = vunpack.c.l.b16 %v3074_v12 }
 0x6d9   : > { %12491 = vst [vmem:[#allocation85_spill] sm:$0xff] %v10743_v48  ;;  %v10745_v37 = vpop.eup %8146  ;;  %v3655_v9 = vmul.f32 1.442695, %v3619_v16  ;;  %v3657_v23 = vmul.f32 1.442695, %v3620_v61  ;;  %8150 = vrcp.f32 %v2986_v55  ;;  %v4303_v0 = vmax.f32 %v10743_v48, %v10728_v38 }
 0x6da   : > { %v10749_v15 = vpop.eup %8148  ;;  %v3075_v13 = vpack.c.bf16 %v3045_v39, %v3044_v21  ;;  %v3124_v16 = vunpack.c.h.b16 %v3074_v12 }
 0x6db   : > { %8152 = vpow2.f32 %v3655_v9  ;;  %v3714_v36 = vadd.f32 %v10749_v15, %v10745_v37  ;;  %3012 = vadd.xlane.f32.xlu1 %v3011_v44  ;;  %v2910_v9 = vsub.f32 %v10500_v7, %v10672_v19 }
 0x6dc   : > { %7170 = vst [vmem:[%s9299_s1 + $0x88] sm:$0xff] %v3075_v13  ;;  %8154 = vpow2.f32 %v3657_v23  ;;  %v3125_v26 = vunpack.c.l.b16 %v3075_v13  ;;  %v3126_v61 = vunpack.c.h.b16 %v3075_v13 }
 0x6dd   : > { %4304 = vmax.xlane.f32.xlu0 %v4303_v0  ;;  %3715 = vadd.xlane.f32.xlu2 %v3714_v36  ;;  %v2911_v0 = vsub.f32 %v10344_v56, %v10672_v19  ;;  %v2970_v36 = vmul.f32 1.442695, %v2910_v9 }
 0x6de   : > { %v3155_v55 = vpack.c.b16 %v3125_v26, %v3123_v11  ;;  %v3156_v21 = vpack.c.b16 %v3126_v61, %v3124_v16 }
 0x6df   : > { %v8151_v39 = vpop.eup %8150  ;;  %v2972_v11 = vmul.f32 1.442695, %v2911_v0  ;;  %v10777_v56 = vpop.f32.mrf.mxu1 }
 0x6e0   : > { %v3046_v59 = vmul.f32 %v8151_v39, %v10542_v25  ;;  %v3047_v38 = vmul.f32 %v8151_v39, %v10546_v6  ;;  %v2989_v48 = vpop.xlane.xlu0 %2988  ;;  %3243 = vmatmul.bf16.vlgmr.msra.gmra.mxu2 %v3155_v55  ;;  %3292 = vmatmul.bf16.vlgmr.msra.gmra.mxu0 %v3156_v21  ;;  %v10762_v23 = vpop.f32.mrf.mxu3  ;;  %v3603_v25 = vmax.f32 %v10659_v8, %v10633_v14 }
 0x6e1   : > { %v10764_v12 = vpop.eup %8152  ;;  %8156 = vrcp.f32 %v2989_v48  ;;  %v4306_v13 = vmax.f32 %v10762_v23, %v10755_v30 }
 0x6e2   : > { %v10770_v7 = vpop.eup %8154  ;;  %v3076_v6 = vpack.c.bf16 %v3047_v38, %v3046_v59  ;;  %8158 = vpow2.f32 %v2970_v36  ;;  %v3609_v38 = vmax.f32 %v10694_v4, %v10670_v40 }
 0x6e3   : > { %v3717_v44 = vadd.f32 %v10770_v7, %v10764_v12  ;;  %3604 = vmax.xlane.f32.xlu1 %v3603_v25  ;;  %8160 = vpow2.f32 %v2972_v11 }
 0x6e4   : > { %7171 = vst [vmem:[%s9299_s1 + $0x90] sm:$0xff] %v3076_v6  ;;  %v3127_v55 = vunpack.c.l.b16 %v3076_v6  ;;  %v3128_v39 = vunpack.c.h.b16 %v3076_v6 }
 0x6e5   : > { %4307 = vmax.xlane.f32.xlu0 %v4306_v13  ;;  %3718 = vadd.xlane.f32.xlu2 %v3717_v44 }
 0x6e7   : > { %v8157_v19 = vpop.eup %8156  ;;  %v10792_v25 = vpop.f32.mrf.mxu1 }
 0x6e8   : > { %v3048_v48 = vmul.f32 %v8157_v19, %v10552_v17  ;;  %v3049_v26 = vmul.f32 %v8157_v19, %v10556_v10  ;;  %v10781_v16 = vpop.f32.mrf.mxu3  ;;  %v10788_v17 = vpop.eup %8158  ;;  %12492 = vst [vmem:[#allocation86_spill] sm:$0xff] %v10792_v25  ;;  %v4300_v19 = vmax.f32 %v10720_v47, %v10700_v43 }
 0x6e9   : > { %v4309_v59 = vmax.f32 %v10781_v16, %v10777_v56  ;;  %v10790_v13 = vpop.eup %8160 }
 0x6ea   : > { %v3077_v61 = vpack.c.bf16 %v3049_v26, %v3048_v48  ;;  %v3020_v6 = vadd.f32 %v10790_v13, %v10788_v17  ;;  %v10802_v26 = vpop.xlane.xlu1 %3580 }
 0x6eb   : > { %3610 = vmax.xlane.f32.xlu1 %v3609_v38 }
 0x6ec   : > { %7172 = vst [vmem:[%s9299_s1 + $0x98] sm:$0xff] %v3077_v61  ;;  %v3129_v21 = vunpack.c.l.b16 %v3077_v61  ;;  %v3130_v9 = vunpack.c.h.b16 %v3077_v61 }
 0x6ed   : > { %4310 = vmax.xlane.f32.xlu2 %v4309_v59  ;;  %v10804_v59 = vpop.xlane.xlu2 %3577 }
 0x6ee   : > { %v3157_v10 = vpack.c.b16 %v3129_v21, %v3127_v55  ;;  %v3158_v0 = vpack.c.b16 %v3130_v9, %v3128_v39  ;;  %v8454_v9 = vld [vmem:[#allocation3 + $0x50] sm:$0xff] }
 0x6f0   : > { %3248 = vmatmul.bf16.gmra.mxu2 %v3157_v10  ;;  %3297 = vmatmul.bf16.gmra.mxu0 %v3158_v0  ;;  %v10794_v44 = vpop.f32.mrf.mxu3 }
 0x6f1   : > { %12493 = vst [vmem:[#allocation87_spill] sm:$0xff] %v10794_v44  ;;  %v4312_v36 = vmax.f32 %v10794_v44, %v10792_v25 }
 0x6f3   : > { %3021 = vadd.xlane.f32.xlu1 %v3020_v6 }
 0x6f5   : > { %4313 = vmax.xlane.f32.xlu2 %v4312_v36 }
 0x6f8   : > { %v2998_v11 = vpop.xlane.xlu0 %2997 }
 0x6f9   : > { %8162 = vrcp.f32 %v2998_v11 }
 0x6fb   : > { %4301 = vmax.xlane.f32.xlu1 %v4300_v19 }
 0x6fe   : > { %v3590_v39 = vpop.xlane.xlu2 %3589 }
 0x6ff   : > { %v8163_v48 = vpop.eup %8162 }
 0x700   : > { %v3054_v38 = vmul.f32 %v8163_v48, %v10576_v33  ;;  %v3055_v61 = vmul.f32 %v8163_v48, %v10578_v52 }
 0x702   : > { %v10808_v55 = vpack.c.bf16 %v3055_v61, %v3054_v38 }
 0x704   : > { %7175 = vst [vmem:[%s9299_s1 + $0xb0] sm:$0xff] %v10808_v55 }
 0x706   : > { %v2992_v21 = vpop.xlane.xlu1 %2991 }
 0x707   : > { %8164 = vrcp.f32 %v2992_v21  ;;  %v8455_v21 = vld [vmem:[#allocation3 + $0x38] sm:$0xff] }
 0x70d   : > { %4683 = vrot.lane.b32.xlu2 %v8454_v9, %s8912_s24  ;;  %v8165_v10 = vpop.eup %8164 }
 0x70e   : > { %v10813_v0 = vpop.xlane.xlu0 %3595  ;;  %v3050_v36 = vmul.f32 %v8165_v10, %v10594_v50  ;;  %v3051_v33 = vmul.f32 %v8165_v10, %v10598_v28  ;;  %v3584_v6 = vpop.xlane.xlu1 %3583 }
 0x70f   : > { %v3625_v52 = vsub.f32 %v10568_v57, %v3584_v6  ;;  %v3626_v11 = vsub.f32 %v10406_v35, %v3584_v6 }
 0x710   : > { %v3007_v19 = vpop.xlane.xlu2 %3006  ;;  %v3078_v61 = vpack.c.bf16 %v3051_v33, %v3050_v36 }
 0x711   : > { %8166 = vrcp.f32 %v3007_v19  ;;  %v3667_v48 = vmul.f32 1.442695, %v3625_v52  ;;  %v3669_v38 = vmul.f32 1.442695, %v3626_v11 }
 0x712   : > { %7173 = vst [vmem:[%s9299_s1 + $0xa0] sm:$0xff] %v3078_v61 }
 0x713   : > { %8168 = vpow2.f32 %v3667_v48 }
 0x714   : > { %8170 = vpow2.f32 %v3669_v38  ;;  %4667 = vrot.lane.b32.xlu1 %v8455_v21, %s8912_s24 }
 0x716   : > { %v2995_v9 = vpop.xlane.xlu1 %2994 }
 0x717   : > { %v8167_v50 = vpop.eup %8166  ;;  %8172 = vrcp.f32 %v2995_v9  ;;  %v3630_v9 = vsub.f32 %v10428_v32, %v3590_v39  ;;  %v12494_v32 = vld [vmem:[#allocation72_spill] sm:$0xff] }
 0x718   : > { %v3060_v28 = vmul.f32 %v8167_v50, %v10612_v51  ;;  %v3061_v57 = vmul.f32 %v8167_v50, %v10616_v18  ;;  %v3010_v35 = vpop.xlane.xlu0 %3009  ;;  %v3629_v50 = vsub.f32 %v10586_v27, %v3590_v39  ;;  %v12495_v39 = vld [vmem:[#allocation79_spill] sm:$0xff] }
 0x719   : > { %8174 = vrcp.f32 %v3010_v35  ;;  %v10823_v10 = vpop.eup %8168 }
 0x71a   : > { %v10825_v6 = vpack.c.bf16 %v3061_v57, %v3060_v28  ;;  %v10827_v36 = vpop.eup %8170  ;;  %v3131_v57 = vunpack.c.l.b16 %v3078_v61  ;;  %v3675_v25 = vmul.f32 1.442695, %v3629_v50 }
 0x71b   : > { %v3726_v33 = vadd.f32 %v10827_v36, %v10823_v10 }
 0x71c   : > { %7178 = vst [vmem:[%s9299_s1 + $0xc8] sm:$0xff] %v10825_v6 }
 0x71d   : > { %v8173_v52 = vpop.eup %8172  ;;  %3727 = vadd.xlane.f32.xlu0 %v3726_v33  ;;  %v3132_v33 = vunpack.c.h.b16 %v3078_v61  ;;  %v3633_v61 = vsub.f32 %v12495_v39, %v10813_v0 }
 0x71e   : > { %v3052_v18 = vmul.f32 %v8173_v52, %v10624_v22  ;;  %v3053_v11 = vmul.f32 %v8173_v52, %v10626_v53  ;;  %v10835_v19 = vpop.xlane.xlu1 %3586 }
 0x71f   : > { %v8175_v51 = vpop.eup %8174  ;;  %v3683_v50 = vmul.f32 1.442695, %v3633_v61  ;;  %v12499_v61 = vld [vmem:[#allocation69_spill] sm:$0xff] }
 0x720   : > { %v3062_v48 = vmul.f32 %v8175_v51, %v10631_v41  ;;  %v3063_v38 = vmul.f32 %v8175_v51, %v10636_v45  ;;  %v3079_v21 = vpack.c.bf16 %v3053_v11, %v3052_v18  ;;  %v3677_v41 = vmul.f32 1.442695, %v3630_v9  ;;  %v12496_v51 = vld [vmem:[#allocation76_spill] sm:$0xff]  ;;  %v12497_v11 = vld [vmem:[#allocation55_spill] sm:$0xff] }
 0x721   : > { %v3621_v45 = vsub.f32 %v12494_v32, %v10804_v59  ;;  %v3634_v18 = vsub.f32 %v12496_v51, %v10813_v0  ;;  %v3135_v32 = vunpack.c.l.b16 %v10808_v55  ;;  %v3624_v51 = vsub.f32 %v12499_v61, %v10802_v26 }
 0x722   : > { %v10841_v28 = vpack.c.bf16 %v3063_v38, %v3062_v48  ;;  %7174 = vst [vmem:[%s9299_s1 + $0xa8] sm:$0xff] %v3079_v21  ;;  %v3133_v35 = vunpack.c.l.b16 %v3079_v21  ;;  %v3134_v22 = vunpack.c.h.b16 %v3079_v21  ;;  %v3622_v48 = vsub.f32 %v12497_v11, %v10804_v59 }
 0x723   : > { %v3659_v38 = vmul.f32 1.442695, %v3621_v45 }
 0x724   : > { %7179 = vst [vmem:[%s9299_s1 + $0xd0] sm:$0xff] %v10841_v28  ;;  %v3159_v53 = vpack.c.b16 %v3133_v35, %v3131_v57  ;;  %v3160_v52 = vpack.c.b16 %v3134_v22, %v3132_v33  ;;  %v3685_v57 = vmul.f32 1.442695, %v3634_v18  ;;  %v3661_v0 = vmul.f32 1.442695, %v3622_v48 }
 0x726   : > { %v3001_v44 = vpop.xlane.xlu1 %3000  ;;  %3253 = vmatmul.bf16.gmra.mxu2 %v3159_v53  ;;  %3302 = vmatmul.bf16.gmra.mxu0 %v3160_v52 }
 0x727   : > { %8176 = vrcp.f32 %v3001_v44 }
 0x728   : > { %v3016_v27 = vpop.xlane.xlu0 %3015 }
 0x729   : > { %8178 = vrcp.f32 %v3016_v27  ;;  %v12498_v27 = vld [vmem:[#allocation73_spill] sm:$0xff] }
 0x72a   : > { %8180 = vpow2.f32 %v3675_v25 }
 0x72b   : > { %8182 = vpow2.f32 %v3677_v41 }
 0x72c   : > { %8184 = vpow2.f32 %v3659_v38 }
 0x72d   : > { %v8177_v21 = vpop.eup %8176  ;;  %8186 = vpow2.f32 %v3683_v50 }
 0x72e   : > { %v10854_v44 = vpop.xlane.xlu2 %3607  ;;  %v3056_v35 = vmul.f32 %v8177_v21, %v10652_v29  ;;  %v3057_v25 = vmul.f32 %v8177_v21, %v10655_v54  ;;  %v10858_v33 = vpop.xlane.xlu1 %3592  ;;  %v3623_v29 = vsub.f32 %v12498_v27, %v10802_v26  ;;  %v8456_v54 = vld [vmem:[#allocation3 + $0x70] sm:$0xff]  ;;  %8188 = vpow2.f32 %v3685_v57 }
 0x72f   : > { %v8179_v9 = vpop.eup %8178  ;;  %8190 = vpow2.f32 %v3661_v0  ;;  %v3665_v57 = vmul.f32 1.442695, %v3624_v51 }
 0x730   : > { %v10860_v22 = vpop.eup %8180  ;;  %v3066_v53 = vmul.f32 %v8179_v9, %v10661_v46  ;;  %v3067_v59 = vmul.f32 %v8179_v9, %v10664_v24  ;;  %v3081_v41 = vpack.c.bf16 %v3057_v25, %v3056_v35  ;;  %v3136_v24 = vunpack.c.h.b16 %v10808_v55 }
 0x731   : > { %v10864_v52 = vpop.eup %8182  ;;  %4665 = vrot.lane.b32.xlu0 %v8456_v54, %s8912_s24  ;;  %v3663_v50 = vmul.f32 1.442695, %v3623_v29  ;;  %v12500_v29 = vld [vmem:[#allocation83_spill] sm:$0xff] }
 0x732   : > { %v10870_v45 = vpack.c.bf16 %v3067_v59, %v3066_v53  ;;  %7176 = vst [vmem:[%s9299_s1 + $0xb8] sm:$0xff] %v3081_v41  ;;  %v3137_v46 = vunpack.c.l.b16 %v3081_v41  ;;  %v3138_v39 = vunpack.c.h.b16 %v3081_v41  ;;  %v3732_v18 = vadd.f32 %v10864_v52, %v10860_v22  ;;  %v10880_v21 = vpop.eup %8184  ;;  %v10890_v53 = vpop.f32.mrf.mxu3 }
 0x733   : > { %v10882_v55 = vpop.eup %8186 }
 0x734   : > { %7181 = vst [vmem:[%s9299_s1 + $0xe0] sm:$0xff] %v10870_v45  ;;  %v3161_v11 = vpack.c.b16 %v3137_v46, %v3135_v32  ;;  %v3162_v48 = vpack.c.b16 %v3138_v39, %v3136_v24  ;;  %v10884_v26 = vpop.eup %8188  ;;  %v10896_v46 = vpop.f32.mrf.mxu1 }
 0x735   : > { %v10886_v35 = vpop.eup %8190  ;;  %v3738_v25 = vadd.f32 %v10884_v26, %v10882_v55 }
 0x736   : > { %3733 = vadd.xlane.f32.xlu2 %v3732_v18  ;;  %v3019_v38 = vpop.xlane.xlu2 %3018  ;;  %v3004_v9 = vpop.xlane.xlu1 %3003  ;;  %3258 = vmatmul.bf16.gmra.mxu2 %v3161_v11  ;;  %v3720_v59 = vadd.f32 %v10886_v35, %v10880_v21 }
 0x737   : > { %3307 = vmatmul.bf16.gmra.mxu0 %v3162_v48  ;;  %8192 = vrcp.f32 %v3019_v38 }
 0x738   : > { %8194 = vrcp.f32 %v3004_v9 }
 0x739   : > { %8196 = vpow2.f32 %v3663_v50 }
 0x73a   : > { %8198 = vpow2.f32 %v3665_v57 }
 0x73d   : > { %v8193_v0 = vpop.eup %8192 }
 0x73e   : > { %v8195_v41 = vpop.eup %8194  ;;  %v3068_v27 = vmul.f32 %v8193_v0, %v10682_v31  ;;  %v3069_v54 = vmul.f32 %v8193_v0, %v12500_v29  ;;  %3739 = vadd.xlane.f32.xlu2 %v3738_v25  ;;  %v3614_v32 = vpop.xlane.xlu2 %3613  ;;  %3721 = vadd.xlane.f32.xlu1 %v3720_v59 }
 0x73f   : > { %v3058_v24 = vmul.f32 %v8195_v41, %v10680_v42  ;;  %v3059_v39 = vmul.f32 %v8195_v41, %v10688_v60  ;;  %v3599_v61 = vpop.xlane.xlu1 %3598  ;;  %v10904_v31 = vpop.eup %8196  ;;  %v3141_v60 = vunpack.c.l.b16 %v10825_v6 }
 0x740   : > { %v3635_v51 = vsub.f32 %v10629_v34, %v3599_v61  ;;  %v3636_v18 = vsub.f32 %v10590_v63, %v3599_v61  ;;  %v10902_v11 = vpack.c.bf16 %v3069_v54, %v3068_v27  ;;  %v10906_v38 = vpop.eup %8198  ;;  %v3142_v34 = vunpack.c.h.b16 %v10825_v6  ;;  %v10915_v41 = vpop.f32.mrf.mxu3 }
 0x741   : > { %v3082_v48 = vpack.c.bf16 %v3059_v39, %v3058_v24  ;;  %v3723_v63 = vadd.f32 %v10906_v38, %v10904_v31  ;;  %v10919_v54 = vpop.f32.mrf.mxu1  ;;  %v3645_v24 = vsub.f32 %v10706_v1, %v3614_v32  ;;  %v3646_v61 = vsub.f32 %v10690_v20, %v3614_v32  ;;  %v12501_v1 = vld [vmem:[#allocation82_spill] sm:$0xff]  ;;  %v12502_v20 = vld [vmem:[#allocation81_spill] sm:$0xff] }
 0x742   : > { %v3687_v50 = vmul.f32 1.442695, %v3635_v51  ;;  %v3689_v9 = vmul.f32 1.442695, %v3636_v18  ;;  %7182 = vst [vmem:[%s9299_s1 + $0xe8] sm:$0xff] %v10902_v11  ;;  %v3642_v32 = vsub.f32 %v12502_v20, %v10854_v44 }
 0x743   : > { %7177 = vst [vmem:[%s9299_s1 + $0xc0] sm:$0xff] %v3082_v48  ;;  %v3139_v42 = vunpack.c.l.b16 %v3082_v48  ;;  %v3140_v57 = vunpack.c.h.b16 %v3082_v48  ;;  %v4315_v48 = vmax.f32 %v10890_v53, %v10896_v46 }
 0x744   : > { %8200 = vpow2.f32 %v3687_v50  ;;  %v3707_v50 = vmul.f32 1.442695, %v3645_v24 }
 0x745   : > { %8202 = vpow2.f32 %v3689_v9  ;;  %v3163_v25 = vpack.c.b16 %v3141_v60, %v3139_v42  ;;  %v3164_v0 = vpack.c.b16 %v3142_v34, %v3140_v57  ;;  %v3641_v57 = vsub.f32 %v12501_v1, %v10854_v44 }
 0x746   : > { %v3025_v59 = vpop.xlane.xlu2 %3024  ;;  %3724 = vadd.xlane.f32.xlu1 %v3723_v63  ;;  %v3709_v34 = vmul.f32 1.442695, %v3646_v61 }
 0x747   : > { %v10917_v27 = vpop.xlane.xlu1 %3601  ;;  %3263 = vmatmul.bf16.gmra.mxu2 %v3163_v25  ;;  %8204 = vrcp.f32 %v3025_v59  ;;  %3312 = vmatmul.bf16.gmra.mxu0 %v3164_v0  ;;  %v3699_v24 = vmul.f32 1.442695, %v3641_v57 }
 0x748   : > { %v3713_v29 = vpop.xlane.xlu0 %3712  ;;  %v10941_v59 = vpop.f32.mrf.mxu3 }
 0x749   : > { %8206 = vrcp.f32 %v3713_v29  ;;  %v10947_v44 = vpop.f32.mrf.mxu1 }
 0x74a   : > { %v10921_v6 = vpop.eup %8200 }
 0x74b   : > { %v10924_v39 = vpop.eup %8202 }
 0x74c   : > { %v3741_v51 = vadd.f32 %v10924_v39, %v10921_v6 }
 0x74d   : > { %v8205_v18 = vpop.eup %8204 }
 0x74e   : > { %v3072_v9 = vmul.f32 %v8205_v18, %v10712_v49  ;;  %v3073_v42 = vmul.f32 %v8205_v18, %v10714_v58  ;;  %3742 = vadd.xlane.f32.xlu2 %v3741_v51  ;;  %4316 = vmax.xlane.f32.xlu1 %v4315_v48 }
 0x74f   : > { %v8207_v60 = vpop.eup %8206  ;;  %v3013_v63 = vpop.xlane.xlu1 %3012 }
 0x750   : > { %v3775_v25 = vmul.f32 %v8207_v60, %v10722_v5  ;;  %v3776_v0 = vmul.f32 %v8207_v60, %v10726_v62  ;;  %8208 = vrcp.f32 %v3013_v63  ;;  %v3716_v49 = vpop.xlane.xlu2 %3715  ;;  %v10939_v58 = vpack.c.bf16 %v3073_v42, %v3072_v9 }
 0x751   : > { %8210 = vrcp.f32 %v3716_v49  ;;  %v4321_v5 = vmax.f32 %v10941_v59, %v10947_v44  ;;  %v3701_v62 = vmul.f32 1.442695, %v3642_v32 }
 0x752   : > { %8212 = vpow2.f32 %v3707_v50  ;;  %v10943_v29 = vpack.c.bf16 %v3776_v0, %v3775_v25  ;;  %7184 = vst [vmem:[%s9299_s1 + $0xf8] sm:$0xff] %v10939_v58 }
 0x753   : > { %8214 = vpow2.f32 %v3709_v34  ;;  %v3143_v34 = vunpack.c.l.b16 %v10841_v28 }
 0x754   : > { %7201 = vst [vmem:[%s9299_s1 + $0x100] sm:$0xff] %v10943_v29  ;;  %8216 = vpow2.f32 %v3699_v24 }
 0x755   : > { %8218 = vpow2.f32 %v3701_v62 }
 0x756   : > { %v8209_v61 = vpop.eup %8208  ;;  %4322 = vmax.xlane.f32.xlu2 %v4321_v5 }
 0x757   : > { %v8211_v51 = vpop.eup %8210  ;;  %v3064_v18 = vmul.f32 %v8209_v61, %v10735_v3  ;;  %v3065_v48 = vmul.f32 %v8209_v61, %v10737_v2  ;;  %v10955_v50 = vpop.xlane.xlu1 %3604  ;;  %v4318_v3 = vmax.f32 %v10915_v41, %v10919_v54 }
 0x758   : > { %v10957_v9 = vpop.eup %8212  ;;  %v3777_v42 = vmul.f32 %v8211_v51, %v10745_v37  ;;  %v3778_v60 = vmul.f32 %v8211_v51, %v10749_v15  ;;  %v3719_v1 = vpop.xlane.xlu2 %3718  ;;  %v3144_v37 = vunpack.c.h.b16 %v10841_v28 }
 0x759   : > { %v10961_v57 = vpop.eup %8214  ;;  %8220 = vrcp.f32 %v3719_v1  ;;  %v3085_v20 = vpack.c.bf16 %v3065_v48, %v3064_v18  ;;  %v10967_v2 = vpop.f32.mrf.mxu2 }
 0x75a   : > { %v10965_v32 = vpack.c.bf16 %v3778_v60, %v3777_v42  ;;  %12503 = vst [vmem:[#allocation72_spill] sm:$0xff] %v10967_v2  ;;  %v3756_v15 = vadd.f32 %v10961_v57, %v10957_v9  ;;  %v10976_v0 = vpop.eup %8216 }
 0x75b   : > { %7180 = vst [vmem:[%s9299_s1 + $0xd8] sm:$0xff] %v3085_v20  ;;  %v3145_v63 = vunpack.c.l.b16 %v3085_v20  ;;  %v3146_v25 = vunpack.c.h.b16 %v3085_v20  ;;  %4319 = vmax.xlane.f32.xlu0 %v4318_v3  ;;  %v10978_v5 = vpop.eup %8218 }
 0x75c   : > { %7202 = vst [vmem:[%s9299_s1 + $0x108] sm:$0xff] %v10965_v32  ;;  %v3750_v20 = vadd.f32 %v10978_v5, %v10976_v0 }
 0x75d   : > { %v3165_v49 = vpack.c.b16 %v3145_v63, %v3143_v34  ;;  %v3166_v24 = vpack.c.b16 %v3146_v25, %v3144_v37  ;;  %v3293_v61 = vpop.f32.mrf.mxu0  ;;  %v3150_v37 = vunpack.c.h.b16 %v10902_v11 }
 0x75e   : > { %3757 = vadd.xlane.f32.xlu2 %v3756_v15 }
 0x75f   : > { %v8221_v62 = vpop.eup %8220  ;;  %v3611_v51 = vpop.xlane.xlu1 %3610  ;;  %3268 = vmatmul.bf16.gmra.mxu2 %v3165_v49  ;;  %3317 = vmatmul.bf16.gmra.mxu0 %v3166_v24 }
 0x760   : > { %v3779_v28 = vmul.f32 %v8221_v62, %v10764_v12  ;;  %v3780_v18 = vmul.f32 %v8221_v62, %v10770_v7  ;;  %v3643_v48 = vsub.f32 %v10694_v4, %v3611_v51  ;;  %v3644_v42 = vsub.f32 %v10670_v40, %v3611_v51  ;;  %v8457_v4 = vld [vmem:[#allocation3 + $0x30] sm:$0xff]  ;;  %v11001_v49 = vpop.xlane.xlu2 %4310 }
 0x761   : > { %v3149_v7 = vunpack.c.l.b16 %v10902_v11  ;;  %v3147_v62 = vunpack.c.l.b16 %v10870_v45 }
 0x762   : > { %v3703_v60 = vmul.f32 1.442695, %v3643_v48  ;;  %v3705_v1 = vmul.f32 1.442695, %v3644_v42  ;;  %v10986_v3 = vpack.c.bf16 %v3780_v18, %v3779_v28 }
 0x763   : > { %v3244_v34 = vpop.f32.mrf.mxu2  ;;  %3751 = vadd.xlane.f32.xlu0 %v3750_v20  ;;  %v3167_v28 = vpack.c.b16 %v3149_v7, %v3147_v62 }
 0x764   : > { %8222 = vpow2.f32 %v3703_v60  ;;  %v10988_v63 = vadd.f32 %v3293_v61, %v3244_v34  ;;  %7203 = vst [vmem:[%s9299_s1 + $0x110] sm:$0xff] %v10986_v3  ;;  %v3148_v61 = vunpack.c.h.b16 %v10870_v45 }
 0x765   : > { %8224 = vpow2.f32 %v3705_v1  ;;  %v10993_v40 = vpop.f32.mrf.mxu0 }
 0x766   : > { %12504 = vst [vmem:[#allocation79_spill] sm:$0xff] %v10988_v63  ;;  %v3168_v18 = vpack.c.b16 %v3150_v37, %v3148_v61  ;;  %v3153_v37 = vunpack.c.l.b16 %v10939_v58 }
 0x767   : > { %v3022_v12 = vpop.xlane.xlu1 %3021  ;;  %4663 = vrot.lane.b32.xlu1 %v8457_v4, %s8912_s24 }
 0x768   : > { %8226 = vrcp.f32 %v3022_v12  ;;  %v11014_v45 = vpop.xlane.xlu2 %4313  ;;  %v8458_v12 = vld [vmem:[#allocation3 + $0x40] sm:$0xff] }
 0x76a   : > { %v10997_v25 = vpop.eup %8222 }
 0x76b   : > { %v10999_v15 = vpop.eup %8224  ;;  %v11003_v24 = vpop.f32.mrf.mxu2 }
 0x76c   : > { %v3753_v51 = vadd.f32 %v10999_v15, %v10997_v25 }
 0x76d   : > { %v3298_v1 = vpop.f32.mrf.mxu0 }
 0x76e   : > { %v8227_v48 = vpop.eup %8226  ;;  %3754 = vadd.xlane.f32.xlu0 %v3753_v51  ;;  %v12506_v51 = vld [vmem:[#allocation75_spill] sm:$0xff] }
 0x76f   : > { %v3070_v11 = vmul.f32 %v8227_v48, %v10788_v17  ;;  %v3071_v42 = vmul.f32 %v8227_v48, %v10790_v13  ;;  %3273 = vmatmul.bf16.gmra.mxu2 %v3167_v28  ;;  %3322 = vmatmul.bf16.gmra.mxu0 %v3168_v18  ;;  %v3154_v17 = vunpack.c.h.b16 %v10939_v58  ;;  %v3627_v28 = vsub.f32 %v12506_v51, %v10835_v19  ;;  %v8459_v18 = vld [vmem:[#allocation3 + $0x58] sm:$0xff] }
 0x770   : > { %v4684_v61 = vpop.permute.xlu2 %4683  ;;  %v12507_v48 = vld [vmem:[#allocation58_spill] sm:$0xff] }
 0x771   : > { %v3088_v60 = vpack.c.bf16 %v3071_v42, %v3070_v11  ;;  %4750 = vmatpush.bf16.msra.mxu0 %v4684_v61  ;;  %v3628_v11 = vsub.f32 %v12507_v48, %v10835_v19  ;;  %v4305_v42 = vpop.xlane.xlu0 %4304  ;;  %7765 = vmatpush.bf16.msra.mxu1 %v4684_v61  ;;  %v3671_v58 = vmul.f32 1.442695, %v3627_v28  ;;  %v3856_v28 = vunpack.c.l.b16 %v10943_v29 }
 0x773   : > { %v3249_v20 = vpop.f32.mrf.mxu2  ;;  %7183 = vst [vmem:[%s9299_s1 + $0xf0] sm:$0xff] %v3088_v60  ;;  %v3151_v4 = vunpack.c.l.b16 %v3088_v60  ;;  %v3152_v7 = vunpack.c.h.b16 %v3088_v60  ;;  %v8460_v60 = vld [vmem:[#allocation3] sm:$0xff]  ;;  %8228 = vpow2.f32 %v3671_v58 }
 0x774   : > { %v11012_v34 = vadd.f32 %v3298_v1, %v3249_v20  ;;  %v11024_v1 = vpop.xlane.xlu1 %4301  ;;  %v3673_v20 = vmul.f32 1.442695, %v3628_v11 }
 0x775   : > { %v3169_v13 = vpack.c.b16 %v3153_v37, %v3151_v4  ;;  %v3170_v62 = vpack.c.b16 %v3154_v17, %v3152_v7  ;;  %v12509_v7 = vld [vmem:[#allocation74_spill] sm:$0xff] }
 0x776   : > { %12505 = vst [vmem:[#allocation76_spill] sm:$0xff] %v11012_v34  ;;  %4659 = vrot.lane.b32.xlu2 %v8458_v12, %s8912_s24  ;;  %v12508_v12 = vld [vmem:[#allocation77_spill] sm:$0xff]  ;;  %8230 = vpow2.f32 %v3673_v20  ;;  %v3632_v37 = vsub.f32 %v12509_v7, %v10858_v33 }
 0x777   : > { %v3631_v4 = vsub.f32 %v12508_v12, %v10858_v33  ;;  %v12510_v7 = vld [vmem:[#allocation85_spill] sm:$0xff] }
 0x778   : > { %v3681_v51 = vmul.f32 1.442695, %v3632_v37  ;;  %v4350_v37 = vsub.f32 %v12510_v7, %v4305_v42 }
 0x779   : > { %v4308_v17 = vpop.xlane.xlu0 %4307  ;;  %v3679_v61 = vmul.f32 1.442695, %v3631_v4  ;;  %v11035_v48 = vpop.eup %8228 }
 0x77a   : > { %v11045_v4 = vpop.f32.mrf.mxu3 }
 0x77b   : > { %8232 = vpow2.f32 %v3679_v61 }
 0x77c   : > { %v11037_v11 = vpop.eup %8230  ;;  %8234 = vpow2.f32 %v3681_v51 }
 0x77d   : > { %v3729_v33 = vadd.f32 %v11037_v11, %v11035_v48 }
 0x77e   : > { %4675 = vrot.lane.b32.xlu2 %v8459_v18, %s8912_s24  ;;  %v3857_v18 = vunpack.c.h.b16 %v10943_v29 }
 0x77f   : > { %3278 = vmatmul.bf16.gmra.mxu2 %v3169_v13  ;;  %3327 = vmatmul.bf16.gmra.mxu0 %v3170_v62  ;;  %v3858_v13 = vunpack.c.l.b16 %v10965_v32  ;;  %v3859_v62 = vunpack.c.h.b16 %v10965_v32 }
 0x781   : > { %v3888_v58 = vpack.c.b16 %v3858_v13, %v3856_v28  ;;  %v11041_v20 = vpop.eup %8232  ;;  %v12511_v13 = vld [vmem:[#allocation84_spill] sm:$0xff]  ;;  %v11053_v28 = vpop.f32.mrf.mxu1 }
 0x782   : > { %4677 = vrot.lane.b32.xlu0 %v8460_v60, %s8912_s24  ;;  %v3889_v60 = vpack.c.b16 %v3859_v62, %v3857_v18  ;;  %v11043_v12 = vpop.eup %8234  ;;  %v4351_v62 = vsub.f32 %v12511_v13, %v4305_v42  ;;  %v4352_v18 = vsub.f32 %v10762_v23, %v4308_v17 }
 0x784   : > { %v4386_v7 = vmul.f32 1.442695, %v4351_v62  ;;  %v4388_v42 = vmul.f32 1.442695, %v4352_v18 }
 0x786   : > { %v4668_v19 = vpop.permute.xlu1 %4667 }
 0x787   : > { %4701 = vmatpush.bf16.msra.mxu2 %v4668_v19  ;;  %v3735_v19 = vadd.f32 %v11043_v12, %v11041_v20 }
 0x789   : > { %v11067_v23 = vpop.f32.mrf.mxu1 }
 0x78f   : > { %3976 = vmatmul.bf16.vlgmr.msrb.gmra.mxu2 %v3888_v58  ;;  %4025 = vmatmul.bf16.vlgmr.msrb.gmra.mxu0 %v3889_v60  ;;  %v4384_v60 = vmul.f32 1.442695, %v4350_v37 }
 0x790   : > { %v3728_v32 = vpop.xlane.xlu0 %3727 }
 0x791   : > { %8236 = vrcp.f32 %v3728_v32  ;;  %3730 = vadd.xlane.f32.xlu1 %v3729_v33  ;;  %v4353_v33 = vsub.f32 %v10755_v30, %v4308_v17  ;;  %v11059_v32 = vpop.f32.mrf.mxu0 }
 0x792   : > { %12512 = vst [vmem:[#allocation55_spill] sm:$0xff] %v11059_v32  ;;  %8238 = vpow2.f32 %v4384_v60 }
 0x793   : > { %8240 = vpow2.f32 %v4386_v7 }
 0x794   : > { %8242 = vpow2.f32 %v4388_v42 }
 0x797   : > { %v8237_v29 = vpop.eup %8236 }
 0x798   : > { %v3785_v61 = vmul.f32 %v8237_v29, %v10823_v10  ;;  %v3786_v51 = vmul.f32 %v8237_v29, %v10827_v36  ;;  %v4390_v10 = vmul.f32 1.442695, %v4353_v33  ;;  %v11063_v36 = vpop.f32.mrf.mxu3  ;;  %v11065_v29 = vpop.f32.mrf.mxu2 }
 0x799   : > { %3736 = vadd.xlane.f32.xlu1 %v3735_v19  ;;  %12513 = vst [vmem:[#allocation73_spill] sm:$0xff] %v11065_v29  ;;  %v4327_v30 = vmax.f32 %v11063_v36, %v11067_v23  ;;  %v11071_v17 = vpop.eup %8238 }
 0x79a   : > { %v11056_v58 = vpack.c.bf16 %v3786_v51, %v3785_v61  ;;  %8244 = vpow2.f32 %v4390_v10  ;;  %v11073_v19 = vpop.eup %8240 }
 0x79b   : > { %v11075_v62 = vpop.eup %8242  ;;  %v4447_v60 = vadd.f32 %v11073_v19, %v11071_v17 }
 0x79c   : > { %7206 = vst [vmem:[%s9299_s1 + $0x128] sm:$0xff] %v11056_v58 }
 0x7a0   : > { %v11077_v51 = vpop.eup %8244 }
 0x7a1   : > { %v4450_v42 = vadd.f32 %v11077_v51, %v11075_v62 }
 0x7a3   : > { %v3303_v37 = vpop.f32.mrf.mxu0  ;;  %v4666_v13 = vpop.permute.xlu0 %4665 }
 0x7a4   : > { %4702 = vmatpush.bf16.msra.mxu2 %v4666_v13 }
 0x7a7   : > { %4328 = vmax.xlane.f32.xlu2 %v4327_v30  ;;  %v11087_v30 = vpop.f32.mrf.mxu3 }
 0x7a9   : > { %v3734_v61 = vpop.xlane.xlu2 %3733  ;;  %v3254_v18 = vpop.f32.mrf.mxu2 }
 0x7aa   : > { %8246 = vrcp.f32 %v3734_v61  ;;  %v11081_v33 = vadd.f32 %v3303_v37, %v3254_v18 }
 0x7ab   : > { %v11083_v7 = vpop.f32.mrf.mxu0 }
 0x7ac   : > { %12514 = vst [vmem:[#allocation69_spill] sm:$0xff] %v11081_v33  ;;  %4448 = vadd.xlane.f32.xlu0 %v4447_v60  ;;  %v8461_v60 = vld [vmem:[#allocation3 + $0x60] sm:$0xff]  ;;  %v11096_v33 = vpop.f32.mrf.mxu1 }
 0x7ad   : > { %12515 = vst [vmem:[#allocation83_spill] sm:$0xff] %v11083_v7 }
 0x7af   : > { %4451 = vadd.xlane.f32.xlu2 %v4450_v42  ;;  %v4330_v42 = vmax.f32 %v11087_v30, %v11096_v33 }
 0x7b0   : > { %v8247_v10 = vpop.eup %8246 }
 0x7b1   : > { %v3789_v13 = vmul.f32 %v8247_v10, %v10860_v22  ;;  %v3790_v61 = vmul.f32 %v8247_v10, %v10864_v52  ;;  %v3740_v2 = vpop.xlane.xlu2 %3739  ;;  %v11091_v34 = vpop.f32.mrf.mxu2 }
 0x7b2   : > { %12516 = vst [vmem:[#allocation82_spill] sm:$0xff] %v11091_v34  ;;  %v3722_v37 = vpop.xlane.xlu1 %3721  ;;  %8248 = vrcp.f32 %v3740_v2  ;;  %4681 = vrot.lane.b32.xlu1 %v8461_v60, %s8912_s24  ;;  %v11106_v34 = vpop.f32.mrf.mxu3 }
 0x7b3   : > { %v11093_v18 = vpack.c.bf16 %v3790_v61, %v3789_v13  ;;  %8250 = vrcp.f32 %v3722_v37 }
 0x7b4   : > { %v3308_v22 = vpop.f32.mrf.mxu0 }
 0x7b5   : > { %7208 = vst [vmem:[%s9299_s1 + $0x138] sm:$0xff] %v11093_v18 }
 0x7b7   : > { %4331 = vmax.xlane.f32.xlu2 %v4330_v42  ;;  %v8462_v42 = vld [vmem:[#allocation3 + $0x48] sm:$0xff] }
 0x7b8   : > { %v8249_v52 = vpop.eup %8248 }
 0x7b9   : > { %v8251_v10 = vpop.eup %8250  ;;  %v3793_v2 = vmul.f32 %v8249_v52, %v10882_v55  ;;  %v3794_v13 = vmul.f32 %v8249_v52, %v10884_v26  ;;  %v3259_v60 = vpop.f32.mrf.mxu2 }
 0x7ba   : > { %v3781_v61 = vmul.f32 %v8251_v10, %v10880_v21  ;;  %v3782_v37 = vmul.f32 %v8251_v10, %v10886_v35  ;;  %v3725_v7 = vpop.xlane.xlu1 %3724  ;;  %v11110_v29 = vadd.f32 %v3308_v22, %v3259_v60  ;;  %4661 = vrot.lane.b32.xlu1 %v8462_v42, %s8912_s24  ;;  %v11115_v55 = vpop.f32.mrf.mxu1  ;;  %v3860_v21 = vunpack.c.l.b16 %v10986_v3  ;;  %v8463_v22 = vld [vmem:[#allocation3 + $0x10] sm:$0xff] }
 0x7bb   : > { %v11108_v32 = vpack.c.bf16 %v3794_v13, %v3793_v2  ;;  %8252 = vrcp.f32 %v3725_v7  ;;  %v3861_v35 = vunpack.c.h.b16 %v10986_v3 }
 0x7bc   : > { %12517 = vst [vmem:[#allocation81_spill] sm:$0xff] %v11110_v29  ;;  %v3810_v63 = vpack.c.bf16 %v3782_v37, %v3781_v61  ;;  %v11120_v10 = vpop.f32.mrf.mxu0 }
 0x7bd   : > { %7210 = vst [vmem:[%s9299_s1 + $0x148] sm:$0xff] %v11108_v32 }
 0x7be   : > { %7204 = vst [vmem:[%s9299_s1 + $0x118] sm:$0xff] %v3810_v63  ;;  %v3862_v26 = vunpack.c.l.b16 %v3810_v63  ;;  %v3863_v52 = vunpack.c.h.b16 %v3810_v63 }
 0x7bf   : > { %12518 = vst [vmem:[#allocation75_spill] sm:$0xff] %v11120_v10 }
 0x7c0   : > { %4657 = vrot.lane.b32.xlu0 %v8463_v22, %s8912_s24  ;;  %v3890_v7 = vpack.c.b16 %v3862_v26, %v3860_v21  ;;  %v3891_v2 = vpack.c.b16 %v3863_v52, %v3861_v35  ;;  %v8464_v22 = vld [vmem:[#allocation3 + $0x8] sm:$0xff]  ;;  %v11130_v26 = vpop.f32.mrf.mxu3 }
 0x7c1   : > { %v8253_v13 = vpop.eup %8252  ;;  %v3743_v61 = vpop.xlane.xlu2 %3742 }
 0x7c2   : > { %v3783_v37 = vmul.f32 %v8253_v13, %v10904_v31  ;;  %v3784_v60 = vmul.f32 %v8253_v13, %v10906_v38  ;;  %8254 = vrcp.f32 %v3743_v61  ;;  %v11125_v42 = vpop.f32.mrf.mxu2  ;;  %v4317_v29 = vpop.xlane.xlu1 %4316  ;;  %3981 = vmatmul.bf16.gmra.mxu2 %v3890_v7  ;;  %4030 = vmatmul.bf16.gmra.mxu0 %v3891_v2 }
 0x7c3   : > { %v4358_v3 = vsub.f32 %v10890_v53, %v4317_v29  ;;  %v4359_v63 = vsub.f32 %v10896_v46, %v4317_v29  ;;  %4679 = vrot.lane.b32.xlu1 %v8464_v22, %s8912_s24  ;;  %v11133_v52 = vpop.f32.mrf.mxu1 }
 0x7c4   : > { %v3811_v21 = vpack.c.bf16 %v3784_v60, %v3783_v37  ;;  %v3313_v29 = vpop.f32.mrf.mxu0 }
 0x7c5   : > { %v4400_v35 = vmul.f32 1.442695, %v4358_v3  ;;  %v4402_v31 = vmul.f32 1.442695, %v4359_v63 }
 0x7c6   : > { %7205 = vst [vmem:[%s9299_s1 + $0x120] sm:$0xff] %v3811_v21  ;;  %v3864_v37 = vunpack.c.l.b16 %v3811_v21  ;;  %v3865_v60 = vunpack.c.h.b16 %v3811_v21 }
 0x7c7   : > { %8256 = vpow2.f32 %v4400_v35  ;;  %v3867_v35 = vunpack.c.h.b16 %v11056_v58 }
 0x7c8   : > { %v8255_v38 = vpop.eup %8254  ;;  %8258 = vpow2.f32 %v4402_v31  ;;  %v11151_v31 = vpop.f32.mrf.mxu3 }
 0x7c9   : > { %v3795_v7 = vmul.f32 %v8255_v38, %v10921_v6  ;;  %v3796_v53 = vmul.f32 %v8255_v38, %v10924_v39  ;;  %v4323_v46 = vpop.xlane.xlu2 %4322  ;;  %v3866_v39 = vunpack.c.l.b16 %v11056_v58 }
 0x7ca   : > { %v3264_v2 = vpop.f32.mrf.mxu2  ;;  %v4362_v63 = vsub.f32 %v10941_v59, %v4323_v46  ;;  %v4363_v6 = vsub.f32 %v10947_v44, %v4323_v46 }
 0x7cb   : > { %v11137_v13 = vpack.c.bf16 %v3796_v53, %v3795_v7  ;;  %v11139_v61 = vadd.f32 %v3313_v29, %v3264_v2  ;;  %v3892_v7 = vpack.c.b16 %v3866_v39, %v3864_v37  ;;  %v3893_v53 = vpack.c.b16 %v3867_v35, %v3865_v60  ;;  %v11157_v2 = vpop.f32.mrf.mxu1  ;;  %v12521_v37 = vld [vmem:[#allocation80_spill] sm:$0xff] }
 0x7cc   : > { %v4408_v29 = vmul.f32 1.442695, %v4362_v63  ;;  %v11159_v44 = vpop.f32.mrf.mxu0  ;;  %v4339_v58 = vmax.f32 %v11151_v31, %v11157_v2  ;;  %v3637_v60 = vsub.f32 %v12521_v37, %v10917_v27 }
 0x7cd   : > { %12519 = vst [vmem:[#allocation58_spill] sm:$0xff] %v11139_v61  ;;  %v11141_v3 = vpop.eup %8256  ;;  %v4410_v61 = vmul.f32 1.442695, %v4363_v6  ;;  %v12522_v6 = vld [vmem:[#allocation78_spill] sm:$0xff] }
 0x7ce   : > { %7211 = vst [vmem:[%s9299_s1 + $0x150] sm:$0xff] %v11137_v13  ;;  %v11146_v22 = vpop.eup %8258  ;;  %v11153_v38 = vpop.xlane.xlu0 %4319  ;;  %v3638_v39 = vsub.f32 %v12522_v6, %v10917_v27  ;;  %v3691_v37 = vmul.f32 1.442695, %v3637_v60  ;;  %v3639_v60 = vsub.f32 %v10659_v8, %v10955_v50 }
 0x7cf   : > { %v4459_v21 = vadd.f32 %v11146_v22, %v11141_v3  ;;  %12520 = vst [vmem:[#allocation77_spill] sm:$0xff] %v11159_v44 }
 0x7d0   : > { %v11165_v63 = vpop.f32.mrf.mxu3  ;;  %v3693_v27 = vmul.f32 1.442695, %v3638_v39  ;;  %v3695_v8 = vmul.f32 1.442695, %v3639_v60  ;;  %v4349_v60 = vsub.f32 %v10700_v43, %v11024_v1 }
 0x7d1   : > { %4460 = vadd.xlane.f32.xlu2 %v4459_v21  ;;  %v3758_v59 = vpop.xlane.xlu2 %3757 }
 0x7d2   : > { %8260 = vrcp.f32 %v3758_v59  ;;  %3986 = vmatmul.bf16.gmra.mxu2 %v3892_v7  ;;  %4035 = vmatmul.bf16.gmra.mxu0 %v3893_v53 }
 0x7d3   : > { %8262 = vpow2.f32 %v4408_v29 }
 0x7d4   : > { %8264 = vpow2.f32 %v4410_v61  ;;  %v11171_v61 = vpop.f32.mrf.mxu2 }
 0x7d6   : > { %v3752_v46 = vpop.xlane.xlu0 %3751 }
 0x7d7   : > { %8266 = vrcp.f32 %v3752_v46  ;;  %v11179_v46 = vpop.f32.mrf.mxu1 }
 0x7d8   : > { %v8261_v10 = vpop.eup %8260  ;;  %8268 = vpow2.f32 %v3691_v37 }
 0x7d9   : > { %v3805_v35 = vmul.f32 %v8261_v10, %v10957_v9  ;;  %v3806_v21 = vmul.f32 %v8261_v10, %v10961_v57  ;;  %4340 = vmax.xlane.f32.xlu2 %v4339_v58  ;;  %v4664_v7 = vpop.permute.xlu1 %4663  ;;  %v11173_v53 = vpop.eup %8262  ;;  %v4354_v57 = vsub.f32 %v10781_v16, %v11001_v49  ;;  %v4355_v10 = vsub.f32 %v10777_v56, %v11001_v49 }
 0x7da   : > { %4703 = vmatpush.bf16.msra.mxu2 %v4664_v7  ;;  %v11177_v59 = vpop.eup %8264  ;;  %8270 = vpow2.f32 %v3693_v27  ;;  %v3640_v16 = vsub.f32 %v10633_v14, %v10955_v50  ;;  %v11201_v7 = vpop.f32.mrf.mxu3 }
 0x7db   : > { %v11175_v29 = vpack.c.bf16 %v3806_v21, %v3805_v35  ;;  %v4465_v35 = vadd.f32 %v11177_v59, %v11173_v53  ;;  %v4392_v56 = vmul.f32 1.442695, %v4354_v57  ;;  %v4394_v49 = vmul.f32 1.442695, %v4355_v10 }
 0x7dc   : > { %v3318_v44 = vpop.f32.mrf.mxu0  ;;  %v4348_v10 = vsub.f32 %v10720_v47, %v11024_v1  ;;  %v4382_v1 = vmul.f32 1.442695, %v4349_v60  ;;  %v4360_v60 = vsub.f32 %v10915_v41, %v11153_v38 }
 0x7dd   : > { %7216 = vst [vmem:[%s9299_s1 + $0x178] sm:$0xff] %v11175_v29  ;;  %v8267_v9 = vpop.eup %8266  ;;  %v3887_v43 = vunpack.c.h.b16 %v11175_v29 }
 0x7de   : > { %v3801_v58 = vmul.f32 %v8267_v9, %v10976_v0  ;;  %v3802_v6 = vmul.f32 %v8267_v9, %v10978_v5  ;;  %v11205_v27 = vpop.eup %8268  ;;  %v4380_v47 = vmul.f32 1.442695, %v4348_v10 }
 0x7df   : > { %v11207_v9 = vpop.f32.mrf.mxu1 }
 0x7e0   : > { %v11193_v39 = vpack.c.bf16 %v3802_v6, %v3801_v58  ;;  %v3697_v58 = vmul.f32 1.442695, %v3640_v16  ;;  %v11209_v14 = vpop.eup %8270  ;;  %v4345_v50 = vmax.f32 %v11201_v7, %v11207_v9 }
 0x7e1   : > { %v3755_v21 = vpop.xlane.xlu0 %3754  ;;  %4466 = vadd.xlane.f32.xlu2 %v4465_v35 }
 0x7e2   : > { %8272 = vrcp.f32 %v3755_v21  ;;  %v3269_v0 = vpop.f32.mrf.mxu2  ;;  %7214 = vst [vmem:[%s9299_s1 + $0x168] sm:$0xff] %v11193_v39 }
 0x7e3   : > { %v11199_v5 = vadd.f32 %v3318_v44, %v3269_v0  ;;  %8274 = vpow2.f32 %v4392_v56  ;;  %v4324_v44 = vmax.f32 %v11045_v4, %v11053_v28  ;;  %v3744_v56 = vadd.f32 %v11209_v14, %v11205_v27 }
 0x7e4   : > { %v11203_v37 = vpop.f32.mrf.mxu0  ;;  %8276 = vpow2.f32 %v4394_v49 }
 0x7e5   : > { %12523 = vst [vmem:[#allocation74_spill] sm:$0xff] %v11199_v5  ;;  %8278 = vpow2.f32 %v3695_v8 }
 0x7e6   : > { %12524 = vst [vmem:[#allocation85_spill] sm:$0xff] %v11203_v37  ;;  %8280 = vpow2.f32 %v3697_v58 }
 0x7e7   : > { %8282 = vpow2.f32 %v4380_v47  ;;  %v4333_v47 = vmax.f32 %v11106_v34, %v11115_v55 }
 0x7e8   : > { %v8273_v57 = vpop.eup %8272  ;;  %8284 = vpow2.f32 %v4382_v1 }
 0x7e9   : > { %v3803_v6 = vmul.f32 %v8273_v57, %v10997_v25  ;;  %v3804_v35 = vmul.f32 %v8273_v57, %v10999_v15  ;;  %4346 = vmax.xlane.f32.xlu2 %v4345_v50  ;;  %v11225_v0 = vpop.eup %8274  ;;  %v3886_v15 = vunpack.c.l.b16 %v11175_v29 }
 0x7ea   : > { %4325 = vmax.xlane.f32.xlu0 %v4324_v44  ;;  %v11221_v21 = vpop.f32.mrf.mxu2  ;;  %v11227_v49 = vpop.eup %8276 }
 0x7eb   : > { %12525 = vst [vmem:[#allocation84_spill] sm:$0xff] %v11221_v21  ;;  %v3821_v16 = vpack.c.bf16 %v3804_v35, %v3803_v6  ;;  %v11232_v50 = vpop.eup %8278  ;;  %v4453_v10 = vadd.f32 %v11227_v49, %v11225_v0 }
 0x7ec   : > { %v3323_v58 = vpop.f32.mrf.mxu0  ;;  %v11238_v6 = vpop.eup %8280 }
 0x7ed   : > { %7215 = vst [vmem:[%s9299_s1 + $0x170] sm:$0xff] %v3821_v16  ;;  %3745 = vadd.xlane.f32.xlu1 %v3744_v56  ;;  %v3884_v25 = vunpack.c.l.b16 %v3821_v16  ;;  %v3885_v8 = vunpack.c.h.b16 %v3821_v16  ;;  %v3747_v29 = vadd.f32 %v11238_v6, %v11232_v50  ;;  %v11248_v56 = vpop.eup %8282 }
 0x7ef   : > { %v11234_v57 = vpack.c.b16 %v3886_v15, %v3884_v25  ;;  %v11236_v44 = vpack.c.b16 %v3887_v43, %v3885_v8  ;;  %v4361_v25 = vsub.f32 %v10919_v54, %v11153_v38  ;;  %v11252_v15 = vpop.eup %8284  ;;  %v4404_v43 = vmul.f32 1.442695, %v4360_v60 }
 0x7f0   : > { %v4444_v41 = vadd.f32 %v11252_v15, %v11248_v56  ;;  %v4336_v54 = vmax.f32 %v11130_v26, %v11133_v52 }
 0x7f1   : > { %8286 = vpow2.f32 %v4404_v43 }
 0x7f2   : > { %4454 = vadd.xlane.f32.xlu0 %v4453_v10  ;;  %v3274_v35 = vpop.f32.mrf.mxu2 }
 0x7f3   : > { %v11242_v16 = vadd.f32 %v3323_v58, %v3274_v35  ;;  %v4406_v58 = vmul.f32 1.442695, %v4361_v25 }
 0x7f4   : > { %v11256_v8 = vpop.f32.mrf.mxu0 }
 0x7f5   : > { %12526 = vst [vmem:[#allocation80_spill] sm:$0xff] %v11242_v16  ;;  %3748 = vadd.xlane.f32.xlu1 %v3747_v29  ;;  %8288 = vpow2.f32 %v4406_v58 }
 0x7f6   : > { %12527 = vst [vmem:[#allocation78_spill] sm:$0xff] %v11256_v8  ;;  %v3870_v8 = vunpack.c.l.b16 %v11093_v18 }
 0x7f7   : > { %v11266_v29 = vpop.eup %8286 }
 0x7fa   : > { %4334 = vmax.xlane.f32.xlu0 %v4333_v47  ;;  %v11258_v1 = vpop.f32.mrf.mxu2  ;;  %v11270_v47 = vpop.permute.xlu2 %4659 }
 0x7fb   : > { %12528 = vst [vmem:[#allocation88_spill] sm:$0xff] %v11258_v1  ;;  %v11268_v60 = vpop.eup %8288 }
 0x7fc   : > { %v3328_v38 = vpop.f32.mrf.mxu0  ;;  %v4462_v43 = vadd.f32 %v11268_v60, %v11266_v29 }
 0x7fd   : > { %4445 = vadd.xlane.f32.xlu1 %v4444_v41 }
 0x802   : > { %4337 = vmax.xlane.f32.xlu0 %v4336_v54  ;;  %v3279_v10 = vpop.f32.mrf.mxu2  ;;  %v11278_v16 = vpop.permute.xlu2 %4675 }
 0x803   : > { %v11264_v35 = vadd.f32 %v3328_v38, %v3279_v10 }
 0x804   : > { %v3731_v25 = vpop.xlane.xlu1 %3730 }
 0x805   : > { %12529 = vst [vmem:[#allocation89_spill] sm:$0xff] %v11264_v35  ;;  %8290 = vrcp.f32 %v3731_v25  ;;  %v4342_v35 = vmax.f32 %v11165_v63, %v11179_v46 }
 0x80a   : > { %4463 = vadd.xlane.f32.xlu0 %v4462_v43  ;;  %v3871_v43 = vunpack.c.h.b16 %v11093_v18 }
 0x80b   : > { %v8291_v58 = vpop.eup %8290 }
 0x80c   : > { %v3787_v41 = vmul.f32 %v8291_v58, %v11035_v48  ;;  %v3788_v54 = vmul.f32 %v8291_v58, %v11037_v11  ;;  %v3737_v38 = vpop.xlane.xlu1 %3736 }
 0x80d   : > { %8292 = vrcp.f32 %v3737_v38  ;;  %v8465_v38 = vld [vmem:[#allocation3 + $0x68] sm:$0xff] }
 0x80e   : > { %v3813_v10 = vpack.c.bf16 %v3788_v54, %v3787_v41  ;;  %v4678_v54 = vpop.permute.xlu0 %4677 }
 0x810   : > { %7207 = vst [vmem:[%s9299_s1 + $0x130] sm:$0xff] %v3813_v10  ;;  %v3868_v25 = vunpack.c.l.b16 %v3813_v10  ;;  %v3869_v1 = vunpack.c.h.b16 %v3813_v10 }
 0x812   : > { %4343 = vmax.xlane.f32.xlu0 %v4342_v35  ;;  %v3894_v48 = vpack.c.b16 %v3870_v8, %v3868_v25  ;;  %v3895_v5 = vpack.c.b16 %v3871_v43, %v3869_v1  ;;  %v8466_v35 = vld [vmem:[#allocation3 + $0x18] sm:$0xff]  ;;  %v3874_v25 = vunpack.c.l.b16 %v11108_v32  ;;  %v3875_v43 = vunpack.c.h.b16 %v11108_v32 }
 0x813   : > { %v8293_v11 = vpop.eup %8292 }
 0x814   : > { %v3791_v58 = vmul.f32 %v8293_v11, %v11041_v20  ;;  %v3792_v41 = vmul.f32 %v8293_v11, %v11043_v12  ;;  %3991 = vmatmul.bf16.gmra.mxu2 %v3894_v48  ;;  %4040 = vmatmul.bf16.gmra.mxu0 %v3895_v5 }
 0x816   : > { %4655 = vrot.lane.b32.xlu1 %v8465_v38, %s8912_s24  ;;  %v3815_v37 = vpack.c.bf16 %v3792_v41, %v3791_v58  ;;  %v8467_v41 = vld [vmem:[#allocation3 + $0x28] sm:$0xff] }
 0x818   : > { %7209 = vst [vmem:[%s9299_s1 + $0x140] sm:$0xff] %v3815_v37  ;;  %v3872_v12 = vunpack.c.l.b16 %v3815_v37  ;;  %v3873_v5 = vunpack.c.h.b16 %v3815_v37 }
 0x81a   : > { %v4329_v21 = vpop.xlane.xlu2 %4328  ;;  %v3897_v11 = vpack.c.b16 %v3875_v43, %v3873_v5  ;;  %v8468_v5 = vld [vmem:[#allocation3 + $0x78] sm:$0xff] }
 0x81b   : > { %v4366_v10 = vsub.f32 %v11063_v36, %v4329_v21  ;;  %v4367_v18 = vsub.f32 %v11067_v23, %v4329_v21  ;;  %v3896_v36 = vpack.c.b16 %v3874_v25, %v3872_v12 }
 0x81d   : > { %v4416_v8 = vmul.f32 1.442695, %v4366_v10  ;;  %v4418_v1 = vmul.f32 1.442695, %v4367_v18 }
 0x81e   : > { %4673 = vrot.lane.b32.xlu1 %v8466_v35, %s8912_s24 }
 0x81f   : > { %8294 = vpow2.f32 %v4416_v8  ;;  %v4449_v20 = vpop.xlane.xlu0 %4448 }
 0x820   : > { %8296 = vpow2.f32 %v4418_v1 }
 0x821   : > { %8298 = vrcp.f32 %v4449_v20 }
 0x822   : > { %v4452_v48 = vpop.xlane.xlu2 %4451 }
 0x823   : > { %8300 = vrcp.f32 %v4452_v48 }
 0x824   : > { %v4682_v21 = vpop.permute.xlu1 %4681  ;;  %3996 = vmatmul.bf16.gmra.mxu2 %v3896_v36  ;;  %4045 = vmatmul.bf16.gmra.mxu0 %v3897_v11  ;;  %v12531_v36 = vld [vmem:[#allocation86_spill] sm:$0xff] }
 0x825   : > { %v11292_v23 = vpop.eup %8294  ;;  %4751 = vmatpush.bf16.msra.mxu0 %v4682_v21  ;;  %7766 = vmatpush.bf16.msra.mxu1 %v4682_v21  ;;  %v4357_v11 = vsub.f32 %v12531_v36, %v11014_v45 }
 0x826   : > { %v11294_v58 = vpop.eup %8296  ;;  %4653 = vrot.lane.b32.xlu1 %v8467_v41, %s8912_s24 }
 0x827   : > { %v8299_v37 = vpop.eup %8298  ;;  %v4471_v32 = vadd.f32 %v11294_v58, %v11292_v23 }
 0x828   : > { %v4510_v38 = vmul.f32 %v8299_v37, %v11071_v17  ;;  %v4511_v10 = vmul.f32 %v8299_v37, %v11073_v19  ;;  %v8469_v19 = vld [vmem:[#allocation3 + $0x20] sm:$0xff] }
 0x829   : > { %v8301_v18 = vpop.eup %8300  ;;  %4472 = vadd.xlane.f32.xlu2 %v4471_v32 }
 0x82a   : > { %v11301_v8 = vpack.c.bf16 %v4511_v10, %v4510_v38  ;;  %v4512_v1 = vmul.f32 %v8301_v18, %v11075_v62  ;;  %v4513_v35 = vmul.f32 %v8301_v18, %v11077_v51  ;;  %v4332_v51 = vpop.xlane.xlu2 %4331  ;;  %v4398_v38 = vmul.f32 1.442695, %v4357_v11  ;;  %v11324_v10 = vpop.f32.mrf.mxu0 }
 0x82b   : > { %v11328_v18 = vpop.f32.mrf.mxu2 }
 0x82c   : > { %7234 = vst [vmem:[%s9299_s1 + $0x188] sm:$0xff] %v11301_v8  ;;  %v11307_v20 = vpack.c.bf16 %v4513_v35, %v4512_v1  ;;  %v4662_v12 = vpop.permute.xlu1 %4661 }
 0x82d   : > { %4704 = vmatpush.bf16.msra.mxu2 %v4662_v12 }
 0x82e   : > { %7235 = vst [vmem:[%s9299_s1 + $0x190] sm:$0xff] %v11307_v20  ;;  %4671 = vrot.lane.b32.xlu1 %v8468_v5, %s8912_s24 }
 0x831   : > { %4705 = vmatpush.bf16.msra.mxu2 %v11270_v47  ;;  %v12530_v47 = vld [vmem:[#allocation87_spill] sm:$0xff] }
 0x832   : > { %v4658_v62 = vpop.permute.xlu0 %4657  ;;  %v4356_v48 = vsub.f32 %v12530_v47, %v11014_v45 }
 0x834   : > { %v4396_v32 = vmul.f32 1.442695, %v4356_v48 }
 0x835   : > { %v4680_v17 = vpop.permute.xlu1 %4679  ;;  %4706 = vmatpush.bf16.msra.mxu2 %v4658_v62 }
 0x836   : > { %4669 = vrot.lane.b32.xlu1 %v8469_v19, %s8912_s24  ;;  %4752 = vmatpush.bf16.msra.mxu0 %v4680_v17 }
 0x837   : > { %7767 = vmatpush.bf16.msra.mxu1 %v4680_v17 }
 0x83a   : > { %4753 = vmatpush.bf16.msra.mxu0 %v4678_v54 }
 0x83b   : > { %7768 = vmatpush.bf16.msra.mxu1 %v4678_v54 }
 0x83e   : > { %4754 = vmatpush.bf16.msra.mxu0 %v11278_v16 }
 0x83f   : > { %7769 = vmatpush.bf16.msra.mxu1 %v11278_v16 }
 0x844   : > { %v4461_v25 = vpop.xlane.xlu2 %4460 }
 0x845   : > { %8302 = vrcp.f32 %v4461_v25 }
 0x846   : > { %8304 = vpow2.f32 %v4396_v32 }
 0x847   : > { %8306 = vpow2.f32 %v4398_v38 }
 0x84b   : > { %v8303_v43 = vpop.eup %8302 }
 0x84c   : > { %v4518_v21 = vmul.f32 %v8303_v43, %v11141_v3  ;;  %v4519_v41 = vmul.f32 %v8303_v43, %v11146_v22  ;;  %v4341_v54 = vpop.xlane.xlu2 %4340  ;;  %v11330_v45 = vpop.eup %8304 }
 0x84d   : > { %v11332_v3 = vpop.eup %8306  ;;  %v11334_v22 = vpop.f32.mrf.mxu0  ;;  %v4375_v32 = vsub.f32 %v11157_v2, %v4341_v54 }
 0x84e   : > { %v11322_v37 = vpack.c.bf16 %v4519_v41, %v4518_v21  ;;  %v4456_v25 = vadd.f32 %v11332_v3, %v11330_v45  ;;  %v11344_v43 = vpop.f32.mrf.mxu2  ;;  %v4374_v21 = vsub.f32 %v11151_v31, %v4341_v54 }
 0x850   : > { %7238 = vst [vmem:[%s9299_s1 + $0x1a8] sm:$0xff] %v11322_v37 }
 0x854   : > { %v4467_v16 = vpop.xlane.xlu2 %4466 }
 0x855   : > { %8308 = vrcp.f32 %v4467_v16  ;;  %v11350_v11 = vpop.f32.mrf.mxu0 }
 0x85b   : > { %v8309_v1 = vpop.eup %8308 }
 0x85c   : > { %v4522_v35 = vmul.f32 %v8309_v1, %v11173_v53  ;;  %v4523_v12 = vmul.f32 %v8309_v1, %v11177_v59  ;;  %v4368_v53 = vsub.f32 %v11087_v30, %v4332_v51  ;;  %v4369_v59 = vsub.f32 %v11096_v33, %v4332_v51  ;;  %v11358_v33 = vpop.f32.mrf.mxu2 }
 0x85d   : > { %v4326_v5 = vpop.xlane.xlu0 %4325  ;;  %v4432_v51 = vmul.f32 1.442695, %v4374_v21 }
 0x85e   : > { %v11338_v17 = vpack.c.bf16 %v4523_v12, %v4522_v35  ;;  %v4364_v19 = vsub.f32 %v11045_v4, %v4326_v5  ;;  %v4365_v62 = vsub.f32 %v11053_v28, %v4326_v5  ;;  %v4420_v28 = vmul.f32 1.442695, %v4368_v53  ;;  %v11362_v5 = vpop.f32.mrf.mxu0 }
 0x85f   : > { %v4422_v41 = vmul.f32 1.442695, %v4369_v59  ;;  %v4434_v35 = vmul.f32 1.442695, %v4375_v32 }
 0x860   : > { %7240 = vst [vmem:[%s9299_s1 + $0x1b8] sm:$0xff] %v11338_v17  ;;  %v4412_v47 = vmul.f32 1.442695, %v4364_v19  ;;  %v4414_v48 = vmul.f32 1.442695, %v4365_v62  ;;  %v3746_v36 = vpop.xlane.xlu1 %3745  ;;  %4457 = vadd.xlane.f32.xlu1 %v4456_v25 }
 0x862   : > { %8310 = vpow2.f32 %v4412_v47  ;;  %v3876_v47 = vunpack.c.l.b16 %v11137_v13 }
 0x863   : > { %8312 = vpow2.f32 %v4414_v48 }
 0x864   : > { %8314 = vrcp.f32 %v3746_v36 }
 0x865   : > { %v4455_v4 = vpop.xlane.xlu0 %4454 }
 0x866   : > { %8316 = vrcp.f32 %v4455_v4 }
 0x868   : > { %v3749_v38 = vpop.xlane.xlu1 %3748  ;;  %v11354_v16 = vpop.eup %8310 }
 0x869   : > { %8318 = vrcp.f32 %v3749_v38  ;;  %v11356_v30 = vpop.eup %8312 }
 0x86a   : > { %8320 = vpow2.f32 %v4420_v28  ;;  %v8315_v1 = vpop.eup %8314  ;;  %v4468_v31 = vadd.f32 %v11356_v30, %v11354_v16 }
 0x86b   : > { %8322 = vpow2.f32 %v4422_v41  ;;  %v3797_v2 = vmul.f32 %v8315_v1, %v11205_v27  ;;  %v3798_v54 = vmul.f32 %v8315_v1, %v11209_v14  ;;  %v3877_v14 = vunpack.c.h.b16 %v11137_v13 }
 0x86c   : > { %v8317_v12 = vpop.eup %8316  ;;  %4469 = vadd.xlane.f32.xlu0 %v4468_v31  ;;  %8324 = vpow2.f32 %v4432_v51  ;;  %v11381_v51 = vpop.f32.mrf.mxu2 }
 0x86d   : > { %v4514_v19 = vmul.f32 %v8317_v12, %v11225_v0  ;;  %v4515_v62 = vmul.f32 %v8317_v12, %v11227_v49  ;;  %v4335_v25 = vpop.xlane.xlu0 %4334  ;;  %v3818_v48 = vpack.c.bf16 %v3798_v54, %v3797_v2  ;;  %8326 = vpow2.f32 %v4434_v35  ;;  %v4347_v54 = vpop.xlane.xlu2 %4346 }
 0x86e   : > { %v4370_v36 = vsub.f32 %v11106_v34, %v4335_v25  ;;  %v4371_v53 = vsub.f32 %v11115_v55, %v4335_v25  ;;  %v4593_v0 = vunpack.c.l.b16 %v11307_v20  ;;  %v4594_v35 = vunpack.c.h.b16 %v11307_v20 }
 0x86f   : > { %v8319_v59 = vpop.eup %8318  ;;  %v4543_v27 = vpack.c.bf16 %v4515_v62, %v4514_v19  ;;  %7212 = vst [vmem:[%s9299_s1 + $0x158] sm:$0xff] %v3818_v48  ;;  %v3878_v55 = vunpack.c.l.b16 %v3818_v48  ;;  %v3879_v38 = vunpack.c.h.b16 %v3818_v48  ;;  %v11395_v48 = vpop.f32.mrf.mxu0 }
 0x870   : > { %v11373_v4 = vpop.eup %8320  ;;  %v3799_v49 = vmul.f32 %v8319_v59, %v11232_v50  ;;  %v3800_v28 = vmul.f32 %v8319_v59, %v11238_v6  ;;  %v4424_v21 = vmul.f32 1.442695, %v4370_v36  ;;  %v4426_v41 = vmul.f32 1.442695, %v4371_v53  ;;  %v4446_v32 = vpop.xlane.xlu1 %4445 }
 0x871   : > { %v11378_v34 = vpop.eup %8322  ;;  %7236 = vst [vmem:[%s9299_s1 + $0x198] sm:$0xff] %v4543_v27  ;;  %8328 = vrcp.f32 %v4446_v32  ;;  %v4595_v13 = vunpack.c.l.b16 %v4543_v27  ;;  %v4596_v50 = vunpack.c.h.b16 %v4543_v27  ;;  %v3898_v6 = vpack.c.b16 %v3878_v55, %v3876_v47 }
 0x872   : > { %v3819_v1 = vpack.c.bf16 %v3800_v28, %v3799_v49  ;;  %8330 = vpow2.f32 %v4424_v21  ;;  %v3899_v31 = vpack.c.b16 %v3879_v38, %v3877_v14  ;;  %v11386_v2 = vpop.eup %8324  ;;  %v4474_v19 = vadd.f32 %v11378_v34, %v11373_v4 }
 0x873   : > { %8332 = vpow2.f32 %v4426_v41  ;;  %v11384_v12 = vpack.c.b16 %v4595_v13, %v4593_v0  ;;  %v11391_v62 = vpack.c.b16 %v4596_v50, %v4594_v35  ;;  %v11393_v25 = vpop.eup %8326  ;;  %4001 = vmatmul.bf16.gmra.mxu2 %v3898_v6  ;;  %v4378_v59 = vsub.f32 %v11201_v7, %v4347_v54 }
 0x874   : > { %7213 = vst [vmem:[%s9299_s1 + $0x160] sm:$0xff] %v3819_v1  ;;  %4050 = vmatmul.bf16.gmra.mxu0 %v3899_v31  ;;  %4475 = vadd.xlane.f32.xlu0 %v4474_v19  ;;  %v4379_v41 = vsub.f32 %v11207_v9, %v4347_v54  ;;  %v3880_v9 = vunpack.c.l.b16 %v3819_v1  ;;  %v3881_v38 = vunpack.c.h.b16 %v3819_v1  ;;  %v3882_v6 = vunpack.c.l.b16 %v11193_v39 }
 0x875   : > { %v4338_v20 = vpop.xlane.xlu0 %4337  ;;  %v4440_v7 = vmul.f32 1.442695, %v4378_v59  ;;  %v3883_v31 = vunpack.c.h.b16 %v11193_v39  ;;  %v3296_v1 = vadd.f32 %v10993_v40, %v11003_v24 }
 0x876   : > { %v4372_v47 = vsub.f32 %v11130_v26, %v4338_v20  ;;  %v4373_v36 = vsub.f32 %v11133_v52, %v4338_v20  ;;  %v11411_v52 = vpop.f32.mrf.mxu2  ;;  %v3900_v19 = vpack.c.b16 %v3882_v6, %v3880_v9 }
 0x877   : > { %v8329_v53 = vpop.eup %8328  ;;  %v11419_v35 = vpop.f32.mrf.mxu0  ;;  %v3901_v20 = vpack.c.b16 %v3883_v31, %v3881_v38  ;;  %v3334_v40 = vpack.c.bf16 %v3296_v1, %v3296_v1 }
 0x878   : > { %v11400_v27 = vpop.eup %8330  ;;  %v4508_v14 = vmul.f32 %v8329_v53, %v11248_v56  ;;  %v4509_v0 = vmul.f32 %v8329_v53, %v11252_v15  ;;  %v4428_v49 = vmul.f32 1.442695, %v4372_v47  ;;  %v4430_v28 = vmul.f32 1.442695, %v4373_v36 }
 0x879   : > { %v11404_v21 = vpop.eup %8332  ;;  %v4483_v56 = vadd.f32 %v11393_v25, %v11386_v2  ;;  %v4442_v15 = vmul.f32 1.442695, %v4379_v41  ;;  %v4872_v31 = vunpack.c.l.b16 %v3334_v40 }
 0x87a   : > { %v11407_v32 = vpack.c.bf16 %v4509_v0, %v4508_v14  ;;  %8334 = vpow2.f32 %v4428_v49  ;;  %v4477_v26 = vadd.f32 %v11404_v21, %v11400_v27 }
 0x87b   : > { %8336 = vpow2.f32 %v4430_v28 }
 0x87c   : > { %7233 = vst [vmem:[%s9299_s1 + $0x180] sm:$0xff] %v11407_v32  ;;  %4478 = vadd.xlane.f32.xlu1 %v4477_v26  ;;  %4484 = vadd.xlane.f32.xlu0 %v4483_v56 }
 0x87d   : > { %v4464_v55 = vpop.xlane.xlu0 %4463 }
 0x87e   : > { %8338 = vrcp.f32 %v4464_v55  ;;  %v3987_v39 = vpop.f32.mrf.mxu2  ;;  %v12532_v55 = vld [vmem:[#allocation79_spill] sm:$0xff] }
 0x87f   : > { %8340 = vpow2.f32 %v4440_v7  ;;  %v4038_v9 = vpop.f32.mrf.mxu0 }
 0x880   : > { %v11417_v13 = vpop.eup %8334  ;;  %8342 = vpow2.f32 %v4442_v15  ;;  %v4604_v15 = vunpack.c.h.b16 %v11338_v17 }
 0x881   : > { %v11421_v50 = vpop.eup %8336 }
 0x882   : > { %v4480_v54 = vadd.f32 %v11421_v50, %v11417_v13 }
 0x883   : > { %4006 = vmatmul.bf16.gmra.mxu2 %v3900_v19  ;;  %v12534_v19 = vld [vmem:[#allocation55_spill] sm:$0xff] }
 0x884   : > { %v8339_v47 = vpop.eup %8338  ;;  %4481 = vadd.xlane.f32.xlu2 %v4480_v54  ;;  %4055 = vmatmul.bf16.gmra.mxu0 %v3901_v20  ;;  %v12533_v54 = vld [vmem:[#allocation73_spill] sm:$0xff] }
 0x885   : > { %v4520_v36 = vmul.f32 %v8339_v47, %v11266_v29  ;;  %v4521_v53 = vmul.f32 %v8339_v47, %v11268_v60  ;;  %v4344_v59 = vpop.xlane.xlu0 %4343  ;;  %v11431_v14 = vpop.eup %8340  ;;  %v4603_v60 = vunpack.c.l.b16 %v11338_v17  ;;  %v3301_v20 = vadd.f32 %v12534_v19, %v12533_v54 }
 0x886   : > { %v4376_v0 = vsub.f32 %v11165_v63, %v4344_v59  ;;  %v4377_v49 = vsub.f32 %v11179_v46, %v4344_v59  ;;  %v11435_v28 = vpop.eup %8342  ;;  %v3333_v63 = vpack.c.bf16 %v12532_v55, %v12532_v55  ;;  %v4029_v19 = vadd.f32 %v11350_v11, %v11358_v33 }
 0x887   : > { %v4546_v41 = vpack.c.bf16 %v4521_v53, %v4520_v36  ;;  %v4489_v46 = vadd.f32 %v11435_v28, %v11431_v14  ;;  %v3336_v36 = vpack.c.bf16 %v3301_v20, %v3301_v20  ;;  %v3989_v53 = vpop.f32.mrf.mxu2 }
 0x888   : > { %v4436_v24 = vmul.f32 1.442695, %v4376_v0  ;;  %v4438_v26 = vmul.f32 1.442695, %v4377_v49  ;;  %v4656_v7 = vpop.permute.xlu1 %4655  ;;  %v4871_v47 = vunpack.c.l.b16 %v3333_v63  ;;  %v12535_v49 = vld [vmem:[#allocation76_spill] sm:$0xff]  ;;  %v4039_v54 = vadd.f32 %v4038_v9, %v3989_v53 }
 0x889   : > { %7239 = vst [vmem:[%s9299_s1 + $0x1b0] sm:$0xff] %v4546_v41  ;;  %4707 = vmatpush.bf16.msra.mxu2 %v4656_v7  ;;  %v4601_v29 = vunpack.c.l.b16 %v4546_v41  ;;  %v4602_v56 = vunpack.c.h.b16 %v4546_v41  ;;  %v3335_v41 = vpack.c.bf16 %v12535_v49, %v12535_v49  ;;  %v4034_v7 = vadd.f32 %v11395_v48, %v11411_v52 }
 0x88a   : > { %8344 = vpow2.f32 %v4436_v24  ;;  %v4887_v1 = vpack.c.b16 %v4872_v31, %v4871_v47  ;;  %v4071_v20 = vpack.c.bf16 %v4039_v54, %v4039_v54  ;;  %v4591_v9 = vunpack.c.l.b16 %v11301_v8 }
 0x88b   : > { %8346 = vpow2.f32 %v4438_v26  ;;  %v11444_v38 = vpack.c.b16 %v4603_v60, %v4601_v29  ;;  %v11446_v6 = vpack.c.b16 %v4604_v15, %v4602_v56  ;;  %v4874_v26 = vunpack.c.l.b16 %v3336_v36 }
 0x88c   : > { %4490 = vadd.xlane.f32.xlu2 %v4489_v46  ;;  %v4873_v29 = vunpack.c.l.b16 %v3335_v41  ;;  %v4032_v60 = vadd.f32 %v11362_v5, %v11381_v51  ;;  %v4069_v15 = vpack.c.bf16 %v4034_v7, %v4034_v7  ;;  %v4589_v5 = vunpack.c.l.b16 %v11407_v32 }
 0x88d   : > { %v4027_v36 = vadd.f32 %v11334_v22, %v11344_v43  ;;  %v4932_v33 = vunpack.c.l.b16 %v4071_v20 }
 0x88e   : > { %v4888_v56 = vpack.c.b16 %v4874_v26, %v4873_v29  ;;  %v4068_v46 = vpack.c.bf16 %v4032_v60, %v4032_v60  ;;  %v4930_v31 = vunpack.c.l.b16 %v4069_v15  ;;  %v4621_v11 = vpack.c.b16 %v4591_v9, %v4589_v5 }
 0x88f   : > { %v4590_v29 = vunpack.c.h.b16 %v11407_v32 }
 0x890   : > { %v11450_v17 = vpop.eup %8344  ;;  %v4674_v59 = vpop.permute.xlu1 %4673  ;;  %4895 = vrot.lane.b32.xlu0 %v4887_v1, %s8912_s24 }
 0x891   : > { %v11452_v0 = vpop.eup %8346  ;;  %4755 = vmatpush.bf16.msra.mxu0 %v4674_v59  ;;  %7770 = vmatpush.bf16.msra.mxu1 %v4674_v59  ;;  %v4041_v24 = vpop.f32.mrf.mxu0 }
 0x892   : > { %v4486_v40 = vadd.f32 %v11452_v0, %v11450_v17 }
 0x893   : > { %4011 = vmatmul.bf16.gmra.mxu2 %v11234_v57  ;;  %v4929_v57 = vunpack.c.l.b16 %v4068_v46 }
 0x894   : > { %4487 = vadd.xlane.f32.xlu1 %v4486_v40  ;;  %4060 = vmatmul.bf16.gmra.mxu0 %v11236_v44  ;;  %v4037_v44 = vadd.f32 %v11419_v35, %v3987_v39  ;;  %v4067_v39 = vpack.c.bf16 %v4029_v19, %v4029_v19  ;;  %v4066_v40 = vpack.c.bf16 %v4027_v36, %v4027_v36 }
 0x895   : > { %v4944_v51 = vpack.c.b16 %v4930_v31, %v4929_v57 }
 0x896   : > { %v4070_v53 = vpack.c.bf16 %v4037_v44, %v4037_v44  ;;  %v4928_v60 = vunpack.c.l.b16 %v4067_v39 }
 0x897   : > { %v3992_v63 = vpop.f32.mrf.mxu2 }
 0x898   : > { %v4654_v55 = vpop.permute.xlu1 %4653  ;;  %4897 = vrot.lane.b32.xlu0 %v4888_v56, %s8912_s24  ;;  %v4931_v22 = vunpack.c.l.b16 %v4070_v53  ;;  %v4042_v43 = vadd.f32 %v4041_v24, %v3992_v63 }
 0x899   : > { %4708 = vmatpush.bf16.msra.mxu2 %v4654_v55  ;;  %v4043_v48 = vpop.f32.mrf.mxu0 }
 0x89a   : > { %v4945_v56 = vpack.c.b16 %v4932_v33, %v4931_v22  ;;  %v4072_v31 = vpack.c.bf16 %v4042_v43, %v4042_v43 }
 0x89c   : > { %v4473_v52 = vpop.xlane.xlu2 %4472 }
 0x89d   : > { %8348 = vrcp.f32 %v4473_v52 }
 0x89f   : > { %v3994_v1 = vpop.f32.mrf.mxu2 }
 0x8a0   : > { %v4672_v47 = vpop.permute.xlu1 %4671  ;;  %4953 = vrot.lane.b32.xlu0 %v4944_v51, %s8911_s29  ;;  %v4044_v41 = vadd.f32 %v4043_v48, %v3994_v1  ;;  %v4933_v48 = vunpack.c.l.b16 %v4072_v31 }
 0x8a1   : > { %4756 = vmatpush.bf16.msra.mxu0 %v4672_v47  ;;  %7771 = vmatpush.bf16.msra.mxu1 %v4672_v47  ;;  %v4046_v7 = vpop.f32.mrf.mxu0 }
 0x8a2   : > { %v4073_v15 = vpack.c.bf16 %v4044_v41, %v4044_v41 }
 0x8a3   : > { %v8349_v35 = vpop.eup %8348  ;;  %4709 = vmatmul.bf16.vlgmr.msra.gmra.mxu2 %v4621_v11  ;;  %v4599_v11 = vunpack.c.l.b16 %v11322_v37 }
 0x8a4   : > { %v4526_v59 = vmul.f32 %v8349_v35, %v11292_v23  ;;  %v4527_v49 = vmul.f32 %v8349_v35, %v11294_v58  ;;  %v4592_v23 = vunpack.c.h.b16 %v11301_v8  ;;  %v4927_v58 = vunpack.c.l.b16 %v4066_v40 }
 0x8a5   : > { %v4934_v54 = vunpack.c.l.b16 %v4073_v15 }
 0x8a6   : > { %v11476_v26 = vpack.c.bf16 %v4527_v49, %v4526_v59  ;;  %v4622_v24 = vpack.c.b16 %v4592_v23, %v4590_v29  ;;  %v4943_v63 = vpack.c.b16 %v4928_v60, %v4927_v58 }
 0x8a7   : > { %v3997_v46 = vpop.f32.mrf.mxu2  ;;  %v4946_v52 = vpack.c.b16 %v4934_v54, %v4933_v48 }
 0x8a8   : > { %7242 = vst [vmem:[%s9299_s1 + $0x1c8] sm:$0xff] %v11476_v26  ;;  %v4670_v55 = vpop.permute.xlu1 %4669  ;;  %4955 = vrot.lane.b32.xlu0 %v4945_v56, %s8911_s29  ;;  %v4047_v32 = vadd.f32 %v4046_v7, %v3997_v46 }
 0x8a9   : > { %4757 = vmatpush.bf16.msra.mxu0 %v4670_v55  ;;  %7772 = vmatpush.bf16.msra.mxu1 %v4670_v55  ;;  %v4048_v57 = vpop.f32.mrf.mxu0 }
 0x8aa   : > { %v4074_v19 = vpack.c.bf16 %v4047_v32, %v4047_v32 }
 0x8ac   : > { %4758 = vmatmul.bf16.vlgmr.msra.gmra.mxu0 %v4622_v24  ;;  %v4935_v51 = vunpack.c.l.b16 %v4074_v19 }
 0x8ad   : > { %4951 = vrot.lane.b32.xlu1 %v4943_v63, %s8911_s29 }
 0x8af   : > { %v3999_v44 = vpop.f32.mrf.mxu2 }
 0x8b0   : > { %v4049_v8 = vadd.f32 %v4048_v57, %v3999_v44  ;;  %4957 = vrot.lane.b32.xlu0 %v4946_v52, %s8911_s29  ;;  %v4607_v52 = vunpack.c.l.b16 %v11476_v26  ;;  %v4608_v44 = vunpack.c.h.b16 %v11476_v26 }
 0x8b2   : > { %v4075_v5 = vpack.c.bf16 %v4049_v8, %v4049_v8 }
 0x8b3   : > { %4714 = vmatmul.bf16.gmra.mxu2 %v11384_v12  ;;  %v4600_v12 = vunpack.c.h.b16 %v11322_v37 }
 0x8b4   : > { %v4936_v20 = vunpack.c.l.b16 %v4075_v5 }
 0x8b6   : > { %v4947_v47 = vpack.c.b16 %v4936_v20, %v4935_v51 }
 0x8b8   : > { %4959 = vrot.lane.b32.xlu0 %v4947_v47, %s8911_s29 }
 0x8bc   : > { %4763 = vmatmul.bf16.gmra.mxu0 %v11391_v62 }
 0x8d3   : > { %v4458_v1 = vpop.xlane.xlu1 %4457 }
 0x8d4   : > { %8350 = vrcp.f32 %v4458_v1 }
 0x8da   : > { %v8351_v36 = vpop.eup %8350 }
 0x8db   : > { %v4516_v9 = vmul.f32 %v8351_v36, %v11330_v45  ;;  %v4517_v53 = vmul.f32 %v8351_v36, %v11332_v3 }
 0x8dd   : > { %v4544_v35 = vpack.c.bf16 %v4517_v53, %v4516_v9 }
 0x8df   : > { %7237 = vst [vmem:[%s9299_s1 + $0x1a0] sm:$0xff] %v4544_v35  ;;  %v4597_v39 = vunpack.c.l.b16 %v4544_v35  ;;  %v4598_v33 = vunpack.c.h.b16 %v4544_v35  ;;  %v4470_v59 = vpop.xlane.xlu0 %4469 }
 0x8e0   : > { %8352 = vrcp.f32 %v4470_v59 }
 0x8e1   : > { %v4625_v49 = vpack.c.b16 %v4599_v11, %v4597_v39  ;;  %v4626_v62 = vpack.c.b16 %v4600_v12, %v4598_v33 }
 0x8e3   : > { %4719 = vmatmul.bf16.gmra.mxu2 %v4625_v49  ;;  %4768 = vmatmul.bf16.gmra.mxu0 %v4626_v62 }
 0x8e6   : > { %v8353_v41 = vpop.eup %8352 }
 0x8e7   : > { %v4524_v45 = vmul.f32 %v8353_v41, %v11354_v16  ;;  %v4525_v3 = vmul.f32 %v8353_v41, %v11356_v30  ;;  %v4476_v40 = vpop.xlane.xlu0 %4475 }
 0x8e8   : > { %8354 = vrcp.f32 %v4476_v40 }
 0x8e9   : > { %v4548_v22 = vpack.c.bf16 %v4525_v3, %v4524_v45 }
 0x8eb   : > { %7241 = vst [vmem:[%s9299_s1 + $0x1c0] sm:$0xff] %v4548_v22  ;;  %v4605_v54 = vunpack.c.l.b16 %v4548_v22  ;;  %v4606_v32 = vunpack.c.h.b16 %v4548_v22 }
 0x8ed   : > { %v4629_v8 = vpack.c.b16 %v4607_v52, %v4605_v54  ;;  %v4630_v47 = vpack.c.b16 %v4608_v44, %v4606_v32 }
 0x8ee   : > { %v8355_v7 = vpop.eup %8354 }
 0x8ef   : > { %v4479_v43 = vpop.xlane.xlu1 %4478  ;;  %v4528_v37 = vmul.f32 %v8355_v7, %v11373_v4  ;;  %v4529_v29 = vmul.f32 %v8355_v7, %v11378_v34  ;;  %v4485_v60 = vpop.xlane.xlu0 %4484 }
 0x8f0   : > { %8356 = vrcp.f32 %v4479_v43  ;;  %v7517_v43 = vld [vmem:[#allocation15 + $0x38] sm:$0xff] }
 0x8f1   : > { %v4051_v56 = vpop.f32.mrf.mxu0  ;;  %8358 = vrcp.f32 %v4485_v60  ;;  %v11498_v15 = vpack.c.bf16 %v4529_v29, %v4528_v37  ;;  %5157 = vmatpush.bf16.msra.mxu3 %v7517_v43  ;;  %v12540_v43 = vld [vmem:[#allocation81_spill] sm:$0xff] }
 0x8f3   : > { %4724 = vmatmul.bf16.gmra.mxu2 %v11444_v38  ;;  %4773 = vmatmul.bf16.gmra.mxu0 %v11446_v6  ;;  %7243 = vst [vmem:[%s9299_s1 + $0x1d0] sm:$0xff] %v11498_v15  ;;  %v4610_v24 = vunpack.c.h.b16 %v11498_v15  ;;  %v4609_v40 = vunpack.c.l.b16 %v11498_v15 }
 0x8f6   : > { %v8357_v16 = vpop.eup %8356  ;;  %v4002_v46 = vpop.f32.mrf.mxu2 }
 0x8f7   : > { %v4530_v30 = vmul.f32 %v8357_v16, %v11400_v27  ;;  %v4531_v4 = vmul.f32 %v8357_v16, %v11404_v21  ;;  %v4482_v55 = vpop.xlane.xlu2 %4481  ;;  %v8359_v34 = vpop.eup %8358  ;;  %v4052_v27 = vadd.f32 %v4051_v56, %v4002_v46 }
 0x8f8   : > { %8360 = vrcp.f32 %v4482_v55  ;;  %v4534_v58 = vmul.f32 %v8359_v34, %v11386_v2  ;;  %v4535_v31 = vmul.f32 %v8359_v34, %v11393_v25 }
 0x8f9   : > { %v4551_v23 = vpack.c.bf16 %v4531_v4, %v4530_v30  ;;  %v4053_v38 = vpop.f32.mrf.mxu0  ;;  %v4076_v5 = vpack.c.bf16 %v4052_v27, %v4052_v27 }
 0x8fa   : > { %v11509_v6 = vpack.c.bf16 %v4535_v31, %v4534_v58 }
 0x8fb   : > { %7244 = vst [vmem:[%s9299_s1 + $0x1d8] sm:$0xff] %v4551_v23  ;;  %v4612_v63 = vunpack.c.h.b16 %v4551_v23  ;;  %v4611_v45 = vunpack.c.l.b16 %v4551_v23 }
 0x8fc   : > { %7246 = vst [vmem:[%s9299_s1 + $0x1e8] sm:$0xff] %v11509_v6  ;;  %v4616_v59 = vunpack.c.h.b16 %v11509_v6  ;;  %v4615_v58 = vunpack.c.l.b16 %v11509_v6 }
 0x8fd   : > { %v4632_v21 = vpack.c.b16 %v4612_v63, %v4610_v24  ;;  %v4631_v60 = vpack.c.b16 %v4611_v45, %v4609_v40  ;;  %v7516_v24 = vld [vmem:[#allocation15 + $0x30] sm:$0xff] }
 0x8fe   : > { %v8361_v48 = vpop.eup %8360  ;;  %v4004_v19 = vpop.f32.mrf.mxu2  ;;  %5158 = vmatpush.bf16.msra.mxu3 %v7516_v24 }
 0x8ff   : > { %v4532_v2 = vmul.f32 %v8361_v48, %v11417_v13  ;;  %v4533_v25 = vmul.f32 %v8361_v48, %v11421_v50  ;;  %4783 = vmatmul.bf16.vlgmr.msra.gmra.mxu1 %v4632_v21  ;;  %v4491_v57 = vpop.xlane.xlu2 %4490  ;;  %v4054_v20 = vadd.f32 %v4053_v38, %v4004_v19  ;;  %v4937_v13 = vunpack.c.l.b16 %v4076_v5 }
 0x900   : > { %8362 = vrcp.f32 %v4491_v57  ;;  %v7515_v57 = vld [vmem:[#allocation15 + $0x28] sm:$0xff] }
 0x901   : > { %v4552_v51 = vpack.c.bf16 %v4533_v25, %v4532_v2  ;;  %v4056_v1 = vpop.f32.mrf.mxu0  ;;  %v4077_v36 = vpack.c.bf16 %v4054_v20, %v4054_v20 }
 0x902   : > { %5159 = vmatpush.bf16.msra.mxu3 %v7515_v57 }
 0x903   : > { %7245 = vst [vmem:[%s9299_s1 + $0x1e0] sm:$0xff] %v4552_v51  ;;  %4729 = vmatmul.bf16.gmra.mxu2 %v4629_v8  ;;  %4778 = vmatmul.bf16.gmra.mxu0 %v4630_v47  ;;  %v4938_v9 = vunpack.c.l.b16 %v4077_v36  ;;  %v4614_v12 = vunpack.c.h.b16 %v4552_v51  ;;  %v4613_v23 = vunpack.c.l.b16 %v4552_v51  ;;  %v12537_v36 = vld [vmem:[#allocation83_spill] sm:$0xff] }
 0x905   : > { %v4948_v53 = vpack.c.b16 %v4938_v9, %v4937_v13  ;;  %v4634_v41 = vpack.c.b16 %v4616_v59, %v4614_v12  ;;  %v4633_v27 = vpack.c.b16 %v4615_v58, %v4613_v23  ;;  %v12538_v12 = vld [vmem:[#allocation69_spill] sm:$0xff]  ;;  %v7513_v23 = vld [vmem:[#allocation15 + $0x18] sm:$0xff] }
 0x906   : > { %v8363_v50 = vpop.eup %8362  ;;  %v4007_v11 = vpop.f32.mrf.mxu2  ;;  %v3337_v59 = vpack.c.bf16 %v12538_v12, %v12538_v12 }
 0x907   : > { %v4538_v35 = vmul.f32 %v8363_v50, %v11431_v14  ;;  %v4539_v26 = vmul.f32 %v8363_v50, %v11435_v28  ;;  %v4488_v39 = vpop.xlane.xlu1 %4487  ;;  %4961 = vrot.lane.b32.xlu0 %v4948_v53, %s8911_s29  ;;  %v4057_v62 = vadd.f32 %v4056_v1, %v4007_v11  ;;  %v12536_v1 = vld [vmem:[#allocation82_spill] sm:$0xff] }
 0x908   : > { %8364 = vrcp.f32 %v4488_v39  ;;  %v3306_v13 = vadd.f32 %v12537_v36, %v12536_v1  ;;  %v4875_v45 = vunpack.c.l.b16 %v3337_v59 }
 0x909   : > { %v4555_v33 = vpack.c.bf16 %v4539_v26, %v4538_v35  ;;  %v4058_v49 = vpop.f32.mrf.mxu0  ;;  %v4078_v7 = vpack.c.bf16 %v4057_v62, %v4057_v62  ;;  %v12539_v62 = vld [vmem:[#allocation75_spill] sm:$0xff] }
 0x90a   : > { %v3338_v35 = vpack.c.bf16 %v3306_v13, %v3306_v13  ;;  %v12549_v13 = vld [vmem:[#allocation89_spill] sm:$0xff] }
 0x90b   : > { %7248 = vst [vmem:[%s9299_s1 + $0x1f8] sm:$0xff] %v4555_v33  ;;  %v4939_v16 = vunpack.c.l.b16 %v4078_v7  ;;  %v4620_v34 = vunpack.c.h.b16 %v4555_v33  ;;  %v4619_v19 = vunpack.c.l.b16 %v4555_v33  ;;  %v7514_v33 = vld [vmem:[#allocation15 + $0x20] sm:$0xff]  ;;  %v3339_v7 = vpack.c.bf16 %v12540_v43, %v12540_v43 }
 0x90c   : > { %5160 = vmatpush.bf16.msra.mxu3 %v7514_v33 }
 0x90e   : > { %v8365_v3 = vpop.eup %8364  ;;  %v4009_v22 = vpop.f32.mrf.mxu2 }
 0x90f   : > { %v4536_v14 = vmul.f32 %v8365_v3, %v11450_v17  ;;  %v4537_v28 = vmul.f32 %v8365_v3, %v11452_v0  ;;  %4788 = vmatmul.bf16.gmra.mxu1 %v4634_v41  ;;  %v4059_v29 = vadd.f32 %v4058_v49, %v4009_v22  ;;  %v4876_v49 = vunpack.c.l.b16 %v3338_v35 }
 0x910   : > { %v3311_v41 = vadd.f32 %v12539_v62, %v11125_v42  ;;  %v4877_v42 = vunpack.c.l.b16 %v3339_v7  ;;  %5161 = vmatpush.bf16.msra.mxu3 %v7513_v23 }
 0x911   : > { %v4554_v37 = vpack.c.bf16 %v4537_v28, %v4536_v14  ;;  %v4079_v56 = vpack.c.bf16 %v4059_v29, %v4059_v29  ;;  %v4061_v4 = vpop.f32.mrf.mxu0  ;;  %v4889_v14 = vpack.c.b16 %v4876_v49, %v4875_v45 }
 0x912   : > { %v3340_v28 = vpack.c.bf16 %v3311_v41, %v3311_v41 }
 0x913   : > { %7247 = vst [vmem:[%s9299_s1 + $0x1f0] sm:$0xff] %v4554_v37  ;;  %4734 = vmatmul.bf16.gmra.mxu2 %v4631_v60  ;;  %v4940_v30 = vunpack.c.l.b16 %v4079_v56  ;;  %v4618_v0 = vunpack.c.h.b16 %v4554_v37  ;;  %v4617_v44 = vunpack.c.l.b16 %v4554_v37  ;;  %v12541_v56 = vld [vmem:[#allocation77_spill] sm:$0xff] }
 0x914   : > { %v4878_v60 = vunpack.c.l.b16 %v3340_v28 }
 0x915   : > { %v4949_v55 = vpack.c.b16 %v4940_v30, %v4939_v16  ;;  %v4636_v46 = vpack.c.b16 %v4620_v34, %v4618_v0  ;;  %v4635_v51 = vpack.c.b16 %v4619_v19, %v4617_v44  ;;  %v3316_v16 = vadd.f32 %v12541_v56, %v11171_v61 }
 0x916   : > { %v4012_v17 = vpop.f32.mrf.mxu2 }
 0x917   : > { %4963 = vrot.lane.b32.xlu0 %v4949_v55, %s8911_s29  ;;  %v4062_v15 = vadd.f32 %v4061_v4, %v4012_v17  ;;  %v4890_v17 = vpack.c.b16 %v4878_v60, %v4877_v42  ;;  %v3342_v0 = vpack.c.bf16 %v3316_v16, %v3316_v16  ;;  %v12550_v16 = vld [vmem:[#allocation45_spill] sm:$0xff] }
 0x919   : > { %v4063_v31 = vpop.f32.mrf.mxu0  ;;  %v4080_v63 = vpack.c.bf16 %v4062_v15, %v4062_v15  ;;  %v12542_v15 = vld [vmem:[#allocation58_spill] sm:$0xff]  ;;  %v4880_v58 = vunpack.c.l.b16 %v3342_v0  ;;  %v12552_v0 = vld [vmem:[#allocation44_spill] sm:$0xff] }
 0x91b   : > { %v4941_v32 = vunpack.c.l.b16 %v4080_v63 }
 0x91e   : > { %v4014_v38 = vpop.f32.mrf.mxu2 }
 0x91f   : > { %4793 = vmatmul.bf16.gmra.mxu1 %v4636_v46  ;;  %v4064_v54 = vadd.f32 %v4063_v31, %v4014_v38  ;;  %v3341_v46 = vpack.c.bf16 %v12542_v15, %v12542_v15  ;;  %v12543_v31 = vld [vmem:[#allocation84_spill] sm:$0xff]  ;;  %v12544_v38 = vld [vmem:[#allocation85_spill] sm:$0xff] }
 0x920   : > { %v3321_v24 = vadd.f32 %v12544_v38, %v12543_v31 }
 0x921   : > { %v4081_v21 = vpack.c.bf16 %v4064_v54, %v4064_v54  ;;  %v4879_v61 = vunpack.c.l.b16 %v3341_v46 }
 0x922   : > { %v3344_v54 = vpack.c.bf16 %v3321_v24, %v3321_v24 }
 0x923   : > { %4739 = vmatmul.bf16.gmra.mxu2 %v4633_v27  ;;  %v4942_v48 = vunpack.c.l.b16 %v4081_v21  ;;  %v4891_v63 = vpack.c.b16 %v4880_v58, %v4879_v61  ;;  %v12545_v27 = vld [vmem:[#allocation74_spill] sm:$0xff] }
 0x924   : > { %v3343_v21 = vpack.c.bf16 %v12545_v27, %v12545_v27  ;;  %v4952_v27 = vpop.permute.xlu1 %4951 }
 0x925   : > { %v4950_v52 = vpack.c.b16 %v4942_v48, %v4941_v32  ;;  %v4882_v32 = vunpack.c.l.b16 %v3344_v54  ;;  %v12546_v48 = vld [vmem:[#allocation88_spill] sm:$0xff] }
 0x926   : > { %v4710_v2 = vpop.f32.mrf.mxu2 }
 0x927   : > { %4965 = vrot.lane.b32.xlu0 %v4950_v52, %s8911_s29  ;;  %v12547_v52 = vld [vmem:[#allocation78_spill] sm:$0xff] }
 0x929   : > { %v4759_v25 = vpop.f32.mrf.mxu0 }
 0x92a   : > { %v4760_v6 = vadd.f32 %v4759_v25, %v4710_v2  ;;  %v3326_v2 = vadd.f32 %v12547_v52, %v12546_v48  ;;  %v4881_v25 = vunpack.c.l.b16 %v3343_v21 }
 0x92c   : > { %v4799_v20 = vpack.c.bf16 %v4760_v6, %v4760_v6  ;;  %v4892_v57 = vpack.c.b16 %v4882_v32, %v4881_v25  ;;  %v3346_v44 = vpack.c.bf16 %v3326_v2, %v3326_v2  ;;  %v12548_v6 = vld [vmem:[#allocation80_spill] sm:$0xff] }
 0x92d   : > { %v3345_v19 = vpack.c.bf16 %v12548_v6, %v12548_v6 }
 0x92e   : > { %v4712_v8 = vpop.f32.mrf.mxu2  ;;  %v4983_v50 = vunpack.c.l.b16 %v4799_v20 }
 0x92f   : > { %v4883_v20 = vunpack.c.l.b16 %v3345_v19 }
 0x931   : > { %v4761_v5 = vpop.f32.mrf.mxu0 }
 0x932   : > { %v4762_v47 = vadd.f32 %v4761_v5, %v4712_v8  ;;  %v4884_v8 = vunpack.c.l.b16 %v3346_v44  ;;  %v3331_v5 = vadd.f32 %v11324_v10, %v11328_v18  ;;  %v7511_v10 = vld [vmem:[#allocation15 + $0x8] sm:$0xff] }
 0x933   : > { %4744 = vmatmul.bf16.gmra.mxu2 %v4635_v51  ;;  %v7512_v51 = vld [vmem:[#allocation15 + $0x10] sm:$0xff] }
 0x934   : > { %v4800_v9 = vpack.c.bf16 %v4762_v47, %v4762_v47  ;;  %5162 = vmatpush.bf16.msra.mxu3 %v7512_v51  ;;  %v4893_v47 = vpack.c.b16 %v4884_v8, %v4883_v20  ;;  %v3348_v1 = vpack.c.bf16 %v3331_v5, %v3331_v5 }
 0x936   : > { %v4984_v53 = vunpack.c.l.b16 %v4800_v9  ;;  %v4715_v39 = vpop.f32.mrf.mxu2  ;;  %v3347_v9 = vpack.c.bf16 %v12549_v13, %v12549_v13 }
 0x938   : > { %v4999_v26 = vpack.c.b16 %v4984_v53, %v4983_v50  ;;  %v4886_v50 = vunpack.c.l.b16 %v3348_v1  ;;  %v4885_v53 = vunpack.c.l.b16 %v3347_v9  ;;  %5163 = vmatpush.bf16.msra.mxu3 %v7511_v10 }
 0x939   : > { %v4764_v11 = vpop.f32.mrf.mxu0 }
 0x93a   : > { %5007 = vrot.lane.b32.xlu2 %v4999_v26, %s8910_s21  ;;  %v4765_v3 = vadd.f32 %v4764_v11, %v4715_v39  ;;  %v4894_v26 = vpack.c.b16 %v4886_v50, %v4885_v53 }
 0x93c   : > { %v4801_v37 = vpack.c.bf16 %v4765_v3, %v4765_v3  ;;  %v7510_v3 = vld [vmem:[#allocation15] sm:$0xff] }
 0x93d   : > { %5164 = vmatpush.bf16.msra.mxu3 %v7510_v3 }
 0x93e   : > { %v4717_v40 = vpop.f32.mrf.mxu2  ;;  %v4985_v4 = vunpack.c.l.b16 %v4801_v37 }
 0x941   : > { %v4766_v22 = vpop.f32.mrf.mxu0 }
 0x942   : > { %v4767_v29 = vadd.f32 %v4766_v22, %v4717_v40  ;;  %4899 = vrot.lane.b32.xlu2 %v4889_v14, %s8912_s24 }
 0x944   : > { %v4802_v30 = vpack.c.bf16 %v4767_v29, %v4767_v29 }
 0x946   : > { %v4986_v55 = vunpack.c.l.b16 %v4802_v30  ;;  %v12551_v30 = vld [vmem:[#allocation46_spill] sm:$0xff] }
 0x947   : > { %v2555_v42 = vadd.f32 %v12551_v30, %v12550_v16 }
 0x948   : > { %v5000_v34 = vpack.c.b16 %v4986_v55, %v4985_v4 }
 0x94a   : > { %5009 = vrot.lane.b32.xlu1 %v5000_v34, %s8910_s21  ;;  %4901 = vrot.lane.b32.xlu2 %v4890_v17, %s8912_s24  ;;  %v2593_v17 = vpack.c.bf16 %v2555_v42, %v2555_v42  ;;  %v2592_v34 = vpack.c.bf16 %v12552_v0, %v12552_v0 }
 0x94c   : > { %v4832_v23 = vunpack.c.l.b16 %v2593_v17  ;;  %v4831_v38 = vunpack.c.l.b16 %v2592_v34 }
 0x94e   : > { %v4847_v54 = vpack.c.b16 %v4832_v23, %v4831_v38  ;;  %v12556_v23 = vld [vmem:[#allocation72_spill] sm:$0xff] }
 0x952   : > { %4903 = vrot.lane.b32.xlu2 %v4891_v63, %s8912_s24  ;;  %v4896_v63 = vpop.permute.xlu0 %4895 }
 0x953   : > { %v5025_v32 = vsel %vm1875_vm0, %v4847_v54, %v4896_v63 }
 0x954   : > { %v5049_v2 = vsel %vm5047_vm2, %v5025_v32, %v4952_v27 }
 0x95a   : > { %4905 = vrot.lane.b32.xlu2 %v4892_v57, %s8912_s24 }
 0x960   : > { %v4769_v36 = vpop.f32.mrf.mxu0 }
 0x962   : > { %4907 = vrot.lane.b32.xlu2 %v4893_v47, %s8912_s24 }
 0x966   : > { %v4720_v35 = vpop.f32.mrf.mxu2 }
 0x967   : > { %v4770_v11 = vadd.f32 %v4769_v36, %v4720_v35 }
 0x968   : > { %v4771_v39 = vpop.f32.mrf.mxu0 }
 0x969   : > { %v4803_v12 = vpack.c.bf16 %v4770_v11, %v4770_v11 }
 0x96a   : > { %4909 = vrot.lane.b32.xlu2 %v4894_v26, %s8912_s24  ;;  %v12553_v26 = vld [vmem:[#allocation61_spill] sm:$0xff]  ;;  %s12584_s24 = sld [smem:[#allocation108_spill]] }
 0x96b   : > { %v4987_v62 = vunpack.c.l.b16 %v4803_v12 }
 0x96e   : > { %v4722_v18 = vpop.f32.mrf.mxu2 }
 0x96f   : > { %v4772_v59 = vadd.f32 %v4771_v39, %v4722_v18  ;;  %v12554_v39 = vld [vmem:[#allocation59_spill] sm:$0xff]  ;;  %v4898_v18 = vpop.permute.xlu0 %4897 }
 0x970   : > { %v4774_v33 = vpop.f32.mrf.mxu0  ;;  %v2560_v11 = vadd.f32 %v12554_v39, %v12553_v26 }
 0x971   : > { %v4804_v49 = vpack.c.bf16 %v4772_v59, %v4772_v59 }
 0x973   : > { %v4988_v41 = vunpack.c.l.b16 %v4804_v49 }
 0x975   : > { %v5001_v45 = vpack.c.b16 %v4988_v41, %v4987_v62  ;;  %v12555_v62 = vld [vmem:[#allocation47_spill] sm:$0xff] }
 0x976   : > { %v4725_v14 = vpop.f32.mrf.mxu2  ;;  %v2594_v41 = vpack.c.bf16 %v12555_v62, %v12555_v62 }
 0x977   : > { %5011 = vrot.lane.b32.xlu1 %v5001_v45, %s8910_s21  ;;  %v4775_v40 = vadd.f32 %v4774_v33, %v4725_v14  ;;  %v2595_v33 = vpack.c.bf16 %v2560_v11, %v2560_v11 }
 0x978   : > { %v4776_v28 = vpop.f32.mrf.mxu0 }
 0x979   : > { %v4805_v43 = vpack.c.bf16 %v4775_v40, %v4775_v40 }
 0x97b   : > { %v4989_v29 = vunpack.c.l.b16 %v4805_v43  ;;  %v4833_v43 = vunpack.c.l.b16 %v2594_v41 }
 0x97c   : > { %v4784_v46 = vpop.f32.mrf.mxu1 }
 0x97e   : > { %v4727_v22 = vpop.f32.mrf.mxu2 }
 0x97f   : > { %v4777_v7 = vadd.f32 %v4776_v28, %v4727_v22  ;;  %v4834_v28 = vunpack.c.l.b16 %v2595_v33 }
 0x980   : > { %v4779_v56 = vpop.f32.mrf.mxu0 }
 0x981   : > { %v4806_v37 = vpack.c.bf16 %v4777_v7, %v4777_v7  ;;  %v4848_v7 = vpack.c.b16 %v4834_v28, %v4833_v43  ;;  %v12567_v28 = vld [vmem:[#allocation52_spill] sm:$0xff] }
 0x983   : > { %v4990_v60 = vunpack.c.l.b16 %v4806_v37  ;;  %v4954_v37 = vpop.permute.xlu0 %4953 }
 0x984   : > { %v4786_v6 = vpop.f32.mrf.mxu1 }
 0x985   : > { %v5002_v4 = vpack.c.b16 %v4990_v60, %v4989_v29  ;;  %v5028_v29 = vsel %vm1875_vm0, %v4848_v7, %v4898_v18  ;;  %v12566_v18 = vld [vmem:[#allocation57_spill] sm:$0xff] }
 0x986   : > { %v4730_v55 = vpop.f32.mrf.mxu2 }
 0x987   : > { %5013 = vrot.lane.b32.xlu1 %v5002_v4, %s8910_s21  ;;  %v4780_v15 = vadd.f32 %v4779_v56, %v4730_v55  ;;  %v5051_v56 = vsel %vm5047_vm2, %v5028_v29, %v4954_v37  ;;  %v12569_v29 = vld [vmem:[#allocation50_spill] sm:$0xff] }
 0x988   : > { %v4781_v58 = vpop.f32.mrf.mxu0 }
 0x989   : > { %v4807_v24 = vpack.c.bf16 %v4780_v15, %v4780_v15 }
 0x98b   : > { %v4991_v48 = vunpack.c.l.b16 %v4807_v24  ;;  %v12558_v24 = vld [vmem:[#allocation48_spill] sm:$0xff] }
 0x98c   : > { %v4789_v47 = vpop.f32.mrf.mxu1 }
 0x98e   : > { %v4732_v31 = vpop.f32.mrf.mxu2 }
 0x98f   : > { %v4782_v61 = vadd.f32 %v4781_v58, %v4732_v31  ;;  %v12557_v58 = vld [vmem:[#allocation65_spill] sm:$0xff] }
 0x990   : > { %v2565_v31 = vadd.f32 %v12557_v58, %v12556_v23  ;;  %v12573_v23 = vld [vmem:[#allocation67_spill] sm:$0xff] }
 0x991   : > { %v4808_v21 = vpack.c.bf16 %v4782_v61, %v4782_v61  ;;  %v2596_v61 = vpack.c.bf16 %v12558_v24, %v12558_v24 }
 0x992   : > { %v2597_v38 = vpack.c.bf16 %v2565_v31, %v2565_v31 }
 0x993   : > { %v4992_v52 = vunpack.c.l.b16 %v4808_v21  ;;  %v4835_v54 = vunpack.c.l.b16 %v2596_v61 }
 0x994   : > { %v5008_v25 = vpop.permute.xlu2 %5007  ;;  %v4791_v53 = vpop.f32.mrf.mxu1  ;;  %v4836_v63 = vunpack.c.l.b16 %v2597_v38 }
 0x995   : > { %v5003_v57 = vpack.c.b16 %v4992_v52, %v4991_v48  ;;  %v5066_v44 = vsel %vm5064_vm1, %v5049_v2, %v5008_v25  ;;  %v12559_v48 = vld [vmem:[#allocation64_spill] sm:$0xff]  ;;  %v12560_v52 = vld [vmem:[#allocation62_spill] sm:$0xff]  ;;  %v4956_v25 = vpop.permute.xlu0 %4955 }
 0x996   : > { %v4735_v19 = vpop.f32.mrf.mxu2  ;;  %5165 = vmatmul.bf16.vlgmr.msra.gmra.mxu3 %v5066_v44  ;;  %v4849_v21 = vpack.c.b16 %v4836_v63, %v4835_v54  ;;  %v2570_v2 = vadd.f32 %v12560_v52, %v12559_v48  ;;  %v12574_v63 = vld [vmem:[#allocation54_spill] sm:$0xff]  ;;  %v12575_v54 = vld [vmem:[#allocation53_spill] sm:$0xff]  ;;  %v8470_v52 = vld [vmem:[%s9268_s0] sm:$0xff] }
 0x997   : > { %5015 = vrot.lane.b32.xlu1 %v5003_v57, %s8910_s21  ;;  %v4785_v8 = vadd.f32 %v4784_v46, %v4735_v19  ;;  %v12562_v19 = vld [vmem:[#allocation66_spill] sm:$0xff] }
 0x999   : > { %v4809_v51 = vpack.c.bf16 %v4785_v8, %v4785_v8 }
 0x99b   : > { %v4993_v36 = vunpack.c.l.b16 %v4809_v51  ;;  %v2599_v51 = vpack.c.bf16 %v2570_v2, %v2570_v2 }
 0x99c   : > { %v4794_v14 = vpop.f32.mrf.mxu1  ;;  %v4900_v27 = vpop.permute.xlu2 %4899 }
 0x99d   : > { %v5031_v32 = vsel %vm1875_vm0, %v4849_v21, %v4900_v27  ;;  %v4958_v26 = vpop.permute.xlu0 %4957  ;;  %v2583_v27 = vadd.f32 %v12575_v54, %v12574_v63 }
 0x99e   : > { %v4737_v5 = vpop.f32.mrf.mxu2  ;;  %v5053_v44 = vsel %vm5047_vm2, %v5031_v32, %v4956_v25 }
 0x99f   : > { %v4787_v20 = vadd.f32 %v4786_v6, %v4737_v5  ;;  %v12561_v6 = vld [vmem:[#allocation63_spill] sm:$0xff]  ;;  %v2604_v25 = vpack.c.bf16 %v2583_v27, %v2583_v27 }
 0x9a0   : > { %v2568_v8 = vadd.f32 %v12562_v19, %v12561_v6  ;;  %v8478_v27 = vld [vmem:[%s9268_s0 + $0x40] sm:$0xff] }
 0x9a1   : > { %v4810_v1 = vpack.c.bf16 %v4787_v20, %v4787_v20  ;;  %v4843_v6 = vunpack.c.l.b16 %v2604_v25 }
 0x9a2   : > { %v2598_v20 = vpack.c.bf16 %v2568_v8, %v2568_v8 }
 0x9a3   : > { %v4994_v13 = vunpack.c.l.b16 %v4810_v1 }
 0x9a4   : > { %v4796_v42 = vpop.f32.mrf.mxu1  ;;  %v4837_v1 = vunpack.c.l.b16 %v2598_v20 }
 0x9a5   : > { %v5004_v9 = vpack.c.b16 %v4994_v13, %v4993_v36  ;;  %v4902_v36 = vpop.permute.xlu2 %4901  ;;  %v4960_v43 = vpop.permute.xlu0 %4959 }
 0x9a6   : > { %v4740_v50 = vpop.f32.mrf.mxu2 }
 0x9a7   : > { %5017 = vrot.lane.b32.xlu1 %v5004_v9, %s8910_s21  ;;  %v4790_v35 = vadd.f32 %v4789_v47, %v4740_v50  ;;  %v4838_v47 = vunpack.c.l.b16 %v2599_v51  ;;  %v12563_v50 = vld [vmem:[#allocation60_spill] sm:$0xff] }
 0x9a8   : > { %v8471_v51 = vld [vmem:[%s9268_s0 + $0x8] sm:$0xff] }
 0x9a9   : > { %v4811_v12 = vpack.c.bf16 %v4790_v35, %v4790_v35  ;;  %v4850_v13 = vpack.c.b16 %v4838_v47, %v4837_v1 }
 0x9ab   : > { %v4995_v45 = vunpack.c.l.b16 %v4811_v12  ;;  %v5034_v9 = vsel %vm1875_vm0, %v4850_v13, %v4902_v36 }
 0x9ac   : > { %v5055_v11 = vsel %vm5047_vm2, %v5034_v9, %v4958_v26 }
 0x9ad   : > { %v4962_v31 = vpop.permute.xlu0 %4961 }
 0x9ae   : > { %v4742_v10 = vpop.f32.mrf.mxu2 }
 0x9af   : > { %v4792_v59 = vadd.f32 %v4791_v53, %v4742_v10  ;;  %v12564_v53 = vld [vmem:[#allocation43_spill] sm:$0xff]  ;;  %v12565_v10 = vld [vmem:[#allocation56_spill] sm:$0xff] }
 0x9b0   : > { %v2575_v35 = vadd.f32 %v12564_v53, %v12563_v50  ;;  %v2573_v12 = vadd.f32 %v12566_v18, %v12565_v10  ;;  %v12576_v53 = vld [vmem:[#allocation71_spill] sm:$0xff] }
 0x9b1   : > { %v4812_v49 = vpack.c.bf16 %v4792_v59, %v4792_v59 }
 0x9b2   : > { %v2601_v33 = vpack.c.bf16 %v2575_v35, %v2575_v35  ;;  %v12577_v35 = vld [vmem:[#allocation70_spill] sm:$0xff] }
 0x9b3   : > { %v4996_v3 = vunpack.c.l.b16 %v4812_v49  ;;  %v2600_v49 = vpack.c.bf16 %v2573_v12, %v2573_v12  ;;  %v12578_v26 = vpack.c.b16 %v12576_v53, %v12577_v35 }
 0x9b4   : > { %v4840_v62 = vunpack.c.l.b16 %v2601_v33 }
 0x9b5   : > { %v5005_v40 = vpack.c.b16 %v4996_v3, %v4995_v45  ;;  %v4839_v41 = vunpack.c.l.b16 %v2600_v49  ;;  %v4904_v45 = vpop.permute.xlu2 %4903  ;;  %v4964_v1 = vpop.permute.xlu0 %4963  ;;  %v8472_v49 = vld [vmem:[%s9268_s0 + $0x10] sm:$0xff] }
 0x9b6   : > { %v4745_v22 = vpop.f32.mrf.mxu2 }
 0x9b7   : > { %5019 = vrot.lane.b32.xlu1 %v5005_v40, %s8910_s21  ;;  %v4795_v60 = vadd.f32 %v4794_v14, %v4745_v22  ;;  %v4851_v3 = vpack.c.b16 %v4840_v62, %v4839_v41  ;;  %v12568_v40 = vld [vmem:[#allocation51_spill] sm:$0xff] }
 0x9b8   : > { %v2580_v22 = vadd.f32 %v12568_v40, %v12567_v28 }
 0x9b9   : > { %v4813_v55 = vpack.c.bf16 %v4795_v60, %v4795_v60  ;;  %v5037_v14 = vsel %vm1875_vm0, %v4851_v3, %v4904_v45  ;;  %v12570_v60 = vld [vmem:[#allocation49_spill] sm:$0xff]  ;;  %v8473_v3 = vld [vmem:[%s9268_s0 + $0x18] sm:$0xff] }
 0x9ba   : > { %v5057_v37 = vsel %vm5047_vm2, %v5037_v14, %v4960_v43 }
 0x9bb   : > { %v4997_v34 = vunpack.c.l.b16 %v4813_v55 }
 0x9bc   : > { %v5010_v16 = vpop.permute.xlu1 %5009 }
 0x9bd   : > { %v5069_v30 = vsel %vm5064_vm1, %v5051_v56, %v5010_v16  ;;  %v2578_v56 = vadd.f32 %v12570_v60, %v12569_v29  ;;  %v8475_v29 = vld [vmem:[%s9268_s0 + $0x28] sm:$0xff] }
 0x9be   : > { %v4747_v4 = vpop.f32.mrf.mxu2  ;;  %5170 = vmatmul.bf16.gmra.mxu3 %v5069_v30  ;;  %v2603_v30 = vpack.c.bf16 %v2580_v22, %v2580_v22  ;;  %v8474_v22 = vld [vmem:[%s9268_s0 + $0x20] sm:$0xff] }
 0x9bf   : > { %v4797_v17 = vadd.f32 %v4796_v42, %v4747_v4  ;;  %v2602_v42 = vpack.c.bf16 %v2578_v56, %v2578_v56 }
 0x9c0   : > { %v4842_v4 = vunpack.c.l.b16 %v2603_v30  ;;  %v8476_v30 = vld [vmem:[%s9268_s0 + $0x30] sm:$0xff] }
 0x9c1   : > { %v4814_v0 = vpack.c.bf16 %v4797_v17, %v4797_v17  ;;  %v4841_v55 = vunpack.c.l.b16 %v2602_v42  ;;  %v4906_v17 = vpop.permute.xlu2 %4905 }
 0x9c3   : > { %v4998_v15 = vunpack.c.l.b16 %v4814_v0  ;;  %v4852_v0 = vpack.c.b16 %v4842_v4, %v4841_v55 }
 0x9c5   : > { %v5006_v46 = vpack.c.b16 %v4998_v15, %v4997_v34  ;;  %v5040_v34 = vsel %vm1875_vm0, %v4852_v0, %v4906_v17  ;;  %v11612_v15 = vld [vmem:[%s12571_s14] ss:$0 sm:$0xff]  ;;  %s7411_s14 = sshll.u32 %s12585_s19, 4 }
 0x9c6   : > { %v5059_v61 = vsel %vm5047_vm2, %v5040_v34, %v4962_v31  ;;  %s6477_s26 = sadd.s32 %s7412_s11, %s7411_s14 }
 0x9c7   : > { %5021 = vrot.lane.b32.xlu1 %v5006_v46, %s8910_s21  ;;  %v12572_v46 = vld [vmem:[#allocation68_spill] sm:$0xff] }
 0x9c8   : > { %v2585_v58 = vadd.f32 %v12573_v23, %v12572_v46 }
 0x9c9   : > { %v4908_v8 = vpop.permute.xlu2 %4907 }
 0x9ca   : > { %v2605_v48 = vpack.c.bf16 %v2585_v58, %v2585_v58 }
 0x9d1   : > { %v4910_v50 = vpop.permute.xlu2 %4909 }
 0x9e9   : > { %v5012_v57 = vpop.permute.xlu1 %5011 }
 0x9ea   : > { %v5072_v5 = vsel %vm5064_vm1, %v5053_v44, %v5012_v57  ;;  %v4844_v57 = vunpack.c.l.b16 %v2605_v48 }
 0x9eb   : > { %5175 = vmatmul.bf16.gmra.mxu3 %v5072_v5 }
 0x9ec   : > { %v4853_v5 = vpack.c.b16 %v4844_v57, %v4843_v6 }
 0x9ee   : > { %v5043_v47 = vsel %vm1875_vm0, %v4853_v5, %v4908_v8  ;;  %v8479_v8 = vld [vmem:[%s9268_s0 + $0x48] sm:$0xff] }
 0x9ef   : > { %v5061_v13 = vsel %vm5047_vm2, %v5043_v47, %v4964_v1  ;;  %v8480_v1 = vld [vmem:[%s9268_s0 + $0x50] sm:$0xff] }
 0x9f9   : > { %v5014_v39 = vpop.permute.xlu1 %5013 }
 0x9fa   : > { %v5075_v59 = vsel %vm5064_vm1, %v5055_v11, %v5014_v39  ;;  %v5046_v39 = vsel %vm1875_vm0, %v12578_v26, %v4910_v50  ;;  %v4966_v11 = vpop.permute.xlu0 %4965 }
 0x9fb   : > { %5180 = vmatmul.bf16.gmra.mxu3 %v5075_v59  ;;  %v5063_v18 = vsel %vm5047_vm2, %v5046_v39, %v4966_v11 }
 0xa09   : > { %v5016_v7 = vpop.permute.xlu1 %5015 }
 0xa0a   : > { %v5078_v16 = vsel %vm5064_vm1, %v5057_v37, %v5016_v7 }
 0xa0b   : > { %5185 = vmatmul.bf16.gmra.mxu3 %v5078_v16 }
 0xa19   : > { %v5018_v38 = vpop.permute.xlu1 %5017  ;;  %v5166_v24 = vpop.f32.mrf.mxu3 }
 0xa1a   : > { %v5167_v21 = vadd.f32 %v11612_v15, %v5166_v24  ;;  %v5081_v32 = vsel %vm5064_vm1, %v5059_v61, %v5018_v38  ;;  %v8477_v38 = vld [vmem:[%s9268_s0 + $0x38] sm:$0xff] }
 0xa1b   : > { %5190 = vmatmul.bf16.gmra.mxu3 %v5081_v32 }
 0xa1c   : > { %v5206_v2 = vadd.f32 %v8470_v52, %v5167_v21 }
 0xa1e   : > { %5224 = vadd.xlane.f32.xlu2 %v5206_v2 }
 0xa21   : > { %v5168_v44 = vpop.f32.mrf.mxu3 }
 0xa22   : > { %v5169_v19 = vadd.f32 %v11612_v15, %v5168_v44 }
 0xa24   : > { %v5207_v20 = vadd.f32 %v8471_v51, %v5169_v19 }
 0xa26   : > { %5226 = vadd.xlane.f32.xlu0 %v5207_v20 }
 0xa29   : > { %v5020_v36 = vpop.permute.xlu1 %5019 }
 0xa2a   : > { %v5084_v9 = vsel %vm5064_vm1, %v5061_v13, %v5020_v36 }
 0xa2b   : > { %5195 = vmatmul.bf16.gmra.mxu3 %v5084_v9 }
 0xa39   : > { %v5022_v10 = vpop.permute.xlu1 %5021 }
 0xa3a   : > { %v5087_v12 = vsel %vm5064_vm1, %v5063_v18, %v5022_v10 }
 0xa3b   : > { %5200 = vmatmul.bf16.gmra.mxu3 %v5087_v12  ;;  %v8481_v12 = vld [vmem:[%s9268_s0 + $0x58] sm:$0xff] }
 0xa41   : > { %v5171_v59 = vpop.f32.mrf.mxu3 }
 0xa42   : > { %v5172_v33 = vadd.f32 %v11612_v15, %v5171_v59 }
 0xa44   : > { %v5208_v62 = vadd.f32 %v8472_v49, %v5172_v33  ;;  %v7339_v49 = vld [vmem:[#allocation16 + $0x70] sm:$0xf] }
 0xa46   : > { %5228 = vadd.xlane.f32.xlu1 %v5208_v62 }
 0xa49   : > { %v5173_v41 = vpop.f32.mrf.mxu3 }
 0xa4a   : > { %v5174_v45 = vadd.f32 %v11612_v15, %v5173_v41  ;;  %v7532_v41 = vld [vmem:[#allocation16 + $0x74] sm:$0xf] }
 0xa4c   : > { %v5209_v14 = vadd.f32 %v8473_v3, %v5174_v45 }
 0xa4e   : > { %5230 = vadd.xlane.f32.xlu2 %v5209_v14 }
 0xa6e   : > { %v5176_v28 = vpop.f32.mrf.mxu3 }
 0xa6f   : > { %v5177_v40 = vadd.f32 %v11612_v15, %v5176_v28 }
 0xa71   : > { %v5210_v43 = vadd.f32 %v8474_v22, %v5177_v40 }
 0xa73   : > { %5232 = vadd.xlane.f32.xlu0 %v5210_v43 }
 0xa76   : > { %v5178_v7 = vpop.f32.mrf.mxu3 }
 0xa77   : > { %v5179_v37 = vadd.f32 %v11612_v15, %v5178_v7  ;;  %v7331_v7 = vld [vmem:[#allocation16 + $0x60] sm:$0xf] }
 0xa79   : > { %v5211_v60 = vadd.f32 %v8475_v29, %v5179_v37  ;;  %v7531_v37 = vld [vmem:[#allocation16 + $0x64] sm:$0xf0]  ;;  %v7530_v29 = vld [vmem:[#allocation16 + $0x64] sm:$0xf] }
 0xa7b   : > { %5234 = vadd.xlane.f32.xlu1 %v5211_v60 }
 0xa7e   : > { %v5181_v56 = vpop.f32.mrf.mxu3 }
 0xa7f   : > { %v5182_v16 = vadd.f32 %v11612_v15, %v5181_v56  ;;  %v7332_v56 = vor.u32 %v7531_v37, %v7331_v7  ;;  %v7519_v7 = vld [vmem:[#allocation16 + $0x4] sm:$0xf0]  ;;  %v7518_v37 = vld [vmem:[#allocation16 + $0x4] sm:$0xf] }
 0xa81   : > { %v11643_v42 = vadd.f32 %v8476_v30, %v5182_v16  ;;  %v7333_v16 = vld [vmem:[#allocation16 + $0x68] sm:$0xf0]  ;;  %v8482_v30 = vld [vmem:[%s9268_s0 + $0x60] sm:$0xff] }
 0xa83   : > { %5236 = vadd.xlane.f32.xlu1 %v11643_v42 }
 0xa86   : > { %v5183_v0 = vpop.f32.mrf.mxu3 }
 0xa87   : > { %v5184_v23 = vadd.f32 %v11612_v15, %v5183_v0  ;;  %v7336_v0 = vor.u32 %v7530_v29, %v7333_v16  ;;  %v7285_v29 = vld [vmem:[#allocation16 + $0x8] sm:$0xf0] }
 0xa89   : > { %v11654_v24 = vadd.f32 %v8477_v38, %v5184_v23 }
 0xa8e   : > { %v5186_v63 = vpop.f32.mrf.mxu3 }
 0xa8f   : > { %v5187_v54 = vadd.f32 %v11612_v15, %v5186_v63  ;;  %v7315_v63 = vld [vmem:[#allocation16 + $0x40] sm:$0xf] }
 0xa91   : > { %v5225_v4 = vpop.xlane.xlu2 %5224  ;;  %v11661_v21 = vadd.f32 %v8478_v27, %v5187_v54  ;;  %v7527_v54 = vld [vmem:[#allocation16 + $0x44] sm:$0xf0]  ;;  %v7526_v27 = vld [vmem:[#allocation16 + $0x44] sm:$0xf] }
 0xa92   : > { %v5256_v55 = vmul.f32 0.0078125, %v5225_v4 }
 0xa94   : > { %v11646_v17 = vsub.f32 %v5206_v2, %v5256_v55 }
 0xa96   : > { %v5288_v34 = vmul.f32 %v11646_v17, %v11646_v17  ;;  %v5188_v2 = vpop.f32.mrf.mxu3 }
 0xa97   : > { %v5189_v44 = vadd.f32 %v11612_v15, %v5188_v2  ;;  %v8483_v2 = vld [vmem:[%s9268_s0 + $0x68] sm:$0xff] }
 0xa98   : > { %5304 = vadd.xlane.f32.xlu2 %v5288_v34  ;;  %v7529_v34 = vld [vmem:[#allocation16 + $0x54] sm:$0xf0] }
 0xa99   : > { %v5227_v46 = vpop.xlane.xlu0 %5226  ;;  %v11672_v5 = vadd.f32 %v8479_v8, %v5189_v44  ;;  %v7525_v8 = vld [vmem:[#allocation16 + $0x34] sm:$0xf0] }
 0xa9a   : > { %v5257_v58 = vmul.f32 0.0078125, %v5227_v46  ;;  %v7528_v46 = vld [vmem:[#allocation16 + $0x54] sm:$0xf] }
 0xa9c   : > { %v11651_v31 = vsub.f32 %v5207_v20, %v5257_v58  ;;  %v7325_v58 = vld [vmem:[#allocation16 + $0x58] sm:$0xf0] }
 0xa9e   : > { %v5289_v61 = vmul.f32 %v11651_v31, %v11651_v31  ;;  %v5191_v20 = vpop.f32.mrf.mxu3 }
 0xa9f   : > { %v5192_v47 = vadd.f32 %v11612_v15, %v5191_v20 }
 0xaa0   : > { %5306 = vadd.xlane.f32.xlu0 %v5289_v61  ;;  %5238 = vadd.xlane.f32.xlu2 %v11654_v24  ;;  %v7328_v61 = vor.u32 %v7528_v46, %v7325_v58 }
 0xaa1   : > { %v11679_v36 = vadd.f32 %v8480_v1, %v5192_v47  ;;  %v7309_v47 = vld [vmem:[#allocation16 + $0x38] sm:$0xf0] }
 0xaa6   : > { %v5193_v13 = vpop.f32.mrf.mxu3 }
 0xaa7   : > { %v5194_v39 = vadd.f32 %v11612_v15, %v5193_v13 }
 0xaa8   : > { %5240 = vadd.xlane.f32.xlu2 %v11661_v21 }
 0xaa9   : > { %v11690_v59 = vadd.f32 %v8481_v12, %v5194_v39  ;;  %v7301_v39 = vld [vmem:[#allocation16 + $0x28] sm:$0xf0] }
 0xaae   : > { %v5196_v10 = vpop.f32.mrf.mxu3 }
 0xaaf   : > { %v5197_v28 = vadd.f32 %v11612_v15, %v5196_v10 }
 0xab1   : > { %v11700_v4 = vadd.f32 %v8482_v30, %v5197_v28  ;;  %v7293_v28 = vld [vmem:[#allocation16 + $0x18] sm:$0xf0] }
 0xab9   : > { %v5229_v32 = vpop.xlane.xlu1 %5228 }
 0xaba   : > { %v5258_v48 = vmul.f32 0.0078125, %v5229_v32  ;;  %v7316_v32 = vor.u32 %v7527_v54, %v7315_v63 }
 0xabc   : > { %v11664_v52 = vsub.f32 %v5208_v62, %v5258_v48  ;;  %v7533_v62 = vld [vmem:[#allocation16 + $0x74] sm:$0xf0]  ;;  %v7317_v48 = vld [vmem:[#allocation16 + $0x48] sm:$0xf0] }
 0xabd   : > { %v7340_v3 = vor.u32 %v7533_v62, %v7339_v49  ;;  %v7291_v62 = vld [vmem:[#allocation16 + $0x10] sm:$0xf] }
 0xabe   : > { %v5290_v25 = vmul.f32 %v11664_v52, %v11664_v52 }
 0xabf   : > { %5692 = vmatpush.bf16.msrb.mxu1 %v7340_v3 }
 0xac0   : > { %5308 = vadd.xlane.f32.xlu0 %v5290_v25 }
 0xac1   : > { %v5231_v57 = vpop.xlane.xlu2 %5230 }
 0xac2   : > { %v5259_v6 = vmul.f32 0.0078125, %v5231_v57  ;;  %v7320_v57 = vor.u32 %v7526_v27, %v7317_v48 }
 0xac3   : > { %5693 = vmatpush.bf16.msrb.mxu1 %v7332_v56  ;;  %v7288_v56 = vor.u32 %v7518_v37, %v7285_v29 }
 0xac4   : > { %v11669_v19 = vsub.f32 %v5209_v14, %v5259_v6  ;;  %v7341_v14 = vld [vmem:[#allocation16 + $0x78] sm:$0xf0]  ;;  %v7307_v6 = vld [vmem:[#allocation16 + $0x30] sm:$0xf] }
 0xac5   : > { %v7344_v22 = vor.u32 %v7532_v41, %v7341_v14  ;;  %v7308_v20 = vor.u32 %v7525_v8, %v7307_v6  ;;  %v7521_v41 = vld [vmem:[#allocation16 + $0x14] sm:$0xf0] }
 0xac6   : > { %v5291_v51 = vmul.f32 %v11669_v19, %v11669_v19  ;;  %v7292_v14 = vor.u32 %v7521_v41, %v7291_v62 }
 0xac7   : > { %5741 = vmatpush.bf16.msrb.mxu2 %v7344_v22 }
 0xac8   : > { %5242 = vadd.xlane.f32.xlu0 %v11672_v5  ;;  %5310 = vadd.xlane.f32.xlu1 %v5291_v51  ;;  %v7524_v51 = vld [vmem:[#allocation16 + $0x34] sm:$0xf] }
 0xac9   : > { %v7312_v13 = vor.u32 %v7524_v51, %v7309_v47 }
 0xacb   : > { %5742 = vmatpush.bf16.msrb.mxu2 %v7336_v0 }
 0xacf   : > { %5743 = vmatpush.bf16.msrb.mxu2 %v7328_v61 }
 0xad0   : > { %5244 = vadd.xlane.f32.xlu0 %v11679_v36 }
 0xad3   : > { %5744 = vmatpush.bf16.msrb.mxu2 %v7320_v57 }
 0xad7   : > { %5745 = vmatpush.bf16.msrb.mxu2 %v7312_v13 }
 0xae6   : > { %v5233_v9 = vpop.xlane.xlu0 %5232 }
 0xae7   : > { %v5260_v50 = vmul.f32 0.0078125, %v5233_v9  ;;  %v7299_v9 = vld [vmem:[#allocation16 + $0x20] sm:$0xf] }
 0xae9   : > { %v11682_v53 = vsub.f32 %v5210_v43, %v5260_v50  ;;  %v7523_v50 = vld [vmem:[#allocation16 + $0x24] sm:$0xf0] }
 0xaeb   : > { %v5292_v35 = vmul.f32 %v11682_v53, %v11682_v53 }
 0xaed   : > { %5312 = vadd.xlane.f32.xlu1 %v5292_v35  ;;  %v7522_v35 = vld [vmem:[#allocation16 + $0x24] sm:$0xf] }
 0xaee   : > { %v5235_v26 = vpop.xlane.xlu1 %5234 }
 0xaef   : > { %v5261_v11 = vmul.f32 0.0078125, %v5235_v26  ;;  %v7300_v26 = vor.u32 %v7523_v50, %v7299_v9  ;;  %v8485_v9 = vld [vmem:[%s9268_s0 + $0x78] sm:$0xff] }
 0xaf1   : > { %v11687_v18 = vsub.f32 %v5211_v60, %v5261_v11  ;;  %v5198_v60 = vpop.f32.mrf.mxu3  ;;  %v8484_v11 = vld [vmem:[%s9268_s0 + $0x70] sm:$0xff] }
 0xaf2   : > { %v5199_v38 = vadd.f32 %v11612_v15, %v5198_v60 }
 0xaf3   : > { %v5293_v33 = vmul.f32 %v11687_v18, %v11687_v18 }
 0xaf4   : > { %v11707_v25 = vadd.f32 %v8483_v2, %v5199_v38 }
 0xaf5   : > { %5314 = vadd.xlane.f32.xlu2 %v5293_v33  ;;  %5246 = vadd.xlane.f32.xlu1 %v11690_v59  ;;  %v7304_v33 = vor.u32 %v7522_v35, %v7301_v39 }
 0xaf6   : > { %v5237_v45 = vpop.xlane.xlu1 %5236 }
 0xaf7   : > { %v5262_v40 = vmul.f32 0.0078125, %v5237_v45  ;;  %v7520_v45 = vld [vmem:[#allocation16 + $0x14] sm:$0xf]  ;;  %5746 = vmatpush.bf16.msrb.mxu2 %v7304_v33 }
 0xaf8   : > { %v7296_v22 = vor.u32 %v7520_v45, %v7293_v28 }
 0xaf9   : > { %v11697_v43 = vsub.f32 %v11643_v42, %v5262_v40  ;;  %v7323_v42 = vld [vmem:[#allocation16 + $0x50] sm:$0xf]  ;;  %v5201_v44 = vpop.f32.mrf.mxu3  ;;  %v7283_v40 = vld [vmem:[#allocation16] sm:$0xf] }
 0xafa   : > { %v7324_v23 = vor.u32 %v7529_v34, %v7323_v42  ;;  %v5202_v1 = vadd.f32 %v11612_v15, %v5201_v44  ;;  %v7284_v60 = vor.u32 %v7519_v7, %v7283_v40 }
 0xafb   : > { %v5294_v55 = vmul.f32 %v11697_v43, %v11697_v43  ;;  %5747 = vmatpush.bf16.msrb.mxu2 %v7296_v22 }
 0xafc   : > { %5694 = vmatpush.bf16.msrb.mxu1 %v7324_v23  ;;  %v11712_v10 = vadd.f32 %v8484_v11, %v5202_v1 }
 0xafd   : > { %5316 = vadd.xlane.f32.xlu2 %v5294_v55  ;;  %5248 = vadd.xlane.f32.xlu1 %v11700_v4 }
 0xaff   : > { %5748 = vmatpush.bf16.msrb.mxu2 %v7288_v56 }
 0xb00   : > { %5695 = vmatpush.bf16.msrb.mxu1 %v7316_v32 }
 0xb01   : > { %v5203_v44 = vpop.f32.mrf.mxu3 }
 0xb04   : > { %5696 = vmatpush.bf16.msrb.mxu1 %v7308_v20  ;;  %v5204_v20 = vadd.f32 %v11612_v15, %v5203_v44  ;;  %v11738_v15 = vld [vmem:[%s12580_s10] ss:$0 sm:$0xff]  ;;  %s12587_s10 = sld [smem:[#allocation109_spill]] }
 0xb05   : > { %5250 = vadd.xlane.f32.xlu2 %v11707_v25 }
 0xb06   : > { %v11733_v50 = vadd.f32 %v8485_v9, %v5204_v20 }
 0xb08   : > { %5697 = vmatpush.bf16.msrb.mxu1 %v7300_v26 }
 0xb0a   : > { %s8776_s9 = scalar_lea.hbm %s12587_s10, 512 }
 0xb0b   : > { %v5305_v12 = vpop.xlane.xlu2 %5304 }
 0xb0c   : > { %v5336_v49 = vmul.f32 0.0078125, %v5305_v12  ;;  %5698 = vmatpush.bf16.msrb.mxu1 %v7292_v14 }
 0xb0d   : > { %5252 = vadd.xlane.f32.xlu2 %v11712_v10 }
 0xb0e   : > { %v5352_v3 = vadd.f32 1e-05, %v5336_v49 }
 0xb10   : > { %8366 = vrsqrt.f32 %v5352_v3  ;;  %5699 = vmatpush.bf16.msrb.mxu1 %v7284_v60  ;;  %vm5374_vm4 = vweird.f32 %v5352_v3 }
 0xb13   : > { %v5307_v16 = vpop.xlane.xlu0 %5306  ;;  %v5239_v30 = vpop.xlane.xlu2 %5238 }
 0xb14   : > { %v5337_v55 = vmul.f32 0.0078125, %v5307_v16  ;;  %v5263_v0 = vmul.f32 0.0078125, %v5239_v30 }
 0xb16   : > { %v8367_v42 = vpop.eup %8366  ;;  %v5353_v34 = vadd.f32 1e-05, %v5337_v55  ;;  %v11716_v46 = vsub.f32 %v11654_v24, %v5263_v0 }
 0xb17   : > { %v5369_v23 = vmul.f32 %v8367_v42, %v5352_v3  ;;  %vm5375_vm3 = vweird.f32 %v8367_v42 }
 0xb18   : > { %8368 = vrsqrt.f32 %v5353_v34  ;;  %v5295_v58 = vmul.f32 %v11716_v46, %v11716_v46  ;;  %vm5376_vm5 = vmor %vm5374_vm4, %vm5375_vm3  ;;  %vm5384_vm7 = vweird.f32 %v5353_v34 }
 0xb19   : > { %v5370_v38 = vmul.f32 %v8367_v42, %v5369_v23 }
 0xb1a   : > { %5318 = vadd.xlane.f32.xlu0 %v5295_v58 }
 0xb1b   : > { %v5371_v61 = vmul.f32 0.5, %v5370_v38  ;;  %v5241_v63 = vpop.xlane.xlu2 %5240 }
 0xb1c   : > { %v5264_v54 = vmul.f32 0.0078125, %v5241_v63 }
 0xb1d   : > { %v5372_v27 = vsub.f32 1.5, %v5371_v61 }
 0xb1e   : > { %v8369_v32 = vpop.eup %8368  ;;  %v11721_v48 = vsub.f32 %v11661_v21, %v5264_v54  ;;  %v11729_v21 = vld [vmem:[%s12579_s16] ss:$0 sm:$0xff]  ;;  %s7413_s16 = sshll.u32 %s6477_s26, 3 }
 0xb1f   : > { %v5373_v2 = vmul.f32 %v8367_v42, %v5372_v27  ;;  %v5379_v24 = vmul.f32 %v8369_v32, %v5353_v34  ;;  %vm5385_vm6 = vweird.f32 %v8369_v32  ;;  %s6479_s17 = scalar_lea.hbm %s12587_s10, %s7413_s16 }
 0xb20   : > { %v5296_v57 = vmul.f32 %v11721_v48, %v11721_v48  ;;  %vm5386_vm8 = vmor %vm5384_vm7, %vm5385_vm6  ;;  %s6482_s6 = sshll.u32 %s6479_s17, 4  ;;  %s6483_s6 = int_to_ptr.hbm [resolvable:$true] %s6482_s6 }
 0xb21   : > { %v5380_v6 = vmul.f32 %v8369_v32, %v5379_v24  ;;  %v5377_v8 = vsel %vm5376_vm5, %v8367_v42, %v5373_v2 }
 0xb22   : > { %5320 = vadd.xlane.f32.xlu0 %v5296_v57  ;;  %v5528_v1 = vmul.f32 %v5377_v8, %v11646_v17 }
 0xb23   : > { %v5381_v51 = vmul.f32 0.5, %v5380_v6 }
 0xb24   : > { %v5547_v26 = vmul.f32 %v11729_v21, %v5528_v1 }
 0xb25   : > { %v5382_v47 = vsub.f32 1.5, %v5381_v51 }
 0xb26   : > { %v11745_v11 = vadd.f32 %v11738_v15, %v5547_v26 }
 0xb27   : > { %v5383_v13 = vmul.f32 %v8369_v32, %v5382_v47 }
 0xb29   : > { %v5387_v35 = vsel %vm5386_vm8, %v8369_v32, %v5383_v13 }
 0xb2a   : > { %v5529_v39 = vmul.f32 %v5387_v35, %v11651_v31  ;;  %5254 = vadd.xlane.f32.xlu0 %v11733_v50 }
 0xb2c   : > { %v5548_v17 = vmul.f32 %v11729_v21, %v5529_v39 }
 0xb2e   : > { %v11748_v12 = vadd.f32 %v11738_v15, %v5548_v17 }
 0xb30   : > { %v5582_v33 = vpack.c.bf16 %v11748_v12, %v11745_v11 }
 0xb32   : > { %5700 = vmatmul.bf16.vlgmr.msrb.gmra.mxu1 %v5582_v33  ;;  %5749 = vmatmul.bf16.vlgmr.msrb.gmra.mxu2 %v5582_v33 }
 0xb33   : > { %v5309_v49 = vpop.xlane.xlu0 %5308 }
 0xb34   : > { %v5338_v62 = vmul.f32 0.0078125, %v5309_v49 }
 0xb36   : > { %v5354_v41 = vadd.f32 1e-05, %v5338_v62 }
 0xb38   : > { %8370 = vrsqrt.f32 %v5354_v41  ;;  %vm5394_vm10 = vweird.f32 %v5354_v41 }
 0xb3b   : > { %v5243_v31 = vpop.xlane.xlu0 %5242  ;;  %v5311_v45 = vpop.xlane.xlu1 %5310 }
 0xb3c   : > { %v5265_v3 = vmul.f32 0.0078125, %v5243_v31  ;;  %v5339_v14 = vmul.f32 0.0078125, %v5311_v45 }
 0xb3e   : > { %v8371_v28 = vpop.eup %8370  ;;  %v11753_v40 = vsub.f32 %v11672_v5, %v5265_v3  ;;  %v5355_v22 = vadd.f32 1e-05, %v5339_v14 }
 0xb3f   : > { %v5389_v7 = vmul.f32 %v8371_v28, %v5354_v41  ;;  %vm5395_vm9 = vweird.f32 %v8371_v28 }
 0xb40   : > { %8372 = vrsqrt.f32 %v5355_v22  ;;  %v5297_v37 = vmul.f32 %v11753_v40, %v11753_v40  ;;  %vm5396_vm11 = vmor %vm5394_vm10, %vm5395_vm9  ;;  %vm5404_vm13 = vweird.f32 %v5355_v22 }
 0xb41   : > { %v5390_v29 = vmul.f32 %v8371_v28, %v5389_v7 }
 0xb42   : > { %5322 = vadd.xlane.f32.xlu1 %v5297_v37 }
 0xb43   : > { %v5391_v60 = vmul.f32 0.5, %v5390_v29  ;;  %v5245_v56 = vpop.xlane.xlu0 %5244 }
 0xb44   : > { %v5266_v16 = vmul.f32 0.0078125, %v5245_v56 }
 0xb45   : > { %v5392_v30 = vsub.f32 1.5, %v5391_v60 }
 0xb46   : > { %v8373_v55 = vpop.eup %8372  ;;  %v11758_v0 = vsub.f32 %v11679_v36, %v5266_v16 }
 0xb47   : > { %v5393_v42 = vmul.f32 %v8371_v28, %v5392_v30  ;;  %v5399_v5 = vmul.f32 %v8373_v55, %v5355_v22  ;;  %vm5405_vm12 = vweird.f32 %v8373_v55 }
 0xb48   : > { %v5298_v34 = vmul.f32 %v11758_v0, %v11758_v0  ;;  %vm5406_vm14 = vmor %vm5404_vm13, %vm5405_vm12 }
 0xb49   : > { %v5400_v23 = vmul.f32 %v8373_v55, %v5399_v5  ;;  %v5397_v58 = vsel %vm5396_vm11, %v8371_v28, %v5393_v42 }
 0xb4a   : > { %5324 = vadd.xlane.f32.xlu1 %v5298_v34  ;;  %v5530_v63 = vmul.f32 %v5397_v58, %v11664_v52 }
 0xb4b   : > { %v5401_v38 = vmul.f32 0.5, %v5400_v23 }
 0xb4c   : > { %v5549_v32 = vmul.f32 %v11729_v21, %v5530_v63 }
 0xb4d   : > { %v5402_v61 = vsub.f32 1.5, %v5401_v38 }
 0xb4e   : > { %v11767_v24 = vadd.f32 %v11738_v15, %v5549_v32  ;;  %v7540_v32 = vld [vmem:[#allocation18 + $0x30] sm:$0xff] }
 0xb4f   : > { %v5403_v54 = vmul.f32 %v8373_v55, %v5402_v61 }
 0xb51   : > { %v5407_v36 = vsel %vm5406_vm14, %v8373_v55, %v5403_v54 }
 0xb52   : > { %v5531_v27 = vmul.f32 %v5407_v36, %v11669_v19 }
 0xb54   : > { %v5550_v2 = vmul.f32 %v11729_v21, %v5531_v27 }
 0xb56   : > { %v11770_v57 = vadd.f32 %v11738_v15, %v5550_v2 }
 0xb58   : > { %v5583_v44 = vpack.c.bf16 %v11770_v57, %v11767_v24 }
 0xb5a   : > { %5705 = vmatmul.bf16.gmra.mxu1 %v5583_v44  ;;  %5754 = vmatmul.bf16.gmra.mxu2 %v5583_v44  ;;  %v7539_v44 = vld [vmem:[#allocation18 + $0x28] sm:$0xff] }
 0xb60   : > { %v5313_v52 = vpop.xlane.xlu1 %5312 }
 0xb61   : > { %v5340_v6 = vmul.f32 0.0078125, %v5313_v52  ;;  %v7548_v52 = vld [vmem:[#allocation18 + $0x70] sm:$0xff] }
 0xb63   : > { %v5356_v8 = vadd.f32 1e-05, %v5340_v6  ;;  %v7538_v6 = vld [vmem:[#allocation18 + $0x20] sm:$0xff] }
 0xb65   : > { %8374 = vrsqrt.f32 %v5356_v8  ;;  %vm5414_vm0 = vweird.f32 %v5356_v8 }
 0xb68   : > { %v5247_v19 = vpop.xlane.xlu1 %5246  ;;  %v5315_v51 = vpop.xlane.xlu2 %5314 }
 0xb69   : > { %v5267_v20 = vmul.f32 0.0078125, %v5247_v19  ;;  %v5341_v47 = vmul.f32 0.0078125, %v5315_v51 }
 0xb6b   : > { %v8375_v1 = vpop.eup %8374  ;;  %v11775_v13 = vsub.f32 %v11690_v59, %v5267_v20  ;;  %v5357_v9 = vadd.f32 1e-05, %v5341_v47  ;;  %v7547_v20 = vld [vmem:[#allocation18 + $0x68] sm:$0xff] }
 0xb6c   : > { %v5409_v35 = vmul.f32 %v8375_v1, %v5356_v8  ;;  %vm5415_vm15 = vweird.f32 %v8375_v1 }
 0xb6d   : > { %8376 = vrsqrt.f32 %v5357_v9  ;;  %v5299_v26 = vmul.f32 %v11775_v13, %v11775_v13  ;;  %vm5416_vm1 = vmor %vm5414_vm0, %vm5415_vm15  ;;  %vm5424_vm3 = vweird.f32 %v5357_v9 }
 0xb6e   : > { %v5410_v39 = vmul.f32 %v8375_v1, %v5409_v35  ;;  %v7546_v35 = vld [vmem:[#allocation18 + $0x60] sm:$0xff] }
 0xb6f   : > { %5326 = vadd.xlane.f32.xlu2 %v5299_v26  ;;  %v7536_v26 = vld [vmem:[#allocation18 + $0x10] sm:$0xff] }
 0xb70   : > { %v5411_v17 = vmul.f32 0.5, %v5410_v39  ;;  %v5249_v33 = vpop.xlane.xlu1 %5248  ;;  %v5317_v49 = vpop.xlane.xlu2 %5316 }
 0xb71   : > { %v5268_v62 = vmul.f32 0.0078125, %v5249_v33  ;;  %v5342_v37 = vmul.f32 0.0078125, %v5317_v49  ;;  %v7545_v33 = vld [vmem:[#allocation18 + $0x58] sm:$0xff] }
 0xb72   : > { %v5412_v41 = vsub.f32 1.5, %v5411_v17 }
 0xb73   : > { %v8377_v31 = vpop.eup %8376  ;;  %v11780_v45 = vsub.f32 %v11700_v4, %v5268_v62  ;;  %v5358_v55 = vadd.f32 1e-05, %v5342_v37  ;;  %v7534_v37 = vld [vmem:[#allocation18] sm:$0xff] }
 0xb74   : > { %v5413_v3 = vmul.f32 %v8375_v1, %v5412_v41  ;;  %v5419_v59 = vmul.f32 %v8377_v31, %v5357_v9  ;;  %vm5425_vm2 = vweird.f32 %v8377_v31  ;;  %v7537_v9 = vld [vmem:[#allocation18 + $0x18] sm:$0xff] }
 0xb75   : > { %v5300_v14 = vmul.f32 %v11780_v45, %v11780_v45  ;;  %vm5426_vm4 = vmor %vm5424_vm3, %vm5425_vm2  ;;  %8378 = vrsqrt.f32 %v5358_v55  ;;  %vm5434_vm6 = vweird.f32 %v5358_v55 }
 0xb76   : > { %v5420_v28 = vmul.f32 %v8377_v31, %v5419_v59  ;;  %v5417_v22 = vsel %vm5416_vm1, %v8375_v1, %v5413_v3  ;;  %v7544_v59 = vld [vmem:[#allocation18 + $0x50] sm:$0xff] }
 0xb77   : > { %5328 = vadd.xlane.f32.xlu0 %v5300_v14  ;;  %v5532_v4 = vmul.f32 %v5417_v22, %v11682_v53 }
 0xb78   : > { %v5421_v7 = vmul.f32 0.5, %v5420_v28  ;;  %v5251_v29 = vpop.xlane.xlu2 %5250 }
 0xb79   : > { %v5269_v60 = vmul.f32 0.0078125, %v5251_v29  ;;  %v5551_v23 = vmul.f32 %v11729_v21, %v5532_v4 }
 0xb7a   : > { %v5422_v56 = vsub.f32 1.5, %v5421_v7 }
 0xb7b   : > { %v11786_v16 = vsub.f32 %v11707_v25, %v5269_v60  ;;  %v7541_v25 = vld [vmem:[#allocation18 + $0x38] sm:$0xff]  ;;  %v11797_v63 = vadd.f32 %v11738_v15, %v5551_v23  ;;  %v8379_v27 = vpop.eup %8378 }
 0xb7c   : > { %v5423_v30 = vmul.f32 %v8377_v31, %v5422_v56  ;;  %5970 = vmatpush.bf16.msrb.mxu0 %v7541_v25  ;;  %v5429_v2 = vmul.f32 %v8379_v27, %v5358_v55  ;;  %vm5435_vm5 = vweird.f32 %v8379_v27 }
 0xb7d   : > { %v5301_v42 = vmul.f32 %v11786_v16, %v11786_v16  ;;  %vm5436_vm7 = vmor %vm5434_vm6, %vm5435_vm5 }
 0xb7e   : > { %v5427_v5 = vsel %vm5426_vm4, %v8377_v31, %v5423_v30  ;;  %v5430_v8 = vmul.f32 %v8379_v27, %v5429_v2  ;;  %v7535_v31 = vld [vmem:[#allocation18 + $0x8] sm:$0xff] }
 0xb7f   : > { %v5533_v34 = vmul.f32 %v5427_v5, %v11687_v18  ;;  %5330 = vadd.xlane.f32.xlu1 %v5301_v42  ;;  %v7543_v30 = vld [vmem:[#allocation18 + $0x48] sm:$0xff] }
 0xb80   : > { %v5253_v58 = vpop.xlane.xlu2 %5252  ;;  %5971 = vmatpush.bf16.msrb.mxu0 %v7540_v32  ;;  %v5431_v1 = vmul.f32 0.5, %v5430_v8 }
 0xb81   : > { %v5270_v38 = vmul.f32 0.0078125, %v5253_v58  ;;  %v5552_v53 = vmul.f32 %v11729_v21, %v5533_v34  ;;  %v7542_v58 = vld [vmem:[#allocation18 + $0x40] sm:$0xff] }
 0xb82   : > { %v5432_v39 = vsub.f32 1.5, %v5431_v1 }
 0xb83   : > { %v11794_v61 = vsub.f32 %v11712_v10, %v5270_v38  ;;  %v11800_v54 = vadd.f32 %v11738_v15, %v5552_v53  ;;  %v7549_v10 = vld [vmem:[#allocation18 + $0x78] sm:$0xff] }
 0xb84   : > { %6019 = vmatpush.bf16.msrb.mxu3 %v7549_v10  ;;  %5972 = vmatpush.bf16.msrb.mxu0 %v7539_v44  ;;  %v5433_v62 = vmul.f32 %v8379_v27, %v5432_v39 }
 0xb85   : > { %v5584_v18 = vpack.c.bf16 %v11800_v54, %v11797_v63  ;;  %v5302_v36 = vmul.f32 %v11794_v61, %v11794_v61 }
 0xb86   : > { %v5437_v14 = vsel %vm5436_vm7, %v8379_v27, %v5433_v62 }
 0xb87   : > { %5710 = vmatmul.bf16.gmra.mxu1 %v5584_v18  ;;  %5759 = vmatmul.bf16.gmra.mxu2 %v5584_v18  ;;  %v5534_v60 = vmul.f32 %v5437_v14, %v11697_v43  ;;  %v5606_v18 = vld [vmem:[%s12581_s5] sm:$0x3]  ;;  %s6480_s5 = sshll.u32 %s9297_s30, 4  ;;  %s6481_s5 = int_to_ptr.vmem [resolvable:$true] %s6480_s5 }
 0xb88   : > { %5332 = vadd.xlane.f32.xlu2 %v5302_v36  ;;  %6020 = vmatpush.bf16.msrb.mxu3 %v7548_v52  ;;  %v11826_v32 = vperm.slane %v5606_v18, 0 }
 0xb89   : > { %5973 = vmatpush.bf16.msrb.mxu0 %v7538_v6  ;;  %v5553_v43 = vmul.f32 %v11729_v21, %v5534_v60 }
 0xb8b   : > { %v11816_v38 = vadd.f32 %v11738_v15, %v5553_v43 }
 0xb8c   : > { %6021 = vmatpush.bf16.msrb.mxu3 %v7547_v20 }
 0xb8d   : > { %v5319_v19 = vpop.xlane.xlu0 %5318  ;;  %5974 = vmatpush.bf16.msrb.mxu0 %v7537_v9 }
 0xb8e   : > { %v5343_v51 = vmul.f32 0.0078125, %v5319_v19 }
 0xb90   : > { %v5359_v47 = vadd.f32 1e-05, %v5343_v51  ;;  %6022 = vmatpush.bf16.msrb.mxu3 %v7546_v35  ;;  %v11829_v51 = vperm.slane %v5606_v18, 1 }
 0xb91   : > { %5975 = vmatpush.bf16.msrb.mxu0 %v7536_v26 }
 0xb92   : > { %8380 = vrsqrt.f32 %v5359_v47  ;;  %vm5444_vm9 = vweird.f32 %v5359_v47 }
 0xb94   : > { %6023 = vmatpush.bf16.msrb.mxu3 %v7545_v33 }
 0xb95   : > { %v5321_v17 = vpop.xlane.xlu0 %5320  ;;  %5976 = vmatpush.bf16.msrb.mxu0 %v7535_v31 }
 0xb96   : > { %v5344_v56 = vmul.f32 0.0078125, %v5321_v17 }
 0xb98   : > { %v8381_v49 = vpop.eup %8380  ;;  %6024 = vmatpush.bf16.msrb.mxu3 %v7544_v59  ;;  %v5360_v23 = vadd.f32 1e-05, %v5344_v56 }
 0xb99   : > { %v5439_v41 = vmul.f32 %v8381_v49, %v5359_v47  ;;  %vm5445_vm8 = vweird.f32 %v8381_v49  ;;  %5977 = vmatpush.bf16.msrb.mxu0 %v7534_v37 }
 0xb9a   : > { %vm5446_vm10 = vmor %vm5444_vm9, %vm5445_vm8  ;;  %8382 = vrsqrt.f32 %v5360_v23  ;;  %vm5454_vm12 = vweird.f32 %v5360_v23 }
 0xb9b   : > { %v5440_v3 = vmul.f32 %v8381_v49, %v5439_v41 }
 0xb9c   : > { %6025 = vmatpush.bf16.msrb.mxu3 %v7543_v30 }
 0xb9d   : > { %v5441_v28 = vmul.f32 0.5, %v5440_v3  ;;  %v5255_v22 = vpop.xlane.xlu0 %5254 }
 0xb9e   : > { %v5271_v7 = vmul.f32 0.0078125, %v5255_v22 }
 0xb9f   : > { %v5442_v29 = vsub.f32 1.5, %v5441_v28 }
 0xba0   : > { %v11808_v4 = vsub.f32 %v11733_v50, %v5271_v7  ;;  %6026 = vmatpush.bf16.msrb.mxu3 %v7542_v58 }
 0xba1   : > { %v5443_v55 = vmul.f32 %v8381_v49, %v5442_v29 }
 0xba2   : > { %v5303_v42 = vmul.f32 %v11808_v4, %v11808_v4 }
 0xba3   : > { %v5447_v5 = vsel %vm5446_vm10, %v8381_v49, %v5443_v55 }
 0xba4   : > { %v5535_v34 = vmul.f32 %v5447_v5, %v11716_v46  ;;  %5334 = vadd.xlane.f32.xlu0 %v5303_v42  ;;  %v8383_v46 = vpop.eup %8382 }
 0xba5   : > { %v5449_v27 = vmul.f32 %v8383_v46, %v5360_v23  ;;  %vm5455_vm11 = vweird.f32 %v8383_v46 }
 0xba6   : > { %v5554_v50 = vmul.f32 %v11729_v21, %v5535_v34  ;;  %vm5456_vm13 = vmor %vm5454_vm12, %vm5455_vm11 }
 0xba7   : > { %v5450_v10 = vmul.f32 %v8383_v46, %v5449_v27 }
 0xba8   : > { %v11819_v53 = vadd.f32 %v11738_v15, %v5554_v50 }
 0xba9   : > { %v5451_v47 = vmul.f32 0.5, %v5450_v10 }
 0xbaa   : > { %v5585_v25 = vpack.c.bf16 %v11819_v53, %v11816_v38 }
 0xbab   : > { %v5452_v39 = vsub.f32 1.5, %v5451_v47 }
 0xbac   : > { %5715 = vmatmul.bf16.gmra.mxu1 %v5585_v25  ;;  %5764 = vmatmul.bf16.gmra.mxu2 %v5585_v25 }
 0xbad   : > { %v5453_v31 = vmul.f32 %v8383_v46, %v5452_v39 }
 0xbaf   : > { %v5701_v36 = vpop.f32.mrf.mxu1  ;;  %v5457_v28 = vsel %vm5456_vm13, %v8383_v46, %v5453_v31 }
 0xbb0   : > { %v5702_v52 = vadd.f32 %v5701_v36, %v11826_v32  ;;  %v5536_v37 = vmul.f32 %v5457_v28, %v11721_v48 }
 0xbb2   : > { %v5790_v1 = vmax.f32 %v5702_v52, 0.0  ;;  %v5555_v55 = vmul.f32 %v11729_v21, %v5536_v37 }
 0xbb4   : > { %v11839_v34 = vadd.f32 %v11738_v15, %v5555_v55 }
 0xbb5   : > { %v5323_v2 = vpop.xlane.xlu1 %5322  ;;  %v5750_v44 = vpop.f32.mrf.mxu2 }
 0xbb6   : > { %v5345_v6 = vmul.f32 0.0078125, %v5323_v2  ;;  %v5751_v35 = vadd.f32 %v5750_v44, %v11829_v51 }
 0xbb7   : > { %v5703_v8 = vpop.f32.mrf.mxu1 }
 0xbb8   : > { %v5361_v19 = vadd.f32 1e-05, %v5345_v6  ;;  %v5704_v20 = vadd.f32 %v5703_v8, %v11826_v32  ;;  %v5791_v62 = vmax.f32 %v5751_v35, 0.0 }
 0xbba   : > { %8384 = vrsqrt.f32 %v5361_v19  ;;  %v5792_v9 = vmax.f32 %v5704_v20, 0.0  ;;  %vm5464_vm15 = vweird.f32 %v5361_v19 }
 0xbbc   : > { %v5822_v26 = vpack.c.bf16 %v5792_v9, %v5790_v1 }
 0xbbd   : > { %v5752_v17 = vpop.f32.mrf.mxu2  ;;  %v5325_v60 = vpop.xlane.xlu1 %5324 }
 0xbbe   : > { %v5753_v33 = vadd.f32 %v5752_v17, %v11829_v51  ;;  %5978 = vmatmul.bf16.vlgmr.msrb.gmra.mxu0 %v5822_v26  ;;  %v5346_v42 = vmul.f32 0.0078125, %v5325_v60 }
 0xbc0   : > { %v8385_v49 = vpop.eup %8384  ;;  %v5793_v41 = vmax.f32 %v5753_v33, 0.0  ;;  %v5362_v43 = vadd.f32 1e-05, %v5346_v42 }
 0xbc1   : > { %v5459_v3 = vmul.f32 %v8385_v49, %v5361_v19  ;;  %vm5465_vm14 = vweird.f32 %v8385_v49 }
 0xbc2   : > { %v5823_v59 = vpack.c.bf16 %v5793_v41, %v5791_v62  ;;  %vm5466_vm0 = vmor %vm5464_vm15, %vm5465_vm14  ;;  %8386 = vrsqrt.f32 %v5362_v43  ;;  %vm5474_vm2 = vweird.f32 %v5362_v43 }
 0xbc3   : > { %v5460_v14 = vmul.f32 %v8385_v49, %v5459_v3 }
 0xbc4   : > { %6027 = vmatmul.bf16.vlgmr.msrb.gmra.mxu3 %v5823_v59 }
 0xbc5   : > { %v5461_v22 = vmul.f32 0.5, %v5460_v14 }
 0xbc7   : > { %v5462_v7 = vsub.f32 1.5, %v5461_v22 }
 0xbc9   : > { %v5463_v29 = vmul.f32 %v8385_v49, %v5462_v7 }
 0xbcb   : > { %v5467_v56 = vsel %vm5466_vm0, %v8385_v49, %v5463_v29 }
 0xbcc   : > { %v5537_v30 = vmul.f32 %v5467_v56, %v11753_v40  ;;  %v8387_v40 = vpop.eup %8386 }
 0xbcd   : > { %v5469_v25 = vmul.f32 %v8387_v40, %v5362_v43  ;;  %vm5475_vm1 = vweird.f32 %v8387_v40 }
 0xbce   : > { %v5556_v5 = vmul.f32 %v11729_v21, %v5537_v30  ;;  %vm5476_vm3 = vmor %vm5474_vm2, %vm5475_vm1 }
 0xbcf   : > { %v5470_v27 = vmul.f32 %v8387_v40, %v5469_v25 }
 0xbd0   : > { %v11842_v23 = vadd.f32 %v11738_v15, %v5556_v5 }
 0xbd1   : > { %v5471_v47 = vmul.f32 0.5, %v5470_v27 }
 0xbd2   : > { %v5586_v48 = vpack.c.bf16 %v11842_v23, %v11839_v34 }
 0xbd3   : > { %v5472_v26 = vsub.f32 1.5, %v5471_v47 }
 0xbd4   : > { %5720 = vmatmul.bf16.gmra.mxu1 %v5586_v48  ;;  %5769 = vmatmul.bf16.gmra.mxu2 %v5586_v48 }
 0xbd5   : > { %v5473_v41 = vmul.f32 %v8387_v40, %v5472_v26 }
 0xbd7   : > { %v5706_v58 = vpop.f32.mrf.mxu1  ;;  %v5477_v59 = vsel %vm5476_vm3, %v8387_v40, %v5473_v41 }
 0xbd8   : > { %v5707_v46 = vadd.f32 %v5706_v58, %v11826_v32  ;;  %v5538_v29 = vmul.f32 %v5477_v59, %v11758_v0 }
 0xbda   : > { %v5794_v10 = vmax.f32 %v5707_v46, 0.0  ;;  %v5557_v43 = vmul.f32 %v11729_v21, %v5538_v29 }
 0xbdc   : > { %v11855_v25 = vadd.f32 %v11738_v15, %v5557_v43 }
 0xbdd   : > { %v5755_v50 = vpop.f32.mrf.mxu2 }
 0xbde   : > { %v5756_v6 = vadd.f32 %v5755_v50, %v11829_v51 }
 0xbdf   : > { %v5708_v18 = vpop.f32.mrf.mxu1 }
 0xbe0   : > { %v5709_v36 = vadd.f32 %v5708_v18, %v11826_v32  ;;  %v5795_v9 = vmax.f32 %v5756_v6, 0.0 }
 0xbe2   : > { %v5796_v2 = vmax.f32 %v5709_v36, 0.0  ;;  %v5327_v44 = vpop.xlane.xlu2 %5326 }
 0xbe3   : > { %v5347_v52 = vmul.f32 0.0078125, %v5327_v44 }
 0xbe4   : > { %v5824_v8 = vpack.c.bf16 %v5796_v2, %v5794_v10 }
 0xbe5   : > { %v5363_v19 = vadd.f32 1e-05, %v5347_v52  ;;  %v5757_v20 = vpop.f32.mrf.mxu2 }
 0xbe6   : > { %v5758_v1 = vadd.f32 %v5757_v20, %v11829_v51  ;;  %5983 = vmatmul.bf16.gmra.mxu0 %v5824_v8 }
 0xbe7   : > { %8388 = vrsqrt.f32 %v5363_v19  ;;  %vm5484_vm5 = vweird.f32 %v5363_v19 }
 0xbe8   : > { %v5797_v35 = vmax.f32 %v5758_v1, 0.0 }
 0xbea   : > { %v5825_v39 = vpack.c.bf16 %v5797_v35, %v5795_v9  ;;  %v5329_v17 = vpop.xlane.xlu0 %5328 }
 0xbeb   : > { %v5348_v33 = vmul.f32 0.0078125, %v5329_v17 }
 0xbec   : > { %6032 = vmatmul.bf16.gmra.mxu3 %v5825_v39 }
 0xbed   : > { %v8389_v49 = vpop.eup %8388  ;;  %v5364_v62 = vadd.f32 1e-05, %v5348_v33 }
 0xbee   : > { %v5479_v31 = vmul.f32 %v8389_v49, %v5363_v19  ;;  %vm5485_vm4 = vweird.f32 %v8389_v49 }
 0xbef   : > { %8390 = vrsqrt.f32 %v5364_v62  ;;  %vm5486_vm6 = vmor %vm5484_vm5, %vm5485_vm4  ;;  %vm5494_vm8 = vweird.f32 %v5364_v62 }
 0xbf0   : > { %v5480_v3 = vmul.f32 %v8389_v49, %v5479_v31 }
 0xbf2   : > { %v5481_v14 = vmul.f32 0.5, %v5480_v3  ;;  %v5331_v28 = vpop.xlane.xlu1 %5330 }
 0xbf3   : > { %v5349_v22 = vmul.f32 0.0078125, %v5331_v28 }
 0xbf4   : > { %v5482_v7 = vsub.f32 1.5, %v5481_v14 }
 0xbf5   : > { %v8391_v37 = vpop.eup %8390  ;;  %v5365_v60 = vadd.f32 1e-05, %v5349_v22 }
 0xbf6   : > { %v5483_v56 = vmul.f32 %v8389_v49, %v5482_v7  ;;  %v5489_v30 = vmul.f32 %v8391_v37, %v5364_v62  ;;  %vm5495_vm7 = vweird.f32 %v8391_v37 }
 0xbf7   : > { %8392 = vrsqrt.f32 %v5365_v60  ;;  %vm5496_vm9 = vmor %vm5494_vm8, %vm5495_vm7  ;;  %vm5504_vm11 = vweird.f32 %v5365_v60 }
 0xbf8   : > { %v5487_v55 = vsel %vm5486_vm6, %v8389_v49, %v5483_v56  ;;  %v5490_v42 = vmul.f32 %v8391_v37, %v5489_v30 }
 0xbf9   : > { %v5539_v5 = vmul.f32 %v5487_v55, %v11775_v13 }
 0xbfa   : > { %v5491_v48 = vmul.f32 0.5, %v5490_v42 }
 0xbfb   : > { %v5558_v58 = vmul.f32 %v11729_v21, %v5539_v5  ;;  %v5333_v36 = vpop.xlane.xlu2 %5332 }
 0xbfc   : > { %v5492_v40 = vsub.f32 1.5, %v5491_v48  ;;  %v5350_v44 = vmul.f32 0.0078125, %v5333_v36 }
 0xbfd   : > { %v8393_v50 = vpop.eup %8392  ;;  %v11858_v0 = vadd.f32 %v11738_v15, %v5558_v58 }
 0xbfe   : > { %v5493_v46 = vmul.f32 %v8391_v37, %v5492_v40  ;;  %v5499_v18 = vmul.f32 %v8393_v50, %v5365_v60  ;;  %vm5505_vm10 = vweird.f32 %v8393_v50  ;;  %v5366_v20 = vadd.f32 1e-05, %v5350_v44 }
 0xbff   : > { %v5587_v13 = vpack.c.bf16 %v11858_v0, %v11855_v25  ;;  %vm5506_vm12 = vmor %vm5504_vm11, %vm5505_vm10 }
 0xc00   : > { %v5500_v27 = vmul.f32 %v8393_v50, %v5499_v18  ;;  %v5497_v10 = vsel %vm5496_vm9, %v8391_v37, %v5493_v46  ;;  %8394 = vrsqrt.f32 %v5366_v20  ;;  %vm5514_vm14 = vweird.f32 %v5366_v20 }
 0xc01   : > { %5725 = vmatmul.bf16.gmra.mxu1 %v5587_v13  ;;  %5774 = vmatmul.bf16.gmra.mxu2 %v5587_v13  ;;  %v5540_v8 = vmul.f32 %v5497_v10, %v11780_v45 }
 0xc02   : > { %v5501_v2 = vmul.f32 0.5, %v5500_v27 }
 0xc03   : > { %v5559_v9 = vmul.f32 %v11729_v21, %v5540_v8 }
 0xc04   : > { %v5502_v52 = vsub.f32 1.5, %v5501_v2  ;;  %v5711_v6 = vpop.f32.mrf.mxu1 }
 0xc05   : > { %v5712_v26 = vadd.f32 %v5711_v6, %v11826_v32  ;;  %v11869_v45 = vadd.f32 %v11738_v15, %v5559_v9 }
 0xc06   : > { %v5503_v19 = vmul.f32 %v8393_v50, %v5502_v52  ;;  %v8395_v31 = vpop.eup %8394 }
 0xc07   : > { %v5798_v62 = vmax.f32 %v5712_v26, 0.0  ;;  %v5509_v28 = vmul.f32 %v8395_v31, %v5366_v20  ;;  %vm5515_vm13 = vweird.f32 %v8395_v31 }
 0xc08   : > { %v5507_v47 = vsel %vm5506_vm12, %v8393_v50, %v5503_v19  ;;  %vm5516_vm15 = vmor %vm5514_vm14, %vm5515_vm13 }
 0xc09   : > { %v5541_v1 = vmul.f32 %v5507_v47, %v11786_v16  ;;  %v5510_v29 = vmul.f32 %v8395_v31, %v5509_v28 }
 0xc0a   : > { %v5760_v35 = vpop.f32.mrf.mxu2 }
 0xc0b   : > { %v5560_v39 = vmul.f32 %v11729_v21, %v5541_v1  ;;  %v5761_v3 = vadd.f32 %v5760_v35, %v11829_v51  ;;  %v5511_v42 = vmul.f32 0.5, %v5510_v29 }
 0xc0c   : > { %v5713_v17 = vpop.f32.mrf.mxu1 }
 0xc0d   : > { %v5714_v33 = vadd.f32 %v5713_v17, %v11826_v32  ;;  %v11872_v49 = vadd.f32 %v11738_v15, %v5560_v39  ;;  %v5799_v7 = vmax.f32 %v5761_v3, 0.0  ;;  %v5512_v5 = vsub.f32 1.5, %v5511_v42 }
 0xc0f   : > { %v5800_v41 = vmax.f32 %v5714_v33, 0.0  ;;  %v5588_v16 = vpack.c.bf16 %v11872_v49, %v11869_v45  ;;  %v5513_v48 = vmul.f32 %v8395_v31, %v5512_v5 }
 0xc11   : > { %v5826_v59 = vpack.c.bf16 %v5800_v41, %v5798_v62  ;;  %5730 = vmatmul.bf16.gmra.mxu1 %v5588_v16  ;;  %5779 = vmatmul.bf16.gmra.mxu2 %v5588_v16  ;;  %v5517_v50 = vsel %vm5516_vm15, %v8395_v31, %v5513_v48  ;;  %v11897_v41 = vld [vmem:[%s12582_s12] ss:$0 sm:$0xff]  ;;  %s8770_s12 = sshra.s32 %s6483_s6, 4  ;;  %s8771_s12 = int_to_ptr.hbm [resolvable:$true] %s8770_s12 }
 0xc12   : > { %v5762_v14 = vpop.f32.mrf.mxu2  ;;  %v5542_v13 = vmul.f32 %v5517_v50, %v11794_v61  ;;  %s8772_s21 = scalar_lea.hbm %s8771_s12, 128  ;;  %p8777_p6 = scmp.lt.s32.totalorder %s8771_s12, %s12587_s10 }
 0xc13   : > { %v5763_v22 = vadd.f32 %v5762_v14, %v11829_v51  ;;  %5988 = vmatmul.bf16.gmra.mxu0 %v5826_v59  ;;  %p8773_p7 = scmp.ne.s32.totalorder %s8771_s12, %s8772_s21  ;;  %p8778_p0 = scmp.lt.s32.totalorder %s8776_s9, %s8772_s21 }
 0xc14   : > { %v5561_v44 = vmul.f32 %v11729_v21, %v5542_v13 }
 0xc15   : > { %v5801_v37 = vmax.f32 %v5763_v22, 0.0  ;;  %p8774_p11 = pnand %p8773_p7, %p9213_p8  ;;  %p8779_p1 = por %p8778_p0, %p8777_p6 }
 0xc16   : > { %v11885_v47 = vadd.f32 %v11738_v15, %v5561_v44 }
 0xc17   : > { %v5827_v60 = vpack.c.bf16 %v5801_v37, %v5799_v7  ;;  %v5335_v56 = vpop.xlane.xlu0 %5334  ;;  %p8775_p2 = pneg %p8774_p11 }
 0xc18   : > { %v5351_v30 = vmul.f32 0.0078125, %v5335_v56 }
 0xc19   : > { %6037 = vmatmul.bf16.gmra.mxu3 %v5827_v60  ;;  %p8780_p3 = pnand %p8779_p1, %p8775_p2 }
 0xc1a   : > { %v5367_v55 = vadd.f32 1e-05, %v5351_v30 }
 0xc1c   : > { %8396 = vrsqrt.f32 %v5367_v55  ;;  %vm5524_vm1 = vweird.f32 %v5367_v55 }
 0xc22   : > { %v8397_v43 = vpop.eup %8396 }
 0xc23   : > { %v5519_v58 = vmul.f32 %v8397_v43, %v5367_v55  ;;  %vm5525_vm0 = vweird.f32 %v8397_v43 }
 0xc24   : > { %vm5526_vm2 = vmor %vm5524_vm1, %vm5525_vm0 }
 0xc25   : > { %v5520_v40 = vmul.f32 %v8397_v43, %v5519_v58 }
 0xc27   : > { %v5521_v46 = vmul.f32 0.5, %v5520_v40 }
 0xc29   : > { %v5522_v18 = vsub.f32 1.5, %v5521_v46  ;;  %v5716_v36 = vpop.f32.mrf.mxu1 }
 0xc2a   : > { %v5717_v6 = vadd.f32 %v5716_v36, %v11826_v32 }
 0xc2b   : > { %v5523_v27 = vmul.f32 %v8397_v43, %v5522_v18 }
 0xc2c   : > { %v5802_v1 = vmax.f32 %v5717_v6, 0.0 }
 0xc2d   : > { %v5527_v10 = vsel %vm5526_vm2, %v8397_v43, %v5523_v27 }
 0xc2e   : > { %v5543_v2 = vmul.f32 %v5527_v10, %v11808_v4 }
 0xc2f   : > { %v5765_v52 = vpop.f32.mrf.mxu2 }
 0xc30   : > { %v5562_v8 = vmul.f32 %v11729_v21, %v5543_v2  ;;  %v5766_v35 = vadd.f32 %v5765_v52, %v11829_v51 }
 0xc31   : > { %v5718_v19 = vpop.f32.mrf.mxu1 }
 0xc32   : > { %v5719_v20 = vadd.f32 %v5718_v19, %v11826_v32  ;;  %v11888_v61 = vadd.f32 %v11738_v15, %v5562_v8  ;;  %v5803_v17 = vmax.f32 %v5766_v35, 0.0 }
 0xc34   : > { %v5804_v9 = vmax.f32 %v5719_v20, 0.0  ;;  %v5589_v4 = vpack.c.bf16 %v11888_v61, %v11885_v47 }
 0xc36   : > { %v5828_v26 = vpack.c.bf16 %v5804_v9, %v5802_v1  ;;  %5735 = vmatmul.bf16.gmra.mxu1 %v5589_v4  ;;  %5784 = vmatmul.bf16.gmra.mxu2 %v5589_v4 }
 0xc37   : > { %v5767_v21 = vpop.f32.mrf.mxu2 }
 0xc38   : > { %v5768_v39 = vadd.f32 %v5767_v21, %v11829_v51  ;;  %5993 = vmatmul.bf16.gmra.mxu0 %v5828_v26 }
 0xc3a   : > { %v5805_v33 = vmax.f32 %v5768_v39, 0.0 }
 0xc3b   : > { %v5979_v15 = vpop.f32.mrf.mxu0 }
 0xc3c   : > { %v5829_v62 = vpack.c.bf16 %v5805_v33, %v5803_v17  ;;  %v5980_v16 = vadd.f32 %v11897_v41, %v5979_v15 }
 0xc3e   : > { %6042 = vmatmul.bf16.gmra.mxu3 %v5829_v62 }
 0xc43   : > { %v5981_v14 = vpop.f32.mrf.mxu0 }
 0xc44   : > { %v5982_v28 = vadd.f32 %v11897_v41, %v5981_v14 }
 0xc47   : > { %v6028_v31 = vpop.f32.mrf.mxu3 }
 0xc48   : > { %v6029_v3 = vadd.f32 %v6028_v31, %v5980_v16 }
 0xc4a   : > { %v11901_v59 = vadd.f32 %v6029_v3, %v11745_v11 }
 0xc4c   : > { %6086 = vadd.xlane.f32.xlu1 %v11901_v59 }
 0xc4f   : > { %v6030_v22 = vpop.f32.mrf.mxu3 }
 0xc50   : > { %v6031_v7 = vadd.f32 %v6030_v22, %v5982_v28 }
 0xc51   : > { %v5721_v37 = vpop.f32.mrf.mxu1 }
 0xc52   : > { %v11906_v29 = vadd.f32 %v6031_v7, %v11748_v12  ;;  %v5722_v56 = vadd.f32 %v5721_v37, %v11826_v32 }
 0xc54   : > { %6088 = vadd.xlane.f32.xlu2 %v11906_v29  ;;  %v5806_v55 = vmax.f32 %v5722_v56, 0.0 }
 0xc57   : > { %v5770_v60 = vpop.f32.mrf.mxu2 }
 0xc58   : > { %v5771_v5 = vadd.f32 %v5770_v60, %v11829_v51 }
 0xc59   : > { %v5723_v30 = vpop.f32.mrf.mxu1 }
 0xc5a   : > { %v5724_v11 = vadd.f32 %v5723_v30, %v11826_v32  ;;  %v5807_v40 = vmax.f32 %v5771_v5, 0.0 }
 0xc5c   : > { %v5808_v42 = vmax.f32 %v5724_v11, 0.0 }
 0xc5e   : > { %v5830_v43 = vpack.c.bf16 %v5808_v42, %v5806_v55 }
 0xc5f   : > { %v5772_v48 = vpop.f32.mrf.mxu2 }
 0xc60   : > { %v5773_v58 = vadd.f32 %v5772_v48, %v11829_v51  ;;  %5998 = vmatmul.bf16.gmra.mxu0 %v5830_v43 }
 0xc62   : > { %v5809_v12 = vmax.f32 %v5773_v58, 0.0 }
 0xc63   : > { %v5984_v46 = vpop.f32.mrf.mxu0 }
 0xc64   : > { %v5831_v50 = vpack.c.bf16 %v5809_v12, %v5807_v40  ;;  %v5985_v18 = vadd.f32 %v11897_v41, %v5984_v46 }
 0xc66   : > { %6047 = vmatmul.bf16.gmra.mxu3 %v5831_v50 }
 0xc6b   : > { %v5986_v10 = vpop.f32.mrf.mxu0 }
 0xc6c   : > { %v5987_v2 = vadd.f32 %v11897_v41, %v5986_v10 }
 0xc6f   : > { %v6033_v36 = vpop.f32.mrf.mxu3 }
 0xc70   : > { %v6034_v13 = vadd.f32 %v6033_v36, %v5985_v18 }
 0xc72   : > { %v11915_v27 = vadd.f32 %v6034_v13, %v11767_v24 }
 0xc74   : > { %6090 = vadd.xlane.f32.xlu0 %v11915_v27 }
 0xc77   : > { %v6035_v44 = vpop.f32.mrf.mxu3 }
 0xc78   : > { %v6036_v52 = vadd.f32 %v6035_v44, %v5987_v2 }
 0xc7a   : > { %v11920_v6 = vadd.f32 %v6036_v52, %v11770_v57 }
 0xc7c   : > { %6092 = vadd.xlane.f32.xlu1 %v11920_v6 }
 0xc7e   : > { %v5726_v8 = vpop.f32.mrf.mxu1 }
 0xc7f   : > { %v5727_v20 = vadd.f32 %v5726_v8, %v11826_v32 }
 0xc81   : > { %v5810_v9 = vmax.f32 %v5727_v20, 0.0 }
 0xc84   : > { %v5775_v19 = vpop.f32.mrf.mxu2 }
 0xc85   : > { %v5776_v35 = vadd.f32 %v5775_v19, %v11829_v51 }
 0xc86   : > { %v5728_v1 = vpop.f32.mrf.mxu1 }
 0xc87   : > { %v5729_v24 = vadd.f32 %v5728_v1, %v11826_v32  ;;  %v5811_v17 = vmax.f32 %v5776_v35, 0.0 }
 0xc89   : > { %v5812_v4 = vmax.f32 %v5729_v24, 0.0 }
 0xc8b   : > { %v5832_v26 = vpack.c.bf16 %v5812_v4, %v5810_v9 }
 0xc8c   : > { %v5777_v21 = vpop.f32.mrf.mxu2 }
 0xc8d   : > { %v5778_v39 = vadd.f32 %v5777_v21, %v11829_v51  ;;  %6003 = vmatmul.bf16.gmra.mxu0 %v5832_v26 }
 0xc8e   : > { %v5731_v57 = vpop.f32.mrf.mxu1 }
 0xc8f   : > { %v5813_v33 = vmax.f32 %v5778_v39, 0.0  ;;  %v5732_v16 = vadd.f32 %v5731_v57, %v11826_v32 }
 0xc90   : > { %v5989_v31 = vpop.f32.mrf.mxu0 }
 0xc91   : > { %v5833_v62 = vpack.c.bf16 %v5813_v33, %v5811_v17  ;;  %v5814_v28 = vmax.f32 %v5732_v16, 0.0  ;;  %v5990_v7 = vadd.f32 %v11897_v41, %v5989_v31 }
 0xc93   : > { %6052 = vmatmul.bf16.gmra.mxu3 %v5833_v62 }
 0xc94   : > { %v5780_v15 = vpop.f32.mrf.mxu2 }
 0xc95   : > { %v5781_v37 = vadd.f32 %v5780_v15, %v11829_v51 }
 0xc96   : > { %v5733_v3 = vpop.f32.mrf.mxu1 }
 0xc97   : > { %v5734_v14 = vadd.f32 %v5733_v3, %v11826_v32  ;;  %v5815_v42 = vmax.f32 %v5781_v37, 0.0 }
 0xc98   : > { %v5991_v48 = vpop.f32.mrf.mxu0 }
 0xc99   : > { %v5816_v22 = vmax.f32 %v5734_v14, 0.0  ;;  %v5992_v40 = vadd.f32 %v11897_v41, %v5991_v48 }
 0xc9b   : > { %v5834_v60 = vpack.c.bf16 %v5816_v22, %v5814_v28 }
 0xc9c   : > { %v5782_v56 = vpop.f32.mrf.mxu2  ;;  %v6038_v30 = vpop.f32.mrf.mxu3 }
 0xc9d   : > { %v5783_v11 = vadd.f32 %v5782_v56, %v11829_v51  ;;  %v6039_v55 = vadd.f32 %v6038_v30, %v5990_v7  ;;  %6008 = vmatmul.bf16.gmra.mxu0 %v5834_v60 }
 0xc9f   : > { %v5817_v5 = vmax.f32 %v5783_v11, 0.0  ;;  %v11933_v43 = vadd.f32 %v6039_v55, %v11797_v63 }
 0xca1   : > { %v5835_v58 = vpack.c.bf16 %v5817_v5, %v5815_v42  ;;  %6094 = vadd.xlane.f32.xlu2 %v11933_v43 }
 0xca3   : > { %6057 = vmatmul.bf16.gmra.mxu3 %v5835_v58 }
 0xca4   : > { %v6040_v12 = vpop.f32.mrf.mxu3 }
 0xca5   : > { %v6041_v50 = vadd.f32 %v6040_v12, %v5992_v40 }
 0xca7   : > { %v11938_v46 = vadd.f32 %v6041_v50, %v11800_v54 }
 0xca9   : > { %6096 = vadd.xlane.f32.xlu0 %v11938_v46 }
 0xcb3   : > { %v5736_v18 = vpop.f32.mrf.mxu1 }
 0xcb4   : > { %v5737_v13 = vadd.f32 %v5736_v18, %v11826_v32 }
 0xcb5   : > { %v5994_v63 = vpop.f32.mrf.mxu0 }
 0xcb6   : > { %v5818_v44 = vmax.f32 %v5737_v13, 0.0  ;;  %v5995_v8 = vadd.f32 %v11897_v41, %v5994_v63 }
 0xcb9   : > { %v5785_v36 = vpop.f32.mrf.mxu2 }
 0xcba   : > { %v5786_v19 = vadd.f32 %v5785_v36, %v11829_v51 }
 0xcbb   : > { %v5738_v10 = vpop.f32.mrf.mxu1 }
 0xcbc   : > { %v5739_v2 = vadd.f32 %v5738_v10, %v11826_v32  ;;  %v5819_v4 = vmax.f32 %v5786_v19, 0.0 }
 0xcbd   : > { %v5996_v21 = vpop.f32.mrf.mxu0 }
 0xcbe   : > { %v5820_v52 = vmax.f32 %v5739_v2, 0.0  ;;  %v5997_v32 = vadd.f32 %v11897_v41, %v5996_v21 }
 0xcbf   : > { %v6087_v50 = vpop.xlane.xlu1 %6086 }
 0xcc0   : > { %v5836_v20 = vpack.c.bf16 %v5820_v52, %v5818_v44  ;;  %v6118_v13 = vmul.f32 0.0078125, %v6087_v50 }
 0xcc1   : > { %v5787_v1 = vpop.f32.mrf.mxu2  ;;  %v6043_v54 = vpop.f32.mrf.mxu3 }
 0xcc2   : > { %v5788_v24 = vadd.f32 %v5787_v1, %v11829_v51  ;;  %v6044_v9 = vadd.f32 %v6043_v54, %v5995_v8  ;;  %6013 = vmatmul.bf16.gmra.mxu0 %v5836_v20  ;;  %v11983_v63 = vsub.f32 %v11901_v59, %v6118_v13 }
 0xcc4   : > { %v5821_v35 = vmax.f32 %v5788_v24, 0.0  ;;  %v6074_v26 = vadd.f32 %v6044_v9, %v11816_v38  ;;  %v6150_v2 = vmul.f32 %v11983_v63, %v11983_v63 }
 0xcc6   : > { %v5837_v39 = vpack.c.bf16 %v5821_v35, %v5819_v4  ;;  %6098 = vadd.xlane.f32.xlu1 %v6074_v26 }
 0xcc7   : > { %v6089_v54 = vpop.xlane.xlu2 %6088 }
 0xcc8   : > { %6062 = vmatmul.bf16.gmra.mxu3 %v5837_v39 }
 0xcc9   : > { %v6045_v57 = vpop.f32.mrf.mxu3 }
 0xcca   : > { %v6046_v17 = vadd.f32 %v6045_v57, %v5997_v32 }
 0xccc   : > { %v11949_v33 = vadd.f32 %v6046_v17, %v11819_v53 }
 0xcce   : > { %6100 = vadd.xlane.f32.xlu2 %v11949_v33 }
 0xcdd   : > { %v5999_v51 = vpop.f32.mrf.mxu0 }
 0xcde   : > { %v6000_v62 = vadd.f32 %v11897_v41, %v5999_v51 }
 0xce5   : > { %v6001_v31 = vpop.f32.mrf.mxu0 }
 0xce6   : > { %v6002_v3 = vadd.f32 %v11897_v41, %v6001_v31 }
 0xce7   : > { %v6091_v21 = vpop.xlane.xlu0 %6090 }
 0xce8   : > { %v6120_v51 = vmul.f32 0.0078125, %v6091_v21 }
 0xce9   : > { %v6048_v15 = vpop.f32.mrf.mxu3 }
 0xcea   : > { %v6049_v16 = vadd.f32 %v6048_v15, %v6000_v62 }
 0xcec   : > { %v11954_v38 = vadd.f32 %v6049_v16, %v11839_v34 }
 0xcee   : > { %6102 = vadd.xlane.f32.xlu0 %v11954_v38 }
 0xcef   : > { %v6093_v10 = vpop.xlane.xlu1 %6092 }
 0xcf1   : > { %v6050_v14 = vpop.f32.mrf.mxu3 }
 0xcf2   : > { %v6051_v28 = vadd.f32 %v6050_v14, %v6002_v3 }
 0xcf4   : > { %v11959_v53 = vadd.f32 %v6051_v28, %v11842_v23 }
 0xcf6   : > { %6104 = vadd.xlane.f32.xlu1 %v11959_v53 }
 0xd0a   : > { %v6004_v22 = vpop.f32.mrf.mxu0 }
 0xd0b   : > { %v6005_v7 = vadd.f32 %v11897_v41, %v6004_v22 }
 0xd12   : > { %v6006_v37 = vpop.f32.mrf.mxu0 }
 0xd13   : > { %v6007_v30 = vadd.f32 %v11897_v41, %v6006_v37 }
 0xd14   : > { %v6095_v32 = vpop.xlane.xlu2 %6094 }
 0xd15   : > { %v6122_v62 = vmul.f32 0.0078125, %v6095_v32 }
 0xd16   : > { %v6053_v60 = vpop.f32.mrf.mxu3 }
 0xd17   : > { %v6054_v56 = vadd.f32 %v6053_v60, %v6005_v7  ;;  %v12015_v16 = vsub.f32 %v11933_v43, %v6122_v62 }
 0xd19   : > { %v11964_v34 = vadd.f32 %v6054_v56, %v11855_v25  ;;  %v6154_v28 = vmul.f32 %v12015_v16, %v12015_v16 }
 0xd1a   : > { %v6009_v42 = vpop.f32.mrf.mxu0 }
 0xd1b   : > { %6106 = vadd.xlane.f32.xlu2 %v11964_v34  ;;  %v6010_v5 = vadd.f32 %v11897_v41, %v6009_v42 }
 0xd1e   : > { %v6055_v11 = vpop.f32.mrf.mxu3 }
 0xd1f   : > { %v6056_v55 = vadd.f32 %v6055_v11, %v6007_v30 }
 0xd21   : > { %v11969_v23 = vadd.f32 %v6056_v55, %v11858_v0 }
 0xd22   : > { %v6011_v25 = vpop.f32.mrf.mxu0 }
 0xd23   : > { %6108 = vadd.xlane.f32.xlu0 %v11969_v23  ;;  %v6012_v12 = vadd.f32 %v11897_v41, %v6011_v25 }
 0xd26   : > { %v6058_v48 = vpop.f32.mrf.mxu3 }
 0xd27   : > { %v6059_v58 = vadd.f32 %v6058_v48, %v6010_v5 }
 0xd29   : > { %v11974_v40 = vadd.f32 %v6059_v58, %v11869_v45  ;;  %v6121_v45 = vmul.f32 0.0078125, %v6093_v10 }
 0xd2b   : > { %6110 = vadd.xlane.f32.xlu1 %v11974_v40  ;;  %v11988_v44 = vsub.f32 %v11920_v6, %v6121_v45  ;;  %v6119_v6 = vmul.f32 0.0078125, %v6089_v54 }
 0xd2e   : > { %v6060_v18 = vpop.f32.mrf.mxu3 }
 0xd2f   : > { %v6061_v36 = vadd.f32 %v6060_v18, %v6012_v12 }
 0xd31   : > { %v11979_v0 = vadd.f32 %v6061_v36, %v11872_v49  ;;  %v6153_v49 = vmul.f32 %v11988_v44, %v11988_v44 }
 0xd33   : > { %6112 = vadd.xlane.f32.xlu2 %v11979_v0 }
 0xd39   : > { %v6099_v52 = vpop.xlane.xlu1 %6098 }
 0xd3a   : > { %v6124_v8 = vmul.f32 0.0078125, %v6099_v52 }
 0xd3b   : > { %6166 = vadd.xlane.f32.xlu2 %v6150_v2 }
 0xd3c   : > { %v11992_v19 = vsub.f32 %v6074_v26, %v6124_v8  ;;  %v12002_v26 = vsub.f32 %v11906_v29, %v6119_v6  ;;  %v12012_v29 = vsub.f32 %v11915_v27, %v6120_v51 }
 0xd3e   : > { %v6156_v59 = vmul.f32 %v11992_v19, %v11992_v19 }
 0xd3f   : > { %v6014_v20 = vpop.f32.mrf.mxu0 }
 0xd40   : > { %v6015_v1 = vadd.f32 %v11897_v41, %v6014_v20 }
 0xd41   : > { %v6101_v31 = vpop.xlane.xlu2 %6100 }
 0xd42   : > { %v6125_v14 = vmul.f32 0.0078125, %v6101_v31 }
 0xd43   : > { %6172 = vadd.xlane.f32.xlu2 %v6153_v49 }
 0xd44   : > { %v12025_v27 = vsub.f32 %v11949_v33, %v6125_v14 }
 0xd46   : > { %v6157_v60 = vmul.f32 %v12025_v27, %v12025_v27 }
 0xd47   : > { %v6016_v35 = vpop.f32.mrf.mxu0 }
 0xd48   : > { %v6017_v39 = vadd.f32 %v11897_v41, %v6016_v35  ;;  %v6097_v41 = vpop.xlane.xlu0 %6096 }
 0xd49   : > { %v6123_v3 = vmul.f32 0.0078125, %v6097_v41  ;;  %v12069_v41 = vld [vmem:[%s12584_s24] ss:$0 sm:$0xff] }
 0xd4b   : > { %6178 = vadd.xlane.f32.xlu2 %v6156_v59  ;;  %v6063_v24 = vpop.f32.mrf.mxu3  ;;  %v12022_v22 = vsub.f32 %v11938_v46, %v6123_v3 }
 0xd4c   : > { %v6064_v9 = vadd.f32 %v6063_v24, %v6015_v1 }
 0xd4d   : > { %v6155_v37 = vmul.f32 %v12022_v22, %v12022_v22 }
 0xd4e   : > { %v11998_v4 = vadd.f32 %v6064_v9, %v11885_v47  ;;  %v6151_v47 = vmul.f32 %v12002_v26, %v12002_v26 }
 0xd50   : > { %6114 = vadd.xlane.f32.xlu0 %v11998_v4 }
 0xd53   : > { %v6065_v57 = vpop.f32.mrf.mxu3 }
 0xd54   : > { %v6066_v17 = vadd.f32 %v6065_v57, %v6017_v39  ;;  %v12064_v57 = vld [vmem:[%s12583_s18] ss:$0 sm:$0xff] }
 0xd56   : > { %v12006_v15 = vadd.f32 %v6066_v17, %v11888_v61  ;;  %v6152_v61 = vmul.f32 %v12012_v29, %v12012_v29 }
 0xd58   : > { %6116 = vadd.xlane.f32.xlu1 %v12006_v15  ;;  %6168 = vadd.xlane.f32.xlu0 %v6151_v47 }
 0xd60   : > { %6170 = vadd.xlane.f32.xlu1 %v6152_v61  ;;  %6174 = vadd.xlane.f32.xlu0 %v6154_v28 }
 0xd61   : > { %v6103_v43 = vpop.xlane.xlu0 %6102 }
 0xd62   : > { %v6126_v7 = vmul.f32 0.0078125, %v6103_v43 }
 0xd64   : > { %v12032_v30 = vsub.f32 %v11954_v38, %v6126_v7 }
 0xd66   : > { %v6158_v55 = vmul.f32 %v12032_v30, %v12032_v30 }
 0xd68   : > { %6176 = vadd.xlane.f32.xlu1 %v6155_v37  ;;  %6180 = vadd.xlane.f32.xlu0 %v6157_v60 }
 0xd69   : > { %v6105_v56 = vpop.xlane.xlu1 %6104 }
 0xd6a   : > { %v6127_v11 = vmul.f32 0.0078125, %v6105_v56 }
 0xd6c   : > { %v12035_v46 = vsub.f32 %v11959_v53, %v6127_v11 }
 0xd6e   : > { %v6159_v33 = vmul.f32 %v12035_v46, %v12035_v46 }
 0xd70   : > { %6184 = vadd.xlane.f32.xlu2 %v6159_v33  ;;  %6182 = vadd.xlane.f32.xlu1 %v6158_v55 }
 0xd8e   : > { %v6107_v42 = vpop.xlane.xlu2 %6106 }
 0xd8f   : > { %v6128_v5 = vmul.f32 0.0078125, %v6107_v42 }
 0xd91   : > { %v12042_v48 = vsub.f32 %v11964_v34, %v6128_v5 }
 0xd93   : > { %v6160_v38 = vmul.f32 %v12042_v48, %v12042_v48 }
 0xd95   : > { %6186 = vadd.xlane.f32.xlu0 %v6160_v38 }
 0xd96   : > { %v6109_v58 = vpop.xlane.xlu0 %6108 }
 0xd97   : > { %v6129_v53 = vmul.f32 0.0078125, %v6109_v58 }
 0xd99   : > { %v12047_v25 = vsub.f32 %v11969_v23, %v6129_v53 }
 0xd9b   : > { %v6161_v12 = vmul.f32 %v12047_v25, %v12047_v25 }
 0xd9d   : > { %6188 = vadd.xlane.f32.xlu1 %v6161_v12 }
 0xd9e   : > { %v6111_v50 = vpop.xlane.xlu1 %6110 }
 0xd9f   : > { %v6130_v18 = vmul.f32 0.0078125, %v6111_v50 }
 0xda1   : > { %v12052_v36 = vsub.f32 %v11974_v40, %v6130_v18 }
 0xda3   : > { %v6162_v34 = vmul.f32 %v12052_v36, %v12052_v36 }
 0xda5   : > { %6190 = vadd.xlane.f32.xlu2 %v6162_v34 }
 0xda6   : > { %v6113_v13 = vpop.xlane.xlu2 %6112 }
 0xda7   : > { %v6131_v10 = vmul.f32 0.0078125, %v6113_v13 }
 0xda9   : > { %v12057_v45 = vsub.f32 %v11979_v0, %v6131_v10 }
 0xdab   : > { %v6163_v23 = vmul.f32 %v12057_v45, %v12057_v45 }
 0xdad   : > { %6192 = vadd.xlane.f32.xlu0 %v6163_v23 }
 0xdae   : > { %v6167_v2 = vpop.xlane.xlu2 %6166 }
 0xdaf   : > { %v6198_v52 = vmul.f32 0.0078125, %v6167_v2 }
 0xdb1   : > { %v6214_v8 = vadd.f32 1e-05, %v6198_v52 }
 0xdb3   : > { %8398 = vrsqrt.f32 %v6214_v8  ;;  %vm6236_vm4 = vweird.f32 %v6214_v8 }
 0xdb6   : > { %v6173_v49 = vpop.xlane.xlu2 %6172 }
 0xdb7   : > { %v6201_v40 = vmul.f32 0.0078125, %v6173_v49 }
 0xdb9   : > { %v8399_v20 = vpop.eup %8398  ;;  %v6217_v59 = vadd.f32 1e-05, %v6201_v40 }
 0xdba   : > { %v6231_v1 = vmul.f32 %v8399_v20, %v6214_v8  ;;  %vm6237_vm3 = vweird.f32 %v8399_v20 }
 0xdbb   : > { %8400 = vrsqrt.f32 %v6217_v59  ;;  %vm6238_vm5 = vmor %vm6236_vm4, %vm6237_vm3  ;;  %vm6266_vm7 = vweird.f32 %v6217_v59 }
 0xdbc   : > { %v6232_v54 = vmul.f32 %v8399_v20, %v6231_v1 }
 0xdbe   : > { %v6233_v24 = vmul.f32 0.5, %v6232_v54  ;;  %v6179_v9 = vpop.xlane.xlu2 %6178 }
 0xdbf   : > { %v6204_v6 = vmul.f32 0.0078125, %v6179_v9 }
 0xdc0   : > { %v6234_v0 = vsub.f32 1.5, %v6233_v24 }
 0xdc1   : > { %v8401_v35 = vpop.eup %8400  ;;  %v6220_v21 = vadd.f32 1e-05, %v6204_v6 }
 0xdc2   : > { %v6235_v39 = vmul.f32 %v8399_v20, %v6234_v0  ;;  %v6261_v32 = vmul.f32 %v8401_v35, %v6217_v59  ;;  %vm6267_vm6 = vweird.f32 %v8401_v35 }
 0xdc3   : > { %8402 = vrsqrt.f32 %v6220_v21  ;;  %v6115_v17 = vpop.xlane.xlu0 %6114  ;;  %vm6268_vm8 = vmor %vm6266_vm7, %vm6267_vm6  ;;  %vm6296_vm10 = vweird.f32 %v6220_v21 }
 0xdc4   : > { %v6239_v51 = vsel %vm6238_vm5, %v8399_v20, %v6235_v39  ;;  %v6262_v62 = vmul.f32 %v8401_v35, %v6261_v32  ;;  %v6132_v47 = vmul.f32 0.0078125, %v6115_v17 }
 0xdc5   : > { %v6390_v31 = vmul.f32 %v6239_v51, %v11983_v63 }
 0xdc6   : > { %v6263_v3 = vmul.f32 0.5, %v6262_v62  ;;  %v12073_v14 = vsub.f32 %v11998_v4, %v6132_v47 }
 0xdc7   : > { %v6409_v61 = vmul.f32 %v12064_v57, %v6390_v31 }
 0xdc8   : > { %v6264_v28 = vsub.f32 1.5, %v6263_v3  ;;  %v6164_v43 = vmul.f32 %v12073_v14, %v12073_v14 }
 0xdc9   : > { %v8403_v7 = vpop.eup %8402  ;;  %v6428_v37 = vadd.f32 %v12069_v41, %v6409_v61 }
 0xdca   : > { %v6265_v60 = vmul.f32 %v8401_v35, %v6264_v28  ;;  %v6291_v56 = vmul.f32 %v8403_v7, %v6220_v21  ;;  %6194 = vadd.xlane.f32.xlu1 %v6164_v43  ;;  %vm6297_vm9 = vweird.f32 %v8403_v7 }
 0xdcb   : > { %6444 = vst [vmem:[%s9297_s30] sm:$0xff] %v6428_v37  ;;  %v6117_v63 = vpop.xlane.xlu1 %6116  ;;  %v6169_v11 = vpop.xlane.xlu0 %6168  ;;  %vm6298_vm11 = vmor %vm6296_vm10, %vm6297_vm9 }
 0xdcc   : > { %v6269_v4 = vsel %vm6268_vm8, %v8401_v35, %v6265_v60  ;;  %v6292_v33 = vmul.f32 %v8403_v7, %v6291_v56  ;;  %v6133_v55 = vmul.f32 0.0078125, %v6117_v63  ;;  %v6199_v42 = vmul.f32 0.0078125, %v6169_v11 }
 0xdcd   : > { %v6393_v5 = vmul.f32 %v6269_v4, %v11988_v44 }
 0xdce   : > { %v6293_v38 = vmul.f32 0.5, %v6292_v33  ;;  %v12082_v58 = vsub.f32 %v12006_v15, %v6133_v55  ;;  %v6215_v53 = vadd.f32 1e-05, %v6199_v42 }
 0xdcf   : > { %v6412_v12 = vmul.f32 %v12064_v57, %v6393_v5 }
 0xdd0   : > { %v6294_v50 = vsub.f32 1.5, %v6293_v38  ;;  %8404 = vrsqrt.f32 %v6215_v53  ;;  %v6165_v18 = vmul.f32 %v12082_v58, %v12082_v58  ;;  %vm6246_vm13 = vweird.f32 %v6215_v53 }
 0xdd1   : > { %v6431_v34 = vadd.f32 %v12069_v41, %v6412_v12 }
 0xdd2   : > { %v6295_v13 = vmul.f32 %v8403_v7, %v6294_v50  ;;  %6196 = vadd.xlane.f32.xlu2 %v6165_v18 }
 0xdd3   : > { %6447 = vst [vmem:[%s9297_s30 + $0x18] sm:$0xff] %v6431_v34  ;;  %v6171_v44 = vpop.xlane.xlu1 %6170  ;;  %v6175_v15 = vpop.xlane.xlu0 %6174 }
 0xdd4   : > { %v6299_v10 = vsel %vm6298_vm11, %v8403_v7, %v6295_v13  ;;  %v6200_v23 = vmul.f32 0.0078125, %v6171_v44  ;;  %v6202_v2 = vmul.f32 0.0078125, %v6175_v15 }
 0xdd5   : > { %v6396_v52 = vmul.f32 %v6299_v10, %v11992_v19 }
 0xdd6   : > { %v8405_v8 = vpop.eup %8404  ;;  %v6216_v49 = vadd.f32 1e-05, %v6200_v23  ;;  %v6218_v40 = vadd.f32 1e-05, %v6202_v2 }
 0xdd7   : > { %v6415_v20 = vmul.f32 %v12064_v57, %v6396_v52  ;;  %v6241_v59 = vmul.f32 %v8405_v8, %v6215_v53  ;;  %vm6247_vm12 = vweird.f32 %v8405_v8 }
 0xdd8   : > { %8406 = vrsqrt.f32 %v6216_v49  ;;  %vm6248_vm14 = vmor %vm6246_vm13, %vm6247_vm12  ;;  %vm6256_vm1 = vweird.f32 %v6216_v49  ;;  %vm6276_vm3 = vweird.f32 %v6218_v40 }
 0xdd9   : > { %v6434_v1 = vadd.f32 %v12069_v41, %v6415_v20  ;;  %v6242_v54 = vmul.f32 %v8405_v8, %v6241_v59  ;;  %8408 = vrsqrt.f32 %v6218_v40 }
 0xddb   : > { %6450 = vst [vmem:[%s9297_s30 + $0x30] sm:$0xff] %v6434_v1  ;;  %v6243_v24 = vmul.f32 0.5, %v6242_v54  ;;  %v6177_v9 = vpop.xlane.xlu1 %6176  ;;  %v6181_v6 = vpop.xlane.xlu0 %6180 }
 0xddc   : > { %v6203_v0 = vmul.f32 0.0078125, %v6177_v9  ;;  %v6205_v35 = vmul.f32 0.0078125, %v6181_v6 }
 0xddd   : > { %v6244_v21 = vsub.f32 1.5, %v6243_v24 }
 0xdde   : > { %v8407_v19 = vpop.eup %8406  ;;  %v12093_v39 = vadd.f32 1e-05, %v6203_v0  ;;  %v12095_v32 = vadd.f32 1e-05, %v6205_v35 }
 0xddf   : > { %v8409_v17 = vpop.eup %8408  ;;  %v6245_v51 = vmul.f32 %v8405_v8, %v6244_v21  ;;  %v6251_v62 = vmul.f32 %v8407_v19, %v6216_v49  ;;  %vm6257_vm15 = vweird.f32 %v8407_v19 }
 0xde0   : > { %v6271_v47 = vmul.f32 %v8409_v17, %v6218_v40  ;;  %8410 = vrsqrt.f32 %v12093_v39  ;;  %vm6277_vm0 = vweird.f32 %v8409_v17  ;;  %vm6258_vm2 = vmor %vm6256_vm1, %vm6257_vm15  ;;  %vm6286_vm7 = vweird.f32 %v12093_v39 }
 0xde1   : > { %v6249_v31 = vsel %vm6248_vm14, %v8405_v8, %v6245_v51  ;;  %v6252_v3 = vmul.f32 %v8407_v19, %v6251_v62  ;;  %8412 = vrsqrt.f32 %v12095_v32  ;;  %vm6278_vm4 = vmor %vm6276_vm3, %vm6277_vm0  ;;  %vm6306_vm9 = vweird.f32 %v12095_v32 }
 0xde2   : > { %v6391_v61 = vmul.f32 %v6249_v31, %v12002_v26  ;;  %v6272_v28 = vmul.f32 %v8409_v17, %v6271_v47 }
 0xde3   : > { %v6253_v43 = vmul.f32 0.5, %v6252_v3  ;;  %v6183_v7 = vpop.xlane.xlu1 %6182  ;;  %v6185_v37 = vpop.xlane.xlu2 %6184 }
 0xde4   : > { %v6410_v60 = vmul.f32 %v12064_v57, %v6391_v61  ;;  %v6273_v56 = vmul.f32 0.5, %v6272_v28  ;;  %v6206_v63 = vmul.f32 0.0078125, %v6183_v7  ;;  %v6207_v11 = vmul.f32 0.0078125, %v6185_v37 }
 0xde5   : > { %v6254_v4 = vsub.f32 1.5, %v6253_v43 }
 0xde6   : > { %v8411_v33 = vpop.eup %8410  ;;  %v6429_v55 = vadd.f32 %v12069_v41, %v6410_v60  ;;  %v6274_v42 = vsub.f32 1.5, %v6273_v56  ;;  %v6222_v5 = vadd.f32 1e-05, %v6206_v63  ;;  %v12102_v38 = vadd.f32 1e-05, %v6207_v11 }
 0xde7   : > { %v8413_v26 = vpop.eup %8412  ;;  %v6255_v53 = vmul.f32 %v8407_v19, %v6254_v4  ;;  %v6281_v12 = vmul.f32 %v8411_v33, %v12093_v39  ;;  %vm6287_vm5 = vweird.f32 %v8411_v33 }
 0xde8   : > { %6445 = vst [vmem:[%s9297_s30 + $0x8] sm:$0xff] %v6429_v55  ;;  %v6275_v50 = vmul.f32 %v8409_v17, %v6274_v42  ;;  %v6301_v18 = vmul.f32 %v8413_v26, %v12095_v32  ;;  %8414 = vrsqrt.f32 %v6222_v5  ;;  %vm6307_vm6 = vweird.f32 %v8413_v26  ;;  %vm6288_vm8 = vmor %vm6286_vm7, %vm6287_vm5 }
 0xde9   : > { %v6259_v34 = vsel %vm6258_vm2, %v8407_v19, %v6255_v53  ;;  %v6282_v13 = vmul.f32 %v8411_v33, %v6281_v12  ;;  %8416 = vrsqrt.f32 %v12102_v38  ;;  %vm6308_vm10 = vmor %vm6306_vm9, %vm6307_vm6  ;;  %vm6316_vm13 = vweird.f32 %v6222_v5 }
 0xdea   : > { %v6392_v44 = vmul.f32 %v6259_v34, %v12012_v29  ;;  %v6279_v15 = vsel %vm6278_vm4, %v8409_v17, %v6275_v50  ;;  %v6302_v10 = vmul.f32 %v8413_v26, %v6301_v18  ;;  %vm6326_vm15 = vweird.f32 %v12102_v38 }
 0xdeb   : > { %v6394_v23 = vmul.f32 %v6279_v15, %v12015_v16  ;;  %v6283_v2 = vmul.f32 0.5, %v6282_v13 }
 0xdec   : > { %v6411_v52 = vmul.f32 %v12064_v57, %v6392_v44  ;;  %v6303_v8 = vmul.f32 0.5, %v6302_v10 }
 0xded   : > { %v6413_v49 = vmul.f32 %v12064_v57, %v6394_v23  ;;  %v6284_v40 = vsub.f32 1.5, %v6283_v2 }
 0xdee   : > { %v8415_v20 = vpop.eup %8414  ;;  %v6430_v59 = vadd.f32 %v12069_v41, %v6411_v52  ;;  %v6304_v1 = vsub.f32 1.5, %v6303_v8 }
 0xdef   : > { %v8417_v29 = vpop.eup %8416  ;;  %v6432_v54 = vadd.f32 %v12069_v41, %v6413_v49  ;;  %v6285_v24 = vmul.f32 %v8411_v33, %v6284_v40  ;;  %v6311_v16 = vmul.f32 %v8415_v20, %v6222_v5  ;;  %vm6317_vm11 = vweird.f32 %v8415_v20 }
 0xdf0   : > { %6446 = vst [vmem:[%s9297_s30 + $0x10] sm:$0xff] %v6430_v59  ;;  %v6305_v9 = vmul.f32 %v8413_v26, %v6304_v1  ;;  %v6321_v6 = vmul.f32 %v8417_v29, %v12102_v38  ;;  %vm6327_vm12 = vweird.f32 %v8417_v29  ;;  %vm6318_vm14 = vmor %vm6316_vm13, %vm6317_vm11 }
 0xdf1   : > { %6448 = vst [vmem:[%s9297_s30 + $0x20] sm:$0xff] %v6432_v54  ;;  %v6289_v0 = vsel %vm6288_vm8, %v8411_v33, %v6285_v24  ;;  %v6312_v35 = vmul.f32 %v8415_v20, %v6311_v16  ;;  %vm6328_vm0 = vmor %vm6326_vm15, %vm6327_vm12 }
 0xdf2   : > { %v6395_v21 = vmul.f32 %v6289_v0, %v12022_v22  ;;  %v6309_v19 = vsel %vm6308_vm10, %v8413_v26, %v6305_v9  ;;  %v6322_v17 = vmul.f32 %v8417_v29, %v6321_v6 }
 0xdf3   : > { %v6397_v51 = vmul.f32 %v6309_v19, %v12025_v27  ;;  %v6313_v39 = vmul.f32 0.5, %v6312_v35 }
 0xdf4   : > { %v6414_v62 = vmul.f32 %v12064_v57, %v6395_v21  ;;  %v6323_v47 = vmul.f32 0.5, %v6322_v17 }
 0xdf5   : > { %v6416_v32 = vmul.f32 %v12064_v57, %v6397_v51  ;;  %v6314_v31 = vsub.f32 1.5, %v6313_v39 }
 0xdf6   : > { %v6433_v3 = vadd.f32 %v12069_v41, %v6414_v62  ;;  %v6324_v61 = vsub.f32 1.5, %v6323_v47 }
 0xdf7   : > { %v6435_v22 = vadd.f32 %v12069_v41, %v6416_v32  ;;  %v6315_v28 = vmul.f32 %v8415_v20, %v6314_v31 }
 0xdf8   : > { %6449 = vst [vmem:[%s9297_s30 + $0x28] sm:$0xff] %v6433_v3  ;;  %v6325_v27 = vmul.f32 %v8417_v29, %v6324_v61 }
 0xdf9   : > { %6451 = vst [vmem:[%s9297_s30 + $0x38] sm:$0xff] %v6435_v22  ;;  %v6319_v43 = vsel %vm6318_vm14, %v8415_v20, %v6315_v28 }
 0xdfa   : > { %v6398_v7 = vmul.f32 %v6319_v43, %v12032_v30  ;;  %v6329_v37 = vsel %vm6328_vm0, %v8417_v29, %v6325_v27 }
 0xdfb   : > { %v6399_v60 = vmul.f32 %v6329_v37, %v12035_v46 }
 0xdfc   : > { %v6417_v56 = vmul.f32 %v12064_v57, %v6398_v7 }
 0xdfd   : > { %v6418_v63 = vmul.f32 %v12064_v57, %v6399_v60 }
 0xdfe   : > { %v6436_v11 = vadd.f32 %v12069_v41, %v6417_v56 }
 0xdff   : > { %v6437_v4 = vadd.f32 %v12069_v41, %v6418_v63 }
 0xe00   : > { %6452 = vst [vmem:[%s9297_s30 + $0x40] sm:$0xff] %v6436_v11 }
 0xe01   : > { %6453 = vst [vmem:[%s9297_s30 + $0x48] sm:$0xff] %v6437_v4 }
 0xe08   : > { %v6187_v33 = vpop.xlane.xlu0 %6186 }
 0xe09   : > { %v6208_v55 = vmul.f32 0.0078125, %v6187_v33 }
 0xe0b   : > { %v6224_v42 = vadd.f32 1e-05, %v6208_v55 }
 0xe0d   : > { %8418 = vrsqrt.f32 %v6224_v42  ;;  %vm6336_vm2 = vweird.f32 %v6224_v42 }
 0xe10   : > { %v6189_v5 = vpop.xlane.xlu1 %6188 }
 0xe11   : > { %v6209_v38 = vmul.f32 0.0078125, %v6189_v5 }
 0xe13   : > { %v8419_v30 = vpop.eup %8418  ;;  %v6225_v26 = vadd.f32 1e-05, %v6209_v38 }
 0xe14   : > { %v6331_v53 = vmul.f32 %v8419_v30, %v6224_v42  ;;  %vm6337_vm1 = vweird.f32 %v8419_v30 }
 0xe15   : > { %8420 = vrsqrt.f32 %v6225_v26  ;;  %vm6338_vm3 = vmor %vm6336_vm2, %vm6337_vm1  ;;  %vm6346_vm5 = vweird.f32 %v6225_v26 }
 0xe16   : > { %v6332_v46 = vmul.f32 %v8419_v30, %v6331_v53 }
 0xe18   : > { %v6333_v12 = vmul.f32 0.5, %v6332_v46  ;;  %v6191_v50 = vpop.xlane.xlu2 %6190 }
 0xe19   : > { %v6210_v18 = vmul.f32 0.0078125, %v6191_v50 }
 0xe1a   : > { %v6334_v34 = vsub.f32 1.5, %v6333_v12 }
 0xe1b   : > { %v8421_v13 = vpop.eup %8420  ;;  %v6226_v44 = vadd.f32 1e-05, %v6210_v18 }
 0xe1c   : > { %v6335_v15 = vmul.f32 %v8419_v30, %v6334_v34  ;;  %v6341_v10 = vmul.f32 %v8421_v13, %v6225_v26  ;;  %vm6347_vm4 = vweird.f32 %v8421_v13 }
 0xe1d   : > { %8422 = vrsqrt.f32 %v6226_v44  ;;  %vm6348_vm6 = vmor %vm6346_vm5, %vm6347_vm4  ;;  %vm6356_vm8 = vweird.f32 %v6226_v44 }
 0xe1e   : > { %v6339_v23 = vsel %vm6338_vm3, %v8419_v30, %v6335_v15  ;;  %v6342_v2 = vmul.f32 %v8421_v13, %v6341_v10 }
 0xe1f   : > { %v6400_v52 = vmul.f32 %v6339_v23, %v12042_v48 }
 0xe20   : > { %v6343_v8 = vmul.f32 0.5, %v6342_v2  ;;  %v6193_v49 = vpop.xlane.xlu0 %6192 }
 0xe21   : > { %v6419_v40 = vmul.f32 %v12064_v57, %v6400_v52  ;;  %v6211_v20 = vmul.f32 0.0078125, %v6193_v49 }
 0xe22   : > { %v6344_v59 = vsub.f32 1.5, %v6343_v8 }
 0xe23   : > { %v8423_v1 = vpop.eup %8422  ;;  %v6438_v29 = vadd.f32 %v12069_v41, %v6419_v40  ;;  %v6227_v54 = vadd.f32 1e-05, %v6211_v20 }
 0xe24   : > { %v6345_v24 = vmul.f32 %v8421_v13, %v6344_v59  ;;  %v6351_v16 = vmul.f32 %v8423_v1, %v6226_v44  ;;  %vm6357_vm7 = vweird.f32 %v8423_v1 }
 0xe25   : > { %6454 = vst [vmem:[%s9297_s30 + $0x50] sm:$0xff] %v6438_v29  ;;  %8424 = vrsqrt.f32 %v6227_v54  ;;  %vm6358_vm9 = vmor %vm6356_vm8, %vm6357_vm7  ;;  %vm6366_vm11 = vweird.f32 %v6227_v54 }
 0xe26   : > { %v6349_v9 = vsel %vm6348_vm6, %v8421_v13, %v6345_v24  ;;  %v6352_v48 = vmul.f32 %v8423_v1, %v6351_v16 }
 0xe27   : > { %v6401_v6 = vmul.f32 %v6349_v9, %v12047_v25 }
 0xe28   : > { %v6353_v0 = vmul.f32 0.5, %v6352_v48 }
 0xe29   : > { %v6420_v35 = vmul.f32 %v12064_v57, %v6401_v6 }
 0xe2a   : > { %v6354_v21 = vsub.f32 1.5, %v6353_v0 }
 0xe2b   : > { %v8425_v19 = vpop.eup %8424  ;;  %v6439_v17 = vadd.f32 %v12069_v41, %v6420_v35 }
 0xe2c   : > { %v6355_v51 = vmul.f32 %v8423_v1, %v6354_v21  ;;  %v6361_v39 = vmul.f32 %v8425_v19, %v6227_v54  ;;  %vm6367_vm10 = vweird.f32 %v8425_v19 }
 0xe2d   : > { %6455 = vst [vmem:[%s9297_s30 + $0x58] sm:$0xff] %v6439_v17  ;;  %vm6368_vm12 = vmor %vm6366_vm11, %vm6367_vm10 }
 0xe2e   : > { %v6359_v62 = vsel %vm6358_vm9, %v8423_v1, %v6355_v51  ;;  %v6362_v47 = vmul.f32 %v8425_v19, %v6361_v39 }
 0xe2f   : > { %v6402_v32 = vmul.f32 %v6359_v62, %v12052_v36 }
 0xe30   : > { %v6363_v25 = vmul.f32 0.5, %v6362_v47 }
 0xe31   : > { %v6421_v31 = vmul.f32 %v12064_v57, %v6402_v32 }
 0xe32   : > { %v6364_v3 = vsub.f32 1.5, %v6363_v25 }
 0xe33   : > { %v6440_v61 = vadd.f32 %v12069_v41, %v6421_v31 }
 0xe34   : > { %v6365_v22 = vmul.f32 %v8425_v19, %v6364_v3 }
 0xe35   : > { %6456 = vst [vmem:[%s9297_s30 + $0x60] sm:$0xff] %v6440_v61 }
 0xe36   : > { %v6369_v28 = vsel %vm6368_vm12, %v8425_v19, %v6365_v22 }
 0xe37   : > { %v6403_v27 = vmul.f32 %v6369_v28, %v12057_v45 }
 0xe39   : > { %v6422_v43 = vmul.f32 %v12064_v57, %v6403_v27 }
 0xe3b   : > { %v6441_v7 = vadd.f32 %v12069_v41, %v6422_v43 }
 0xe3d   : > { %6457 = vst [vmem:[%s9297_s30 + $0x68] sm:$0xff] %v6441_v7  ;;  %v6195_v36 = vpop.xlane.xlu1 %6194 }
 0xe3e   : > { %v6212_v37 = vmul.f32 0.0078125, %v6195_v36 }
 0xe40   : > { %v6228_v60 = vadd.f32 1e-05, %v6212_v37 }
 0xe42   : > { %8426 = vrsqrt.f32 %v6228_v60  ;;  %vm6376_vm14 = vweird.f32 %v6228_v60 }
 0xe45   : > { %v6197_v56 = vpop.xlane.xlu2 %6196 }
 0xe46   : > { %v6213_v63 = vmul.f32 0.0078125, %v6197_v56 }
 0xe48   : > { %v8427_v11 = vpop.eup %8426  ;;  %v6229_v4 = vadd.f32 1e-05, %v6213_v63 }
 0xe49   : > { %v6371_v33 = vmul.f32 %v8427_v11, %v6228_v60  ;;  %vm6377_vm13 = vweird.f32 %v8427_v11 }
 0xe4a   : > { %8428 = vrsqrt.f32 %v6229_v4  ;;  %vm6378_vm15 = vmor %vm6376_vm14, %vm6377_vm13  ;;  %vm6386_vm1 = vweird.f32 %v6229_v4 }
 0xe4b   : > { %v6372_v55 = vmul.f32 %v8427_v11, %v6371_v33 }
 0xe4d   : > { %v6373_v42 = vmul.f32 0.5, %v6372_v55 }
 0xe4f   : > { %v6374_v45 = vsub.f32 1.5, %v6373_v42 }
 0xe50   : > { %v8429_v5 = vpop.eup %8428 }
 0xe51   : > { %v6375_v38 = vmul.f32 %v8427_v11, %v6374_v45  ;;  %v6381_v30 = vmul.f32 %v8429_v5, %v6229_v4  ;;  %vm6387_vm0 = vweird.f32 %v8429_v5 }
 0xe52   : > { %vm6388_vm2 = vmor %vm6386_vm1, %vm6387_vm0 }
 0xe53   : > { %v6379_v26 = vsel %vm6378_vm15, %v8427_v11, %v6375_v38  ;;  %v6382_v53 = vmul.f32 %v8429_v5, %v6381_v30 }
 0xe54   : > { %v6404_v46 = vmul.f32 %v6379_v26, %v12073_v14 }
 0xe55   : > { %v6383_v12 = vmul.f32 0.5, %v6382_v53 }
 0xe56   : > { %v6423_v50 = vmul.f32 %v12064_v57, %v6404_v46 }
 0xe57   : > { %v6384_v18 = vsub.f32 1.5, %v6383_v12 }
 0xe58   : > { %v6442_v34 = vadd.f32 %v12069_v41, %v6423_v50 }
 0xe59   : > { %v6385_v13 = vmul.f32 %v8429_v5, %v6384_v18 }
 0xe5a   : > { %6458 = vst [vmem:[%s9297_s30 + $0x70] sm:$0xff] %v6442_v34 }
 0xe5b   : > { %v6389_v14 = vsel %vm6388_vm2, %v8429_v5, %v6385_v13 }
 0xe5c   : > { %v6405_v44 = vmul.f32 %v6389_v14, %v12082_v58 }
 0xe5e   : > { %v6424_v15 = vmul.f32 %v12064_v57, %v6405_v44 }
 0xe60   : > { %v6443_v10 = vadd.f32 %v12069_v41, %v6424_v15 }
 0xe62   : > { %6459 = vst [vmem:[%s9297_s30 + $0x78] sm:$0xff] %v6443_v10 }
 0xe63   : > { %8783 = shalt.err (!%p8780_p3)
}
 0xe64   : > { %s8913_s30 = smov 128   ;;  %s8914_s14 = smov 8  }
 0xe65   : > { %7803 = dma.vmem_to_hbm [thread:$0]  (%p9213_p8), %s6481_s5, 2048, %s6483_s6, %s6461_s8, %s8913_s30, %s8913_s30, %s8914_s14  }
 0xe66   : > { %s6466_s11 = scalar_lea.sflag [#allocation21], %s9264_s22 }
 0xe67   : > { %s7550_s26 = sshll.u32 %s12585_s19, 5  ;;  %s7416_s16 = sshll.u32 %s12586_s3, 8 }
 0xe68   : > { %s6497_s15 = sadd.s32 %s7550_s26, %s7416_s16  ;;  %s6510_s20 = sshll.u32 %s9299_s1, 4  ;;  %s6511_s20 = int_to_ptr.vmem [resolvable:$true] %s6510_s20 }
 0xe69   : > { %s7417_s17 = sshll.u32 %s6497_s15, 2  ;;  %s12589_s29 = sld [smem:[#allocation110_spill]] }
 0xe6a   : > { %s8915_s6 = smov 2048   ;;  %s8916_s8 = smov 4096  }
 0xe6b   : > { %7804 = sst [smem:[#allocation23]] (%p9213_p8), %s8915_s6  ;;  %s8917_s19 = smov 16  }
 0xe6c   : > { %7805 = sst [smem:[#allocation23 + $0x1]] (%p9213_p8), %s8916_s8  ;;  %s8918_s1 = smov 128  }
 0xe6d   : > { %7806 = sst [smem:[#allocation23 + $0x2]] (%p9213_p8), %s8917_s19  ;;  %s8919_s3 = smov 8  }
 0xe6e   : > { %7807 = sst [smem:[#allocation23 + $0x3]] (%p9213_p8), %s8918_s1  ;;  %s8920_s18 = smov [#allocation22]  }
 0xe6f   : > { %s6499_s5 = scalar_lea.hbm %s12589_s29, %s7417_s17  ;;  %7808 = sst [smem:[#allocation23 + $0x4]] (%p9213_p8), %s8918_s1 }
 0xe70   : > { %s6512_s22 = sshll.u32 %s6499_s5, 4  ;;  %7809 = sst [smem:[#allocation23 + $0x5]] (%p9213_p8), %s8919_s3  ;;  %s6513_s22 = int_to_ptr.hbm [resolvable:$true] %s6512_s22 }
 0xe71   : > { %s8921_s9 = smov 0  }
 0xe72   : > { %7810 = dma.general (%p9213_p8), %s6511_s20, 8192, %s6513_s22, %s6466_s11, %s8920_s18, [#allocation23], %s8921_s9, 0  }
 0xe73 PF: > { %s12590_s7 = sld [smem:[#allocation32_spill]]  ;;  %p7862_p9 = scmp.ge.s32.totalorder %s8898_s4, 2 }
 0xe75   : > { %p7843_p12 = pnand %p7862_p9, %p9219_p13 }
 0xe77   : > { %p7844_p4 = pneg %p7843_p12 }
 0xe79   : > { %s6540_s30 = sand.u32 1, %s12590_s7  }
 0xe7a   : > { %s6541_s14 = scalar_lea.sflag [#allocation6], %s6540_s30 }
 0xe7b   : > { %8849 = dma.done.wait (%p7844_p4), %s6541_s14, 2048  }
 0xe7c   : > { %8851 = vsyncadd (%p7844_p4), %s6541_s14, 4294965248  ;;  %s6551_s26 = scalar_lea.sflag [#allocation21], %s6540_s30 }
 0xe7d   : > { %8853 = dma.done.wait (%p7844_p4), %s6551_s26, 8192  }
 0xe7e   : > { %8855 = vsyncadd (%p7844_p4), %s6551_s26, 4294959104  ;;  %s46_s4 = sadd.s32 1, %s8898_s4   ;;  %s12592_s1 = sld [smem:[#allocation31_spill]] }
 0xe7f   : > { %p43_p5 = scmp.ge.s32.totalorder %s46_s4, 6   ;;  %s12593_s0 = sld [smem:[#allocation42_spill]] }
 0xe80   : > { %s12594_s11 = sld [smem:[#allocation37_spill]]  ;;  %s12596_s22 = smov %s8866_s23 }
 0xe81   : > { %s12595_s16 = sld [smem:[#allocation40_spill]]  ;;  %s12598_s24 = smov %s8874_s2 }
 0xe82   : > { %s12599_s2 = smov %s8878_s25  ;;  %s12600_s25 = smov %s9238_s13 }
 0xe83   : > { %s12601_s3 = smov %s8890_s27  ;;  %s12602_s26 = smov %s8894_s28 }
 0xe84   :  { %45 = sbr.rel (!%p43_p5) target bundleno = 38 (0x26), region = 218 }
 0xe85   : > { %s12597_s23 = smov %s12593_s0 }
 0xe86   : > { %s12603_s27 = smov %s12594_s11 }
 0xe87   : > { %s12604_s28 = smov %s12595_s16 }
 0xe89   :  { %6557 = vsyncpa [#allocation5], 1 }
 0xe8a   :  { %6559 = vsyncpa [#allocation5 + $0x1], 1 }
 0xe8b   :  { %6560 = vsyncpa [#allocation8], 1 }
 0xe8c   :  { %6562 = vsyncpa [#allocation8 + $0x1], 1 }
 0xe8d   :  { %6563 = vsyncpa [#allocation11], 1 }
 0xe8e   :  { %6564 = vsyncpa [#allocation14], 1 }
 0xe8f   :  { %6565 = vsyncpa [#allocation17], 1 }
 0xe90   :  { %6566 = vsyncpa [#allocation6], 1 }
 0xe91   :  { %6568 = vsyncpa [#allocation6 + $0x1], 1 }
 0xe92   :  { %6569 = vsyncpa [#allocation21], 1 }
 0xe93   :  { %6571 = vsyncpa [#allocation21 + $0x1], 1 }

</bundles_post_ra>
